<compile_context>
chip_gen: v6e
topology: v6e:2x2x1
jax: 0.10.0
libtpu: 0.0.40
codegen_flags: <defaults>
</compile_context>

<pallas_src>
import functools

import jax
import jax.numpy as jnp
from jax.experimental import pallas as pl
from jax.experimental.pallas import tpu as pltpu

EPS = 1e-5


def _round_up(x, m):
    return (x + m - 1) // m * m


def _pick_vmem_limit():
    # ~70% of physical VMEM, capped: ~45 MiB on v7x (64 MiB/TC), ~90-100 MiB on v5e/v6e (128 MiB).
    try:
        cap = getattr(pltpu.get_tpu_info(), "vmem_capacity_bytes", None)
        if cap:
            return int(min(100 * 2**20, cap * 7 // 10))
    except Exception:
        pass
    return 32 * 2**20


_VMEM_LIMIT = _pick_vmem_limit()


# ----------------------------- kernels ---------------------------------------


def _conv_taps(x_ref, w_ref, *, kh, kw, stride, ho, wo, cinp):
    """Implicit-im2col conv for one image tile.

    x_ref: (1, Hp, Wp, Cinp) padded NHWC image block (compute dtype)
    w_ref: (kh*kw, Cinp, Coutp) per-tap weight slabs (compute dtype)
    returns f32 (Ho*Wo, Coutp) accumulator.
    """
    acc = None
    for t in range(kh * kw):
        i, j = divmod(t, kw)
        if stride == 1:
            win = x_ref[0, i:i + ho, j:j + wo, :]
        else:
            win = x_ref[0, pl.ds(i, ho, stride=stride), pl.ds(j, wo, stride=stride), :]
        p = jnp.dot(win.reshape(ho * wo, cinp), w_ref[t],
                    preferred_element_type=jnp.float32)
        acc = p if acc is None else acc + p
    return acc


def _stats_kernel(x_ref, w_ref, stats_ref, *, kh, kw, stride, ho, wo, cinp):
    """Pass 1: per-image mean-shifted partial stats (no conv writeback).

    stats block: (1, 8, Coutp) f32 -- row 0 = sum(conv), row 1 = sum((conv - tile_mean)^2).
    Rows 2..7 are never read (left unwritten on purpose).
    """
    acc = _conv_taps(x_ref, w_ref, kh=kh, kw=kw, stride=stride, ho=ho, wo=wo, cinp=cinp)
    mt = float(ho * wo)
    s = jnp.sum(acc, axis=0, keepdims=True)              # (1, Coutp)
    mu = s * (1.0 / mt)
    d = acc - mu
    ssd = jnp.sum(d * d, axis=0, keepdims=True)          # (1, Coutp)
    stats_ref[0, 0:1, :] = s
    stats_ref[0, 1:2, :] = ssd


def _fused_kernel(x_ref, w_ref, scale_ref, offset_ref, out_ref,
                  *, kh, kw, stride, ho, wo, cinp, cout):
    """Pass 2: recompute conv, apply folded BN (FMA) + ReLU, write final NHWC (true cout)."""
    acc = _conv_taps(x_ref, w_ref, kh=kh, kw=kw, stride=stride, ho=ho, wo=wo, cinp=cinp)
    y = jnp.maximum(acc * scale_ref[...] + offset_ref[...], 0.0)
    y = y.reshape(ho, wo, -1)[:, :, :cout]
    out_ref[0] = y.astype(out_ref.dtype)


# ----------------------------- wrapper ----------------------------------------


@functools.partial(jax.jit, static_argnames=("stride", "padding", "compute_dtype"))
def conv_bn_relu(x_nchw, w_oihw, gamma, beta, *, stride=1, padding=0,
                 compute_dtype=jnp.bfloat16):
    """Forward pass equivalent to ConvBnRelu(..., bias=False) in training mode.

    x_nchw: (N, Cin, H, W) f32      w_oihw: (Cout, Cin, KH, KW) f32
    gamma, beta: (Cout,) f32        returns (N, Cout, Hout, Wout) f32
    """
    n, cin, h, w = x_nchw.shape
    cout, _, kh, kw = w_oihw.shape
    ho = (h + 2 * padding - kh) // stride + 1
    wo = (w + 2 * padding - kw) // stride + 1

    k_align = 16 if compute_dtype == jnp.bfloat16 else 8
    cinp = _round_up(cin, k_align)
    coutp = _round_up(cout, 128)

    # Glue (single XLA pass over the small input): NCHW -> NHWC, spatial zero-pad,
    # channel pad to the MXU contraction alignment, cast to the MXU compute dtype.
    x_nhwc = jnp.transpose(x_nchw, (0, 2, 3, 1))
    xp = jnp.pad(x_nhwc, ((0, 0), (padding, padding), (padding, padding),
                          (0, cinp - cin))).astype(compute_dtype)
    hp, wp = xp.shape[1], xp.shape[2]

    # Weights: (Cout, Cin, KH, KW) -> per-tap (KH*KW, Cinp, Coutp), zero-padded.
    w_taps = jnp.transpose(w_oihw, (2, 3, 1, 0)).reshape(kh * kw, cin, cout)
    w_p = jnp.zeros((kh * kw, cinp, coutp), compute_dtype).at[:, :cin, :cout].set(
        w_taps.astype(compute_dtype))

    cparams = pltpu.CompilerParams(dimension_semantics=("parallel",),
                                   vmem_limit_bytes=_VMEM_LIMIT)

    x_spec = pl.BlockSpec((1, hp, wp, cinp), lambda b: (b, 0, 0, 0))
    w_spec = pl.BlockSpec((kh * kw, cinp, coutp), lambda b: (0, 0, 0))

    # ---- Pass 1: per-image partial BN statistics (no conv intermediate in HBM) -----
    stats = pl.pallas_call(
        functools.partial(_stats_kernel, kh=kh, kw=kw, stride=stride,
                          ho=ho, wo=wo, cinp=cinp),
        out_shape=jax.ShapeDtypeStruct((n, 8, coutp), jnp.float32),
        grid=(n,),
        in_specs=[x_spec, w_spec],
        out_specs=pl.BlockSpec((1, 8, coutp), lambda b: (b, 0, 0)),
        compiler_params=cparams,
    )(xp, w_p)

    # ---- Finalize BN statistics: Chan merge of mean-shifted partials (f32) ---------
    mt = float(ho * wo)
    m_total = float(n * ho * wo)
    s_n = stats[:, 0, :]                                   # (N, Coutp)
    ssd_n = stats[:, 1, :]                                  # (N, Coutp)
    mean = jnp.sum(s_n, axis=0) / m_total                   # (Coutp,)
    mu_n = s_n / mt
    ss = jnp.sum(ssd_n, axis=0) + mt * jnp.sum((mu_n - mean[None, :]) ** 2, axis=0)
    var = jnp.maximum(ss / m_total, 0.0)                    # biased var (training-mode BN)
    inv_std = jax.lax.rsqrt(var + EPS)
    gamma_p = jnp.zeros((coutp,), jnp.float32).at[:cout].set(gamma.astype(jnp.float32))
    beta_p = jnp.zeros((coutp,), jnp.float32).at[:cout].set(beta.astype(jnp.float32))
    scale = (gamma_p * inv_std).reshape(1, coutp)
    offset = (beta_p - mean * gamma_p * inv_std).reshape(1, coutp)

    # ---- Pass 2: recompute conv, fused BN + ReLU, final NHWC (true cout) write ------
    out_nhwc = pl.pallas_call(
        functools.partial(_fused_kernel, kh=kh, kw=kw, stride=stride,
                          ho=ho, wo=wo, cinp=cinp, cout=cout),
        out_shape=jax.ShapeDtypeStruct((n, ho, wo, cout), jnp.float32),
        grid=(n,),
        in_specs=[x_spec, w_spec,
                  pl.BlockSpec((1, coutp), lambda b: (0, 0)),
                  pl.BlockSpec((1, coutp), lambda b: (0, 0))],
        out_specs=pl.BlockSpec((1, ho, wo, cout), lambda b: (b, 0, 0, 0)),
        compiler_params=cparams,
    )(xp, w_p, scale, offset)

    return jnp.transpose(out_nhwc, (0, 3, 1, 2))


# ----------------------------- reference & test --------------------------------


def _reference(x_nchw, w_oihw, gamma, beta, *, stride, padding):
    conv = jax.lax.conv_general_dilated(
        x_nchw, w_oihw, window_strides=(stride, stride),
        padding=((padding, padding), (padding, padding)),
        dimension_numbers=("NCHW", "OIHW", "NCHW"))
    mean = conv.mean(axis=(0, 2, 3), keepdims=True)
    var = conv.var(axis=(0, 2, 3), keepdims=True)   # biased, matches BN training mode
    y = (conv - mean) / jnp.sqrt(var + EPS)
    y = y * gamma.reshape(1, -1, 1, 1) + beta.reshape(1, -1, 1, 1)
    return jnp.maximum(y, 0.0)


if __name__ == "__main__":
    key = jax.random.PRNGKey(0)
    k_x, k_w, k_g, k_b = jax.random.split(key, 4)

    # ConvBnRelu(in_channels=4, out_channels=8, kernel_size=3, stride=1, padding=1, bias=False)
    N, Cin, H, W = 2, 4, 16, 16
    Cout, K = 8, 3
    stride, padding = 1, 1

    x = jax.random.normal(k_x, (N, Cin, H, W), dtype=jnp.float32)
    w = jax.random.normal(k_w, (Cout, Cin, K, K), dtype=jnp.float32) * 0.1
    gamma = 1.0 + 0.1 * jax.random.normal(k_g, (Cout,), dtype=jnp.float32)
    beta = 0.1 * jax.random.normal(k_b, (Cout,), dtype=jnp.float32)

    ref = _reference(x, w, gamma, beta, stride=stride, padding=padding)

    # Default bf16 MXU operand path (v5e/v6e/v7x fast path), f32 accumulation/stats.
    out_bf16 = conv_bn_relu(x, w, gamma, beta, stride=stride, padding=padding)
    out_bf16 = jax.block_until_ready(out_bf16)
    assert out_bf16.shape == (N, Cout, H, W), out_bf16.shape
    assert jnp.allclose(out_bf16, ref, atol=5e-2, rtol=5e-2), \
        float(jnp.max(jnp.abs(out_bf16 - ref)))

    # f32 operand path: tight tolerance check.
    out_f32 = conv_bn_relu(x, w, gamma, beta, stride=stride, padding=padding,
                           compute_dtype=jnp.float32)
    out_f32 = jax.block_until_ready(out_f32)
    assert jnp.allclose(out_f32, ref, atol=1e-4, rtol=1e-4), \
        float(jnp.max(jnp.abs(out_f32 - ref)))

    print("KERNEL_OK")
</pallas_src>

<mosaic_0001>
module attributes {stable_mosaic.version = 11 : i64} {
  func.func @_stats_kernel(%arg0: i32, %arg1: memref<1x18x18x16xbf16, #tpu.memory_space<vmem>>, %arg2: memref<9x16x128xbf16, #tpu.memory_space<vmem>>, %arg3: memref<1x8x128xf32, #tpu.memory_space<vmem>>) attributes {dimension_semantics = [#tpu.dimension_semantics<parallel>], iteration_bounds = array<i64: 2>, scalar_prefetch = 0 : i64, scratch_operands = 0 : i64, tpu.core_type = #tpu.core_type<tc>, window_params = [{transform_indices = @transform_0, window_bounds = array<i64: 1, 18, 18, 16>}, {pipeline_mode = #tpu.pipeline_mode<synchronous>, transform_indices = @transform_1, window_bounds = array<i64: 9, 16, 128>}, {transform_indices = @transform_2, window_bounds = array<i64: 1, 8, 128>}]} {
    %c0 = arith.constant 0 : index
    %c0_0 = arith.constant 0 : index
    %c0_1 = arith.constant 0 : index
    %c0_2 = arith.constant 0 : index
    %0 = vector.load %arg1[%c0, %c0_0, %c0_1, %c0_2] : memref<1x18x18x16xbf16, #tpu.memory_space<vmem>>, vector<1x16x16x16xbf16>
    %1 = vector.shape_cast %0 : vector<1x16x16x16xbf16> to vector<16x16x16xbf16>
    %2 = vector.shape_cast %1 : vector<16x16x16xbf16> to vector<256x16xbf16>
    %c0_3 = arith.constant 0 : index
    %c0_4 = arith.constant 0 : index
    %c0_5 = arith.constant 0 : index
    %3 = vector.load %arg2[%c0_3, %c0_4, %c0_5] : memref<9x16x128xbf16, #tpu.memory_space<vmem>>, vector<1x16x128xbf16>
    %4 = vector.shape_cast %3 : vector<1x16x128xbf16> to vector<16x128xbf16>
    %cst = arith.constant dense<0.000000e+00> : vector<256x128xf32>
    %5 = tpu.matmul %2, %4, %cst {dimension_numbers = #tpu.dot_dimension_numbers<[1], [0], [0], [1], [0, 0, 1, 1], [], []>} : vector<256x16xbf16>, vector<16x128xbf16>, vector<256x128xf32> -> vector<256x128xf32>
    %c0_6 = arith.constant 0 : index
    %c0_7 = arith.constant 0 : index
    %c1 = arith.constant 1 : index
    %c0_8 = arith.constant 0 : index
    %6 = vector.load %arg1[%c0_6, %c0_7, %c1, %c0_8] : memref<1x18x18x16xbf16, #tpu.memory_space<vmem>>, vector<1x16x16x16xbf16>
    %7 = vector.shape_cast %6 : vector<1x16x16x16xbf16> to vector<16x16x16xbf16>
    %8 = vector.shape_cast %7 : vector<16x16x16xbf16> to vector<256x16xbf16>
    %c1_9 = arith.constant 1 : index
    %c0_10 = arith.constant 0 : index
    %c0_11 = arith.constant 0 : index
    %9 = vector.load %arg2[%c1_9, %c0_10, %c0_11] : memref<9x16x128xbf16, #tpu.memory_space<vmem>>, vector<1x16x128xbf16>
    %10 = vector.shape_cast %9 : vector<1x16x128xbf16> to vector<16x128xbf16>
    %cst_12 = arith.constant dense<0.000000e+00> : vector<256x128xf32>
    %11 = tpu.matmul %8, %10, %cst_12 {dimension_numbers = #tpu.dot_dimension_numbers<[1], [0], [0], [1], [0, 0, 1, 1], [], []>} : vector<256x16xbf16>, vector<16x128xbf16>, vector<256x128xf32> -> vector<256x128xf32>
    %12 = arith.addf %5, %11 : vector<256x128xf32>
    %c0_13 = arith.constant 0 : index
    %c0_14 = arith.constant 0 : index
    %c2 = arith.constant 2 : index
    %c0_15 = arith.constant 0 : index
    %13 = vector.load %arg1[%c0_13, %c0_14, %c2, %c0_15] : memref<1x18x18x16xbf16, #tpu.memory_space<vmem>>, vector<1x16x16x16xbf16>
    %14 = vector.shape_cast %13 : vector<1x16x16x16xbf16> to vector<16x16x16xbf16>
    %15 = vector.shape_cast %14 : vector<16x16x16xbf16> to vector<256x16xbf16>
    %c2_16 = arith.constant 2 : index
    %c0_17 = arith.constant 0 : index
    %c0_18 = arith.constant 0 : index
    %16 = vector.load %arg2[%c2_16, %c0_17, %c0_18] : memref<9x16x128xbf16, #tpu.memory_space<vmem>>, vector<1x16x128xbf16>
    %17 = vector.shape_cast %16 : vector<1x16x128xbf16> to vector<16x128xbf16>
    %cst_19 = arith.constant dense<0.000000e+00> : vector<256x128xf32>
    %18 = tpu.matmul %15, %17, %cst_19 {dimension_numbers = #tpu.dot_dimension_numbers<[1], [0], [0], [1], [0, 0, 1, 1], [], []>} : vector<256x16xbf16>, vector<16x128xbf16>, vector<256x128xf32> -> vector<256x128xf32>
    %19 = arith.addf %12, %18 : vector<256x128xf32>
    %c0_20 = arith.constant 0 : index
    %c1_21 = arith.constant 1 : index
    %c0_22 = arith.constant 0 : index
    %c0_23 = arith.constant 0 : index
    %20 = vector.load %arg1[%c0_20, %c1_21, %c0_22, %c0_23] : memref<1x18x18x16xbf16, #tpu.memory_space<vmem>>, vector<1x16x16x16xbf16>
    %21 = vector.shape_cast %20 : vector<1x16x16x16xbf16> to vector<16x16x16xbf16>
    %22 = vector.shape_cast %21 : vector<16x16x16xbf16> to vector<256x16xbf16>
    %c3 = arith.constant 3 : index
    %c0_24 = arith.constant 0 : index
    %c0_25 = arith.constant 0 : index
    %23 = vector.load %arg2[%c3, %c0_24, %c0_25] : memref<9x16x128xbf16, #tpu.memory_space<vmem>>, vector<1x16x128xbf16>
    %24 = vector.shape_cast %23 : vector<1x16x128xbf16> to vector<16x128xbf16>
    %cst_26 = arith.constant dense<0.000000e+00> : vector<256x128xf32>
    %25 = tpu.matmul %22, %24, %cst_26 {dimension_numbers = #tpu.dot_dimension_numbers<[1], [0], [0], [1], [0, 0, 1, 1], [], []>} : vector<256x16xbf16>, vector<16x128xbf16>, vector<256x128xf32> -> vector<256x128xf32>
    %26 = arith.addf %19, %25 : vector<256x128xf32>
    %c0_27 = arith.constant 0 : index
    %c1_28 = arith.constant 1 : index
    %c1_29 = arith.constant 1 : index
    %c0_30 = arith.constant 0 : index
    %27 = vector.load %arg1[%c0_27, %c1_28, %c1_29, %c0_30] : memref<1x18x18x16xbf16, #tpu.memory_space<vmem>>, vector<1x16x16x16xbf16>
    %28 = vector.shape_cast %27 : vector<1x16x16x16xbf16> to vector<16x16x16xbf16>
    %29 = vector.shape_cast %28 : vector<16x16x16xbf16> to vector<256x16xbf16>
    %c4 = arith.constant 4 : index
    %c0_31 = arith.constant 0 : index
    %c0_32 = arith.constant 0 : index
    %30 = vector.load %arg2[%c4, %c0_31, %c0_32] : memref<9x16x128xbf16, #tpu.memory_space<vmem>>, vector<1x16x128xbf16>
    %31 = vector.shape_cast %30 : vector<1x16x128xbf16> to vector<16x128xbf16>
    %cst_33 = arith.constant dense<0.000000e+00> : vector<256x128xf32>
    %32 = tpu.matmul %29, %31, %cst_33 {dimension_numbers = #tpu.dot_dimension_numbers<[1], [0], [0], [1], [0, 0, 1, 1], [], []>} : vector<256x16xbf16>, vector<16x128xbf16>, vector<256x128xf32> -> vector<256x128xf32>
    %33 = arith.addf %26, %32 : vector<256x128xf32>
    %c0_34 = arith.constant 0 : index
    %c1_35 = arith.constant 1 : index
    %c2_36 = arith.constant 2 : index
    %c0_37 = arith.constant 0 : index
    %34 = vector.load %arg1[%c0_34, %c1_35, %c2_36, %c0_37] : memref<1x18x18x16xbf16, #tpu.memory_space<vmem>>, vector<1x16x16x16xbf16>
    %35 = vector.shape_cast %34 : vector<1x16x16x16xbf16> to vector<16x16x16xbf16>
    %36 = vector.shape_cast %35 : vector<16x16x16xbf16> to vector<256x16xbf16>
    %c5 = arith.constant 5 : index
    %c0_38 = arith.constant 0 : index
    %c0_39 = arith.constant 0 : index
    %37 = vector.load %arg2[%c5, %c0_38, %c0_39] : memref<9x16x128xbf16, #tpu.memory_space<vmem>>, vector<1x16x128xbf16>
    %38 = vector.shape_cast %37 : vector<1x16x128xbf16> to vector<16x128xbf16>
    %cst_40 = arith.constant dense<0.000000e+00> : vector<256x128xf32>
    %39 = tpu.matmul %36, %38, %cst_40 {dimension_numbers = #tpu.dot_dimension_numbers<[1], [0], [0], [1], [0, 0, 1, 1], [], []>} : vector<256x16xbf16>, vector<16x128xbf16>, vector<256x128xf32> -> vector<256x128xf32>
    %40 = arith.addf %33, %39 : vector<256x128xf32>
    %c0_41 = arith.constant 0 : index
    %c2_42 = arith.constant 2 : index
    %c0_43 = arith.constant 0 : index
    %c0_44 = arith.constant 0 : index
    %41 = vector.load %arg1[%c0_41, %c2_42, %c0_43, %c0_44] : memref<1x18x18x16xbf16, #tpu.memory_space<vmem>>, vector<1x16x16x16xbf16>
    %42 = vector.shape_cast %41 : vector<1x16x16x16xbf16> to vector<16x16x16xbf16>
    %43 = vector.shape_cast %42 : vector<16x16x16xbf16> to vector<256x16xbf16>
    %c6 = arith.constant 6 : index
    %c0_45 = arith.constant 0 : index
    %c0_46 = arith.constant 0 : index
    %44 = vector.load %arg2[%c6, %c0_45, %c0_46] : memref<9x16x128xbf16, #tpu.memory_space<vmem>>, vector<1x16x128xbf16>
    %45 = vector.shape_cast %44 : vector<1x16x128xbf16> to vector<16x128xbf16>
    %cst_47 = arith.constant dense<0.000000e+00> : vector<256x128xf32>
    %46 = tpu.matmul %43, %45, %cst_47 {dimension_numbers = #tpu.dot_dimension_numbers<[1], [0], [0], [1], [0, 0, 1, 1], [], []>} : vector<256x16xbf16>, vector<16x128xbf16>, vector<256x128xf32> -> vector<256x128xf32>
    %47 = arith.addf %40, %46 : vector<256x128xf32>
    %c0_48 = arith.constant 0 : index
    %c2_49 = arith.constant 2 : index
    %c1_50 = arith.constant 1 : index
    %c0_51 = arith.constant 0 : index
    %48 = vector.load %arg1[%c0_48, %c2_49, %c1_50, %c0_51] : memref<1x18x18x16xbf16, #tpu.memory_space<vmem>>, vector<1x16x16x16xbf16>
    %49 = vector.shape_cast %48 : vector<1x16x16x16xbf16> to vector<16x16x16xbf16>
    %50 = vector.shape_cast %49 : vector<16x16x16xbf16> to vector<256x16xbf16>
    %c7 = arith.constant 7 : index
    %c0_52 = arith.constant 0 : index
    %c0_53 = arith.constant 0 : index
    %51 = vector.load %arg2[%c7, %c0_52, %c0_53] : memref<9x16x128xbf16, #tpu.memory_space<vmem>>, vector<1x16x128xbf16>
    %52 = vector.shape_cast %51 : vector<1x16x128xbf16> to vector<16x128xbf16>
    %cst_54 = arith.constant dense<0.000000e+00> : vector<256x128xf32>
    %53 = tpu.matmul %50, %52, %cst_54 {dimension_numbers = #tpu.dot_dimension_numbers<[1], [0], [0], [1], [0, 0, 1, 1], [], []>} : vector<256x16xbf16>, vector<16x128xbf16>, vector<256x128xf32> -> vector<256x128xf32>
    %54 = arith.addf %47, %53 : vector<256x128xf32>
    %c0_55 = arith.constant 0 : index
    %c2_56 = arith.constant 2 : index
    %c2_57 = arith.constant 2 : index
    %c0_58 = arith.constant 0 : index
    %55 = vector.load %arg1[%c0_55, %c2_56, %c2_57, %c0_58] : memref<1x18x18x16xbf16, #tpu.memory_space<vmem>>, vector<1x16x16x16xbf16>
    %56 = vector.shape_cast %55 : vector<1x16x16x16xbf16> to vector<16x16x16xbf16>
    %57 = vector.shape_cast %56 : vector<16x16x16xbf16> to vector<256x16xbf16>
    %c8 = arith.constant 8 : index
    %c0_59 = arith.constant 0 : index
    %c0_60 = arith.constant 0 : index
    %58 = vector.load %arg2[%c8, %c0_59, %c0_60] : memref<9x16x128xbf16, #tpu.memory_space<vmem>>, vector<1x16x128xbf16>
    %59 = vector.shape_cast %58 : vector<1x16x128xbf16> to vector<16x128xbf16>
    %cst_61 = arith.constant dense<0.000000e+00> : vector<256x128xf32>
    %60 = tpu.matmul %57, %59, %cst_61 {dimension_numbers = #tpu.dot_dimension_numbers<[1], [0], [0], [1], [0, 0, 1, 1], [], []>} : vector<256x16xbf16>, vector<16x128xbf16>, vector<256x128xf32> -> vector<256x128xf32>
    %61 = arith.addf %54, %60 : vector<256x128xf32>
    %cst_62 = arith.constant dense<0.000000e+00> : vector<128xf32>
    %62 = vector.multi_reduction <add>, %61, %cst_62 [0] : vector<256x128xf32> to vector<128xf32>
    %63 = vector.shape_cast %62 : vector<128xf32> to vector<1x128xf32>
    %cst_63 = arith.constant 3.906250e-03 : f32
    %64 = vector.broadcast %cst_63 : f32 to vector<1x128xf32>
    %65 = arith.mulf %63, %64 : vector<1x128xf32>
    %66 = vector.broadcast %65 : vector<1x128xf32> to vector<256x128xf32>
    %67 = arith.subf %61, %66 : vector<256x128xf32>
    %68 = arith.mulf %67, %67 : vector<256x128xf32>
    %cst_64 = arith.constant dense<0.000000e+00> : vector<128xf32>
    %69 = vector.multi_reduction <add>, %68, %cst_64 [0] : vector<256x128xf32> to vector<128xf32>
    %70 = vector.shape_cast %69 : vector<128xf32> to vector<1x128xf32>
    %c0_65 = arith.constant 0 : index
    %c0_66 = arith.constant 0 : index
    %c0_67 = arith.constant 0 : index
    %71 = vector.load %arg3[%c0_65, %c0_66, %c0_67] : memref<1x8x128xf32, #tpu.memory_space<vmem>>, vector<1x1x128xf32>
    %72 = vector.shape_cast %71 : vector<1x1x128xf32> to vector<1x128xf32>
    %73 = vector.shape_cast %63 : vector<1x128xf32> to vector<1x1x128xf32>
    tpu.vector_store %arg3[%c0_65, %c0_66, %c0_67], %73 {strides = array<i32>} : memref<1x8x128xf32, #tpu.memory_space<vmem>>, vector<1x1x128xf32>,
    %c0_68 = arith.constant 0 : index
    %c1_69 = arith.constant 1 : index
    %c0_70 = arith.constant 0 : index
    %74 = vector.load %arg3[%c0_68, %c1_69, %c0_70] : memref<1x8x128xf32, #tpu.memory_space<vmem>>, vector<1x1x128xf32>
    %75 = vector.shape_cast %74 : vector<1x1x128xf32> to vector<1x128xf32>
    %76 = vector.shape_cast %70 : vector<1x128xf32> to vector<1x1x128xf32>
    tpu.vector_store %arg3[%c0_68, %c1_69, %c0_70], %76 {strides = array<i32>} : memref<1x8x128xf32, #tpu.memory_space<vmem>>, vector<1x1x128xf32>,
    return
  }
  func.func @transform_0(%arg0: i32) -> (i32, i32, i32, i32) {
    %c0_i32 = arith.constant 0 : i32
    %c0_i32_0 = arith.constant 0 : i32
    %c0_i32_1 = arith.constant 0 : i32
    %c0_i32_2 = arith.constant 0 : i32
    return %arg0, %c0_i32, %c0_i32_0, %c0_i32_1 : i32, i32, i32, i32
  }
  func.func @transform_1(%arg0: i32) -> (i32, i32, i32) {
    %c0_i32 = arith.constant 0 : i32
    %c0_i32_0 = arith.constant 0 : i32
    %c0_i32_1 = arith.constant 0 : i32
    %c0_i32_2 = arith.constant 0 : i32
    return %c0_i32, %c0_i32_0, %c0_i32_1 : i32, i32, i32
  }
  func.func @transform_2(%arg0: i32) -> (i32, i32, i32) {
    %c0_i32 = arith.constant 0 : i32
    %c0_i32_0 = arith.constant 0 : i32
    %c0_i32_1 = arith.constant 0 : i32
    return %arg0, %c0_i32, %c0_i32_0 : i32, i32, i32
  }
}

module attributes {stable_mosaic.version = 11 : i64} {
  func.func @_fused_kernel(%arg0: i32, %arg1: memref<1x18x18x16xbf16, #tpu.memory_space<vmem>>, %arg2: memref<9x16x128xbf16, #tpu.memory_space<vmem>>, %arg3: memref<1x128xf32, #tpu.memory_space<vmem>>, %arg4: memref<1x128xf32, #tpu.memory_space<vmem>>, %arg5: memref<1x16x16x8xf32, #tpu.memory_space<vmem>>) attributes {dimension_semantics = [#tpu.dimension_semantics<parallel>], iteration_bounds = array<i64: 2>, scalar_prefetch = 0 : i64, scratch_operands = 0 : i64, tpu.core_type = #tpu.core_type<tc>, window_params = [{transform_indices = @transform_0, window_bounds = array<i64: 1, 18, 18, 16>}, {pipeline_mode = #tpu.pipeline_mode<synchronous>, transform_indices = @transform_1, window_bounds = array<i64: 9, 16, 128>}, {pipeline_mode = #tpu.pipeline_mode<synchronous>, transform_indices = @transform_2, window_bounds = array<i64: 1, 128>}, {pipeline_mode = #tpu.pipeline_mode<synchronous>, transform_indices = @transform_3, window_bounds = array<i64: 1, 128>}, {transform_indices = @transform_4, window_bounds = array<i64: 1, 16, 16, 8>}]} {
    %c0 = arith.constant 0 : index
    %c0_0 = arith.constant 0 : index
    %c0_1 = arith.constant 0 : index
    %c0_2 = arith.constant 0 : index
    %0 = vector.load %arg1[%c0, %c0_0, %c0_1, %c0_2] : memref<1x18x18x16xbf16, #tpu.memory_space<vmem>>, vector<1x16x16x16xbf16>
    %1 = vector.shape_cast %0 : vector<1x16x16x16xbf16> to vector<16x16x16xbf16>
    %2 = vector.shape_cast %1 : vector<16x16x16xbf16> to vector<256x16xbf16>
    %c0_3 = arith.constant 0 : index
    %c0_4 = arith.constant 0 : index
    %c0_5 = arith.constant 0 : index
    %3 = vector.load %arg2[%c0_3, %c0_4, %c0_5] : memref<9x16x128xbf16, #tpu.memory_space<vmem>>, vector<1x16x128xbf16>
    %4 = vector.shape_cast %3 : vector<1x16x128xbf16> to vector<16x128xbf16>
    %cst = arith.constant dense<0.000000e+00> : vector<256x128xf32>
    %5 = tpu.matmul %2, %4, %cst {dimension_numbers = #tpu.dot_dimension_numbers<[1], [0], [0], [1], [0, 0, 1, 1], [], []>} : vector<256x16xbf16>, vector<16x128xbf16>, vector<256x128xf32> -> vector<256x128xf32>
    %c0_6 = arith.constant 0 : index
    %c0_7 = arith.constant 0 : index
    %c1 = arith.constant 1 : index
    %c0_8 = arith.constant 0 : index
    %6 = vector.load %arg1[%c0_6, %c0_7, %c1, %c0_8] : memref<1x18x18x16xbf16, #tpu.memory_space<vmem>>, vector<1x16x16x16xbf16>
    %7 = vector.shape_cast %6 : vector<1x16x16x16xbf16> to vector<16x16x16xbf16>
    %8 = vector.shape_cast %7 : vector<16x16x16xbf16> to vector<256x16xbf16>
    %c1_9 = arith.constant 1 : index
    %c0_10 = arith.constant 0 : index
    %c0_11 = arith.constant 0 : index
    %9 = vector.load %arg2[%c1_9, %c0_10, %c0_11] : memref<9x16x128xbf16, #tpu.memory_space<vmem>>, vector<1x16x128xbf16>
    %10 = vector.shape_cast %9 : vector<1x16x128xbf16> to vector<16x128xbf16>
    %cst_12 = arith.constant dense<0.000000e+00> : vector<256x128xf32>
    %11 = tpu.matmul %8, %10, %cst_12 {dimension_numbers = #tpu.dot_dimension_numbers<[1], [0], [0], [1], [0, 0, 1, 1], [], []>} : vector<256x16xbf16>, vector<16x128xbf16>, vector<256x128xf32> -> vector<256x128xf32>
    %12 = arith.addf %5, %11 : vector<256x128xf32>
    %c0_13 = arith.constant 0 : index
    %c0_14 = arith.constant 0 : index
    %c2 = arith.constant 2 : index
    %c0_15 = arith.constant 0 : index
    %13 = vector.load %arg1[%c0_13, %c0_14, %c2, %c0_15] : memref<1x18x18x16xbf16, #tpu.memory_space<vmem>>, vector<1x16x16x16xbf16>
    %14 = vector.shape_cast %13 : vector<1x16x16x16xbf16> to vector<16x16x16xbf16>
    %15 = vector.shape_cast %14 : vector<16x16x16xbf16> to vector<256x16xbf16>
    %c2_16 = arith.constant 2 : index
    %c0_17 = arith.constant 0 : index
    %c0_18 = arith.constant 0 : index
    %16 = vector.load %arg2[%c2_16, %c0_17, %c0_18] : memref<9x16x128xbf16, #tpu.memory_space<vmem>>, vector<1x16x128xbf16>
    %17 = vector.shape_cast %16 : vector<1x16x128xbf16> to vector<16x128xbf16>
    %cst_19 = arith.constant dense<0.000000e+00> : vector<256x128xf32>
    %18 = tpu.matmul %15, %17, %cst_19 {dimension_numbers = #tpu.dot_dimension_numbers<[1], [0], [0], [1], [0, 0, 1, 1], [], []>} : vector<256x16xbf16>, vector<16x128xbf16>, vector<256x128xf32> -> vector<256x128xf32>
    %19 = arith.addf %12, %18 : vector<256x128xf32>
    %c0_20 = arith.constant 0 : index
    %c1_21 = arith.constant 1 : index
    %c0_22 = arith.constant 0 : index
    %c0_23 = arith.constant 0 : index
    %20 = vector.load %arg1[%c0_20, %c1_21, %c0_22, %c0_23] : memref<1x18x18x16xbf16, #tpu.memory_space<vmem>>, vector<1x16x16x16xbf16>
    %21 = vector.shape_cast %20 : vector<1x16x16x16xbf16> to vector<16x16x16xbf16>
    %22 = vector.shape_cast %21 : vector<16x16x16xbf16> to vector<256x16xbf16>
    %c3 = arith.constant 3 : index
    %c0_24 = arith.constant 0 : index
    %c0_25 = arith.constant 0 : index
    %23 = vector.load %arg2[%c3, %c0_24, %c0_25] : memref<9x16x128xbf16, #tpu.memory_space<vmem>>, vector<1x16x128xbf16>
    %24 = vector.shape_cast %23 : vector<1x16x128xbf16> to vector<16x128xbf16>
    %cst_26 = arith.constant dense<0.000000e+00> : vector<256x128xf32>
    %25 = tpu.matmul %22, %24, %cst_26 {dimension_numbers = #tpu.dot_dimension_numbers<[1], [0], [0], [1], [0, 0, 1, 1], [], []>} : vector<256x16xbf16>, vector<16x128xbf16>, vector<256x128xf32> -> vector<256x128xf32>
    %26 = arith.addf %19, %25 : vector<256x128xf32>
    %c0_27 = arith.constant 0 : index
    %c1_28 = arith.constant 1 : index
    %c1_29 = arith.constant 1 : index
    %c0_30 = arith.constant 0 : index
    %27 = vector.load %arg1[%c0_27, %c1_28, %c1_29, %c0_30] : memref<1x18x18x16xbf16, #tpu.memory_space<vmem>>, vector<1x16x16x16xbf16>
    %28 = vector.shape_cast %27 : vector<1x16x16x16xbf16> to vector<16x16x16xbf16>
    %29 = vector.shape_cast %28 : vector<16x16x16xbf16> to vector<256x16xbf16>
    %c4 = arith.constant 4 : index
    %c0_31 = arith.constant 0 : index
    %c0_32 = arith.constant 0 : index
    %30 = vector.load %arg2[%c4, %c0_31, %c0_32] : memref<9x16x128xbf16, #tpu.memory_space<vmem>>, vector<1x16x128xbf16>
    %31 = vector.shape_cast %30 : vector<1x16x128xbf16> to vector<16x128xbf16>
    %cst_33 = arith.constant dense<0.000000e+00> : vector<256x128xf32>
    %32 = tpu.matmul %29, %31, %cst_33 {dimension_numbers = #tpu.dot_dimension_numbers<[1], [0], [0], [1], [0, 0, 1, 1], [], []>} : vector<256x16xbf16>, vector<16x128xbf16>, vector<256x128xf32> -> vector<256x128xf32>
    %33 = arith.addf %26, %32 : vector<256x128xf32>
    %c0_34 = arith.constant 0 : index
    %c1_35 = arith.constant 1 : index
    %c2_36 = arith.constant 2 : index
    %c0_37 = arith.constant 0 : index
    %34 = vector.load %arg1[%c0_34, %c1_35, %c2_36, %c0_37] : memref<1x18x18x16xbf16, #tpu.memory_space<vmem>>, vector<1x16x16x16xbf16>
    %35 = vector.shape_cast %34 : vector<1x16x16x16xbf16> to vector<16x16x16xbf16>
    %36 = vector.shape_cast %35 : vector<16x16x16xbf16> to vector<256x16xbf16>
    %c5 = arith.constant 5 : index
    %c0_38 = arith.constant 0 : index
    %c0_39 = arith.constant 0 : index
    %37 = vector.load %arg2[%c5, %c0_38, %c0_39] : memref<9x16x128xbf16, #tpu.memory_space<vmem>>, vector<1x16x128xbf16>
    %38 = vector.shape_cast %37 : vector<1x16x128xbf16> to vector<16x128xbf16>
    %cst_40 = arith.constant dense<0.000000e+00> : vector<256x128xf32>
    %39 = tpu.matmul %36, %38, %cst_40 {dimension_numbers = #tpu.dot_dimension_numbers<[1], [0], [0], [1], [0, 0, 1, 1], [], []>} : vector<256x16xbf16>, vector<16x128xbf16>, vector<256x128xf32> -> vector<256x128xf32>
    %40 = arith.addf %33, %39 : vector<256x128xf32>
    %c0_41 = arith.constant 0 : index
    %c2_42 = arith.constant 2 : index
    %c0_43 = arith.constant 0 : index
    %c0_44 = arith.constant 0 : index
    %41 = vector.load %arg1[%c0_41, %c2_42, %c0_43, %c0_44] : memref<1x18x18x16xbf16, #tpu.memory_space<vmem>>, vector<1x16x16x16xbf16>
    %42 = vector.shape_cast %41 : vector<1x16x16x16xbf16> to vector<16x16x16xbf16>
    %43 = vector.shape_cast %42 : vector<16x16x16xbf16> to vector<256x16xbf16>
    %c6 = arith.constant 6 : index
    %c0_45 = arith.constant 0 : index
    %c0_46 = arith.constant 0 : index
    %44 = vector.load %arg2[%c6, %c0_45, %c0_46] : memref<9x16x128xbf16, #tpu.memory_space<vmem>>, vector<1x16x128xbf16>
    %45 = vector.shape_cast %44 : vector<1x16x128xbf16> to vector<16x128xbf16>
    %cst_47 = arith.constant dense<0.000000e+00> : vector<256x128xf32>
    %46 = tpu.matmul %43, %45, %cst_47 {dimension_numbers = #tpu.dot_dimension_numbers<[1], [0], [0], [1], [0, 0, 1, 1], [], []>} : vector<256x16xbf16>, vector<16x128xbf16>, vector<256x128xf32> -> vector<256x128xf32>
    %47 = arith.addf %40, %46 : vector<256x128xf32>
    %c0_48 = arith.constant 0 : index
    %c2_49 = arith.constant 2 : index
    %c1_50 = arith.constant 1 : index
    %c0_51 = arith.constant 0 : index
    %48 = vector.load %arg1[%c0_48, %c2_49, %c1_50, %c0_51] : memref<1x18x18x16xbf16, #tpu.memory_space<vmem>>, vector<1x16x16x16xbf16>
    %49 = vector.shape_cast %48 : vector<1x16x16x16xbf16> to vector<16x16x16xbf16>
    %50 = vector.shape_cast %49 : vector<16x16x16xbf16> to vector<256x16xbf16>
    %c7 = arith.constant 7 : index
    %c0_52 = arith.constant 0 : index
    %c0_53 = arith.constant 0 : index
    %51 = vector.load %arg2[%c7, %c0_52, %c0_53] : memref<9x16x128xbf16, #tpu.memory_space<vmem>>, vector<1x16x128xbf16>
    %52 = vector.shape_cast %51 : vector<1x16x128xbf16> to vector<16x128xbf16>
    %cst_54 = arith.constant dense<0.000000e+00> : vector<256x128xf32>
    %53 = tpu.matmul %50, %52, %cst_54 {dimension_numbers = #tpu.dot_dimension_numbers<[1], [0], [0], [1], [0, 0, 1, 1], [], []>} : vector<256x16xbf16>, vector<16x128xbf16>, vector<256x128xf32> -> vector<256x128xf32>
    %54 = arith.addf %47, %53 : vector<256x128xf32>
    %c0_55 = arith.constant 0 : index
    %c2_56 = arith.constant 2 : index
    %c2_57 = arith.constant 2 : index
    %c0_58 = arith.constant 0 : index
    %55 = vector.load %arg1[%c0_55, %c2_56, %c2_57, %c0_58] : memref<1x18x18x16xbf16, #tpu.memory_space<vmem>>, vector<1x16x16x16xbf16>
    %56 = vector.shape_cast %55 : vector<1x16x16x16xbf16> to vector<16x16x16xbf16>
    %57 = vector.shape_cast %56 : vector<16x16x16xbf16> to vector<256x16xbf16>
    %c8 = arith.constant 8 : index
    %c0_59 = arith.constant 0 : index
    %c0_60 = arith.constant 0 : index
    %58 = vector.load %arg2[%c8, %c0_59, %c0_60] : memref<9x16x128xbf16, #tpu.memory_space<vmem>>, vector<1x16x128xbf16>
    %59 = vector.shape_cast %58 : vector<1x16x128xbf16> to vector<16x128xbf16>
    %cst_61 = arith.constant dense<0.000000e+00> : vector<256x128xf32>
    %60 = tpu.matmul %57, %59, %cst_61 {dimension_numbers = #tpu.dot_dimension_numbers<[1], [0], [0], [1], [0, 0, 1, 1], [], []>} : vector<256x16xbf16>, vector<16x128xbf16>, vector<256x128xf32> -> vector<256x128xf32>
    %61 = arith.addf %54, %60 : vector<256x128xf32>
    %c0_62 = arith.constant 0 : index
    %c0_63 = arith.constant 0 : index
    %62 = vector.load %arg3[%c0_62, %c0_63] : memref<1x128xf32, #tpu.memory_space<vmem>>, vector<1x128xf32>
    %63 = vector.broadcast %62 : vector<1x128xf32> to vector<256x128xf32>
    %64 = arith.mulf %61, %63 : vector<256x128xf32>
    %c0_64 = arith.constant 0 : index
    %c0_65 = arith.constant 0 : index
    %65 = vector.load %arg4[%c0_64, %c0_65] : memref<1x128xf32, #tpu.memory_space<vmem>>, vector<1x128xf32>
    %66 = vector.broadcast %65 : vector<1x128xf32> to vector<256x128xf32>
    %67 = arith.addf %64, %66 : vector<256x128xf32>
    %cst_66 = arith.constant 0.000000e+00 : f32
    %68 = vector.broadcast %cst_66 : f32 to vector<256x128xf32>
    %69 = arith.maximumf %67, %68 : vector<256x128xf32>
    %70 = vector.shape_cast %69 : vector<256x128xf32> to vector<16x16x128xf32>
    %71 = vector.extract_strided_slice %70 {offsets = [0, 0, 0], sizes = [16, 16, 8], strides = [1, 1, 1]} : vector<16x16x128xf32> to vector<16x16x8xf32>
    %c0_67 = arith.constant 0 : index
    %c0_68 = arith.constant 0 : index
    %c0_69 = arith.constant 0 : index
    %c0_70 = arith.constant 0 : index
    %72 = vector.load %arg5[%c0_67, %c0_68, %c0_69, %c0_70] : memref<1x16x16x8xf32, #tpu.memory_space<vmem>>, vector<1x16x16x8xf32>
    %73 = vector.shape_cast %72 : vector<1x16x16x8xf32> to vector<16x16x8xf32>
    %74 = vector.shape_cast %71 : vector<16x16x8xf32> to vector<1x16x16x8xf32>
    tpu.vector_store %arg5[%c0_67, %c0_68, %c0_69, %c0_70], %74 {strides = array<i32>} : memref<1x16x16x8xf32, #tpu.memory_space<vmem>>, vector<1x16x16x8xf32>,
    return
  }
  func.func @transform_0(%arg0: i32) -> (i32, i32, i32, i32) {
    %c0_i32 = arith.constant 0 : i32
    %c0_i32_0 = arith.constant 0 : i32
    %c0_i32_1 = arith.constant 0 : i32
    %c0_i32_2 = arith.constant 0 : i32
    return %arg0, %c0_i32, %c0_i32_0, %c0_i32_1 : i32, i32, i32, i32
  }
  func.func @transform_1(%arg0: i32) -> (i32, i32, i32) {
    %c0_i32 = arith.constant 0 : i32
    %c0_i32_0 = arith.constant 0 : i32
    %c0_i32_1 = arith.constant 0 : i32
    %c0_i32_2 = arith.constant 0 : i32
    return %c0_i32, %c0_i32_0, %c0_i32_1 : i32, i32, i32
  }
  func.func @transform_2(%arg0: i32) -> (i32, i32) {
    %c0_i32 = arith.constant 0 : i32
    %c0_i32_0 = arith.constant 0 : i32
    %c0_i32_1 = arith.constant 0 : i32
    return %c0_i32, %c0_i32_0 : i32, i32
  }
  func.func @transform_3(%arg0: i32) -> (i32, i32) {
    %c0_i32 = arith.constant 0 : i32
    %c0_i32_0 = arith.constant 0 : i32
    %c0_i32_1 = arith.constant 0 : i32
    return %c0_i32, %c0_i32_0 : i32, i32
  }
  func.func @transform_4(%arg0: i32) -> (i32, i32, i32, i32) {
    %c0_i32 = arith.constant 0 : i32
    %c0_i32_0 = arith.constant 0 : i32
    %c0_i32_1 = arith.constant 0 : i32
    %c0_i32_2 = arith.constant 0 : i32
    return %arg0, %c0_i32, %c0_i32_0, %c0_i32_1 : i32, i32, i32, i32
  }
}

</mosaic_0001>

<bundles_post_ra>
// kernel: conv_bn_relu.2
= control target key start
LH: loop header
LB: loop body
LE: loop exit
PB: predicated region body
PF: predicated region fallthrough
CT: control target
= control target key end

     0   :  { %s6048_s9 = smov 0   ;;  %s8648_s0 = inlined_call_operand.vmem [shape: bf16[2,18,18,16], index: 0, kind: input, shape index: {}]   ;;  %s8649_s1 = inlined_call_operand.vmem [shape: bf16[9,16,128], index: 1, kind: input, shape index: {}]   ;;  %s8650_s2 = inlined_call_operand.vmem [shape: f32[2,8,128], index: 2, kind: output, shape index: {}]  }
   0x1 LB: > { %s4931_s10 = sadd.s32 4294967295, %s6031_s9   ;;  %p4935_p0 = scmp.ge.s32.totalorder %s6031_s9, 1  ;;  %s6031_s9 = sphi %s6048_s9, %s12_s9  }
   0x2   : > { %p112_p1 = scmp.lt.s32.totalorder %s6031_s9, 3 }
   0x4   : > { %p113_p2 = pnand %p4935_p0, %p112_p1 }
   0x6   : > { %116 = sbr.rel (%p113_p2) target bundleno = 657 (0x291), region = 28 }
   0xb   : > { %v5963_v0 = vld [vmem:[%s8649_s1 + $0x8] sm:$0xff]   ;;  %p133_p3 = scmp.lt.s32.totalorder %s4931_s10, 1  ;;  %v6062_v1 = vld [vmem:[%s8649_s1] sm:$0xff]   ;;  %v6069_v2 = vld [vmem:[%s8649_s1 + $0x10] sm:$0xff]   ;;  %vm193_vm0 = vsmask.f32 3328 }
   0xc   : > { %5952 = vmatprep.subr.bf16.mxu1 %v5963_v0  ;;  %5646 = vmatprep.subr.bf16.mxu0 %v5963_v0  ;;  %vm194_vm1 = vsmask.f32 7440  ;;  %vm637_vm2 = vcmask 130048   ;;  %vm1190_vm4 = vcmask 1042432   ;;  %vm1191_vm5 = vcmask 1046532  }
   0xd   : > { %s8842_s10 = smov (!%p133_p3, %s4931_s10), 1  ;;  %5953 = vmatpush3.bf16.msra.mxu1 %v5963_v0  ;;  %5647 = vmatpush3.bf16.msra.mxu0 %v5963_v0  ;;  %vm6115_vm3 = vmor %vm193_vm0, %vm194_vm1 }
   0xe   : > { %s5954_s17 = smul.u32 216, %s8842_s10  ;;  %5680 = vmatprep.subr.bf16.mxu1 %v6062_v1  ;;  %5714 = vmatprep.subr.bf16.mxu0 %v6069_v2  ;;  %vm6391_vm6 = vmor %vm1190_vm4, %vm1191_vm5  ;;  %s4937_s5 = sshll.u32 %s8842_s10, 3 }
   0xf   : > { %s8589_s8 = scalar_lea.vmem %s8650_s2, %s4937_s5 }
  0x10   : > { %s6077_s20 = scalar_lea.vmem %s8648_s0, %s5954_s17 }
  0x11   : > { %v6080_v3 = vld [vmem:[%s6077_s20] sm:$0xf]  ;;  %v6083_v4 = vld [vmem:[%s6077_s20 + $0x4] sm:$0xf]  ;;  %v6086_v5 = vld [vmem:[%s6077_s20 + $0x8] sm:$0x1] }
  0x12   : > { %v197_v6 = vshrl.u32 %v6080_v3, 16  ;;  %v200_v7 = vshll.u32 %v6080_v3, 16  ;;  %v206_v8 = vshll.u32 %v6083_v4, 16  ;;  %v210_v9 = vshrl.u32 %v6083_v4, 16  ;;  %v6093_v10 = vld [vmem:[%s6077_s20 + $0x60] sm:$0xf] }
  0x13   : > { %v216_v11 = vshll.u32 %v6086_v5, 16  ;;  %v6097_v12 = vld [vmem:[%s6077_s20 + $0x64] sm:$0xf]  ;;  %v6100_v13 = vld [vmem:[%s6077_s20 + $0x68] sm:$0x1]  ;;  %v389_v19 = vshrl.u32 %v6093_v10, 16 }
  0x14   : > { %v199_v14 = vrot.slane %v197_v6, 4  ;;  %v202_v15 = vrot.slane %v200_v7, 5  ;;  %v208_v16 = vrot.slane %v206_v8, 5  ;;  %v212_v17 = vrot.slane %v210_v9, 4  ;;  %v6108_v26 = vld [vmem:[%s6077_s20 + $0xc] sm:$0xf] }
  0x15   : > { %v218_v18 = vrot.slane %v216_v11, 5  ;;  %v392_v20 = vshll.u32 %v6093_v10, 16  ;;  %v398_v21 = vshll.u32 %v6097_v12, 16  ;;  %v402_v24 = vshrl.u32 %v6097_v12, 16  ;;  %v6111_v27 = vld [vmem:[%s6077_s20 + $0x10] sm:$0xf] }
  0x16   : > { %v203_v22 = vor.u32 %v202_v15, %v199_v14  ;;  %v213_v23 = vor.u32 %v212_v17, %v208_v16  ;;  %v408_v25 = vshll.u32 %v6100_v13, 16  ;;  %v391_v30 = vrot.slane %v389_v19, 4  ;;  %v6121_v38 = vld [vmem:[%s6077_s20 + $0x14] sm:$0x1]  ;;  %v161_v50 = vld [vmem:[%s6077_s20 + $0x6c] sm:$0xf] }
  0x17   : > { %v394_v31 = vrot.slane %v392_v20, 5  ;;  %v400_v32 = vrot.slane %v398_v21, 5  ;;  %v404_v35 = vrot.slane %v402_v24, 4  ;;  %v221_v39 = vshrl.u32 %v6108_v26, 16  ;;  %v6134_v55 = vld [vmem:[%s6077_s20 + $0x70] sm:$0xf] }
  0x18   : > { %v204_v33 = vrot.slane %v203_v22, 4  ;;  %v214_v34 = vrot.slane %v213_v23, 4  ;;  %v410_v36 = vrot.slane %v408_v25, 5  ;;  %v224_v40 = vshll.u32 %v6108_v26, 16  ;;  %v6142_v60 = vld [vmem:[%s6077_s20 + $0x74] sm:$0x1] }
  0x19   : > { %v395_v37 = vor.u32 %v394_v31, %v391_v30  ;;  %v230_v41 = vshll.u32 %v6111_v27, 16  ;;  %v405_v44 = vor.u32 %v404_v35, %v400_v32  ;;  %v234_v45 = vshrl.u32 %v6111_v27, 16  ;;  %v6147_v6 = vld [vmem:[%s6077_s20 + $0x18] sm:$0xf]  ;;  %v6159_v22 = vld [vmem:[%s6077_s20 + $0x20] sm:$0x1] }
  0x1a   : > { %v209_v42 = vsel %vm6115_vm3, %v204_v33, %v208_v16  ;;  %v219_v43 = vsel %vm6115_vm3, %v214_v34, %v218_v18  ;;  %v223_v48 = vrot.slane %v221_v39, 4  ;;  %v226_v49 = vrot.slane %v224_v40, 5  ;;  %v6153_v18 = vld [vmem:[%s6077_s20 + $0x1c] sm:$0xf] }
  0x1b   : > { %v4940_v46 = vcombine.low %v209_v42, %v219_v43  ;;  %v396_v47 = vrot.slane %v395_v37, 4  ;;  %v406_v51 = vrot.slane %v405_v44, 4  ;;  %v232_v52 = vrot.slane %v230_v41, 5  ;;  %v6170_v37 = vld [vmem:[%s8649_s1 + $0x20] sm:$0xff]   ;;  %v6175_v43 = vld [vmem:[%s6077_s20 + $0x7c] sm:$0xf] }
  0x1c   : > { %v236_v53 = vrot.slane %v234_v45, 4  ;;  %v240_v54 = vshll.u32 %v6121_v38, 16  ;;  %v227_v57 = vor.u32 %v226_v49, %v223_v48  ;;  %v413_v0 = vshrl.u32 %v161_v50, 16  ;;  %8680 = vst [vmem:[#allocation2_spill] sm:$0xff] %v6175_v43 }
  0x1d   : > { %5648 = vmatprep.mubr.msk.bf16.mxu0 %vm637_vm2, %v4940_v46  ;;  %v401_v56 = vsel %vm6115_vm3, %v396_v47, %v400_v32  ;;  %v411_v61 = vsel %vm6115_vm3, %v406_v51, %v410_v36  ;;  %v416_v9 = vshll.u32 %v161_v50, 16  ;;  %v422_v11 = vshll.u32 %v6134_v55, 16  ;;  %v163_v32 = vld [vmem:[%s6077_s20 + $0x78] sm:$0xf] }
  0x1e   : > { %v237_v62 = vor.u32 %v236_v53, %v232_v52  ;;  %v242_v63 = vrot.slane %v240_v54, 5  ;;  %v4948_v7 = vcombine.low %v401_v56, %v411_v61  ;;  %v228_v8 = vrot.slane %v227_v57, 4  ;;  %v6186_v61 = vld [vmem:[%s6077_s20 + $0x24] sm:$0xf] }
  0x1f   : > { %v415_v15 = vrot.slane %v413_v0, 4  ;;  %v426_v16 = vshrl.u32 %v6134_v55, 16  ;;  %v432_v17 = vshll.u32 %v6142_v60, 16  ;;  %v418_v20 = vrot.slane %v416_v9, 5 }
  0x20   : > { %v238_v14 = vrot.slane %v237_v62, 4  ;;  %5664 = vmatprep.mubr.msk.bf16.mxu1 %vm637_vm2, %v4948_v7  ;;  %v233_v19 = vsel %vm6115_vm3, %v228_v8, %v232_v52  ;;  %v424_v21 = vrot.slane %v422_v11, 5  ;;  %v245_v23 = vshrl.u32 %v6147_v6, 16  ;;  %v6180_v52 = vld [vmem:[%s6077_s20 + $0x80] sm:$0x1] }
  0x21   : > { %v428_v25 = vrot.slane %v426_v16, 4  ;;  %v434_v30 = vrot.slane %v432_v17, 5  ;;  %v248_v31 = vshll.u32 %v6147_v6, 16  ;;  %v419_v34 = vor.u32 %v418_v20, %v415_v15  ;;  %8681 = vst [vmem:[#allocation3_spill] sm:$0xff] %v6180_v52  ;;  %v6193_v7 = vld [vmem:[%s6077_s20 + $0x28] sm:$0xf] }
  0x22   : > { %v243_v24 = vsel %vm6115_vm3, %v238_v14, %v242_v63  ;;  %v247_v35 = vrot.slane %v245_v23, 4  ;;  %v254_v36 = vshll.u32 %v6153_v18, 16  ;;  %v258_v41 = vshrl.u32 %v6153_v18, 16  ;;  %v6199_v15 = vld [vmem:[%s8649_s1 + $0x18] sm:$0xff]   ;;  %v6204_v20 = vld [vmem:[%s6077_s20 + $0x2c] sm:$0x1] }
  0x23   : > { %v4941_v33 = vcombine.low %v233_v19, %v243_v24  ;;  %v429_v39 = vor.u32 %v428_v25, %v424_v21  ;;  %v250_v40 = vrot.slane %v248_v31, 5  ;;  %v264_v42 = vshll.u32 %v6159_v22, 16  ;;  %v6211_v31 = vld [vmem:[%s6077_s20 + $0x84] sm:$0xf] }
  0x24   : > { %v420_v44 = vrot.slane %v419_v34, 4  ;;  %v256_v45 = vrot.slane %v254_v36, 5  ;;  %v437_v46 = vshrl.u32 %v163_v32, 16  ;;  %v440_v47 = vshll.u32 %v163_v32, 16  ;;  %v6218_v36 = vld [vmem:[%s6077_s20 + $0x88] sm:$0xf] }
  0x25   : > { %5649 = vmatmul.mubr.msk.bf16.vlgmr.msra.gmra.mxu0 %vm637_vm2, %v4941_v33  ;;  %v430_v48 = vrot.slane %v429_v39, 4  ;;  %v251_v49 = vor.u32 %v250_v40, %v247_v35  ;;  %v260_v50 = vrot.slane %v258_v41, 4  ;;  %v266_v51 = vrot.slane %v264_v42, 5 }
  0x26   : > { %5715 = vmatpush3.bf16.msra.mxu0 %v6069_v2  ;;  %v425_v53 = vsel %vm6115_vm3, %v420_v44, %v424_v21  ;;  %v439_v54 = vrot.slane %v437_v46, 4  ;;  %v442_v56 = vrot.slane %v440_v47, 5  ;;  %v446_v57 = vshll.u32 %v6175_v43, 16  ;;  %v6225_v46 = vld [vmem:[%s6077_s20 + $0x8c] sm:$0x1] }
  0x27   : > { %5782 = vmatprep.subr.bf16.mxu0 %v6170_v37  ;;  %v435_v2 = vsel %vm6115_vm3, %v430_v48, %v434_v30  ;;  %v252_v62 = vrot.slane %v251_v49, 4  ;;  %v261_v63 = vor.u32 %v260_v50, %v256_v45  ;;  %v450_v0 = vshrl.u32 %v6175_v43, 16 }
  0x28   : > { %v4949_v8 = vcombine.low %v425_v53, %v435_v2  ;;  %v443_v9 = vor.u32 %v442_v56, %v439_v54  ;;  %v448_v11 = vrot.slane %v446_v57, 5  ;;  %v456_v14 = vshll.u32 %v6180_v52, 16  ;;  %v6233_v53 = vld [vmem:[%s6077_s20 + $0x30] sm:$0xf] }
  0x29   : > { %v257_v16 = vsel %vm6115_vm3, %v252_v62, %v256_v45  ;;  %v262_v17 = vrot.slane %v261_v63, 4  ;;  %v452_v19 = vrot.slane %v450_v0, 4  ;;  %v269_v21 = vshrl.u32 %v6186_v61, 16  ;;  %v6238_v62 = vld [vmem:[%s6077_s20 + $0x34] sm:$0xf] }
  0x2a   : > { %5665 = vmatmul.mubr.msk.bf16.vlgmr.msra.gmra.mxu1 %vm637_vm2, %v4949_v8  ;;  %v444_v23 = vrot.slane %v443_v9, 4  ;;  %v458_v24 = vrot.slane %v456_v14, 5  ;;  %v272_v25 = vshll.u32 %v6186_v61, 16  ;;  %v278_v30 = vshll.u32 %v6193_v7, 16 }
  0x2b   : > { %5681 = vmatpush3.bf16.msra.mxu1 %v6062_v1  ;;  %v267_v32 = vsel %vm6115_vm3, %v262_v17, %v266_v51  ;;  %v453_v33 = vor.u32 %v452_v19, %v448_v11  ;;  %v271_v34 = vrot.slane %v269_v21, 4  ;;  %v282_v35 = vshrl.u32 %v6193_v7, 16 }
  0x2c   : > { %v4942_v39 = vcombine.low %v257_v16, %v267_v32  ;;  %v449_v40 = vsel %vm6115_vm3, %v444_v23, %v448_v11  ;;  %v274_v41 = vrot.slane %v272_v25, 5  ;;  %v280_v42 = vrot.slane %v278_v30, 5  ;;  %5748 = vmatprep.subr.bf16.mxu1 %v6199_v15  ;;  %v6246_v23 = vld [vmem:[%s6077_s20 + $0x38] sm:$0x1]  ;;  %v6251_v30 = vld [vmem:[%s6077_s20 + $0x90] sm:$0xf] }
  0x2d   : > { %v454_v1 = vrot.slane %v453_v33, 4  ;;  %v284_v44 = vrot.slane %v282_v35, 4  ;;  %v288_v45 = vshll.u32 %v6204_v20, 16  ;;  %v461_v47 = vshrl.u32 %v6211_v31, 16 }
  0x2e   : > { %5652 = vmatprep.mubr.msk.bf16.mxu0 %vm637_vm2, %v4942_v39  ;;  %v275_v48 = vor.u32 %v274_v41, %v271_v34  ;;  %v464_v49 = vshll.u32 %v6211_v31, 16  ;;  %v470_v50 = vshll.u32 %v6218_v36, 16  ;;  %v474_v51 = vshrl.u32 %v6218_v36, 16  ;;  %v6256_v39 = vld [vmem:[%s6077_s20 + $0x94] sm:$0xf] }
  0x2f   : > { %v459_v54 = vsel %vm6115_vm3, %v454_v1, %v458_v24  ;;  %v285_v56 = vor.u32 %v284_v44, %v280_v42  ;;  %v290_v57 = vrot.slane %v288_v45, 5  ;;  %v463_v2 = vrot.slane %v461_v47, 4 }
  0x30   : > { %v4950_v63 = vcombine.low %v449_v40, %v459_v54  ;;  %v276_v0 = vrot.slane %v275_v48, 4  ;;  %v466_v8 = vrot.slane %v464_v49, 5  ;;  %v472_v9 = vrot.slane %v470_v50, 5 }
  0x31   : > { %v286_v11 = vrot.slane %v285_v56, 4  ;;  %v476_v14 = vrot.slane %v474_v51, 4  ;;  %v480_v16 = vshll.u32 %v6225_v46, 16  ;;  %v293_v17 = vshrl.u32 %v6233_v53, 16  ;;  %v6265_v51 = vld [vmem:[%s6077_s20 + $0x98] sm:$0x1] }
  0x32   : > { %5668 = vmatprep.mubr.msk.bf16.mxu1 %vm637_vm2, %v4950_v63  ;;  %v281_v19 = vsel %vm6115_vm3, %v276_v0, %v280_v42  ;;  %v467_v21 = vor.u32 %v466_v8, %v463_v2  ;;  %v296_v24 = vshll.u32 %v6233_v53, 16  ;;  %v302_v25 = vshll.u32 %v6238_v62, 16  ;;  %8682 = vst [vmem:[#allocation4_spill] sm:$0xff] %v6265_v51 }
  0x33   : > { %v291_v32 = vsel %vm6115_vm3, %v286_v11, %v290_v57  ;;  %v477_v33 = vor.u32 %v476_v14, %v472_v9  ;;  %v482_v34 = vrot.slane %v480_v16, 5  ;;  %v295_v35 = vrot.slane %v293_v17, 4  ;;  %v6270_v57 = vld [vmem:[%s6077_s20 + $0x3c] sm:$0xf]  ;;  %v6275_v11 = vld [vmem:[%s6077_s20 + $0x40] sm:$0xf] }
  0x34   : > { %v4943_v40 = vcombine.low %v281_v19, %v291_v32  ;;  %v468_v41 = vrot.slane %v467_v21, 4  ;;  %v298_v42 = vrot.slane %v296_v24, 5  ;;  %v304_v1 = vrot.slane %v302_v25, 5 }
  0x35   : > { %v478_v44 = vrot.slane %v477_v33, 4  ;;  %v306_v45 = vshrl.u32 %v6238_v62, 16  ;;  %v312_v47 = vshll.u32 %v6246_v23, 16  ;;  %v485_v48 = vshrl.u32 %v6251_v30, 16 }
  0x36   : > { %5653 = vmatmul.mubr.msk.bf16.gmra.mxu0 %vm637_vm2, %v4943_v40  ;;  %v473_v49 = vsel %vm6115_vm3, %v468_v41, %v472_v9  ;;  %v299_v50 = vor.u32 %v298_v42, %v295_v35  ;;  %v488_v54 = vshll.u32 %v6251_v30, 16  ;;  %v494_v56 = vshll.u32 %v6256_v39, 16  ;;  %v6289_v41 = vld [vmem:[%s6077_s20 + $0x9c] sm:$0xf] }
  0x37   : > { %v483_v2 = vsel %vm6115_vm3, %v478_v44, %v482_v34  ;;  %v308_v63 = vrot.slane %v306_v45, 4  ;;  %v314_v0 = vrot.slane %v312_v47, 5  ;;  %v487_v8 = vrot.slane %v485_v48, 4  ;;  %v6284_v34 = vld [vmem:[%s6077_s20 + $0x44] sm:$0x1]  ;;  %8683 = vst [vmem:[#allocation5_spill] sm:$0xff] %v6289_v41 }
  0x38   : > { %v4951_v9 = vcombine.low %v473_v49, %v483_v2  ;;  %v300_v14 = vrot.slane %v299_v50, 4  ;;  %v490_v16 = vrot.slane %v488_v54, 5  ;;  %v496_v17 = vrot.slane %v494_v56, 5  ;;  %v6293_v54 = vld [vmem:[%s6077_s20 + $0xa0] sm:$0xf] }
  0x39   : > { %v309_v19 = vor.u32 %v308_v63, %v304_v1  ;;  %v498_v21 = vshrl.u32 %v6256_v39, 16  ;;  %v504_v24 = vshll.u32 %v6265_v51, 16  ;;  %v317_v25 = vshrl.u32 %v6270_v57, 16  ;;  %8684 = vst [vmem:[#allocation6_spill] sm:$0xff] %v6293_v54  ;;  %v1143_v51 = vld [vmem:[%s6077_s20 + $0xc] sm:$0xe] }
  0x3a   : > { %5669 = vmatmul.mubr.msk.bf16.gmra.mxu1 %vm637_vm2, %v4951_v9  ;;  %v305_v32 = vsel %vm6115_vm3, %v300_v14, %v304_v1  ;;  %v491_v33 = vor.u32 %v490_v16, %v487_v8  ;;  %v320_v35 = vshll.u32 %v6270_v57, 16  ;;  %v326_v40 = vshll.u32 %v6275_v11, 16  ;;  %v6299_v8 = vld [vmem:[%s6077_s20 + $0xa4] sm:$0x1]  ;;  %v6303_v14 = vld [vmem:[%s6077_s20 + $0x48] sm:$0xf] }
  0x3b   : > { %v310_v42 = vrot.slane %v309_v19, 4  ;;  %v500_v44 = vrot.slane %v498_v21, 4  ;;  %v506_v45 = vrot.slane %v504_v24, 5  ;;  %v319_v47 = vrot.slane %v317_v25, 4  ;;  %8685 = vst [vmem:[#allocation7_spill] sm:$0xff] %v6299_v8 }
  0x3c   : > { %v492_v48 = vrot.slane %v491_v33, 4  ;;  %v322_v49 = vrot.slane %v320_v35, 5  ;;  %v328_v50 = vrot.slane %v326_v40, 5  ;;  %v330_v1 = vshrl.u32 %v6275_v11, 16 }
  0x3d   : > { %v315_v56 = vsel %vm6115_vm3, %v310_v42, %v314_v0  ;;  %v501_v2 = vor.u32 %v500_v44, %v496_v17  ;;  %v336_v63 = vshll.u32 %v6284_v34, 16  ;;  %v509_v9 = vshrl.u32 %v6289_v41, 16 }
  0x3e   : > { %v4944_v16 = vcombine.low %v305_v32, %v315_v56  ;;  %v497_v19 = vsel %vm6115_vm3, %v492_v48, %v496_v17  ;;  %v323_v21 = vor.u32 %v322_v49, %v319_v47  ;;  %v332_v24 = vrot.slane %v330_v1, 4  ;;  %v6312_v56 = vld [vmem:[%s6077_s20 + $0x4c] sm:$0xf]  ;;  %v6318_v49 = vld [vmem:[%s6077_s20 + $0x50] sm:$0x1] }
  0x3f   : > { %v502_v25 = vrot.slane %v501_v2, 4  ;;  %v338_v33 = vrot.slane %v336_v63, 5  ;;  %v511_v0 = vrot.slane %v509_v9, 4  ;;  %v512_v35 = vshll.u32 %v6289_v41, 16 }
  0x40   : > { %5656 = vmatprep.mubr.msk.bf16.mxu0 %vm637_vm2, %v4944_v16  ;;  %v324_v40 = vrot.slane %v323_v21, 4  ;;  %v333_v42 = vor.u32 %v332_v24, %v328_v50  ;;  %v518_v44 = vshll.u32 %v6293_v54, 16  ;;  %v522_v32 = vshrl.u32 %v6293_v54, 16 }
  0x41   : > { %v507_v17 = vsel %vm6115_vm3, %v502_v25, %v506_v45  ;;  %v514_v47 = vrot.slane %v512_v35, 5  ;;  %v528_v48 = vshll.u32 %v6299_v8, 16  ;;  %v341_v1 = vshrl.u32 %v6303_v14, 16  ;;  %v6324_v45 = vld [vmem:[%s6077_s20 + $0xa8] sm:$0xf] }
  0x42   : > { %v4952_v2 = vcombine.low %v497_v19, %v507_v17  ;;  %v329_v63 = vsel %vm6115_vm3, %v324_v40, %v328_v50  ;;  %v334_v9 = vrot.slane %v333_v42, 4  ;;  %v520_v16 = vrot.slane %v518_v44, 5  ;;  %8686 = vst [vmem:[#allocation8_spill] sm:$0xff] %v6324_v45  ;;  %v6333_v40 = vld [vmem:[%s6077_s20 + $0xac] sm:$0xf] }
  0x43   : > { %v515_v21 = vor.u32 %v514_v47, %v511_v0  ;;  %v524_v24 = vrot.slane %v522_v32, 4  ;;  %v530_v59 = vrot.slane %v528_v48, 5  ;;  %v343_v29 = vrot.slane %v341_v1, 4  ;;  %8687 = vst [vmem:[#allocation9_spill] sm:$0xff] %v6333_v40  ;;  %v6337_v17 = vld [vmem:[%s6077_s20 + $0xb0] sm:$0x1] }
  0x44   : > { %5672 = vmatprep.mubr.msk.bf16.mxu1 %vm637_vm2, %v4952_v2  ;;  %v339_v25 = vsel %vm6115_vm3, %v334_v9, %v338_v33  ;;  %v344_v35 = vshll.u32 %v6303_v14, 16  ;;  %v350_v19 = vshll.u32 %v6312_v56, 16  ;;  %v354_v50 = vshrl.u32 %v6312_v56, 16  ;;  %8688 = vst [vmem:[#allocation10_spill] sm:$0xff] %v6337_v17 }
  0x45   : > { %v4945_v42 = vcombine.low %v329_v63, %v339_v25  ;;  %v516_v0 = vrot.slane %v515_v21, 4  ;;  %v525_v44 = vor.u32 %v524_v24, %v520_v16  ;;  %v360_v32 = vshll.u32 %v6318_v49, 16 }
  0x46   : > { %v346_v47 = vrot.slane %v344_v35, 5  ;;  %v352_v48 = vrot.slane %v350_v19, 5  ;;  %v356_v1 = vrot.slane %v354_v50, 4  ;;  %v533_v33 = vshrl.u32 %v6324_v45, 16  ;;  %v6346_v19 = vld [vmem:[%s6077_s20 + $0x54] sm:$0xf] }
  0x47   : > { %5657 = vmatmul.mubr.msk.bf16.gmra.mxu0 %vm637_vm2, %v4945_v42  ;;  %v521_v2 = vsel %vm6115_vm3, %v516_v0, %v520_v16  ;;  %v526_v9 = vrot.slane %v525_v44, 4  ;;  %v362_v63 = vrot.slane %v360_v32, 5  ;;  %v536_v21 = vshll.u32 %v6324_v45, 16  ;;  %v6353_v44 = vld [vmem:[%s6077_s20 + $0x58] sm:$0xf] }
  0x48   : > { %v347_v24 = vor.u32 %v346_v47, %v343_v29  ;;  %v357_v25 = vor.u32 %v356_v1, %v352_v48  ;;  %v535_v58 = vrot.slane %v533_v33, 4  ;;  %v542_v35 = vshll.u32 %v6333_v40, 16  ;;  %v6356_v33 = vld [vmem:[%s6077_s20 + $0x5c] sm:$0x1] }
  0x49   : > { %v531_v50 = vsel %vm6115_vm3, %v526_v9, %v530_v59  ;;  %v538_v42 = vrot.slane %v536_v21, 5  ;;  %v546_v16 = vshrl.u32 %v6333_v40, 16  ;;  %v552_v0 = vshll.u32 %v6337_v17, 16  ;;  %v1142_v17 = vld [vmem:[%s6077_s20] sm:$0xe] }
  0x4a   : > { %v4953_v29 = vcombine.low %v521_v2, %v531_v50  ;;  %v348_v32 = vrot.slane %v347_v24, 4  ;;  %v358_v47 = vrot.slane %v357_v25, 4  ;;  %v544_v1 = vrot.slane %v542_v35, 5  ;;  %v6367_v25 = vld [vmem:[%s6077_s20 + $0xb4] sm:$0xf] }
  0x4b   : > { %v539_v52 = vor.u32 %v538_v42, %v535_v58  ;;  %v548_v45 = vrot.slane %v546_v16, 4  ;;  %v554_v8 = vrot.slane %v552_v0, 5  ;;  %v365_v59 = vshrl.u32 %v6346_v19, 16  ;;  %8689 = vst [vmem:[#allocation11_spill] sm:$0xff] %v6367_v25  ;;  %v6370_v16 = vld [vmem:[%s6077_s20 + $0xb8] sm:$0xf] }
  0x4c   : > { %5673 = vmatmul.mubr.msk.bf16.gmra.mxu1 %vm637_vm2, %v4953_v29  ;;  %v353_v9 = vsel %vm6115_vm3, %v348_v32, %v352_v48  ;;  %v363_v2 = vsel %vm6115_vm3, %v358_v47, %v362_v63  ;;  %v368_v21 = vshll.u32 %v6346_v19, 16  ;;  %v374_v24 = vshll.u32 %v6353_v44, 16  ;;  %v6375_v63 = vld [vmem:[%s6077_s20 + $0xbc] sm:$0x1] }
  0x4d   : > { %v4946_v58 = vcombine.low %v353_v9, %v363_v2  ;;  %v540_v35 = vrot.slane %v539_v52, 4  ;;  %v549_v50 = vor.u32 %v548_v45, %v544_v1  ;;  %v367_v42 = vrot.slane %v365_v59, 4 }
  0x4e   : > { %v370_v0 = vrot.slane %v368_v21, 5  ;;  %v376_v29 = vrot.slane %v374_v24, 5  ;;  %v378_v48 = vshrl.u32 %v6353_v44, 16  ;;  %v384_v32 = vshll.u32 %v6356_v33, 16 }
  0x4f   : > { %5660 = vmatprep.mubr.msk.bf16.mxu0 %vm637_vm2, %v4946_v58  ;;  %v545_v47 = vsel %vm6115_vm3, %v540_v35, %v544_v1  ;;  %v550_v9 = vrot.slane %v549_v50, 4  ;;  %v557_v52 = vshrl.u32 %v6367_v25, 16  ;;  %v560_v45 = vshll.u32 %v6367_v25, 16 }
  0x50   : > { %v371_v59 = vor.u32 %v370_v0, %v367_v42  ;;  %v380_v2 = vrot.slane %v378_v48, 4  ;;  %v386_v21 = vrot.slane %v384_v32, 5  ;;  %v566_v24 = vshll.u32 %v6370_v16, 16 }
  0x51   : > { %v555_v40 = vsel %vm6115_vm3, %v550_v9, %v554_v8  ;;  %v559_v43 = vrot.slane %v557_v52, 4  ;;  %v562_v58 = vrot.slane %v560_v45, 5  ;;  %v570_v41 = vshrl.u32 %v6370_v16, 16 }
  0x52   : > { %v4954_v1 = vcombine.low %v545_v47, %v555_v40  ;;  %v372_v35 = vrot.slane %v371_v59, 4  ;;  %v381_v50 = vor.u32 %v380_v2, %v376_v29  ;;  %v568_v54 = vrot.slane %v566_v24, 5  ;;  %v1144_v59 = vld [vmem:[%s6077_s20 + $0x18] sm:$0xe] }
  0x53   : > { %v563_v25 = vor.u32 %v562_v58, %v559_v43  ;;  %v572_v42 = vrot.slane %v570_v41, 4  ;;  %v576_v0 = vshll.u32 %v6375_v63, 16  ;;  %v8690_v48 = vmov 0 }
  0x54   : > { %v8691_v48 = vsel %vm6391_vm6, 4294967295, %v8690_v48  ;;  %v5006_v8 = vrot.slane %v1142_v17, 9  ;;  %5676 = vmatprep.mubr.msk.bf16.mxu1 %vm637_vm2, %v4954_v1  ;;  %v377_v40 = vsel %vm6115_vm3, %v372_v35, %v376_v29  ;;  %v382_v32 = vrot.slane %v381_v50, 4 }
  0x55   : > { %8692 = vst [vmem:[#allocation12_spill] sm:$0xff] %v8691_v48  ;;  %v1195_v47 = vrot.slane %v6083_v4, 5  ;;  %v4974_v43 = vcombine.low %v6108_v26, %v6111_v27  ;;  %v564_v41 = vrot.slane %v563_v25, 4  ;;  %v573_v9 = vor.u32 %v572_v42, %v568_v54 }
  0x56   : > { %v578_v52 = vrot.slane %v576_v0, 5  ;;  %v5007_v45 = vrot.slane %v1143_v51, 9  ;;  %v387_v17 = vsel %vm6115_vm3, %v382_v32, %v386_v21  ;;  %v8693_v29 = vrot.slane %v6111_v27, 5  ;;  %v1145_v0 = vld [vmem:[%s6077_s20 + $0x24] sm:$0xe] }
  0x57   : > { %v1196_v2 = vsel %vm6391_vm6, %v5006_v8, %v1195_v47  ;;  %v1197_v24 = vrot.slane %v1195_v47, 4  ;;  %v4947_v1 = vcombine.low %v377_v40, %v387_v17  ;;  %v569_v35 = vsel %vm6115_vm3, %v564_v41, %v568_v54  ;;  %v1146_v17 = vld [vmem:[%s6077_s20 + $0x30] sm:$0xe] }
  0x58   : > { %v1204_v58 = vrot.slane %v8693_v29, 4  ;;  %v574_v25 = vrot.slane %v573_v9, 4  ;;  %v8694_v50 = vrot.slane %v6086_v5, 5  ;;  %v4975_v21 = vcombine.low %v6147_v6, %v6153_v18 }
  0x59   : > { %v5008_v42 = vrot.slane %v1144_v59, 9  ;;  %5661 = vmatmul.mubr.msk.bf16.gmra.mxu0 %vm637_vm2, %v4947_v1  ;;  %v4973_v40 = vcombine.low %v6080_v3, %v6083_v4  ;;  %v1209_v5 = vrot.slane %v6153_v18, 5  ;;  %v8695_v47 = vmov %v8693_v29  ;;  %v1147_v29 = vld [vmem:[%s6077_s20 + $0x3c] sm:$0xe] }
  0x5a   : > { %v1199_v51 = vsel %vm6391_vm6, %v1197_v24, %v8694_v50  ;;  %v579_v8 = vsel %vm6115_vm3, %v574_v25, %v578_v52  ;;  %v1203_v41 = vsel %vm6391_vm6, %v5007_v45, %v8695_v47  ;;  %v8696_v9 = vrot.slane %v6121_v38, 5  ;;  %v1149_v47 = vld [vmem:[%s6077_s20 + $0x54] sm:$0xe] }
  0x5b   : > { %v5024_v54 = vcombine.low %v1196_v2, %v1199_v51  ;;  %v4955_v32 = vcombine.low %v569_v35, %v579_v8  ;;  %v1212_v52 = vrot.slane %v6159_v22, 5  ;;  %v1210_v3 = vsel %vm6391_vm6, %v5008_v42, %v1209_v5  ;;  %v1148_v35 = vld [vmem:[%s6077_s20 + $0x48] sm:$0xe] }
  0x5c   : > { %v1206_v59 = vsel %vm6391_vm6, %v1204_v58, %v8696_v9  ;;  %v1211_v4 = vrot.slane %v1209_v5, 4  ;;  %v5009_v2 = vrot.slane %v1145_v0, 9  ;;  %v1216_v24 = vrot.slane %v6193_v7, 5 }
  0x5d   : > { %5716 = vmatprep.mubr.msk.bf16.mxu0 %vm637_vm2, %v5024_v54  ;;  %5677 = vmatmul.mubr.msk.bf16.gmra.mxu1 %vm637_vm2, %v4955_v32  ;;  %v1219_v38 = vrot.slane %v6204_v20, 5  ;;  %v1223_v45 = vrot.slane %v6238_v62, 5  ;;  %v5025_v22 = vcombine.low %v1203_v41, %v1206_v59  ;;  %v5010_v50 = vrot.slane %v1146_v17, 9 }
  0x5e   : > { %5682 = vmatprep.mubr.msk.bf16.mxu1 %vm637_vm2, %v4973_v40  ;;  %v1213_v58 = vsel %vm6391_vm6, %v1211_v4, %v1212_v52  ;;  %v1218_v1 = vrot.slane %v1216_v24, 4  ;;  %v1226_v51 = vrot.slane %v6246_v23, 5  ;;  %v1217_v42 = vsel %vm6391_vm6, %v5009_v2, %v1216_v24  ;;  %v6452_v40 = vld [vmem:[%s8649_s1 + $0x30] sm:$0xff]   ;;  %v6472_v4 = vld [vmem:[%s8649_s1 + $0x28] sm:$0xff]  }
  0x5f   : > { %v5026_v25 = vcombine.low %v1210_v3, %v1213_v58  ;;  %v1225_v20 = vrot.slane %v1223_v45, 4  ;;  %v5011_v0 = vrot.slane %v1147_v29, 9  ;;  %v1230_v8 = vrot.slane %v6275_v11, 5  ;;  %v1150_v3 = vld [vmem:[%s6077_s20 + $0x60] sm:$0xe] }
  0x60   : > { %v1220_v54 = vsel %vm6391_vm6, %v1218_v1, %v1219_v38  ;;  %v1233_v5 = vrot.slane %v6284_v34, 5  ;;  %v5012_v32 = vrot.slane %v1148_v35, 9  ;;  %v1237_v23 = vrot.slane %v6312_v56, 5 }
  0x61   : > { %5717 = vmatmul.mubr.msk.bf16.vlgmr.msra.gmra.mxu0 %vm637_vm2, %v5025_v22  ;;  %v1232_v41 = vrot.slane %v1230_v8, 4  ;;  %v1240_v9 = vrot.slane %v6318_v49, 5  ;;  %v1254_v59 = vrot.slane %v6100_v13, 5  ;;  %v4976_v52 = vcombine.low %v6186_v61, %v6193_v7  ;;  %v1151_v7 = vld [vmem:[%s6077_s20 + $0x6c] sm:$0xe] }
  0x62   : > { %5783 = vmatpush3.bf16.msra.mxu0 %v6170_v37  ;;  %5720 = vmatprep.mubr.msk.bf16.mxu0 %vm637_vm2, %v5026_v25  ;;  %v1224_v34 = vsel %vm6391_vm6, %v5010_v50, %v1223_v45  ;;  %v1239_v17 = vrot.slane %v1237_v23, 4  ;;  %v5027_v49 = vcombine.low %v1217_v42, %v1220_v54  ;;  %v1227_v13 = vsel %vm6391_vm6, %v1225_v20, %v1226_v51  ;;  %v1154_v42 = vld [vmem:[%s6077_s20 + $0x90] sm:$0xe]  ;;  %v6616_v54 = vld [vmem:[%s6077_s20 + $0x14] sm:$0x1] }
  0x63   : > { %v6478_v37 = vsel %vm6391_vm6, %v5011_v0, %v1230_v8  ;;  %v1244_v61 = vrot.slane %v6353_v44, 5  ;;  %5850 = vmatprep.subr.bf16.mxu0 %v6452_v40  ;;  %v6489_v2 = vsel %vm6391_vm6, %v5012_v32, %v1237_v23  ;;  %v5013_v24 = vrot.slane %v1149_v47, 9 }
  0x64   : > { %v1247_v38 = vrot.slane %v6356_v33, 5  ;;  %v1251_v45 = vrot.slane %v6097_v12, 5  ;;  %v1234_v26 = vsel %vm6391_vm6, %v1232_v41, %v1233_v5  ;;  %v6502_v27 = vsel %vm6391_vm6, %v1239_v17, %v1240_v9  ;;  %v1155_v41 = vld [vmem:[%s6077_s20 + $0x9c] sm:$0xe]  ;;  %v1156_v17 = vld [vmem:[%s6077_s20 + $0xa8] sm:$0xe] }
  0x65   : > { %5683 = vmatmul.mubr.msk.bf16.vlgmr.msra.gmra.mxu1 %vm637_vm2, %v4974_v43  ;;  %v1246_v43 = vrot.slane %v1244_v61, 4  ;;  %v5014_v29 = vrot.slane %v1150_v3, 9  ;;  %v4977_v33 = vcombine.low %v6233_v53, %v6238_v62  ;;  %v4978_v6 = vcombine.low %v6270_v57, %v6275_v11  ;;  %v1153_v53 = vld [vmem:[%s6077_s20 + $0x84] sm:$0xe] }
  0x66   : > { %5749 = vmatpush3.bf16.msra.mxu1 %v6199_v15  ;;  %5686 = vmatprep.mubr.msk.bf16.mxu1 %vm637_vm2, %v4975_v21  ;;  %v5028_v15 = vcombine.low %v1224_v34, %v1227_v13  ;;  %v4979_v18 = vcombine.low %v6303_v14, %v6312_v56  ;;  %v6511_v21 = vld [vmem:[%s6077_s20 + $0x78] sm:$0xe]  ;;  %v4980_v22 = vcombine.low %v6346_v19, %v6353_v44  ;;  %v1253_v1 = vrot.slane %v1251_v45, 4 }
  0x67   : > { %5816 = vmatprep.subr.bf16.mxu1 %v6472_v4  ;;  %v4981_v58 = vcombine.low %v6093_v10, %v6097_v12  ;;  %v5015_v35 = vrot.slane %v1151_v7, 9  ;;  %v5029_v62 = vcombine.low %v6478_v37, %v1234_v26  ;;  %v5030_v25 = vcombine.low %v6489_v2, %v6502_v27  ;;  %v8697_v37 = vld [vmem:[#allocation4_spill] sm:$0xff]  ;;  %v8698_v7 = vld [vmem:[#allocation6_spill] sm:$0xff]  ;;  %v8699_v2 = vld [vmem:[#allocation5_spill] sm:$0xff] }
  0x68   : > { %v6524_v50 = vsel %vm6391_vm6, %v5013_v24, %v1244_v61  ;;  %v6528_v51 = vsel %vm6391_vm6, %v1246_v43, %v1247_v38  ;;  %v6534_v20 = vsel %vm6391_vm6, %v5014_v29, %v1251_v45  ;;  %v1258_v0 = vrot.slane %v6134_v55, 5  ;;  %v8700_v45 = vld [vmem:[#allocation2_spill] sm:$0xff]  ;;  %v6020_v10 = vld [vmem:[%s6077_s20 + $0x6c] sm:$0xf]  ;;  %v6021_v12 = vld [vmem:[%s6077_s20 + $0x70] sm:$0xf] }
  0x69   : > { %5721 = vmatmul.mubr.msk.bf16.gmra.mxu0 %vm637_vm2, %v5027_v49  ;;  %v1261_v8 = vrot.slane %v6142_v60, 5  ;;  %v5016_v5 = vrot.slane %v6511_v21, 9  ;;  %v5017_v32 = vrot.slane %v1153_v53, 9  ;;  %v1272_v23 = vrot.slane %v6218_v36, 5  ;;  %v8703_v53 = vld [vmem:[#allocation8_spill] sm:$0xff] }
  0x6a   : > { %5724 = vmatprep.mubr.msk.bf16.mxu0 %vm637_vm2, %v5028_v15  ;;  %v1275_v47 = vrot.slane %v6225_v46, 5  ;;  %v5031_v9 = vcombine.low %v6524_v50, %v6528_v51  ;;  %v6549_v55 = vsel %vm6391_vm6, %v1253_v1, %v1254_v59  ;;  %v6553_v60 = vsel %vm6391_vm6, %v5015_v35, %v1258_v0  ;;  %v8701_v15 = vld [vmem:[#allocation7_spill] sm:$0xff]  ;;  %v8702_v35 = vld [vmem:[#allocation9_spill] sm:$0xff] }
  0x6b   : > { %v6561_v46 = vsel %vm6391_vm6, %v5017_v32, %v1272_v23  ;;  %v1274_v3 = vrot.slane %v1272_v23, 4  ;;  %v5018_v49 = vrot.slane %v1154_v42, 9  ;;  %v1279_v13 = vrot.slane %v6256_v39, 5  ;;  %v8706_v42 = vld [vmem:[#allocation3_spill] sm:$0xff] }
  0x6c   : > { %v1260_v59 = vrot.slane %v1258_v0, 4  ;;  %v1282_v61 = vrot.slane %v8697_v37, 5  ;;  %v5019_v38 = vrot.slane %v1155_v41, 9  ;;  %v1289_v1 = vrot.slane %v8701_v15, 5  ;;  %v6601_v15 = vld [vmem:[%s6077_s20 + $0x10] sm:$0xf] }
  0x6d   : > { %5687 = vmatmul.mubr.msk.bf16.gmra.mxu1 %vm637_vm2, %v4976_v52  ;;  %v1265_v52 = vrot.slane %v8700_v45, 5  ;;  %v6571_v26 = vsel %vm6391_vm6, %v1274_v3, %v1275_v47  ;;  %v6575_v27 = vsel %vm6391_vm6, %v5018_v49, %v1279_v13  ;;  %v1281_v43 = vrot.slane %v1279_v13, 4  ;;  %v8704_v47 = vld [vmem:[#allocation10_spill] sm:$0xff]  ;;  %v5124_v3 = vld [vmem:[%s6077_s20 + $0xc] sm:$0xf] }
  0x6e   : > { %5690 = vmatprep.mubr.msk.bf16.mxu1 %vm637_vm2, %v4977_v33  ;;  %v1286_v33 = vrot.slane %v8698_v7, 5  ;;  %v5020_v32 = vrot.slane %v1156_v17, 9  ;;  %v1293_v23 = vrot.slane %v8702_v35, 5  ;;  %v1296_v41 = vrot.slane %v8704_v47, 5 }
  0x6f   : > { %v6585_v0 = vsel %vm6391_vm6, %v1281_v43, %v1282_v61  ;;  %v8705_v61 = vld [vmem:[#allocation11_spill] sm:$0xff]  ;;  %v1157_v43 = vld [vmem:[%s6077_s20 + $0xb4] sm:$0xe]  ;;  %v1267_v47 = vrot.slane %v1265_v52, 4  ;;  %v1300_v17 = vrot.slane %v6370_v16, 5  ;;  %v2018_v49 = vshll.u32 %v5124_v3, 16 }
  0x70   : > { %v6595_v13 = vsel %vm6391_vm6, %v5019_v38, %v1286_v33  ;;  %v1288_v37 = vrot.slane %v1286_v33, 4  ;;  %v6607_v24 = vsel %vm6391_vm6, %v5020_v32, %v1293_v23  ;;  %v1295_v34 = vrot.slane %v1293_v23, 4  ;;  %v5127_v38 = vld [vmem:[%s6077_s20 + $0x18] sm:$0xf] }
  0x71   : > { %5725 = vmatmul.mubr.msk.bf16.gmra.mxu0 %vm637_vm2, %v5029_v62  ;;  %v1268_v62 = vrot.slane %v8706_v42, 5  ;;  %v5032_v42 = vcombine.low %v6534_v20, %v6549_v55  ;;  %v2024_v20 = vshll.u32 %v6601_v15, 16  ;;  %v5021_v55 = vrot.slane %v1157_v43, 9 }
  0x72   : > { %5728 = vmatprep.mubr.msk.bf16.mxu0 %vm637_vm2, %v5030_v25  ;;  %v6612_v33 = vsel %vm6391_vm6, %v1288_v37, %v1289_v1  ;;  %v2015_v25 = vshrl.u32 %v5124_v3, 16  ;;  %v6626_v1 = vsel %vm6391_vm6, %v1260_v59, %v1261_v8  ;;  %v6632_v23 = vsel %vm6391_vm6, %v1295_v34, %v1296_v41  ;;  %v5128_v3 = vld [vmem:[%s6077_s20 + $0x1c] sm:$0xf]  ;;  %v5129_v8 = vld [vmem:[%s6077_s20 + $0x20] sm:$0x1] }
  0x73   : > { %v1303_v59 = vrot.slane %v6375_v63, 5  ;;  %v2028_v34 = vshrl.u32 %v6601_v15, 16  ;;  %v2039_v41 = vshrl.u32 %v5127_v38, 16  ;;  %v5130_v37 = vld [vmem:[%s6077_s20 + $0x24] sm:$0xf]  ;;  %v1266_v14 = vsel %vm6391_vm6, %v5016_v5, %v1265_v52 }
  0x74   : > { %v2017_v11 = vrot.slane %v2015_v25, 4  ;;  %v1269_v56 = vsel %vm6391_vm6, %v1267_v47, %v1268_v62  ;;  %v6653_v25 = vld [vmem:[%s6077_s20 + $0x28] sm:$0xf]  ;;  %v6655_v57 = vrot.slane %v2024_v20, 5  ;;  %v2034_v63 = vshll.u32 %v6616_v54, 16 }
  0x75   : > { %5691 = vmatmul.mubr.msk.bf16.gmra.mxu1 %vm637_vm2, %v4978_v6  ;;  %v2020_v6 = vrot.slane %v2018_v49, 5  ;;  %v2042_v49 = vshll.u32 %v5127_v38, 16  ;;  %v2030_v43 = vrot.slane %v2028_v34, 4  ;;  %v2041_v32 = vrot.slane %v2039_v41, 4 }
  0x76   : > { %5694 = vmatprep.mubr.msk.bf16.mxu1 %vm637_vm2, %v4979_v18  ;;  %v1302_v18 = vrot.slane %v1300_v17, 4  ;;  %v2048_v52 = vshll.u32 %v5128_v3, 16  ;;  %v2052_v47 = vshrl.u32 %v5128_v3, 16  ;;  %v2058_v62 = vshll.u32 %v5129_v8, 16  ;;  %v6683_v3 = vld [vmem:[%s6077_s20 + $0x34] sm:$0xf] }
  0x77   : > { %v2021_v21 = vor.u32 %v2020_v6, %v2017_v11  ;;  %v2044_v5 = vrot.slane %v2042_v49, 5  ;;  %v2063_v38 = vshrl.u32 %v5130_v37, 16  ;;  %v2066_v20 = vshll.u32 %v5130_v37, 16  ;;  %8707 = vst [vmem:[#allocation4_spill] sm:$0xff] %v6683_v3  ;;  %v6694_v11 = vld [vmem:[%s6077_s20 + $0x2c] sm:$0x1] }
  0x78   : > { %v5033_v34 = vcombine.low %v6553_v60, %v6626_v1  ;;  %v5034_v41 = vcombine.low %v1266_v14, %v1269_v56  ;;  %v6667_v50 = vsel %vm6391_vm6, %v5021_v55, %v1300_v17  ;;  %v6671_v51 = vsel %vm6391_vm6, %v1302_v18, %v1303_v59  ;;  %v5136_v37 = vld [vmem:[%s6077_s20 + $0x3c] sm:$0xf]  ;;  %v6022_v14 = vld [vmem:[%s6077_s20 + $0x78] sm:$0xf] }
  0x79   : > { %5729 = vmatmul.mubr.msk.bf16.gmra.mxu0 %vm637_vm2, %v5031_v9  ;;  %v5133_v9 = vld [vmem:[%s6077_s20 + $0x30] sm:$0xf]  ;;  %v6679_v60 = vrot.slane %v2034_v63, 5  ;;  %v2045_v1 = vor.u32 %v2044_v5, %v2041_v32  ;;  %v2072_v17 = vshll.u32 %v6653_v25, 16  ;;  %v6689_v19 = vrot.slane %v2021_v21, 4 }
  0x7a   : > { %5732 = vmatprep.mubr.msk.bf16.mxu0 %vm637_vm2, %v5032_v42  ;;  %v2031_v42 = vor.u32 %v2030_v43, %v6655_v57  ;;  %v6691_v44 = vrot.slane %v2048_v52, 5  ;;  %v2076_v32 = vshrl.u32 %v6653_v25, 16  ;;  %v6697_v6 = vrot.slane %v2058_v62, 5  ;;  %v6707_v43 = vld [vmem:[%s6077_s20 + $0x38] sm:$0x1] }
  0x7b   : > { %v2065_v8 = vrot.slane %v2063_v38, 4  ;;  %v2068_v55 = vrot.slane %v2066_v20, 5  ;;  %v2087_v59 = vshrl.u32 %v5133_v9, 16  ;;  %v4983_v56 = vcombine.low %v6022_v14, %v8700_v45  ;;  %8708 = vst [vmem:[#allocation6_spill] sm:$0xff] %v6707_v43 }
  0x7c   : > { %v6704_v18 = vrot.slane %v2072_v17, 5  ;;  %v2078_v49 = vrot.slane %v2076_v32, 4  ;;  %v2032_v63 = vrot.slane %v2031_v42, 4  ;;  %v6709_v21 = vrot.slane %v2045_v1, 4  ;;  %v5139_v17 = vld [vmem:[%s6077_s20 + $0x48] sm:$0xf] }
  0x7d   : > { %5695 = vmatmul.mubr.msk.bf16.gmra.mxu1 %vm637_vm2, %v4980_v22  ;;  %v2054_v22 = vrot.slane %v2052_v47, 4  ;;  %v2089_v5 = vrot.slane %v2087_v59, 4  ;;  %v2090_v52 = vshll.u32 %v5133_v9, 16  ;;  %v6712_v47 = vld [vmem:[%s6077_s20 + $0x40] sm:$0xf]  ;;  %v2027_v45 = vsel %vm6115_vm3, %v6689_v19, %v6655_v57 }
  0x7e   : > { %5698 = vmatprep.mubr.msk.bf16.mxu1 %vm637_vm2, %v4981_v58  ;;  %v4982_v58 = vcombine.low %v6020_v10, %v6021_v12  ;;  %v2096_v38 = vshll.u32 %v6683_v3, 16  ;;  %v2100_v20 = vshrl.u32 %v6683_v3, 16  ;;  %v2069_v42 = vor.u32 %v2068_v55, %v2065_v8  ;;  %v6733_v12 = vld [vmem:[%s6077_s20 + $0x44] sm:$0x1]  ;;  %v6737_v55 = vld [vmem:[%s6077_s20 + $0x4c] sm:$0xf] }
  0x7f   : > { %v2055_v9 = vor.u32 %v2054_v22, %v6691_v44  ;;  %v2092_v1 = vrot.slane %v2090_v52, 5  ;;  %v2079_v32 = vor.u32 %v2078_v49, %v6704_v18  ;;  %v2111_v19 = vshrl.u32 %v5136_v37, 16 }
  0x80   : > { %v6728_v59 = vrot.slane %v2096_v38, 5  ;;  %v2102_v57 = vrot.slane %v2100_v20, 4  ;;  %v2114_v22 = vshll.u32 %v5136_v37, 16  ;;  %v2120_v8 = vshll.u32 %v6712_v47, 16  ;;  %v5142_v37 = vld [vmem:[%s6077_s20 + $0x54] sm:$0xf] }
  0x81   : > { %5733 = vmatmul.mubr.msk.bf16.gmra.mxu0 %vm637_vm2, %v5033_v34  ;;  %v2082_v34 = vshll.u32 %v6694_v11, 16  ;;  %v2093_v10 = vor.u32 %v2092_v1, %v2089_v5  ;;  %v2037_v14 = vsel %vm6115_vm3, %v2032_v63, %v6679_v60  ;;  %v2124_v5 = vshrl.u32 %v6712_v47, 16 }
  0x82   : > { %5736 = vmatprep.mubr.msk.bf16.mxu0 %vm637_vm2, %v5034_v41  ;;  %v2106_v41 = vshll.u32 %v6707_v43, 16  ;;  %v2103_v49 = vor.u32 %v2102_v57, %v6728_v59  ;;  %v2056_v52 = vrot.slane %v2055_v9, 4  ;;  %v2070_v38 = vrot.slane %v2069_v42, 4 }
  0x83   : > { %v2116_v20 = vrot.slane %v2114_v22, 5  ;;  %v6745_v1 = vrot.slane %v2120_v8, 5  ;;  %v2080_v62 = vrot.slane %v2079_v32, 4  ;;  %v2084_v29 = vrot.slane %v2082_v34, 5 }
  0x84   : > { %v2126_v43 = vrot.slane %v2124_v5, 4  ;;  %v2094_v3 = vrot.slane %v2093_v10, 4  ;;  %v2104_v48 = vrot.slane %v2103_v49, 4  ;;  %v2108_v60 = vrot.slane %v2106_v41, 5  ;;  %v6769_v41 = vld [vmem:[%s6077_s20 + $0x58] sm:$0xf] }
  0x85   : > { %5699 = vmatmul.mubr.msk.bf16.gmra.mxu1 %vm637_vm2, %v4982_v58  ;;  %v2113_v58 = vrot.slane %v2111_v19, 4  ;;  %v2138_v63 = vshll.u32 %v5139_v17, 16  ;;  %v8709_v57 = vcombine.low %v6561_v46, %v6571_v26  ;;  %v6752_v9 = vcombine.low %v2027_v45, %v2037_v14  ;;  %v6766_v45 = vld [vmem:[%s6077_s20 + $0x50] sm:$0x1]  ;;  %v6791_v49 = vld [vmem:[%s6077_s20 + $0x64] sm:$0xf] }
  0x86   : > { %5702 = vmatprep.mubr.msk.bf16.mxu1 %vm637_vm2, %v4983_v56  ;;  %v2135_v56 = vshrl.u32 %v5139_v17, 16  ;;  %v2130_v32 = vshll.u32 %v6733_v12, 16  ;;  %v2144_v34 = vshll.u32 %v6737_v55, 16  ;;  %v8710_v19 = vcombine.low %v6575_v27, %v6585_v0 }
  0x87   : > { %v2117_v42 = vor.u32 %v2116_v20, %v2113_v58  ;;  %v2051_v46 = vsel %vm6115_vm3, %v6709_v21, %v6691_v44  ;;  %v2127_v26 = vor.u32 %v2126_v43, %v6745_v1  ;;  %v2140_v10 = vrot.slane %v2138_v63, 5  ;;  %v5145_v21 = vld [vmem:[%s6077_s20 + $0x60] sm:$0xf] }
  0x88   : > { %v2137_v17 = vrot.slane %v2135_v56, 4  ;;  %v2061_v27 = vsel %vm6115_vm3, %v2056_v52, %v6697_v6  ;;  %v2075_v0 = vsel %vm6115_vm3, %v2070_v38, %v6704_v18  ;;  %v2148_v22 = vshrl.u32 %v6737_v55, 16 }
  0x89   : > { %5737 = vmatmul.mubr.msk.bf16.gmra.mxu0 %vm637_vm2, %v8709_v57  ;;  %v2159_v44 = vshrl.u32 %v5142_v37, 16  ;;  %v8711_v43 = vcombine.low %v6211_v31, %v6218_v36  ;;  %v2085_v8 = vsel %vm6115_vm3, %v2080_v62, %v2084_v29  ;;  %v2099_v6 = vsel %vm6115_vm3, %v2094_v3, %v6728_v59 }
  0x8a   : > { %5740 = vmatprep.mubr.msk.bf16.mxu0 %vm637_vm2, %v8710_v19  ;;  %v2109_v14 = vsel %vm6115_vm3, %v2104_v48, %v2108_v60  ;;  %v2162_v18 = vshll.u32 %v5142_v37, 16  ;;  %v8712_v58 = vcombine.low %v6251_v30, %v6256_v39  ;;  %v2118_v31 = vrot.slane %v2117_v42, 4  ;;  %v5148_v30 = vld [vmem:[%s6077_s20 + $0x6c] sm:$0xf] }
  0x8b   : > { %v2132_v36 = vrot.slane %v2130_v32, 5  ;;  %v6797_v5 = vrot.slane %v2144_v34, 5  ;;  %v2168_v29 = vshll.u32 %v6769_v41, 16  ;;  %v2128_v62 = vrot.slane %v2127_v26, 4  ;;  %v6818_v34 = vld [vmem:[%s6077_s20 + $0x5c] sm:$0x1] }
  0x8c   : > { %v2141_v3 = vor.u32 %v2140_v10, %v2137_v17  ;;  %v2150_v59 = vrot.slane %v2148_v22, 4  ;;  %v2154_v48 = vshll.u32 %v6766_v45, 16  ;;  %v2161_v52 = vrot.slane %v2159_v44, 4  ;;  %v6832_v10 = vld [vmem:[%s6077_s20 + $0x68] sm:$0x1] }
  0x8d   : > { %5703 = vmatmul.mubr.msk.bf16.gmra.mxu1 %vm637_vm2, %v8711_v43  ;;  %v2164_v38 = vrot.slane %v2162_v18, 5  ;;  %v2172_v20 = vshrl.u32 %v6769_v41, 16  ;;  %v2183_v37 = vshrl.u32 %v5145_v21, 16  ;;  %v6803_v39 = vcombine.low %v2051_v46, %v2061_v27  ;;  %v6836_v27 = vld [vmem:[%s6077_s20 + $0x70] sm:$0xf] }
  0x8e   : > { %5706 = vmatprep.mubr.msk.bf16.mxu1 %vm637_vm2, %v8712_v58  ;;  %v6805_v56 = vcombine.low %v2075_v0, %v2085_v8  ;;  %v2186_v60 = vshll.u32 %v5145_v21, 16  ;;  %v2192_v63 = vshll.u32 %v6791_v49, 16  ;;  %v8713_v57 = vcombine.low %v6595_v13, %v6612_v33 }
  0x8f   : > { %v6812_v42 = vcombine.low %v2099_v6, %v2109_v14  ;;  %v2123_v32 = vsel %vm6115_vm3, %v2118_v31, %v6745_v1  ;;  %v6820_v19 = vrot.slane %v2168_v29, 5  ;;  %v2174_v46 = vrot.slane %v2172_v20, 4  ;;  %v6848_v14 = vld [vmem:[%s6077_s20 + $0x74] sm:$0x1] }
  0x90   : > { %v8714_v26 = vcombine.low %v6607_v24, %v6632_v23  ;;  %v2133_v13 = vsel %vm6115_vm3, %v2128_v62, %v2132_v36  ;;  %v6828_v33 = vrot.slane %v2141_v3, 4  ;;  %v2151_v17 = vor.u32 %v2150_v59, %v6797_v5  ;;  %v5151_v36 = vld [vmem:[%s6077_s20 + $0x78] sm:$0xf] }
  0x91   : > { %5741 = vmatmul.mubr.msk.bf16.gmra.mxu0 %vm637_vm2, %v8713_v57  ;;  %v2196_v1 = vshrl.u32 %v6791_v49, 16  ;;  %v2165_v0 = vor.u32 %v2164_v38, %v2161_v52  ;;  %v2185_v22 = vrot.slane %v2183_v37, 4  ;;  %v2188_v24 = vrot.slane %v2186_v60, 5 }
  0x92   : > { %5744 = vmatprep.mubr.msk.bf16.mxu0 %vm637_vm2, %v8714_v26  ;;  %v2207_v23 = vshrl.u32 %v5148_v30, 16  ;;  %v8715_v44 = vcombine.low %v8699_v2, %v8698_v7  ;;  %v6842_v21 = vrot.slane %v2154_v48, 5  ;;  %v2178_v43 = vshll.u32 %v6818_v34, 16 }
  0x93   : > { %v6845_v8 = vrot.slane %v2192_v63, 5  ;;  %v2198_v6 = vrot.slane %v2196_v1, 4  ;;  %v8716_v18 = vcombine.low %v8703_v53, %v8702_v35  ;;  %v6854_v58 = vcombine.low %v2123_v32, %v2133_v13  ;;  %v6865_v53 = vld [vmem:[%s6077_s20 + $0x7c] sm:$0xf]  ;;  %v5984_v63 = vld [vmem:[%s6077_s20 + $0xc] sm:$0xff]  }
  0x94   : > { %v2175_v7 = vor.u32 %v2174_v46, %v6820_v19  ;;  %v2209_v2 = vrot.slane %v2207_v23, 4  ;;  %v2210_v31 = vshll.u32 %v5148_v30, 16  ;;  %v2147_v29 = vsel %vm6115_vm3, %v6828_v33, %v6797_v5  ;;  %v5154_v13 = vld [vmem:[%s6077_s20 + $0x84] sm:$0xf]  ;;  %v6890_v23 = vld [vmem:[%s6077_s20 + $0x88] sm:$0xf] }
  0x95   : > { %5707 = vmatmul.mubr.msk.bf16.gmra.mxu1 %vm637_vm2, %v8715_v44  ;;  %v2152_v62 = vrot.slane %v2151_v17, 4  ;;  %v2216_v3 = vshll.u32 %v6836_v27, 16  ;;  %v2220_v35 = vshrl.u32 %v6836_v27, 16  ;;  %v2166_v59 = vrot.slane %v2165_v0, 4 }
  0x96   : > { %5710 = vmatprep.mubr.msk.bf16.mxu1 %vm637_vm2, %v8716_v18  ;;  %v2189_v48 = vor.u32 %v2188_v24, %v2185_v22  ;;  %v2202_v52 = vshll.u32 %v6832_v10, 16  ;;  %v2212_v38 = vrot.slane %v2210_v31, 5  ;;  %v2180_v20 = vrot.slane %v2178_v43, 5 }
  0x97   : > { %v2199_v37 = vor.u32 %v2198_v6, %v6845_v8  ;;  %v6869_v30 = vrot.slane %v2216_v3, 5  ;;  %v2231_v60 = vshrl.u32 %v5151_v36, 16  ;;  %v8717_v5 = vcombine.low %v6667_v50, %v6671_v51 }
  0x98   : > { %v2176_v57 = vrot.slane %v2175_v7, 4  ;;  %v2213_v32 = vor.u32 %v2212_v38, %v2209_v2  ;;  %v2222_v46 = vrot.slane %v2220_v35, 4  ;;  %v2226_v26 = vshll.u32 %v6848_v14, 16  ;;  %v6911_v35 = vld [vmem:[%s6077_s20 + $0x94] sm:$0xf] }
  0x99   : > { %5745 = vmatmul.mubr.msk.bf16.gmra.mxu0 %vm637_vm2, %v8717_v5  ;;  %v2157_v33 = vsel %vm6115_vm3, %v2152_v62, %v6842_v21  ;;  %v2234_v17 = vshll.u32 %v5151_v36, 16  ;;  %v2240_v50 = vshll.u32 %v6865_v53, 16  ;;  %v2244_v51 = vshrl.u32 %v6865_v53, 16  ;;  %v6897_v21 = vld [vmem:[%s6077_s20 + $0x80] sm:$0x1] }
  0x9a   : > { %5784 = vmatprep.mubr.msk.bf16.mxu0 %vm637_vm2, %v6752_v9  ;;  %v2171_v1 = vsel %vm6115_vm3, %v2166_v59, %v6820_v19  ;;  %v2190_v0 = vrot.slane %v2189_v48, 4  ;;  %v2204_v22 = vrot.slane %v2202_v52, 5  ;;  %v2223_v24 = vor.u32 %v2222_v46, %v6869_v30 }
  0x9b   : > { %v8718_v9 = vcombine.low %v8705_v61, %v6370_v16  ;;  %v2200_v44 = vrot.slane %v2199_v37, 4  ;;  %v2233_v43 = vrot.slane %v2231_v60, 4  ;;  %v2236_v6 = vrot.slane %v2234_v17, 5  ;;  %v5157_v61 = vld [vmem:[%s6077_s20 + $0x90] sm:$0xf]  ;;  %v5986_v37 = vld [vmem:[%s6077_s20 + $0x18] sm:$0xff]  }
  0x9c   : > { %v2255_v18 = vshrl.u32 %v5154_v13, 16  ;;  %v2181_v19 = vsel %vm6115_vm3, %v2176_v57, %v2180_v20  ;;  %v6902_v7 = vrot.slane %v2213_v32, 4  ;;  %v6904_v2 = vrot.slane %v2226_v26, 5  ;;  %v6918_v20 = vld [vmem:[%s8649_s1 + $0x40] sm:$0xff]  }
  0x9d   : > { %5711 = vmatmul.mubr.msk.bf16.gmra.mxu1 %vm637_vm2, %v8718_v9  ;;  %v2258_v16 = vshll.u32 %v5154_v13, 16  ;;  %v6907_v31 = vrot.slane %v2240_v50, 5  ;;  %v2246_v36 = vrot.slane %v2244_v51, 4  ;;  %v2264_v3 = vshll.u32 %v6890_v23, 16  ;;  %8719 = vst [vmem:[#allocation5_spill] sm:$0xff] %v6918_v20  ;;  %v5988_v32 = vld [vmem:[%s6077_s20 + $0x24] sm:$0xff]  }
  0x9e   : > { %5750 = vmatprep.mubr.msk.bf16.mxu1 %vm637_vm2, %v5984_v63  ;;  %v2257_v62 = vrot.slane %v2255_v18, 4  ;;  %v2224_v59 = vrot.slane %v2223_v24, 4  ;;  %v2250_v48 = vshll.u32 %v6897_v21, 16  ;;  %v2268_v38 = vshrl.u32 %v6890_v23, 16  ;;  %v6936_v13 = vld [vmem:[%s6077_s20 + $0x8c] sm:$0x1] }
  0x9f   : > { %v2260_v52 = vrot.slane %v2258_v16, 5  ;;  %v2195_v60 = vsel %vm6115_vm3, %v2190_v0, %v6845_v8  ;;  %v2205_v5 = vsel %vm6115_vm3, %v2200_v44, %v2204_v22  ;;  %v2237_v63 = vor.u32 %v2236_v6, %v2233_v43  ;;  %v6961_v24 = vld [vmem:[%s6077_s20 + $0xa0] sm:$0xf]  ;;  %v6973_v6 = vld [vmem:[%s6077_s20 + $0x98] sm:$0x1] }
  0xa0   : > { %v6926_v57 = vrot.slane %v2264_v3, 5  ;;  %v6931_v46 = vcombine.low %v2147_v29, %v2157_v33  ;;  %v6933_v26 = vcombine.low %v2171_v1, %v2181_v19  ;;  %v2270_v17 = vrot.slane %v2268_v38, 4  ;;  %v5160_v29 = vld [vmem:[%s6077_s20 + $0x9c] sm:$0xf]  ;;  %8721 = vst [vmem:[#allocation7_spill] sm:$0xff] %v6961_v24 }
  0xa1   : > { %5785 = vmatmul.mubr.msk.bf16.vlgmr.msra.gmra.mxu0 %vm637_vm2, %v6803_v39  ;;  %v2279_v8 = vshrl.u32 %v5157_v61, 16  ;;  %v2247_v50 = vor.u32 %v2246_v36, %v6907_v31  ;;  %v2261_v51 = vor.u32 %v2260_v52, %v2257_v62  ;;  %v2282_v0 = vshll.u32 %v5157_v61, 16  ;;  %v6947_v33 = vld [vmem:[%s8649_s1 + $0x38] sm:$0xff]   ;;  %v6986_v38 = vld [vmem:[%s6077_s20 + $0xac] sm:$0xf] }
  0xa2   : > { %5851 = vmatpush3.bf16.msra.mxu0 %v6452_v40  ;;  %5788 = vmatprep.mubr.msk.bf16.mxu0 %vm637_vm2, %v6805_v56  ;;  %v2288_v39 = vshll.u32 %v6911_v35, 16  ;;  %8720 = vst [vmem:[#allocation2_spill] sm:$0xff] %v6947_v33  ;;  %v6949_v1 = vcombine.low %v2195_v60, %v2205_v5  ;;  %v2219_v40 = vsel %vm6115_vm3, %v6902_v7, %v6869_v30  ;;  %v6958_v22 = vrot.slane %v2250_v48, 5 }
  0xa3   : > { %v2229_v56 = vsel %vm6115_vm3, %v2224_v59, %v6904_v2  ;;  %5918 = vmatprep.subr.bf16.mxu0 %v6918_v20  ;;  %v6965_v9 = vrot.slane %v2237_v63, 4  ;;  %v2271_v44 = vor.u32 %v2270_v17, %v6926_v57  ;;  %v2274_v43 = vshll.u32 %v6936_v13, 16  ;;  %8722 = vst [vmem:[#allocation9_spill] sm:$0xff] %v6986_v38  ;;  %v5990_v17 = vld [vmem:[%s6077_s20 + $0x3c] sm:$0xff]   ;;  %v7052_v20 = vld [vmem:[%s6077_s20 + $0xc4] sm:$0xf] }
  0xa4   : > { %v2292_v30 = vshrl.u32 %v6911_v35, 16  ;;  %v2281_v18 = vrot.slane %v2279_v8, 4  ;;  %v2284_v19 = vrot.slane %v2282_v0, 5  ;;  %v2303_v7 = vshrl.u32 %v5160_v29, 16 }
  0xa5   : > { %5751 = vmatmul.mubr.msk.bf16.vlgmr.msra.gmra.mxu1 %vm637_vm2, %v5986_v37  ;;  %v2306_v2 = vshll.u32 %v5160_v29, 16  ;;  %v6975_v16 = vrot.slane %v2247_v50, 4  ;;  %v6977_v61 = vrot.slane %v2261_v51, 4  ;;  %v6979_v36 = vrot.slane %v2288_v39, 5  ;;  %v5989_v37 = vld [vmem:[%s6077_s20 + $0x30] sm:$0xff]  }
  0xa6   : > { %5817 = vmatpush3.bf16.msra.mxu1 %v6472_v4  ;;  %5754 = vmatprep.mubr.msk.bf16.mxu1 %vm637_vm2, %v5988_v32  ;;  %v2312_v62 = vshll.u32 %v6961_v24, 16  ;;  %v5163_v4 = vld [vmem:[%s6077_s20 + $0xa8] sm:$0xf]  ;;  %v2294_v3 = vrot.slane %v2292_v30, 4  ;;  %v2305_v59 = vrot.slane %v2303_v7, 4  ;;  %v2316_v52 = vshrl.u32 %v6961_v24, 16 }
  0xa7   : > { %5884 = vmatprep.subr.bf16.mxu1 %v6947_v33  ;;  %v2308_v48 = vrot.slane %v2306_v2, 5  ;;  %v6989_v60 = vcombine.low %v2219_v40, %v2229_v56  ;;  %v6991_v5 = vrot.slane %v2271_v44, 4  ;;  %v6993_v63 = vrot.slane %v2274_v43, 5  ;;  %v7000_v50 = vld [vmem:[%s6077_s20 + $0xa4] sm:$0x1] }
  0xa8   : > { %v2298_v32 = vshll.u32 %v6973_v6, 16  ;;  %v2285_v8 = vor.u32 %v2284_v19, %v2281_v18  ;;  %8723 = vst [vmem:[#allocation8_spill] sm:$0xff] %v7000_v50  ;;  %v7002_v51 = vrot.slane %v2312_v62, 5  ;;  %v2318_v0 = vrot.slane %v2316_v52, 4  ;;  %v7021_v30 = vld [vmem:[%s6077_s20 + $0xb0] sm:$0x1] }
  0xa9   : > { %5789 = vmatmul.mubr.msk.bf16.gmra.mxu0 %vm637_vm2, %v6812_v42  ;;  %v2327_v39 = vshrl.u32 %v5163_v4, 16  ;;  %v2253_v42 = vsel %vm6115_vm3, %v6975_v16, %v6958_v22  ;;  %v2330_v40 = vshll.u32 %v5163_v4, 16  ;;  %v2336_v56 = vshll.u32 %v6986_v38, 16  ;;  %8724 = vst [vmem:[#allocation10_spill] sm:$0xff] %v7021_v30  ;;  %v5166_v19 = vld [vmem:[%s6077_s20 + $0xb4] sm:$0xf] }
  0xaa   : > { %5792 = vmatprep.mubr.msk.bf16.mxu0 %vm637_vm2, %v6854_v58  ;;  %v2295_v58 = vor.u32 %v2294_v3, %v6979_v36  ;;  %v2309_v43 = vor.u32 %v2308_v48, %v2305_v59  ;;  %v2322_v22 = vshll.u32 %v7000_v50, 16  ;;  %v2340_v16 = vshrl.u32 %v6986_v38, 16  ;;  %v7030_v62 = vld [vmem:[%s6077_s20 + $0xb8] sm:$0xf]  ;;  %v7061_v24 = vld [vmem:[%s6077_s20 + $0xc8] sm:$0x1] }
  0xab   : > { %v2329_v18 = vrot.slane %v2327_v39, 4  ;;  %v2332_v7 = vrot.slane %v2330_v40, 5  ;;  %v7026_v2 = vrot.slane %v2336_v56, 5  ;;  %8725 = vst [vmem:[#allocation11_spill] sm:$0xff] %v7030_v62  ;;  %v2277_v4 = vsel %vm6115_vm3, %v6991_v5, %v6993_v63  ;;  %v7044_v39 = vld [vmem:[%s6077_s20 + $0xbc] sm:$0x1] }
  0xac   : > { %v7037_v3 = vrot.slane %v2285_v8, 4  ;;  %v7039_v59 = vrot.slane %v2298_v32, 5  ;;  %v2319_v48 = vor.u32 %v2318_v0, %v7002_v51  ;;  %v2342_v52 = vrot.slane %v2340_v16, 4  ;;  %v5169_v63 = vld [vmem:[%s6077_s20 + $0xc0] sm:$0xf]  ;;  %v5991_v32 = vld [vmem:[%s6077_s20 + $0x48] sm:$0xff]  }
  0xad   : > { %5755 = vmatmul.mubr.msk.bf16.gmra.mxu1 %vm637_vm2, %v5989_v37  ;;  %v2346_v37 = vshll.u32 %v7021_v30, 16  ;;  %v2351_v40 = vshrl.u32 %v5166_v19, 16  ;;  %v2296_v56 = vrot.slane %v2295_v58, 4  ;;  %v2333_v44 = vor.u32 %v2332_v7, %v2329_v18 }
  0xae   : > { %5758 = vmatprep.mubr.msk.bf16.mxu1 %vm637_vm2, %v5990_v17  ;;  %v2354_v17 = vshll.u32 %v5166_v19, 16  ;;  %v2360_v29 = vshll.u32 %v7030_v62, 16  ;;  %v2364_v5 = vshrl.u32 %v7030_v62, 16  ;;  %v2310_v8 = vrot.slane %v2309_v43, 4  ;;  %v5992_v19 = vld [vmem:[%s6077_s20 + $0x54] sm:$0xff]  }
  0xaf   : > { %v2324_v33 = vrot.slane %v2322_v22, 5  ;;  %v2343_v0 = vor.u32 %v2342_v52, %v7026_v2  ;;  %v2353_v16 = vrot.slane %v2351_v40, 4  ;;  %v2370_v30 = vshll.u32 %v7044_v39, 16 }
  0xb0   : > { %v2356_v58 = vrot.slane %v2354_v17, 5  ;;  %v2362_v18 = vrot.slane %v2360_v29, 5  ;;  %v2366_v7 = vrot.slane %v2364_v5, 4  ;;  %v2320_v43 = vrot.slane %v2319_v48, 4 }
  0xb1   : > { %5793 = vmatmul.mubr.msk.bf16.gmra.mxu0 %vm637_vm2, %v6931_v46  ;;  %v2348_v22 = vrot.slane %v2346_v37, 5  ;;  %v2375_v62 = vshrl.u32 %v5169_v63, 16  ;;  %v2378_v52 = vshll.u32 %v5169_v63, 16  ;;  %v2334_v40 = vrot.slane %v2333_v44, 4 }
  0xb2   : > { %5796 = vmatprep.mubr.msk.bf16.mxu0 %vm637_vm2, %v6933_v26  ;;  %v2357_v38 = vor.u32 %v2356_v58, %v2353_v16  ;;  %v2367_v50 = vor.u32 %v2366_v7, %v2362_v18  ;;  %v2384_v46 = vshll.u32 %v7052_v20, 16  ;;  %v2344_v29 = vrot.slane %v2343_v0, 4 }
  0xb3   : > { %v2377_v17 = vrot.slane %v2375_v62, 4  ;;  %v2380_v5 = vrot.slane %v2378_v52, 5  ;;  %v2388_v26 = vshrl.u32 %v7052_v20, 16  ;;  %v2372_v44 = vrot.slane %v2370_v30, 5 }
  0xb4   : > { %v2358_v48 = vrot.slane %v2357_v38, 4  ;;  %v2368_v37 = vrot.slane %v2367_v50, 4  ;;  %v7067_v63 = vrot.slane %v2384_v46, 5  ;;  %v2394_v58 = vshll.u32 %v7061_v24, 16 }
  0xb5   : > { %5759 = vmatmul.mubr.msk.bf16.gmra.mxu1 %vm637_vm2, %v5991_v32  ;;  %v8726_v32 = vsel %vm6115_vm3, %v6965_v9, %v6907_v31  ;;  %v2381_v62 = vor.u32 %v2380_v5, %v2377_v17  ;;  %v2390_v16 = vrot.slane %v2388_v26, 4  ;;  %v8727_v38 = vsel %vm6115_vm3, %v6977_v61, %v6926_v57 }
  0xb6   : > { %5762 = vmatprep.mubr.msk.bf16.mxu1 %vm637_vm2, %v5992_v19  ;;  %v5183_v0 = vcombine.low %v8726_v32, %v2253_v42  ;;  %v5184_v50 = vcombine.low %v8727_v38, %v2277_v4  ;;  %v2291_v30 = vsel %vm6115_vm3, %v7037_v3, %v6979_v36  ;;  %v2301_v31 = vsel %vm6115_vm3, %v2296_v56, %v7039_v59  ;;  %v5209_v42 = vld [vmem:[%s6077_s20 + $0x24] sm:$0xe]  ;;  %v7101_v3 = vld [vmem:[%s6077_s20 + $0xc] sm:$0xe] }
  0xb7   : > { %v2315_v9 = vsel %vm6115_vm3, %v2310_v8, %v7002_v51  ;;  %v5993_v19 = vld [vmem:[%s6077_s20 + $0x60] sm:$0xff]   ;;  %v2325_v57 = vsel %vm6115_vm3, %v2320_v43, %v2324_v33  ;;  %v2339_v61 = vsel %vm6115_vm3, %v2334_v40, %v7026_v2  ;;  %v2349_v36 = vsel %vm6115_vm3, %v2344_v29, %v2348_v22  ;;  %v5994_v51 = vld [vmem:[%s6077_s20 + $0x6c] sm:$0xff]   ;;  %v5211_v29 = vld [vmem:[%s6077_s20 + $0x3c] sm:$0xe] }
  0xb8   : > { %v2391_v4 = vor.u32 %v2390_v16, %v7067_v63  ;;  %v2363_v59 = vsel %vm6115_vm3, %v2358_v48, %v2362_v18  ;;  %v2373_v33 = vsel %vm6115_vm3, %v2368_v37, %v2372_v44  ;;  %v7110_v56 = vrot.slane %v2381_v62, 4  ;;  %v5210_v8 = vld [vmem:[%s6077_s20 + $0x30] sm:$0xe]  ;;  %v5212_v48 = vld [vmem:[%s6077_s20 + $0x48] sm:$0xe]  ;;  %v8730_v38 = vld [vmem:[#allocation6_spill] sm:$0xff] }
  0xb9   : > { %5797 = vmatmul.mubr.msk.bf16.gmra.mxu0 %vm637_vm2, %v6949_v1  ;;  %v2762_v2 = vrot.slane %v6601_v15, 5  ;;  %v7116_v7 = vcombine.low %v2291_v30, %v2301_v31  ;;  %v7120_v43 = vrot.slane %v2394_v58, 5  ;;  %v5225_v22 = vrot.slane %v5209_v42, 9  ;;  %v8729_v16 = vld [vmem:[#allocation4_spill] sm:$0xff]  ;;  %v6001_v15 = vld [vmem:[%s6077_s20 + $0xc0] sm:$0xff]  }
  0xba   : > { %5800 = vmatprep.mubr.msk.bf16.mxu0 %vm637_vm2, %v6989_v60  ;;  %v7118_v1 = vrot.slane %v2391_v4, 4  ;;  %v7122_v18 = vcombine.low %v2315_v9, %v2325_v57  ;;  %v7124_v52 = vcombine.low %v2339_v61, %v2349_v36  ;;  %v5223_v40 = vrot.slane %v7101_v3, 9  ;;  %v5213_v9 = vld [vmem:[%s6077_s20 + $0x54] sm:$0xe]  ;;  %v5995_v36 = vld [vmem:[%s6077_s20 + $0x78] sm:$0xff]  }
  0xbb   : > { %v2776_v46 = vrot.slane %v6653_v25, 5  ;;  %v7130_v60 = vcombine.low %v2363_v59, %v2373_v33  ;;  %v2765_v17 = vrot.slane %v6616_v54, 5  ;;  %v2779_v5 = vrot.slane %v6694_v11, 5 }
  0xbc   : > { %v5226_v26 = vrot.slane %v5210_v8, 9  ;;  %v2387_v25 = vsel %vm6115_vm3, %v7110_v56, %v7067_v63  ;;  %v7142_v37 = vrot.slane %v2762_v2, 4  ;;  %v2397_v62 = vsel %vm6115_vm3, %v7118_v1, %v7120_v43  ;;  %v5214_v8 = vld [vmem:[%s6077_s20 + $0x60] sm:$0xe]  ;;  %v6002_v56 = vld [vmem:[%s6077_s20 + $0x18] sm:$0xff]  }
  0xbd   : > { %5763 = vmatmul.mubr.msk.bf16.gmra.mxu1 %vm637_vm2, %v5993_v19  ;;  %v7146_v32 = vsel %vm6391_vm6, %v5225_v22, %v2776_v46  ;;  %v2778_v11 = vrot.slane %v2776_v46, 4  ;;  %v2783_v58 = vrot.slane %v8729_v16, 5  ;;  %v2786_v30 = vrot.slane %v8730_v38, 5  ;;  %v5208_v43 = vld [vmem:[%s6077_s20 + $0x18] sm:$0xe] }
  0xbe   : > { %5766 = vmatprep.mubr.msk.bf16.mxu1 %vm637_vm2, %v5994_v51  ;;  %v5227_v31 = vrot.slane %v5211_v29, 9  ;;  %v2790_v19 = vrot.slane %v6712_v47, 5  ;;  %v2793_v57 = vrot.slane %v6733_v12, 5  ;;  %v5228_v61 = vrot.slane %v5212_v48, 9  ;;  %v5996_v47 = vld [vmem:[%s6077_s20 + $0x84] sm:$0xff]  }
  0xbf   : > { %v7157_v42 = vsel %vm6391_vm6, %v2778_v11, %v2779_v5  ;;  %v7166_v51 = vsel %vm6391_vm6, %v5226_v26, %v2783_v58  ;;  %v2785_v59 = vrot.slane %v2783_v58, 4  ;;  %v2797_v33 = vrot.slane %v6737_v55, 5  ;;  %v5215_v48 = vld [vmem:[%s6077_s20 + $0x6c] sm:$0xe]  ;;  %v5216_v58 = vld [vmem:[%s6077_s20 + $0x78] sm:$0xe] }
  0xc0   : > { %v5243_v4 = vcombine.low %v7146_v32, %v7157_v42  ;;  %v7174_v12 = vsel %vm6391_vm6, %v5227_v31, %v2790_v19  ;;  %v2792_v22 = vrot.slane %v2790_v19, 4  ;;  %v2800_v46 = vrot.slane %v6766_v45, 5 }
  0xc1   : > { %5801 = vmatmul.mubr.msk.bf16.gmra.mxu0 %vm637_vm2, %v5183_v0  ;;  %v5229_v29 = vrot.slane %v5213_v9, 9  ;;  %v7180_v5 = vsel %vm6391_vm6, %v2785_v59, %v2786_v30  ;;  %v7184_v55 = vsel %vm6391_vm6, %v5228_v61, %v2797_v33  ;;  %v2799_v0 = vrot.slane %v2797_v33, 4  ;;  %v5217_v61 = vld [vmem:[%s6077_s20 + $0x84] sm:$0xe] }
  0xc2   : > { %5804 = vmatprep.mubr.msk.bf16.mxu0 %vm637_vm2, %v5184_v50  ;;  %v2804_v26 = vrot.slane %v6769_v41, 5  ;;  %v5244_v11 = vcombine.low %v7166_v51, %v7180_v5  ;;  %v7192_v45 = vsel %vm6391_vm6, %v2792_v22, %v2793_v57  ;;  %v2807_v50 = vrot.slane %v6818_v34, 5  ;;  %v7444_v34 = vld [vmem:[%s6077_s20 + $0x38] sm:$0x1] }
  0xc3   : > { %v5230_v16 = vrot.slane %v5214_v8, 9  ;;  %v5245_v38 = vcombine.low %v7174_v12, %v7192_v45  ;;  %v7201_v41 = vsel %vm6391_vm6, %v2799_v0, %v2800_v46  ;;  %v2811_v9 = vrot.slane %v6791_v49, 5  ;;  %v5218_v46 = vld [vmem:[%s6077_s20 + $0x90] sm:$0xe] }
  0xc4   : > { %v7205_v30 = vsel %vm6391_vm6, %v5229_v29, %v2804_v26  ;;  %v2806_v31 = vrot.slane %v2804_v26, 4  ;;  %v2814_v19 = vrot.slane %v6832_v10, 5  ;;  %v5231_v57 = vrot.slane %v5215_v48, 9  ;;  %v5997_v29 = vld [vmem:[%s6077_s20 + $0x90] sm:$0xff]   ;;  %v5998_v48 = vld [vmem:[%s6077_s20 + $0x9c] sm:$0xff]  }
  0xc5   : > { %5767 = vmatmul.mubr.msk.bf16.gmra.mxu1 %vm637_vm2, %v5995_v36  ;;  %v2818_v59 = vrot.slane %v6836_v27, 5  ;;  %v2821_v33 = vrot.slane %v6848_v14, 5  ;;  %v5232_v8 = vrot.slane %v5216_v58, 9  ;;  %v7223_v49 = vsel %vm6391_vm6, %v5230_v16, %v2811_v9 }
  0xc6   : > { %5770 = vmatprep.mubr.msk.bf16.mxu1 %vm637_vm2, %v5996_v47  ;;  %v7215_v36 = vsel %vm6391_vm6, %v2806_v31, %v2807_v50  ;;  %v2813_v10 = vrot.slane %v2811_v9, 4  ;;  %v2825_v22 = vrot.slane %v6865_v53, 5  ;;  %v2828_v14 = vrot.slane %v6897_v21, 5  ;;  %v5219_v31 = vld [vmem:[%s6077_s20 + $0x9c] sm:$0xe] }
  0xc7   : > { %v7230_v0 = vsel %vm6391_vm6, %v5231_v57, %v2818_v59  ;;  %v2820_v27 = vrot.slane %v2818_v59, 4  ;;  %v5233_v26 = vrot.slane %v5217_v61, 9  ;;  %v2832_v58 = vrot.slane %v6890_v23, 5  ;;  %v5220_v57 = vld [vmem:[%s6077_s20 + $0xa8] sm:$0xe] }
  0xc8   : > { %v7238_v50 = vsel %vm6391_vm6, %v2813_v10, %v2814_v19  ;;  %v7242_v53 = vsel %vm6391_vm6, %v5232_v8, %v2825_v22  ;;  %v2827_v16 = vrot.slane %v2825_v22, 4  ;;  %v2835_v9 = vrot.slane %v6936_v13, 5  ;;  %v5221_v22 = vld [vmem:[%s6077_s20 + $0xb4] sm:$0xe]  ;;  %v5222_v13 = vld [vmem:[%s6077_s20 + $0xc0] sm:$0xe] }
  0xc9   : > { %5805 = vmatmul.mubr.msk.bf16.gmra.mxu0 %vm637_vm2, %v7116_v7  ;;  %v7252_v7 = vsel %vm6391_vm6, %v2820_v27, %v2821_v33  ;;  %v5234_v19 = vrot.slane %v5218_v46, 9  ;;  %v2834_v59 = vrot.slane %v2832_v58, 4  ;;  %v2839_v33 = vrot.slane %v6911_v35, 5  ;;  %v8731_v27 = vld [vmem:[#allocation7_spill] sm:$0xff] }
  0xca   : > { %5808 = vmatprep.mubr.msk.bf16.mxu0 %vm637_vm2, %v7122_v18  ;;  %v7260_v23 = vsel %vm6391_vm6, %v2827_v16, %v2828_v14  ;;  %v7264_v18 = vsel %vm6391_vm6, %v5233_v26, %v2832_v58  ;;  %v2842_v8 = vrot.slane %v6973_v6, 5  ;;  %v5235_v10 = vrot.slane %v5219_v31, 9  ;;  %v8732_v26 = vld [vmem:[#allocation8_spill] sm:$0xff]  ;;  %v8733_v31 = vld [vmem:[#allocation9_spill] sm:$0xff]  ;;  %v5999_v61 = vld [vmem:[%s6077_s20 + $0xa8] sm:$0xff]  }
  0xcb   : > { %v7275_v46 = vsel %vm6391_vm6, %v2834_v59, %v2835_v9  ;;  %v2846_v14 = vrot.slane %v8731_v27, 5  ;;  %v5236_v16 = vrot.slane %v5220_v57, 9  ;;  %v7283_v6 = vsel %vm6391_vm6, %v5234_v19, %v2839_v33  ;;  %v8734_v27 = vld [vmem:[#allocation10_spill] sm:$0xff] }
  0xcc   : > { %v2841_v58 = vrot.slane %v2839_v33, 4  ;;  %v5237_v57 = vrot.slane %v5221_v22, 9  ;;  %v2763_v1 = vsel %vm6391_vm6, %v5223_v40, %v2762_v2  ;;  %v2766_v63 = vsel %vm6391_vm6, %v7142_v37, %v2765_v17  ;;  %v6024_v17 = vld [vmem:[%s6077_s20 + $0x20] sm:$0x1] }
  0xcd   : > { %5771 = vmatmul.mubr.msk.bf16.gmra.mxu1 %vm637_vm2, %v5997_v29  ;;  %v2849_v29 = vrot.slane %v8732_v26, 5  ;;  %v7289_v9 = vsel %vm6391_vm6, %v5235_v10, %v2846_v14  ;;  %v2848_v59 = vrot.slane %v2846_v14, 4  ;;  %v2856_v26 = vrot.slane %v8734_v27, 5  ;;  %v6000_v10 = vld [vmem:[%s6077_s20 + $0xb4] sm:$0xff]  }
  0xce   : > { %5774 = vmatprep.mubr.msk.bf16.mxu1 %vm637_vm2, %v5998_v48  ;;  %v2853_v48 = vrot.slane %v8733_v31, 5  ;;  %v7295_v35 = vsel %vm6391_vm6, %v2841_v58, %v2842_v8  ;;  %v8735_v31 = vld [vmem:[#allocation11_spill] sm:$0xff]  ;;  %v2863_v8 = vrot.slane %v7044_v39, 5  ;;  %v5238_v58 = vrot.slane %v5222_v13, 9 }
  0xcf   : > { %v2860_v21 = vrot.slane %v8735_v31, 5  ;;  %v7309_v14 = vsel %vm6391_vm6, %v2848_v59, %v2849_v29  ;;  %v2867_v13 = vrot.slane %v7052_v20, 5  ;;  %v6023_v59 = vld [vmem:[%s6077_s20 + $0x1c] sm:$0xf]  ;;  %v5189_v20 = vcombine.low %v2387_v25, %v2397_v62  ;;  %v6006_v31 = vld [vmem:[%s6077_s20 + $0x30] sm:$0xff]  }
  0xd0   : > { %v7299_v19 = vsel %vm6391_vm6, %v5236_v16, %v2853_v48  ;;  %v2855_v33 = vrot.slane %v2853_v48, 4  ;;  %v2769_v27 = vrot.slane %v6023_v59, 5  ;;  %v5241_v54 = vcombine.low %v2763_v1, %v2766_v63 }
  0xd1   : > { %5809 = vmatmul.mubr.msk.bf16.gmra.mxu0 %vm637_vm2, %v7124_v52  ;;  %v7322_v48 = vsel %vm6391_vm6, %v5237_v57, %v2860_v21  ;;  %v2862_v29 = vrot.slane %v2860_v21, 4  ;;  %v7349_v21 = vsel %vm6391_vm6, %v5238_v58, %v2867_v13  ;;  %v5224_v2 = vrot.slane %v5208_v43, 9 }
  0xd2   : > { %5812 = vmatprep.mubr.msk.bf16.mxu0 %vm637_vm2, %v7130_v60  ;;  %v7318_v52 = vsel %vm6391_vm6, %v2855_v33, %v2856_v26  ;;  %v2870_v60 = vrot.slane %v7061_v24, 5  ;;  %v2771_v40 = vrot.slane %v2769_v27, 4  ;;  %v2772_v37 = vrot.slane %v6024_v17, 5  ;;  %v6004_v33 = vld [vmem:[%s6077_s20 + $0x24] sm:$0xff]  }
  0xd3   : > { %v7332_v26 = vsel %vm6391_vm6, %v2862_v29, %v2863_v8  ;;  %v2770_v62 = vsel %vm6391_vm6, %v5224_v2, %v2769_v27  ;;  %v7384_v8 = vld [vmem:[%s6077_s20 + $0x1c] sm:$0xf]  ;;  %v5344_v29 = vld [vmem:[%s6077_s20 + $0x24] sm:$0xf]  ;;  %v6008_v2 = vld [vmem:[%s6077_s20 + $0x48] sm:$0xff]  }
  0xd4   : > { %v2773_v57 = vsel %vm6391_vm6, %v2771_v40, %v2772_v37  ;;  %v3606_v1 = vshrl.u32 %v5344_v29, 16  ;;  %v3609_v63 = vshll.u32 %v5344_v29, 16  ;;  %v5343_v40 = vld [vmem:[%s6077_s20 + $0x20] sm:$0x1] }
  0xd5   : > { %5775 = vmatmul.mubr.msk.bf16.gmra.mxu1 %vm637_vm2, %v5999_v61  ;;  %v2869_v61 = vrot.slane %v2867_v13, 4  ;;  %v5242_v58 = vcombine.low %v2770_v62, %v2773_v57  ;;  %v7389_v13 = vld [vmem:[%s6077_s20 + $0x28] sm:$0xf]  ;;  %v3601_v42 = vshll.u32 %v5343_v40, 16 }
  0xd6   : > { %5778 = vmatprep.mubr.msk.bf16.mxu1 %vm637_vm2, %v6000_v10  ;;  %v5341_v10 = vld [vmem:[%s6077_s20 + $0x18] sm:$0xf]  ;;  %v3619_v43 = vshrl.u32 %v7389_v13, 16 }
  0xd7   : > { %v7366_v25 = vsel %vm6391_vm6, %v2869_v61, %v2870_v60  ;;  %v8736_v60 = vld [vmem:[#allocation5_spill] sm:$0xff]  ;;  %v3582_v59 = vshrl.u32 %v5341_v10, 16  ;;  %v3585_v27 = vshll.u32 %v5341_v10, 16  ;;  %v3595_v61 = vshrl.u32 %v7384_v8, 16  ;;  %v5347_v10 = vld [vmem:[%s6077_s20 + $0x30] sm:$0xf] }
  0xd8   : > { %v3621_v29 = vrot.slane %v3619_v43, 4  ;;  %v4336_v43 = vrot.slane %v7389_v13, 5  ;;  %v3603_v51 = vrot.slane %v3601_v42, 5 }
  0xd9   : > { %5813 = vmatmul.mubr.msk.bf16.gmra.mxu0 %vm637_vm2, %v5189_v20  ;;  %v3591_v20 = vshll.u32 %v7384_v8, 16  ;;  %v3584_v17 = vrot.slane %v3582_v59, 4  ;;  %v3587_v37 = vrot.slane %v3585_v27, 5  ;;  %v3597_v57 = vrot.slane %v3595_v61, 4  ;;  %v7417_v59 = vld [vmem:[%s6077_s20 + $0x34] sm:$0xf] }
  0xda   : > { %5852 = vmatprep.mubr.msk.bf16.mxu0 %vm637_vm2, %v6002_v56  ;;  %v3615_v56 = vshll.u32 %v7389_v13, 16  ;;  %v5424_v61 = vld [vmem:[%s6077_s20 + $0x18] sm:$0xe]  ;;  %v4338_v22 = vrot.slane %v4336_v43, 4 }
  0xdb   : > { %v7406_v62 = vrot.slane %v3591_v20, 5  ;;  %v3588_v27 = vor.u32 %v3587_v37, %v3584_v17  ;;  %v3639_v17 = vshll.u32 %v7417_v59, 16  ;;  %v3643_v37 = vshrl.u32 %v7417_v59, 16  ;;  %v6009_v13 = vld [vmem:[%s6077_s20 + $0x54] sm:$0xff]  }
  0xdc   : > { %v5440_v5 = vrot.slane %v5424_v61, 9 }
  0xdd   : > { %5779 = vmatmul.mubr.msk.bf16.gmra.mxu1 %vm637_vm2, %v6001_v15  ;;  %v8737_v15 = vld [vmem:[#allocation2_spill] sm:$0xff]  ;;  %v3598_v20 = vor.u32 %v3597_v57, %v7406_v62  ;;  %v7446_v42 = vrot.slane %v3639_v17, 5 }
  0xde   : > { %5818 = vmatprep.mubr.msk.bf16.mxu1 %vm637_vm2, %v5241_v54  ;;  %v6007_v54 = vld [vmem:[%s6077_s20 + $0x3c] sm:$0xff]  }
  0xdf   : > { %v7480_v17 = vld [vmem:[%s6077_s20 + $0x40] sm:$0xf] }
  0xe1   : > { %5853 = vmatmul.mubr.msk.bf16.vlgmr.msra.gmra.mxu0 %vm637_vm2, %v6004_v33  ;;  %v3608_v33 = vrot.slane %v3606_v1, 4  ;;  %v3630_v1 = vshrl.u32 %v5347_v10, 16 }
  0xe2   : > { %5919 = vmatpush3.bf16.msra.mxu0 %v8736_v60  ;;  %5856 = vmatprep.mubr.msk.bf16.mxu0 %vm637_vm2, %v6006_v31  ;;  %v3611_v31 = vrot.slane %v3609_v63, 5  ;;  %v5346_v60 = vld [vmem:[%s6077_s20 + $0x2c] sm:$0x1]  ;;  %v3633_v63 = vshll.u32 %v5347_v10, 16  ;;  %v3589_v10 = vrot.slane %v3588_v27, 4 }
  0xe3   : > { %v3632_v3 = vrot.slane %v3630_v1, 4  ;;  %v4339_v12 = vrot.slane %v5346_v60, 5 }
  0xe4   : > { %v3635_v24 = vrot.slane %v3633_v63, 5  ;;  %v3594_v61 = vsel %vm6115_vm3, %v3589_v10, %v7406_v62 }
  0xe5   : > { %5819 = vmatmul.mubr.msk.bf16.vlgmr.msra.gmra.mxu1 %vm637_vm2, %v5242_v58  ;;  %v7409_v58 = vrot.slane %v3615_v56, 5  ;;  %v7412_v32 = vpop.f32.mrf.mxu0  ;;  %v3612_v56 = vor.u32 %v3611_v31, %v3608_v33  ;;  %v4332_v33 = vrot.slane %v5343_v40, 5  ;;  %v6010_v31 = vld [vmem:[%s6077_s20 + $0x60] sm:$0xff]   ;;  %v3645_v40 = vrot.slane %v3643_v37, 4 }
  0xe6   : > { %5885 = vmatpush3.bf16.msra.mxu1 %v8737_v15  ;;  %5822 = vmatprep.mubr.msk.bf16.mxu1 %vm637_vm2, %v5243_v4  ;;  %v4329_v4 = vrot.slane %v7384_v8, 5  ;;  %v7475_v62 = vsel %vm6391_vm6, %v4338_v22, %v4339_v12  ;;  %v3667_v12 = vshrl.u32 %v7480_v17, 16 }
  0xe7   : > { %v3622_v15 = vor.u32 %v3621_v29, %v7409_v58  ;;  %v7438_v57 = vpop.f32.mrf.mxu0  ;;  %v3599_v29 = vrot.slane %v3598_v20, 4  ;;  %v3613_v39 = vrot.slane %v3612_v56, 4  ;;  %v3636_v56 = vor.u32 %v3635_v24, %v3632_v3 }
  0xe8   : > { %v7453_v20 = vsel %vm6391_vm6, %v5440_v5, %v4329_v4  ;;  %v8740_v24 = vcombine.low %v7184_v55, %v7201_v41  ;;  %v3646_v22 = vor.u32 %v3645_v40, %v7446_v42  ;;  %v6011_v55 = vld [vmem:[%s6077_s20 + $0x6c] sm:$0xff]   ;;  %v6012_v41 = vld [vmem:[%s6077_s20 + $0x78] sm:$0xff]  }
  0xe9   : > { %5857 = vmatmul.mubr.msk.bf16.gmra.mxu0 %vm637_vm2, %v6007_v54  ;;  %v3625_v54 = vshll.u32 %v5346_v60, 16  ;;  %v7449_v27 = vpop.f32.mrf.mxu0  ;;  %v5426_v60 = vld [vmem:[%s6077_s20 + $0x30] sm:$0xe]  ;;  %v3604_v1 = vsel %vm6115_vm3, %v3599_v29, %v3603_v51  ;;  %v5353_v51 = vld [vmem:[%s6077_s20 + $0x48] sm:$0xf]  ;;  %v7505_v5 = vrot.slane %v3636_v56, 4 }
  0xea   : > { %5860 = vmatprep.mubr.msk.bf16.mxu0 %vm637_vm2, %v6008_v2  ;;  %v7427_v8 = vpop.f32.mrf.mxu1  ;;  %v5425_v2 = vld [vmem:[%s6077_s20 + $0x24] sm:$0xe]  ;;  %v5442_v3 = vrot.slane %v5426_v60, 9  ;;  %v7516_v29 = vld [vmem:[%s6077_s20 + $0x44] sm:$0x1]  ;;  %v3647_v40 = vrot.slane %v3646_v22, 4 }
  0xeb   : > { %8738 = vst [vmem:[#allocation3_spill] sm:$0xff] %v7427_v8  ;;  %v5441_v16 = vrot.slane %v5425_v2, 9  ;;  %v3627_v47 = vrot.slane %v3625_v54, 5  ;;  %v3649_v54 = vshll.u32 %v7444_v34, 16  ;;  %v5350_v2 = vld [vmem:[%s6077_s20 + $0x3c] sm:$0xf]  ;;  %v7498_v37 = vpop.f32.mrf.mxu0 }
  0xec   : > { %v7441_v45 = vpop.f32.mrf.mxu1  ;;  %v5356_v56 = vld [vmem:[%s6077_s20 + $0x54] sm:$0xf]  ;;  %v7533_v22 = vld [vmem:[%s6077_s20 + $0x58] sm:$0xf] }
  0xed   : > { %5823 = vmatmul.mubr.msk.bf16.gmra.mxu1 %vm637_vm2, %v5244_v11  ;;  %v4331_v11 = vrot.slane %v4329_v4, 4  ;;  %8739 = vst [vmem:[#allocation12_spill] sm:$0xff] %v7441_v45  ;;  %v3618_v4 = vsel %vm6115_vm3, %v3613_v39, %v7409_v58  ;;  %v4343_v58 = vrot.slane %v7417_v59, 5  ;;  %v3654_v59 = vshrl.u32 %v5350_v2, 16 }
  0xee   : > { %5826 = vmatprep.mubr.msk.bf16.mxu1 %vm637_vm2, %v5245_v38  ;;  %v3623_v38 = vrot.slane %v3622_v15, 4  ;;  %v7471_v15 = vsel %vm6391_vm6, %v5441_v16, %v4336_v43  ;;  %v7486_v39 = vpop.f32.mrf.mxu1  ;;  %v8742_v43 = vcombine.low %v7205_v30, %v7215_v36  ;;  %v3663_v30 = vshll.u32 %v7480_v17, 16  ;;  %v7509_v36 = vld [vmem:[%s6077_s20 + $0x4c] sm:$0xf] }
  0xef   : > { %v7464_v63 = vsel %vm6391_vm6, %v4331_v11, %v4332_v33  ;;  %8741 = vst [vmem:[#allocation4_spill] sm:$0xff] %v7486_v39  ;;  %v3657_v11 = vshll.u32 %v5350_v2, 16  ;;  %v3651_v10 = vrot.slane %v3649_v54, 5  ;;  %v7523_v60 = vsel %vm6391_vm6, %v5442_v3, %v4343_v58  ;;  %v6013_v39 = vld [vmem:[%s6077_s20 + $0x84] sm:$0xff]  }
  0xf0   : > { %v3628_v16 = vsel %vm6115_vm3, %v3623_v38, %v3627_v47  ;;  %v7519_v38 = vpop.f32.mrf.mxu1  ;;  %v3678_v54 = vshrl.u32 %v5353_v51, 16  ;;  %v3681_v2 = vshll.u32 %v5353_v51, 16  ;;  %v3656_v3 = vrot.slane %v3654_v59, 4  ;;  %v5427_v51 = vld [vmem:[%s6077_s20 + $0x3c] sm:$0xe] }
  0xf1   : > { %5861 = vmatmul.mubr.msk.bf16.gmra.mxu0 %vm637_vm2, %v6009_v13  ;;  %v7500_v13 = vcombine.low %v3594_v61, %v3604_v1  ;;  %v7511_v33 = vcombine.low %v3618_v4, %v3628_v16  ;;  %8743 = vst [vmem:[#allocation6_spill] sm:$0xff] %v7519_v38  ;;  %v4345_v61 = vrot.slane %v4343_v58, 4  ;;  %v4346_v1 = vrot.slane %v7444_v34, 5 }
  0xf2   : > { %5864 = vmatprep.mubr.msk.bf16.mxu0 %vm637_vm2, %v6010_v31  ;;  %v3691_v16 = vshrl.u32 %v7509_v36, 16  ;;  %v3642_v34 = vsel %vm6115_vm3, %v7505_v5, %v7446_v42  ;;  %v3659_v58 = vrot.slane %v3657_v11, 5  ;;  %v4350_v31 = vrot.slane %v7480_v17, 5 }
  0xf3   : > { %v3702_v47 = vshrl.u32 %v5356_v56, 16  ;;  %v3705_v38 = vshll.u32 %v5356_v56, 16  ;;  %v7553_v42 = vsel %vm6391_vm6, %v4345_v61, %v4346_v1  ;;  %v3673_v5 = vshll.u32 %v7516_v29, 16  ;;  %v6014_v56 = vld [vmem:[%s6077_s20 + $0x90] sm:$0xff]  }
  0xf4   : > { %v3711_v59 = vshll.u32 %v7533_v22, 16  ;;  %v3715_v17 = vshrl.u32 %v7533_v22, 16  ;;  %v8747_v11 = vcombine.low %v7230_v0, %v7252_v7  ;;  %v3693_v1 = vrot.slane %v3691_v16, 4 }
  0xf5   : > { %5827 = vmatmul.mubr.msk.bf16.gmra.mxu1 %vm637_vm2, %v8740_v24  ;;  %v3687_v24 = vshll.u32 %v7509_v36, 16  ;;  %v5443_v8 = vrot.slane %v5427_v51, 9  ;;  %v4353_v0 = vrot.slane %v7516_v29, 5  ;;  %v7591_v51 = vld [vmem:[%s6077_s20 + $0x5c] sm:$0x1] }
  0xf6   : > { %5830 = vmatprep.mubr.msk.bf16.mxu1 %vm637_vm2, %v8742_v43  ;;  %v7528_v4 = vpop.f32.mrf.mxu0  ;;  %v7540_v43 = vrot.slane %v3663_v30, 5  ;;  %v3680_v30 = vrot.slane %v3678_v54, 4  ;;  %v5359_v54 = vld [vmem:[%s6077_s20 + $0x60] sm:$0xf] }
  0xf7   : > { %8744 = vst [vmem:[#allocation7_spill] sm:$0xff] %v7528_v4  ;;  %v7567_v61 = vrot.slane %v3687_v24, 5  ;;  %v3707_v4 = vrot.slane %v3705_v38, 5  ;;  %v3729_v24 = vshll.u32 %v5359_v54, 16 }
  0xf9   : > { %5865 = vmatmul.mubr.msk.bf16.gmra.mxu0 %vm637_vm2, %v6011_v55  ;;  %v3669_v55 = vrot.slane %v3667_v12, 4  ;;  %v3683_v12 = vrot.slane %v3681_v2, 5  ;;  %v3694_v38 = vor.u32 %v3693_v1, %v7567_v61  ;;  %v7607_v1 = vld [vmem:[%s6077_s20 + $0x64] sm:$0xf] }
  0xfa   : > { %5868 = vmatprep.mubr.msk.bf16.mxu0 %vm637_vm2, %v6012_v41  ;;  %v8745_v41 = vcombine.low %v7223_v49, %v7238_v50  ;;  %v7549_v45 = vpop.f32.mrf.mxu1  ;;  %v7562_v49 = vpop.f32.mrf.mxu0  ;;  %v7565_v50 = vld [vmem:[%s6077_s20 + $0x50] sm:$0x1] }
  0xfb   : > { %8746 = vst [vmem:[#allocation8_spill] sm:$0xff] %v7549_v45  ;;  %8748 = vst [vmem:[#allocation9_spill] sm:$0xff] %v7562_v49  ;;  %v3660_v45 = vor.u32 %v3659_v58, %v3656_v3  ;;  %v3670_v7 = vor.u32 %v3669_v55, %v7540_v43  ;;  %v3704_v49 = vrot.slane %v3702_v47, 4  ;;  %v3697_v16 = vshll.u32 %v7565_v50, 16  ;;  %v5428_v58 = vld [vmem:[%s6077_s20 + $0x48] sm:$0xe] }
  0xfc   : > { %v7575_v2 = vpop.f32.mrf.mxu1  ;;  %v7583_v29 = vpop.f32.mrf.mxu0  ;;  %v3684_v47 = vor.u32 %v3683_v12, %v3680_v30  ;;  %v4357_v55 = vrot.slane %v7509_v36, 5  ;;  %v7600_v30 = vsel %vm6391_vm6, %v5443_v8, %v4350_v31 }
  0xfd   : > { %5831 = vmatmul.mubr.msk.bf16.gmra.mxu1 %vm637_vm2, %v8745_v41  ;;  %v3652_v41 = vsel %vm6115_vm3, %v3647_v40, %v3651_v10  ;;  %8749 = vst [vmem:[#allocation10_spill] sm:$0xff] %v7575_v2  ;;  %v7580_v10 = vrot.slane %v3711_v59, 5  ;;  %v3717_v40 = vrot.slane %v3715_v17, 4  ;;  %v7594_v59 = vrot.slane %v3660_v45, 4 }
  0xfe   : > { %5834 = vmatprep.mubr.msk.bf16.mxu1 %vm637_vm2, %v8747_v11  ;;  %v4352_v11 = vrot.slane %v4350_v31, 4  ;;  %v7585_v3 = vcombine.low %v3642_v34, %v3652_v41  ;;  %v7596_v17 = vrot.slane %v3673_v5, 5  ;;  %v3671_v34 = vrot.slane %v3670_v7, 4  ;;  %v7613_v5 = vpop.f32.mrf.mxu1  ;;  %v6016_v7 = vld [vmem:[%s6077_s20 + $0xa8] sm:$0xff]  }
  0xff   : > { %v3708_v12 = vor.u32 %v3707_v4, %v3704_v49  ;;  %v8750_v45 = vcombine.low %v7242_v53, %v7260_v23  ;;  %8751 = vst [vmem:[#allocation11_spill] sm:$0xff] %v7613_v5  ;;  %v5444_v41 = vrot.slane %v5428_v58, 9  ;;  %v3718_v8 = vor.u32 %v3717_v40, %v7580_v10  ;;  %v6015_v4 = vld [vmem:[%s6077_s20 + $0x9c] sm:$0xff]   ;;  %v7622_v49 = vpop.f32.mrf.mxu0 }
 0x100   : > { %v7604_v36 = vsel %vm6391_vm6, %v4352_v11, %v4353_v0  ;;  %v3721_v31 = vshll.u32 %v7591_v51, 16  ;;  %v8752_v0 = vcombine.low %v7264_v18, %v7275_v46  ;;  %8753 = vst [vmem:[#allocation5_spill] sm:$0xff] %v7622_v49  ;;  %v3685_v53 = vrot.slane %v3684_v47, 4 }
 0x101   : > { %5869 = vmatmul.mubr.msk.bf16.gmra.mxu0 %vm637_vm2, %v6013_v39  ;;  %v3726_v39 = vshrl.u32 %v5359_v54, 16  ;;  %v3695_v23 = vrot.slane %v3694_v38, 4  ;;  %v4359_v11 = vrot.slane %v4357_v55, 4  ;;  %v4360_v54 = vrot.slane %v7565_v50, 5  ;;  %v7637_v38 = vpop.f32.mrf.mxu1 }
 0x102   : > { %5872 = vmatprep.mubr.msk.bf16.mxu0 %vm637_vm2, %v6014_v56  ;;  %v3699_v56 = vrot.slane %v3697_v16, 5  ;;  %v5429_v16 = vld [vmem:[%s6077_s20 + $0x54] sm:$0xe]  ;;  %v3731_v40 = vrot.slane %v3729_v24, 5  ;;  %v3739_v5 = vshrl.u32 %v7607_v1, 16  ;;  %v3666_v18 = vsel %vm6115_vm3, %v7594_v59, %v7540_v43  ;;  %8754 = vst [vmem:[#allocation2_spill] sm:$0xff] %v7637_v38 }
 0x103   : > { %v3728_v58 = vrot.slane %v3726_v39, 4  ;;  %v3676_v46 = vsel %vm6115_vm3, %v3671_v34, %v7596_v17  ;;  %v3709_v47 = vrot.slane %v3708_v12, 4  ;;  %v4364_v50 = vrot.slane %v7533_v22, 5  ;;  %v5362_v59 = vld [vmem:[%s6077_s20 + $0x6c] sm:$0xf] }
 0x104   : > { %v7643_v39 = vsel %vm6391_vm6, %v5444_v41, %v4357_v55  ;;  %v3723_v43 = vrot.slane %v3721_v31, 5  ;;  %v3690_v22 = vsel %vm6115_vm3, %v3685_v53, %v7567_v61  ;;  %v3700_v34 = vsel %vm6115_vm3, %v3695_v23, %v3699_v56  ;;  %v7659_v41 = vld [vmem:[%s6077_s20 + $0x68] sm:$0x1]  ;;  %v7667_v53 = vld [vmem:[%s6077_s20 + $0x70] sm:$0xf] }
 0x105   : > { %5835 = vmatmul.mubr.msk.bf16.gmra.mxu1 %vm637_vm2, %v8750_v45  ;;  %v3735_v45 = vshll.u32 %v7607_v1, 16  ;;  %v7656_v12 = vsel %vm6391_vm6, %v4359_v11, %v4360_v54  ;;  %v5445_v55 = vrot.slane %v5429_v16, 9  ;;  %v4367_v31 = vrot.slane %v7591_v51, 5 }
 0x106   : > { %5838 = vmatprep.mubr.msk.bf16.mxu1 %vm637_vm2, %v8752_v0  ;;  %v3719_v0 = vrot.slane %v3718_v8, 4  ;;  %v5430_v8 = vld [vmem:[%s6077_s20 + $0x60] sm:$0xe]  ;;  %v3741_v61 = vrot.slane %v3739_v5, 4  ;;  %v3714_v56 = vsel %vm6115_vm3, %v3709_v47, %v7580_v10  ;;  %v4366_v23 = vrot.slane %v4364_v50, 4 }
 0x107   : > { %v7647_v17 = vpop.f32.mrf.mxu0  ;;  %v7664_v24 = vrot.slane %v3735_v45, 5  ;;  %v3750_v11 = vshrl.u32 %v5362_v59, 16  ;;  %v3753_v54 = vshll.u32 %v5362_v59, 16  ;;  %v3745_v16 = vshll.u32 %v7659_v41, 16  ;;  %v6018_v59 = vld [vmem:[%s6077_s20 + $0xc0] sm:$0xff]  }
 0x108   : > { %8755 = vst [vmem:[#allocation13_spill] sm:$0xff] %v7647_v17  ;;  %v3724_v5 = vsel %vm6115_vm3, %v3719_v0, %v3723_v43  ;;  %v4371_v10 = vrot.slane %v7607_v1, 5  ;;  %v7689_v45 = vcombine.low %v3666_v18, %v3676_v46  ;;  %v7691_v47 = vcombine.low %v3690_v22, %v3700_v34  ;;  %v5365_v46 = vld [vmem:[%s6077_s20 + $0x78] sm:$0xf]  ;;  %v7716_v1 = vld [vmem:[%s6077_s20 + $0x7c] sm:$0xf] }
 0x109   : > { %5873 = vmatmul.mubr.msk.bf16.gmra.mxu0 %vm637_vm2, %v6015_v4  ;;  %v3732_v4 = vor.u32 %v3731_v40, %v3728_v58  ;;  %v5446_v58 = vrot.slane %v5430_v8, 9  ;;  %v8758_v40 = vcombine.low %v7289_v9, %v7309_v14  ;;  %v3759_v0 = vshll.u32 %v7667_v53, 16  ;;  %v7713_v8 = vld [vmem:[%s6077_s20 + $0x74] sm:$0x1] }
 0x10a   : > { %5876 = vmatprep.mubr.msk.bf16.mxu0 %vm637_vm2, %v6016_v7  ;;  %v8756_v7 = vcombine.low %v7283_v6, %v7295_v35  ;;  %v6017_v35 = vld [vmem:[%s6077_s20 + $0xb4] sm:$0xff]   ;;  %v7687_v6 = vpop.f32.mrf.mxu0  ;;  %v3763_v43 = vshrl.u32 %v7667_v53, 16  ;;  %v7700_v9 = vsel %vm6391_vm6, %v5445_v55, %v4364_v50  ;;  %v3742_v18 = vor.u32 %v3741_v61, %v7664_v24 }
 0x10b   : > { %8759 = vst [vmem:[#allocation15_spill] sm:$0xff] %v7687_v6  ;;  %v7702_v14 = vrot.slane %v3732_v4, 4  ;;  %v7706_v22 = vcombine.low %v3714_v56, %v3724_v5  ;;  %v7710_v34 = vsel %vm6391_vm6, %v4366_v23, %v4367_v31  ;;  %v7720_v55 = vrot.slane %v3745_v16, 5  ;;  %v5368_v56 = vld [vmem:[%s6077_s20 + $0x84] sm:$0xf] }
 0x10c   : > { %v7676_v51 = vpop.f32.mrf.mxu1  ;;  %v7724_v4 = vsel %vm6391_vm6, %v5446_v58, %v4371_v10  ;;  %v4373_v61 = vrot.slane %v4371_v10, 4  ;;  %v4374_v31 = vrot.slane %v7659_v41, 5  ;;  %v7729_v23 = vpop.f32.mrf.mxu0  ;;  %v3774_v5 = vshrl.u32 %v5365_v46, 16  ;;  %v5431_v58 = vld [vmem:[%s6077_s20 + $0x6c] sm:$0xe] }
 0x10d   : > { %5839 = vmatmul.mubr.msk.bf16.gmra.mxu1 %vm637_vm2, %v8756_v7  ;;  %8757 = vst [vmem:[#allocation14_spill] sm:$0xff] %v7676_v51  ;;  %8760 = vst [vmem:[#allocation16_spill] sm:$0xff] %v7706_v22  ;;  %v3752_v7 = vrot.slane %v3750_v11, 4  ;;  %v7731_v11 = vrot.slane %v3759_v0, 5  ;;  %v7734_v51 = vld [vmem:[%s6077_s20 + $0x88] sm:$0xf] }
 0x10e   : > { %5842 = vmatprep.mubr.msk.bf16.mxu1 %vm637_vm2, %v8758_v40  ;;  %v3755_v40 = vrot.slane %v3753_v54, 5  ;;  %v7718_v50 = vpop.f32.mrf.mxu1  ;;  %8762 = vst [vmem:[#allocation18_spill] sm:$0xff] %v7729_v23  ;;  %v3765_v54 = vrot.slane %v3763_v43, 4  ;;  %v7741_v41 = vrot.slane %v3742_v18, 4  ;;  %v3783_v10 = vshll.u32 %v7716_v1, 16 }
 0x10f   : > { %8761 = vst [vmem:[#allocation17_spill] sm:$0xff] %v7718_v50  ;;  %v3777_v50 = vshll.u32 %v5365_v46, 16  ;;  %v4378_v43 = vrot.slane %v7667_v53, 5  ;;  %v3798_v46 = vshrl.u32 %v5368_v56, 16  ;;  %v3801_v38 = vshll.u32 %v5368_v56, 16 }
 0x110   : > { %v3756_v0 = vor.u32 %v3755_v40, %v3752_v7  ;;  %v7751_v16 = vpop.f32.mrf.mxu1  ;;  %v7755_v18 = vsel %vm6391_vm6, %v4373_v61, %v4374_v31  ;;  %v3769_v2 = vshll.u32 %v7713_v8, 16  ;;  %v3807_v7 = vshll.u32 %v7734_v51, 16  ;;  %v7760_v40 = vpop.f32.mrf.mxu0  ;;  %v5367_v61 = vld [vmem:[%s6077_s20 + $0x80] sm:$0x1]  ;;  %v5432_v22 = vld [vmem:[%s6077_s20 + $0x78] sm:$0xe] }
 0x111   : > { %5877 = vmatmul.mubr.msk.bf16.gmra.mxu0 %vm637_vm2, %v6017_v35  ;;  %v3787_v35 = vshrl.u32 %v7716_v1, 16  ;;  %8764 = vst [vmem:[#allocation19_spill] sm:$0xff] %v7751_v16  ;;  %v3811_v53 = vshrl.u32 %v7734_v51, 16  ;;  %8765 = vst [vmem:[#allocation20_spill] sm:$0xff] %v7760_v40  ;;  %v3766_v56 = vor.u32 %v3765_v54, %v7731_v11  ;;  %v3776_v31 = vrot.slane %v3774_v5, 4 }
 0x112   : > { %5880 = vmatprep.mubr.msk.bf16.mxu0 %vm637_vm2, %v6018_v59  ;;  %v8763_v59 = vcombine.low %v7299_v19, %v7318_v52  ;;  %v8766_v19 = vcombine.low %v7322_v48, %v7332_v26  ;;  %v6019_v52 = vld [vmem:[%s6077_s20 + $0xcc] sm:$0xff]   ;;  %v3779_v16 = vrot.slane %v3777_v50, 5  ;;  %v4381_v23 = vrot.slane %v7713_v8, 5  ;;  %v7776_v54 = vpop.f32.mrf.mxu1 }
 0x113   : > { %v7770_v6 = vrot.slane %v3783_v10, 5  ;;  %v3789_v17 = vrot.slane %v3787_v35, 4  ;;  %v4385_v40 = vrot.slane %v7716_v1, 5  ;;  %v7774_v49 = vrot.slane %v3756_v0, 4  ;;  %8767 = vst [vmem:[#allocation21_spill] sm:$0xff] %v7776_v54 }
 0x114   : > { %v4380_v48 = vrot.slane %v4378_v43, 4  ;;  %v3800_v26 = vrot.slane %v3798_v46, 4  ;;  %v3748_v50 = vsel %vm6115_vm3, %v7741_v41, %v7720_v55  ;;  %v7782_v8 = vrot.slane %v3769_v2, 5  ;;  %v7785_v5 = vld [vmem:[%s6077_s20 + $0x8c] sm:$0x1] }
 0x115   : > { %5843 = vmatmul.mubr.msk.bf16.gmra.mxu1 %vm637_vm2, %v8763_v59  ;;  %v5447_v59 = vrot.slane %v5431_v58, 9  ;;  %v7787_v58 = vrot.slane %v3807_v7, 5  ;;  %v3813_v1 = vrot.slane %v3811_v53, 4  ;;  %v3780_v35 = vor.u32 %v3779_v16, %v3776_v31  ;;  %v5371_v54 = vld [vmem:[%s6077_s20 + $0x90] sm:$0xf] }
 0x116   : > { %5846 = vmatprep.mubr.msk.bf16.mxu1 %vm637_vm2, %v8766_v19  ;;  %v3803_v19 = vrot.slane %v3801_v38, 5  ;;  %v3767_v38 = vrot.slane %v3766_v56, 4  ;;  %v3793_v0 = vshll.u32 %v5367_v61, 16  ;;  %v5448_v46 = vrot.slane %v5432_v22, 9 }
 0x117   : > { %v8768_v2 = vcombine.low %v7453_v20, %v7464_v63  ;;  %v7799_v55 = vsel %vm6391_vm6, %v5447_v59, %v4378_v43  ;;  %v3790_v41 = vor.u32 %v3789_v17, %v7770_v6  ;;  %v4387_v7 = vrot.slane %v4385_v40, 4  ;;  %v7814_v43 = vld [vmem:[%s6077_s20 + $0x94] sm:$0xf] }
 0x118   : > { %v4388_v53 = vrot.slane %v5367_v61, 5  ;;  %v3762_v22 = vsel %vm6115_vm3, %v7774_v49, %v7731_v11  ;;  %v7810_v20 = vsel %vm6391_vm6, %v4380_v48, %v4381_v23  ;;  %v3804_v63 = vor.u32 %v3803_v19, %v3800_v26  ;;  %v5433_v61 = vld [vmem:[%s6077_s20 + $0x84] sm:$0xe] }
 0x119   : > { %v7789_v10 = vpop.f32.mrf.mxu0  ;;  %5881 = vmatmul.mubr.msk.bf16.gmra.mxu0 %vm637_vm2, %v6019_v52  ;;  %v3817_v16 = vshll.u32 %v7785_v5, 16  ;;  %v8769_v17 = vcombine.low %v7349_v21, %v7366_v25  ;;  %v3814_v59 = vor.u32 %v3813_v1, %v7787_v58  ;;  %v4392_v49 = vrot.slane %v7734_v51, 5 }
 0x11a   : > { %5920 = vmatprep.mubr.msk.bf16.mxu0 %vm637_vm2, %v8768_v2  ;;  %v3822_v11 = vshrl.u32 %v5371_v54, 16  ;;  %v3825_v23 = vshll.u32 %v5371_v54, 16  ;;  %v3772_v48 = vsel %vm6115_vm3, %v3767_v38, %v7782_v8  ;;  %v3781_v26 = vrot.slane %v3780_v35, 4  ;;  %v8804_v28 = vld [vmem:[#allocation21_spill] sm:$0xff] }
 0x11b   : > { %v7802_v52 = vpop.f32.mrf.mxu0  ;;  %v3795_v21 = vrot.slane %v3793_v0, 5  ;;  %v7834_v25 = vsel %vm6391_vm6, %v5448_v46, %v4385_v40  ;;  %v3791_v51 = vrot.slane %v3790_v41, 4  ;;  %v7840_v54 = vsel %vm6391_vm6, %v4387_v7, %v4388_v53 }
 0x11c   : > { %v3831_v1 = vshll.u32 %v7814_v43, 16  ;;  %v3805_v8 = vrot.slane %v3804_v63, 4  ;;  %v3819_v38 = vrot.slane %v3817_v16, 5  ;;  %v5449_v35 = vrot.slane %v5433_v61, 9 }
 0x11d   : > { %v7816_v56 = vpop.f32.mrf.mxu1  ;;  %5847 = vmatmul.mubr.msk.bf16.gmra.mxu1 %vm637_vm2, %v8769_v17  ;;  %v7825_v31 = vpop.f32.mrf.mxu0  ;;  %v4395_v40 = vrot.slane %v7785_v5, 5  ;;  %v3815_v46 = vrot.slane %v3814_v59, 4  ;;  %v4394_v41 = vrot.slane %v4392_v49, 4  ;;  %v3824_v17 = vrot.slane %v3822_v11, 4 }
 0x11e   : > { %5886 = vmatprep.mubr.msk.bf16.mxu1 %vm637_vm2, %v7500_v13  ;;  %v3835_v13 = vshrl.u32 %v7814_v43, 16  ;;  %v3827_v7 = vrot.slane %v3825_v23, 5  ;;  %v5463_v63 = vcombine.low %v7700_v9, %v7710_v34  ;;  %v8772_v5 = vsel %vm6115_vm3, %v7702_v14, %v7664_v24 }
 0x11f   : > { %v7836_v19 = vpop.f32.mrf.mxu1  ;;  %v7844_v2 = vpop.f32.mrf.mxu0  ;;  %v7860_v16 = vcombine.low %v8772_v5, %v3748_v50  ;;  %v8773_v11 = vcombine.low %v7523_v60, %v7553_v42  ;;  %v3786_v24 = vsel %vm6115_vm3, %v3781_v26, %v7770_v6  ;;  %v3796_v14 = vsel %vm6115_vm3, %v3791_v51, %v3795_v21  ;;  %v7895_v26 = vld [vmem:[%s6077_s20 + $0xa0] sm:$0xf]  ;;  %v5377_v60 = vld [vmem:[%s6077_s20 + $0xa8] sm:$0xf] }
 0x120   : > { %8770 = vst [vmem:[#allocation22_spill] sm:$0xff] %v7836_v19  ;;  %v8771_v19 = vcombine.low %v7471_v15, %v7475_v62  ;;  %v7867_v15 = vld [vmem:[%s6077_s20 + $0x98] sm:$0x1]  ;;  %v7880_v50 = vrot.slane %v3831_v1, 5  ;;  %v3837_v23 = vrot.slane %v3835_v13, 4  ;;  %v7883_v61 = vcombine.low %v3762_v22, %v3772_v48 }
 0x121   : > { %v7847_v0 = vpop.f32.mrf.mxu1  ;;  %v5718_v53 = vpop.f32.mrf.mxu0  ;;  %v3810_v42 = vsel %vm6115_vm3, %v3805_v8, %v7787_v58  ;;  %v7892_v6 = vsel %vm6391_vm6, %v5449_v35, %v4392_v49  ;;  %v3820_v22 = vsel %vm6115_vm3, %v3815_v46, %v3819_v38  ;;  %v7903_v48 = vsel %vm6391_vm6, %v4394_v41, %v4395_v40  ;;  %v5434_v8 = vld [vmem:[%s6077_s20 + $0x90] sm:$0xe] }
 0x122   : > { %5921 = vmatmul.mubr.msk.bf16.vlgmr.msra.gmra.mxu0 %vm637_vm2, %v8771_v19  ;;  %v5374_v19 = vld [vmem:[%s6077_s20 + $0x9c] sm:$0xf]  ;;  %v3828_v51 = vor.u32 %v3827_v7, %v3824_v17  ;;  %v3841_v58 = vshll.u32 %v7867_v15, 16  ;;  %v7909_v13 = vcombine.low %v3786_v24, %v3796_v14  ;;  %v3838_v46 = vor.u32 %v3837_v23, %v7880_v50 }
 0x123   : > { %v7869_v62 = vpop.f32.mrf.mxu1  ;;  %5924 = vmatprep.mubr.msk.bf16.mxu0 %vm637_vm2, %v8773_v11  ;;  %v1444_v5 = vpop.f32.mrf.mxu0  ;;  %v3849_v35 = vshll.u32 %v5374_v19, 16  ;;  %v4399_v40 = vrot.slane %v7814_v43, 5  ;;  %v3855_v41 = vshll.u32 %v7895_v26, 16  ;;  %v3859_v17 = vshrl.u32 %v7895_v26, 16 }
 0x124   : > { %v7919_v11 = vcombine.low %v3810_v42, %v3820_v22  ;;  %v3843_v23 = vrot.slane %v3841_v58, 5  ;;  %v5450_v43 = vrot.slane %v5434_v8, 9  ;;  %v8774_v42 = vcombine.low %v7600_v30, %v7604_v36 }
 0x125   : > { %v5684_v21 = vpop.f32.mrf.mxu1  ;;  %5887 = vmatmul.mubr.msk.bf16.vlgmr.msra.gmra.mxu1 %vm637_vm2, %v7511_v33  ;;  %v5719_v49 = vpop.f32.mrf.mxu0  ;;  %v3846_v33 = vshrl.u32 %v5374_v19, 16  ;;  %v7923_v19 = vrot.slane %v3828_v51, 4  ;;  %v7935_v51 = vld [vmem:[%s6077_s20 + $0xac] sm:$0xf]  ;;  %v4401_v8 = vrot.slane %v4399_v40, 4 }
 0x126   : > { %v1024_v1 = vadd.f32 %v5684_v21, %v7412_v32  ;;  %5890 = vmatprep.mubr.msk.bf16.mxu1 %vm637_vm2, %v7585_v3  ;;  %v4402_v21 = vrot.slane %v7867_v15, 5  ;;  %v8775_v15 = vcombine.low %v7643_v39, %v7656_v12  ;;  %v7957_v12 = vsel %vm6391_vm6, %v5450_v43, %v4399_v40 }
 0x127   : > { %v1015_v38 = vpop.f32.mrf.mxu1  ;;  %v1447_v3 = vpop.f32.mrf.mxu0  ;;  %v3848_v22 = vrot.slane %v3846_v33, 4  ;;  %v7947_v33 = vld [vmem:[%s6077_s20 + $0xa4] sm:$0x1]  ;;  %v3834_v39 = vsel %vm6115_vm3, %v7923_v19, %v7880_v50  ;;  %v4406_v50 = vrot.slane %v7895_v26, 5 }
 0x128   : > { %v7916_v32 = vadd.f32 %v5718_v53, %v1024_v1  ;;  %v1016_v7 = vadd.f32 %v1015_v38, %v7438_v57  ;;  %v3851_v1 = vrot.slane %v3849_v35, 5  ;;  %v7941_v38 = vrot.slane %v3855_v41, 5 }
 0x129   : > { %v5685_v14 = vpop.f32.mrf.mxu1  ;;  %v5722_v53 = vpop.f32.mrf.mxu0  ;;  %v3870_v35 = vshrl.u32 %v5377_v60, 16  ;;  %v7972_v43 = vsel %vm6391_vm6, %v4401_v8, %v4402_v21 }
 0x12a   : > { %v7927_v59 = vadd.f32 %v1444_v5, %v1016_v7  ;;  %v1027_v57 = vadd.f32 %v5685_v14, %v7449_v27  ;;  %5925 = vmatmul.mubr.msk.bf16.gmra.mxu0 %vm637_vm2, %v8774_v42  ;;  %v3839_v5 = vrot.slane %v3838_v46, 4  ;;  %v3861_v27 = vrot.slane %v3859_v17, 4 }
 0x12b   : > { %v1018_v58 = vpop.f32.mrf.mxu1  ;;  %5928 = vmatprep.mubr.msk.bf16.mxu0 %vm637_vm2, %v8775_v15  ;;  %v1460_v36 = vpop.f32.mrf.mxu0  ;;  %v3873_v14 = vshll.u32 %v5377_v60, 16  ;;  %v8776_v60 = vld [vmem:[#allocation7_spill] sm:$0xff]  ;;  %v3872_v26 = vrot.slane %v3870_v35, 4 }
 0x12c   : > { %v7943_v7 = vadd.f32 %v5719_v49, %v1027_v57  ;;  %v1019_v30 = vadd.f32 %v1018_v58, %v7498_v37  ;;  %v3879_v37 = vshll.u32 %v7935_v51, 16  ;;  %v3883_v49 = vshrl.u32 %v7935_v51, 16  ;;  %v5435_v57 = vld [vmem:[%s6077_s20 + $0x9c] sm:$0xe] }
 0x12d   : > { %v5688_v42 = vpop.f32.mrf.mxu1  ;;  %5891 = vmatmul.mubr.msk.bf16.gmra.mxu1 %vm637_vm2, %v7689_v45  ;;  %v5723_v17 = vpop.f32.mrf.mxu0  ;;  %v3852_v45 = vor.u32 %v3851_v1, %v3848_v22  ;;  %v3844_v40 = vsel %vm6115_vm3, %v3839_v5, %v3843_v23  ;;  %v3865_v58 = vshll.u32 %v7947_v33, 16  ;;  %v3875_v1 = vrot.slane %v3873_v14, 5 }
 0x12e   : > { %v7961_v46 = vadd.f32 %v1447_v3, %v1019_v30  ;;  %v1040_v41 = vadd.f32 %v5688_v42, %v8776_v60  ;;  %5894 = vmatprep.mubr.msk.bf16.mxu1 %vm637_vm2, %v7691_v47  ;;  %v3862_v3 = vor.u32 %v3861_v27, %v7941_v38  ;;  %v8777_v30 = vld [vmem:[#allocation9_spill] sm:$0xff]  ;;  %v5451_v60 = vrot.slane %v5435_v57, 9 }
 0x12f   : > { %v1031_v19 = vpop.f32.mrf.mxu1  ;;  %v1463_v22 = vpop.f32.mrf.mxu0  ;;  %v4409_v23 = vrot.slane %v7947_v33, 5  ;;  %v7980_v5 = vrot.slane %v3879_v37, 5  ;;  %v3885_v21 = vrot.slane %v3883_v49, 4  ;;  %v7989_v35 = vrot.slane %v3852_v45, 4  ;;  %v5436_v33 = vld [vmem:[%s6077_s20 + $0xa8] sm:$0xe] }
 0x130   : > { %v7976_v15 = vadd.f32 %v5722_v53, %v1040_v41  ;;  %v1032_v47 = vadd.f32 %v1031_v19, %v8777_v30  ;;  %v4408_v14 = vrot.slane %v4406_v50, 4  ;;  %v7992_v41 = vld [vmem:[%s6077_s20 + $0xb0] sm:$0x1]  ;;  %v8003_v34 = vrot.slane %v3862_v3, 4  ;;  %v8779_v45 = vld [vmem:[#allocation5_spill] sm:$0xff] }
 0x131   : > { %v5689_v42 = vpop.f32.mrf.mxu1  ;;  %v5726_v53 = vpop.f32.mrf.mxu0  ;;  %v3876_v30 = vor.u32 %v3875_v1, %v3872_v26  ;;  %v3886_v3 = vor.u32 %v3885_v21, %v7980_v5  ;;  %v8781_v26 = vld [vmem:[#allocation13_spill] sm:$0xff] }
 0x132   : > { %v7982_v8 = vadd.f32 %v1460_v36, %v1032_v47  ;;  %v1043_v27 = vadd.f32 %v5689_v42, %v7583_v29  ;;  %5929 = vmatmul.mubr.msk.bf16.gmra.mxu0 %vm637_vm2, %v5463_v63  ;;  %v8778_v36 = vcombine.low %v7724_v4, %v7755_v18  ;;  %v7999_v29 = vcombine.low %v3834_v39, %v3844_v40  ;;  %v5380_v4 = vld [vmem:[%s6077_s20 + $0xb4] sm:$0xf] }
 0x133   : > { %v1034_v37 = vpop.f32.mrf.mxu1  ;;  %v8005_v63 = vrot.slane %v3865_v58, 5  ;;  %v1476_v19 = vpop.f32.mrf.mxu0  ;;  %v4413_v47 = vrot.slane %v7935_v51, 5  ;;  %v8780_v39 = vld [vmem:[#allocation16_spill] sm:$0xff]  ;;  %v8016_v40 = vsel %vm6391_vm6, %v5451_v60, %v4406_v50  ;;  %v5452_v58 = vrot.slane %v5436_v33, 9  ;;  %v8039_v33 = vld [vmem:[%s6077_s20 + $0xb8] sm:$0xf] }
 0x134   : > { %5932 = vmatprep.mubr.msk.bf16.mxu0 %vm637_vm2, %v8778_v36  ;;  %v8007_v49 = vadd.f32 %v5723_v17, %v1043_v27  ;;  %v1035_v57 = vadd.f32 %v1034_v37, %v8779_v45  ;;  %v3889_v17 = vshll.u32 %v7992_v41, 16  ;;  %v3858_v50 = vsel %vm6115_vm3, %v7989_v35, %v7941_v38  ;;  %v8782_v38 = vld [vmem:[#allocation15_spill] sm:$0xff] }
 0x135   : > { %v5692_v18 = vpop.f32.mrf.mxu1  ;;  %5895 = vmatmul.mubr.msk.bf16.gmra.mxu1 %vm637_vm2, %v8780_v39  ;;  %v5727_v51 = vpop.f32.mrf.mxu0  ;;  %v8031_v60 = vsel %vm6391_vm6, %v4408_v14, %v4409_v23  ;;  %v4416_v27 = vrot.slane %v7992_v41, 5  ;;  %v3897_v37 = vshll.u32 %v5380_v4, 16  ;;  %v3877_v23 = vrot.slane %v3876_v30, 4 }
 0x136   : > { %v8020_v42 = vadd.f32 %v1463_v22, %v1035_v57  ;;  %v1056_v1 = vadd.f32 %v5692_v18, %v8781_v26  ;;  %5898 = vmatprep.mubr.msk.bf16.mxu1 %vm637_vm2, %v7860_v16  ;;  %v3868_v22 = vsel %vm6115_vm3, %v8003_v34, %v8005_v63  ;;  %v3894_v16 = vshrl.u32 %v5380_v4, 16  ;;  %v5383_v57 = vld [vmem:[%s6077_s20 + $0xc0] sm:$0xf] }
 0x137   : > { %v1047_v21 = vpop.f32.mrf.mxu1  ;;  %v1479_v45 = vpop.f32.mrf.mxu0  ;;  %v4415_v14 = vrot.slane %v4413_v47, 4  ;;  %v3887_v63 = vrot.slane %v3886_v3, 4  ;;  %v3891_v41 = vrot.slane %v3889_v17, 5  ;;  %v8049_v39 = vsel %vm6391_vm6, %v5452_v58, %v4413_v47  ;;  %v8064_v17 = vld [vmem:[%s6077_s20 + $0xc4] sm:$0xf] }
 0x138   : > { %v8041_v36 = vadd.f32 %v5726_v53, %v1056_v1  ;;  %v1048_v35 = vadd.f32 %v1047_v21, %v8782_v38  ;;  %v8783_v53 = vld [vmem:[#allocation18_spill] sm:$0xff]  ;;  %v8784_v30 = vcombine.low %v7799_v55, %v7810_v20  ;;  %v8059_v21 = vld [vmem:[%s6077_s20 + $0xbc] sm:$0x1]  ;;  %v3903_v38 = vshll.u32 %v8039_v33, 16 }
 0x139   : > { %v5693_v18 = vpop.f32.mrf.mxu1  ;;  %v5730_v1 = vpop.f32.mrf.mxu0  ;;  %v3907_v3 = vshrl.u32 %v8039_v33, 16  ;;  %v3896_v58 = vrot.slane %v3894_v16, 4  ;;  %v3918_v55 = vshrl.u32 %v5383_v57, 16  ;;  %v3921_v20 = vshll.u32 %v5383_v57, 16  ;;  %v5437_v16 = vld [vmem:[%s6077_s20 + $0xb4] sm:$0xe] }
 0x13a   : > { %v8051_v4 = vadd.f32 %v1476_v19, %v1048_v35  ;;  %v1059_v26 = vadd.f32 %v5693_v18, %v8783_v53  ;;  %5933 = vmatmul.mubr.msk.bf16.gmra.mxu0 %vm637_vm2, %v8784_v30  ;;  %v8785_v19 = vcombine.low %v7834_v25, %v7840_v54  ;;  %v3899_v35 = vrot.slane %v3897_v37, 5  ;;  %v8786_v53 = vld [vmem:[#allocation20_spill] sm:$0xff] }
 0x13b   : > { %v1050_v47 = vpop.f32.mrf.mxu1  ;;  %v1492_v34 = vpop.f32.mrf.mxu0  ;;  %v3882_v9 = vsel %vm6115_vm3, %v3877_v23, %v7980_v5  ;;  %v8078_v24 = vsel %vm6391_vm6, %v4415_v14, %v4416_v27  ;;  %v3892_v54 = vsel %vm6115_vm3, %v3887_v63, %v3891_v41  ;;  %v3927_v37 = vshll.u32 %v8064_v17, 16 }
 0x13c   : > { %5936 = vmatprep.mubr.msk.bf16.mxu0 %vm637_vm2, %v8785_v19  ;;  %v8070_v18 = vadd.f32 %v5727_v51, %v1059_v26  ;;  %v1051_v30 = vadd.f32 %v1050_v47, %v8786_v53  ;;  %v3913_v51 = vshll.u32 %v8059_v21, 16  ;;  %v3931_v57 = vshrl.u32 %v8064_v17, 16 }
 0x13d   : > { %v5696_v25 = vpop.f32.mrf.mxu1  ;;  %5899 = vmatmul.mubr.msk.bf16.gmra.mxu1 %vm637_vm2, %v7883_v61  ;;  %v5731_v27 = vpop.f32.mrf.mxu0  ;;  %v8093_v23 = vrot.slane %v3903_v38, 5  ;;  %v3909_v61 = vrot.slane %v3907_v3, 4  ;;  %v3900_v63 = vor.u32 %v3899_v35, %v3896_v58  ;;  %v4420_v41 = vrot.slane %v8039_v33, 5 }
 0x13e   : > { %v8088_v26 = vadd.f32 %v1479_v45, %v1051_v30  ;;  %v1072_v5 = vadd.f32 %v5696_v25, %v7789_v10  ;;  %5902 = vmatprep.mubr.msk.bf16.mxu1 %vm637_vm2, %v7909_v13  ;;  %v3920_v47 = vrot.slane %v3918_v55, 4  ;;  %v3923_v19 = vrot.slane %v3921_v20, 5 }
 0x13f   : > { %v1063_v14 = vpop.f32.mrf.mxu1  ;;  %v1495_v10 = vpop.f32.mrf.mxu0  ;;  %v8099_v30 = vcombine.low %v3858_v50, %v3868_v22  ;;  %v5453_v25 = vrot.slane %v5437_v16, 9  ;;  %v8101_v38 = vcombine.low %v3882_v9, %v3892_v54  ;;  %v5470_v3 = vcombine.low %v8049_v39, %v8078_v24  ;;  %v5385_v24 = vld [vmem:[%s6077_s20 + $0xc8] sm:$0x1]  ;;  %v5386_v39 = vld [vmem:[%s6077_s20 + $0xcc] sm:$0xf] }
 0x140   : > { %v8096_v53 = vadd.f32 %v5730_v1, %v1072_v5  ;;  %v1064_v45 = vadd.f32 %v1063_v14, %v7802_v52  ;;  %v8105_v58 = vrot.slane %v3927_v37, 5  ;;  %v3933_v33 = vrot.slane %v3931_v57, 4  ;;  %v8127_v54 = vld [vmem:[%s6077_s20 + $0xd0] sm:$0xf] }
 0x141   : > { %v5697_v13 = vpop.f32.mrf.mxu1  ;;  %v5734_v52 = vpop.f32.mrf.mxu0  ;;  %v8788_v50 = vcombine.low %v7892_v6, %v7903_v48  ;;  %v8114_v9 = vrot.slane %v3913_v51, 5  ;;  %v4423_v22 = vrot.slane %v8059_v21, 5  ;;  %v3910_v20 = vor.u32 %v3909_v61, %v8093_v23 }
 0x142   : > { %v8107_v1 = vadd.f32 %v1492_v34, %v1064_v45  ;;  %v1075_v35 = vadd.f32 %v5697_v13, %v7825_v31  ;;  %v8789_v34 = vcombine.low %v7957_v12, %v7972_v43  ;;  %v8123_v31 = vrot.slane %v3900_v63, 4  ;;  %v5438_v12 = vld [vmem:[%s6077_s20 + $0xc0] sm:$0xe] }
 0x143   : > { %5937 = vmatmul.mubr.msk.bf16.gmra.mxu0 %vm637_vm2, %v8788_v50  ;;  %v1066_v55 = vpop.f32.mrf.mxu1  ;;  %v4422_v6 = vrot.slane %v4420_v41, 4  ;;  %v3924_v48 = vor.u32 %v3923_v19, %v3920_v47  ;;  %v1508_v16 = vpop.f32.mrf.mxu0  ;;  %v8134_v37 = vsel %vm6391_vm6, %v5453_v25, %v4420_v41  ;;  %v4427_v43 = vrot.slane %v8064_v17, 5 }
 0x144   : > { %8787 = vst [vmem:[#allocation7_spill] sm:$0xff] %v8107_v1  ;;  %5940 = vmatprep.mubr.msk.bf16.mxu0 %vm637_vm2, %v8789_v34  ;;  %v8129_v51 = vadd.f32 %v5731_v27, %v1075_v35  ;;  %v1067_v21 = vadd.f32 %v1066_v55, %v7844_v2  ;;  %v3934_v5 = vor.u32 %v3933_v33, %v8105_v58  ;;  %v3937_v61 = vshll.u32 %v5385_v24, 16  ;;  %v8792_v2 = vld [vmem:[#allocation3_spill] sm:$0xff] }
 0x145   : > { %v5700_v57 = vpop.f32.mrf.mxu1  ;;  %5903 = vmatmul.mubr.msk.bf16.gmra.mxu1 %vm637_vm2, %v7919_v11  ;;  %v3942_v14 = vshrl.u32 %v5386_v39, 16  ;;  %v3945_v27 = vshll.u32 %v5386_v39, 16  ;;  %v5735_v19 = vpop.f32.mrf.mxu0  ;;  %v3951_v41 = vshll.u32 %v8127_v54, 16  ;;  %v3955_v17 = vshrl.u32 %v8127_v54, 16 }
 0x146   : > { %8790 = vst [vmem:[#allocation9_spill] sm:$0xff] %v8129_v51  ;;  %v8141_v63 = vadd.f32 %v1495_v10, %v1067_v21  ;;  %v1088_v47 = vadd.f32 %v5700_v57, %v8792_v2  ;;  %5906 = vmatprep.mubr.msk.bf16.mxu1 %vm637_vm2, %v7999_v29  ;;  %v3911_v25 = vrot.slane %v3910_v20, 4  ;;  %v4424_v11 = vsel %vm6391_vm6, %v4422_v6, %v4423_v22  ;;  %v8793_v10 = vld [vmem:[#allocation12_spill] sm:$0xff] }
 0x147   : > { %v1079_v45 = vpop.f32.mrf.mxu1  ;;  %v3925_v13 = vrot.slane %v3924_v48, 4  ;;  %v5454_v33 = vrot.slane %v5438_v12, 9  ;;  %v1511_v39 = vpop.f32.mrf.mxu0  ;;  %v4429_v55 = vrot.slane %v4427_v43, 4  ;;  %v4430_v34 = vrot.slane %v5385_v24, 5  ;;  %v8794_v20 = vld [vmem:[#allocation4_spill] sm:$0xff] }
 0x148   : > { %8791 = vst [vmem:[#allocation5_spill] sm:$0xff] %v8141_v63  ;;  %v8150_v35 = vadd.f32 %v5734_v52, %v1088_v47  ;;  %v1080_v50 = vadd.f32 %v1079_v45, %v8793_v10  ;;  %v3935_v21 = vrot.slane %v3934_v5, 4  ;;  %v3939_v57 = vrot.slane %v3937_v61, 5  ;;  %v5388_v5 = vld [vmem:[%s6077_s20 + $0xd4] sm:$0x1]  ;;  %v8796_v61 = vld [vmem:[#allocation6_spill] sm:$0xff] }
 0x149   : > { %v5701_v29 = vpop.f32.mrf.mxu1  ;;  %v3944_v2 = vrot.slane %v3942_v14, 4  ;;  %v3947_v63 = vrot.slane %v3945_v27, 5  ;;  %v5738_v22 = vpop.f32.mrf.mxu0  ;;  %v8795_v52 = vcombine.low %v8016_v40, %v8031_v60  ;;  %v8160_v6 = vrot.slane %v3951_v41, 5  ;;  %v5439_v41 = vld [vmem:[%s6077_s20 + $0xcc] sm:$0xe] }
 0x14a   : > { %v8153_v51 = vadd.f32 %v1508_v16, %v1080_v50  ;;  %v1091_v1 = vadd.f32 %v5701_v29, %v8794_v20  ;;  %v3957_v24 = vrot.slane %v3955_v17, 4  ;;  %v3906_v16 = vsel %vm6115_vm3, %v8123_v31, %v8093_v23  ;;  %v8798_v50 = vld [vmem:[#allocation10_spill] sm:$0xff] }
 0x14b   : > { %5941 = vmatmul.mubr.msk.bf16.gmra.mxu0 %vm637_vm2, %v8795_v52  ;;  %v1082_v48 = vpop.f32.mrf.mxu1  ;;  %v3916_v12 = vsel %vm6115_vm3, %v3911_v25, %v8114_v9  ;;  %v4434_v40 = vrot.slane %v8127_v54, 5  ;;  %v1524_v27 = vpop.f32.mrf.mxu0  ;;  %v4431_v47 = vsel %vm6391_vm6, %v4429_v55, %v4430_v34  ;;  %v5471_v9 = vcombine.low %v8134_v37, %v4424_v11 }
 0x14c   : > { %5944 = vmatprep.mubr.msk.bf16.mxu0 %vm637_vm2, %v5470_v3  ;;  %v8172_v60 = vadd.f32 %v5735_v19, %v1091_v1  ;;  %v1083_v14 = vadd.f32 %v1082_v48, %v8796_v61  ;;  %v4428_v3 = vsel %vm6391_vm6, %v5454_v33, %v4427_v43  ;;  %v3930_v1 = vsel %vm6115_vm3, %v3925_v13, %v8105_v58  ;;  %v8797_v43 = vld [vmem:[#allocation8_spill] sm:$0xff] }
 0x14d   : > { %v5704_v23 = vpop.f32.mrf.mxu1  ;;  %5907 = vmatmul.mubr.msk.bf16.gmra.mxu1 %vm637_vm2, %v8099_v30  ;;  %v3940_v31 = vsel %vm6115_vm3, %v3935_v21, %v3939_v57  ;;  %v3948_v54 = vor.u32 %v3947_v63, %v3944_v2  ;;  %v5739_v45 = vpop.f32.mrf.mxu0  ;;  %v3958_v30 = vor.u32 %v3957_v24, %v8160_v6  ;;  %v3961_v25 = vshll.u32 %v5388_v5, 16 }
 0x14e   : > { %v8188_v19 = vadd.f32 %v1511_v39, %v1083_v14  ;;  %v1104_v17 = vadd.f32 %v5704_v23, %v8797_v43  ;;  %5910 = vmatprep.mubr.msk.bf16.mxu1 %vm637_vm2, %v8101_v38  ;;  %v5472_v11 = vcombine.low %v4428_v3, %v4431_v47  ;;  %v5455_v33 = vrot.slane %v5439_v41, 9  ;;  %v8799_v38 = vld [vmem:[#allocation11_spill] sm:$0xff]  ;;  %v8801_v41 = vld [vmem:[#allocation14_spill] sm:$0xff] }
 0x14f   : > { %v1095_v37 = vpop.f32.mrf.mxu1  ;;  %v4436_v10 = vrot.slane %v4434_v40, 4  ;;  %v4437_v58 = vrot.slane %v5388_v5, 5  ;;  %v1527_v39 = vpop.f32.mrf.mxu0  ;;  %v5404_v34 = vcombine.low %v3906_v16, %v3916_v12  ;;  %v5405_v29 = vcombine.low %v3930_v1, %v3940_v31  ;;  %v8800_v5 = vld [vmem:[#allocation2_spill] sm:$0xff] }
 0x150   : > { %v8194_v13 = vadd.f32 %v5738_v22, %v1104_v17  ;;  %v1096_v63 = vadd.f32 %v1095_v37, %v8798_v50  ;;  %v3949_v21 = vrot.slane %v3948_v54, 4  ;;  %v3959_v52 = vrot.slane %v3958_v30, 4  ;;  %v8802_v54 = vld [vmem:[#allocation17_spill] sm:$0xff] }
 0x151   : > { %v5705_v55 = vpop.f32.mrf.mxu1  ;;  %v5742_v20 = vpop.f32.mrf.mxu0  ;;  %v3963_v24 = vrot.slane %v3961_v25, 5  ;;  %v4435_v22 = vsel %vm6391_vm6, %v5455_v33, %v4434_v40  ;;  %v4438_v16 = vsel %vm6391_vm6, %v4436_v10, %v4437_v58  ;;  %v8803_v25 = vld [vmem:[#allocation19_spill] sm:$0xff] }
 0x152   : > { %v8197_v57 = vadd.f32 %v1524_v27, %v1096_v63  ;;  %v1107_v2 = vadd.f32 %v5705_v55, %v8799_v38  ;;  %v3954_v3 = vsel %vm6115_vm3, %v3949_v21, %v8160_v6  ;;  %v8805_v38 = vld [vmem:[#allocation22_spill] sm:$0xff] }
 0x153   : > { %5945 = vmatmul.mubr.msk.bf16.gmra.mxu0 %vm637_vm2, %v5471_v9  ;;  %v1098_v48 = vpop.f32.mrf.mxu1  ;;  %v1540_v14 = vpop.f32.mrf.mxu0  ;;  %v3964_v44 = vsel %vm6115_vm3, %v3959_v52, %v3963_v24  ;;  %v5473_v9 = vcombine.low %v4435_v22, %v4438_v16 }
 0x154   : > { %5948 = vmatprep.mubr.msk.bf16.mxu0 %vm637_vm2, %v5472_v11  ;;  %v8206_v12 = vadd.f32 %v5739_v45, %v1107_v2  ;;  %v1099_v61 = vadd.f32 %v1098_v48, %v8800_v5  ;;  %v5406_v30 = vcombine.low %v3954_v3, %v3964_v44 }
 0x155   : > { %v5708_v27 = vpop.f32.mrf.mxu1  ;;  %5911 = vmatmul.mubr.msk.bf16.gmra.mxu1 %vm637_vm2, %v5404_v34  ;;  %v5743_v40 = vpop.f32.mrf.mxu0 }
 0x156   : > { %v8213_v47 = vadd.f32 %v1527_v39, %v1099_v61  ;;  %v1120_v23 = vadd.f32 %v5708_v27, %v8801_v41  ;;  %5914 = vmatprep.mubr.msk.bf16.mxu1 %vm637_vm2, %v5405_v29 }
 0x157   : > { %v1111_v1 = vpop.f32.mrf.mxu1  ;;  %v1543_v17 = vpop.f32.mrf.mxu0 }
 0x158   : > { %v8219_v31 = vadd.f32 %v5742_v20, %v1120_v23  ;;  %v1112_v43 = vadd.f32 %v1111_v1, %v8802_v54 }
 0x159   : > { %v5709_v45 = vpop.f32.mrf.mxu1  ;;  %v5746_v11 = vpop.f32.mrf.mxu0 }
 0x15a   : > { %v8222_v6 = vadd.f32 %v1540_v14, %v1112_v43  ;;  %v1123_v37 = vadd.f32 %v5709_v45, %v8803_v25 }
 0x15b   : > { %5949 = vmatmul.mubr.msk.bf16.gmra.mxu0 %vm637_vm2, %v5473_v9  ;;  %v1114_v33 = vpop.f32.mrf.mxu1  ;;  %v1556_v50 = vpop.f32.mrf.mxu0 }
 0x15c   : > { %v8226_v10 = vadd.f32 %v5743_v40, %v1123_v37  ;;  %v1115_v58 = vadd.f32 %v1114_v33, %v8804_v28 }
 0x15d   : > { %v5712_v63 = vpop.f32.mrf.mxu1  ;;  %5915 = vmatmul.mubr.msk.bf16.gmra.mxu1 %vm637_vm2, %v5406_v30  ;;  %v5747_v34 = vpop.f32.mrf.mxu0 }
 0x15e   : > { %v8230_v39 = vadd.f32 %v1543_v17, %v1115_v58  ;;  %v1136_v55 = vadd.f32 %v5712_v63, %v7816_v56 }
 0x15f   : > { %v1127_v29 = vpop.f32.mrf.mxu1  ;;  %v1559_v20 = vpop.f32.mrf.mxu0 }
 0x160   : > { %v8233_v21 = vadd.f32 %v5746_v11, %v1136_v55  ;;  %v1128_v2 = vadd.f32 %v1127_v29, %v8805_v38 }
 0x161   : > { %v5713_v52 = vpop.f32.mrf.mxu1  ;;  %v5786_v22 = vpop.f32.mrf.mxu0 }
 0x162   : > { %v8236_v24 = vadd.f32 %v1556_v50, %v1128_v2  ;;  %v1139_v48 = vadd.f32 %v5713_v52, %v7847_v0 }
 0x163   : > { %v1130_v16 = vpop.f32.mrf.mxu1  ;;  %v2537_v14 = vpop.f32.mrf.mxu0 }
 0x164   : > { %v8239_v5 = vadd.f32 %v5747_v34, %v1139_v48  ;;  %v1131_v61 = vadd.f32 %v1130_v16, %v7869_v62 }
 0x165   : > { %v5752_v56 = vpop.f32.mrf.mxu1  ;;  %v5787_v41 = vpop.f32.mrf.mxu0 }
 0x166   : > { %v8242_v27 = vadd.f32 %v1559_v20, %v1131_v61  ;;  %v1936_v3 = vadd.f32 %v5752_v56, %v7916_v32 }
 0x167   : > { %v1807_v23 = vpop.f32.mrf.mxu1  ;;  %v2540_v9 = vpop.f32.mrf.mxu0 }
 0x168   : > { %v8245_v40 = vadd.f32 %v5786_v22, %v1936_v3  ;;  %v1934_v44 = vadd.f32 %v1807_v23, %v7927_v59 }
 0x169   : > { %v5753_v0 = vpop.f32.mrf.mxu1  ;;  %v5790_v43 = vpop.f32.mrf.mxu0 }
 0x16a   : > { %v8248_v1 = vadd.f32 %v2537_v14, %v1934_v44  ;;  %v1937_v54 = vadd.f32 %v5753_v0, %v7943_v7 }
 0x16b   : > { %v1810_v62 = vpop.f32.mrf.mxu1  ;;  %v2553_v30 = vpop.f32.mrf.mxu0 }
 0x16c   : > { %v8251_v17 = vadd.f32 %v5787_v41, %v1937_v54  ;;  %v1935_v45 = vadd.f32 %v1810_v62, %v7961_v46 }
 0x16d   : > { %v5756_v32 = vpop.f32.mrf.mxu1  ;;  %v5791_v11 = vpop.f32.mrf.mxu0 }
 0x16e   : > { %v8254_v25 = vadd.f32 %v2540_v9, %v1935_v45  ;;  %v1940_v37 = vadd.f32 %v5756_v32, %v7976_v15  ;;  %v8807_v32 = vld [vmem:[#allocation9_spill] sm:$0xff] }
 0x16f   : > { %v1823_v59 = vpop.f32.mrf.mxu1  ;;  %v2556_v58 = vpop.f32.mrf.mxu0 }
 0x170   : > { %v8257_v33 = vadd.f32 %v5790_v43, %v1940_v37  ;;  %v1938_v28 = vadd.f32 %v1823_v59, %v7982_v8  ;;  %v8806_v43 = vld [vmem:[#allocation7_spill] sm:$0xff] }
 0x171   : > { %v5757_v7 = vpop.f32.mrf.mxu1  ;;  %v5794_v55 = vpop.f32.mrf.mxu0 }
 0x172   : > { %v8260_v50 = vadd.f32 %v2553_v30, %v1938_v28  ;;  %v1941_v63 = vadd.f32 %v5757_v7, %v8007_v49  ;;  %v8808_v28 = vld [vmem:[#allocation5_spill] sm:$0xff] }
 0x173   : > { %v1826_v46 = vpop.f32.mrf.mxu1  ;;  %v2569_v38 = vpop.f32.mrf.mxu0 }
 0x174   : > { %v8263_v34 = vadd.f32 %v5791_v11, %v1941_v63  ;;  %v1939_v29 = vadd.f32 %v1826_v46, %v8020_v42 }
 0x175   : > { %v5760_v15 = vpop.f32.mrf.mxu1  ;;  %v5795_v52 = vpop.f32.mrf.mxu0 }
 0x176   : > { %v8266_v2 = vadd.f32 %v2556_v58, %v1939_v29  ;;  %v1944_v20 = vadd.f32 %v5760_v15, %v8041_v36 }
 0x177   : > { %v1839_v8 = vpop.f32.mrf.mxu1  ;;  %v2572_v16 = vpop.f32.mrf.mxu0 }
 0x178   : > { %v8269_v48 = vadd.f32 %v5794_v55, %v1944_v20  ;;  %v1942_v22 = vadd.f32 %v1839_v8, %v8051_v4 }
 0x179   : > { %v5761_v49 = vpop.f32.mrf.mxu1  ;;  %v5798_v56 = vpop.f32.mrf.mxu0 }
 0x17a   : > { %v8272_v61 = vadd.f32 %v2569_v38, %v1942_v22  ;;  %v1945_v14 = vadd.f32 %v5761_v49, %v8070_v18 }
 0x17b   : > { %v1842_v42 = vpop.f32.mrf.mxu1  ;;  %v2585_v23 = vpop.f32.mrf.mxu0 }
 0x17c   : > { %v8275_v3 = vadd.f32 %v5795_v52, %v1945_v14  ;;  %v1943_v41 = vadd.f32 %v1842_v42, %v8088_v26 }
 0x17d   : > { %v5764_v36 = vpop.f32.mrf.mxu1  ;;  %v5799_v0 = vpop.f32.mrf.mxu0 }
 0x17e   : > { %v8278_v44 = vadd.f32 %v2572_v16, %v1943_v41  ;;  %v1948_v9 = vadd.f32 %v5764_v36, %v8096_v53 }
 0x17f   : > { %v1855_v4 = vpop.f32.mrf.mxu1  ;;  %v2588_v45 = vpop.f32.mrf.mxu0 }
 0x180   : > { %v8281_v54 = vadd.f32 %v5798_v56, %v1948_v9  ;;  %v1946_v62 = vadd.f32 %v1855_v4, %v8806_v43 }
 0x181   : > { %v5765_v18 = vpop.f32.mrf.mxu1  ;;  %v5802_v11 = vpop.f32.mrf.mxu0 }
 0x182   : > { %v8284_v30 = vadd.f32 %v2585_v23, %v1946_v62  ;;  %v1949_v37 = vadd.f32 %v5765_v18, %v8807_v32 }
 0x183   : > { %v1858_v26 = vpop.f32.mrf.mxu1  ;;  %v2601_v7 = vpop.f32.mrf.mxu0 }
 0x184   : > { %v8287_v59 = vadd.f32 %v5799_v0, %v1949_v37  ;;  %v1947_v58 = vadd.f32 %v1858_v26, %v8808_v28 }
 0x185   : > { %v5768_v53 = vpop.f32.mrf.mxu1  ;;  %v5803_v46 = vpop.f32.mrf.mxu0 }
 0x186   : > { %v8290_v63 = vadd.f32 %v2588_v45, %v1947_v58  ;;  %v1952_v55 = vadd.f32 %v5768_v53, %v8150_v35 }
 0x187   : > { %v1871_v29 = vpop.f32.mrf.mxu1  ;;  %v2604_v20 = vpop.f32.mrf.mxu0 }
 0x188   : > { %v8293_v38 = vadd.f32 %v5802_v11, %v1952_v55  ;;  %v1950_v15 = vadd.f32 %v1871_v29, %v8153_v51 }
 0x189   : > { %v5769_v52 = vpop.f32.mrf.mxu1  ;;  %v5806_v16 = vpop.f32.mrf.mxu0 }
 0x18a   : > { %v8296_v8 = vadd.f32 %v2601_v7, %v1950_v15  ;;  %v1953_v22 = vadd.f32 %v5769_v52, %v8172_v60 }
 0x18b   : > { %v1874_v49 = vpop.f32.mrf.mxu1  ;;  %v2617_v42 = vpop.f32.mrf.mxu0 }
 0x18c   : > { %v8299_v14 = vadd.f32 %v5803_v46, %v1953_v22  ;;  %v1951_v56 = vadd.f32 %v1874_v49, %v8188_v19 }
 0x18d   : > { %v5772_v35 = vpop.f32.mrf.mxu1  ;;  %v5807_v36 = vpop.f32.mrf.mxu0 }
 0x18e   : > { %v8302_v41 = vadd.f32 %v2604_v20, %v1951_v56  ;;  %v1956_v23 = vadd.f32 %v5772_v35, %v8194_v13 }
 0x18f   : > { %v1887_v51 = vpop.f32.mrf.mxu1  ;;  %v2620_v4 = vpop.f32.mrf.mxu0 }
 0x190   : > { %v8305_v9 = vadd.f32 %v5806_v16, %v1956_v23  ;;  %v1954_v0 = vadd.f32 %v1887_v51, %v8197_v57 }
 0x191   : > { %v5773_v60 = vpop.f32.mrf.mxu1  ;;  %v5810_v45 = vpop.f32.mrf.mxu0 }
 0x192   : > { %v8308_v43 = vadd.f32 %v2617_v42, %v1954_v0  ;;  %v1957_v62 = vadd.f32 %v5773_v60, %v8206_v12 }
 0x193   : > { %v1890_v19 = vpop.f32.mrf.mxu1  ;;  %v2633_v37 = vpop.f32.mrf.mxu0 }
 0x194   : > { %v8311_v18 = vadd.f32 %v5807_v36, %v1957_v62  ;;  %v1955_v32 = vadd.f32 %v1890_v19, %v8213_v47 }
 0x195   : > { %v5776_v13 = vpop.f32.mrf.mxu1  ;;  %v5811_v28 = vpop.f32.mrf.mxu0 }
 0x196   : > { %v8314_v11 = vadd.f32 %v2620_v4, %v1955_v32  ;;  %v1960_v26 = vadd.f32 %v5776_v13, %v8219_v31 }
 0x197   : > { %v1903_v57 = vpop.f32.mrf.mxu1  ;;  %v2636_v53 = vpop.f32.mrf.mxu0 }
 0x198   : > { %v8317_v58 = vadd.f32 %v5810_v45, %v1960_v26  ;;  %v1958_v7 = vadd.f32 %v1903_v57, %v8222_v6 }
 0x199   : > { %v5777_v12 = vpop.f32.mrf.mxu1  ;;  %v5814_v29 = vpop.f32.mrf.mxu0 }
 0x19a   : > { %v8320_v55 = vadd.f32 %v2633_v37, %v1958_v7  ;;  %v1961_v46 = vadd.f32 %v5777_v12, %v8226_v10 }
 0x19b   : > { %v1906_v47 = vpop.f32.mrf.mxu1  ;;  %v2649_v52 = vpop.f32.mrf.mxu0 }
 0x19c   : > { %v8323_v15 = vadd.f32 %v5811_v28, %v1961_v46  ;;  %v1959_v20 = vadd.f32 %v1906_v47, %v8230_v39 }
 0x19d   : > { %v5780_v31 = vpop.f32.mrf.mxu1  ;;  %v5815_v49 = vpop.f32.mrf.mxu0 }
 0x19e   : > { %v8326_v22 = vadd.f32 %v2636_v53, %v1959_v20  ;;  %v1964_v16 = vadd.f32 %v5780_v31, %v8233_v21 }
 0x19f   : > { %v1919_v6 = vpop.f32.mrf.mxu1  ;;  %v2652_v35 = vpop.f32.mrf.mxu0 }
 0x1a0   : > { %8809 = vst [vmem:[#allocation16_spill] sm:$0xff] %v8326_v22  ;;  %v8329_v56 = vadd.f32 %v5814_v29, %v1964_v16  ;;  %v1962_v42 = vadd.f32 %v1919_v6, %v8236_v24 }
 0x1a1   : > { %v5781_v10 = vpop.f32.mrf.mxu1  ;;  %v5854_v51 = vpop.f32.mrf.mxu0 }
 0x1a2   : > { %v8332_v23 = vadd.f32 %v2649_v52, %v1962_v42  ;;  %v1965_v36 = vadd.f32 %v5781_v10, %v8239_v5 }
 0x1a3   : > { %v1922_v39 = vpop.f32.mrf.mxu1  ;;  %v3374_v60 = vpop.f32.mrf.mxu0 }
 0x1a4   : > { %8810 = vst [vmem:[#allocation13_spill] sm:$0xff] %v8332_v23  ;;  %v8335_v0 = vadd.f32 %v5815_v49, %v1965_v36  ;;  %v1963_v4 = vadd.f32 %v1922_v39, %v8242_v27 }
 0x1a5   : > { %v5820_v21 = vpop.f32.mrf.mxu1  ;;  %v5855_v19 = vpop.f32.mrf.mxu0 }
 0x1a6   : > { %v8338_v62 = vadd.f32 %v2652_v35, %v1963_v4  ;;  %v3140_v45 = vadd.f32 %v5820_v21, %v8245_v40 }
 0x1a7   : > { %v3011_v24 = vpop.f32.mrf.mxu1  ;;  %v8344_v13 = vpop.f32.mrf.mxu0 }
 0x1a8   : > { %8811 = vst [vmem:[#allocation15_spill] sm:$0xff] %v8338_v62  ;;  %v8341_v32 = vadd.f32 %v5854_v51, %v3140_v45  ;;  %v3138_v37 = vadd.f32 %v3011_v24, %v8248_v1 }
 0x1a9   : > { %v5821_v5 = vpop.f32.mrf.mxu1  ;;  %v5858_v27 = vpop.f32.mrf.mxu0 }
 0x1aa   : > { %v8346_v26 = vadd.f32 %v3374_v60, %v3138_v37  ;;  %v3141_v28 = vadd.f32 %v5821_v5, %v8251_v17 }
 0x1ab   : > { %v8349_v57 = vpop.f32.mrf.mxu1  ;;  %v8353_v53 = vpop.f32.mrf.mxu0 }
 0x1ac   : > { %v8351_v7 = vadd.f32 %v5855_v19, %v3141_v28 }
 0x1ad   : > { %v5824_v40 = vpop.f32.mrf.mxu1  ;;  %v5859_v46 = vpop.f32.mrf.mxu0 }
 0x1ae   : > { %v3144_v12 = vadd.f32 %v5824_v40, %v8257_v33 }
 0x1af   : > { %v8356_v29 = vpop.f32.mrf.mxu1  ;;  %v8360_v47 = vpop.f32.mrf.mxu0 }
 0x1b0   : > { %v8358_v1 = vadd.f32 %v5858_v27, %v3144_v12 }
 0x1b1   : > { %v5825_v20 = vpop.f32.mrf.mxu1  ;;  %v5862_v52 = vpop.f32.mrf.mxu0 }
 0x1b2   : > { %v3145_v17 = vadd.f32 %v5825_v20, %v8263_v34 }
 0x1b3   : > { %v8363_v31 = vpop.f32.mrf.mxu1  ;;  %v8367_v49 = vpop.f32.mrf.mxu0 }
 0x1b4   : > { %v8365_v16 = vadd.f32 %v5859_v46, %v3145_v17 }
 0x1b5   : > { %v5828_v6 = vpop.f32.mrf.mxu1  ;;  %v5863_v42 = vpop.f32.mrf.mxu0 }
 0x1b6   : > { %v3148_v33 = vadd.f32 %v5828_v6, %v8269_v48 }
 0x1b7   : > { %v8370_v35 = vpop.f32.mrf.mxu1  ;;  %v8374_v36 = vpop.f32.mrf.mxu0 }
 0x1b8   : > { %v8372_v10 = vadd.f32 %v5862_v52, %v3148_v33 }
 0x1b9   : > { %v5829_v51 = vpop.f32.mrf.mxu1  ;;  %v5866_v39 = vpop.f32.mrf.mxu0 }
 0x1ba   : > { %v3149_v34 = vadd.f32 %v5829_v51, %v8275_v3 }
 0x1bb   : > { %v8377_v4 = vpop.f32.mrf.mxu1  ;;  %v8381_v21 = vpop.f32.mrf.mxu0 }
 0x1bc   : > { %v8379_v60 = vadd.f32 %v5863_v42, %v3149_v34 }
 0x1bd   : > { %v5832_v45 = vpop.f32.mrf.mxu1  ;;  %v5867_v19 = vpop.f32.mrf.mxu0 }
 0x1be   : > { %v3152_v48 = vadd.f32 %v5832_v45, %v8281_v54 }
 0x1bf   : > { %v8384_v24 = vpop.f32.mrf.mxu1  ;;  %v8388_v5 = vpop.f32.mrf.mxu0 }
 0x1c0   : > { %v8386_v37 = vadd.f32 %v5866_v39, %v3152_v48 }
 0x1c1   : > { %v5833_v28 = vpop.f32.mrf.mxu1  ;;  %v5870_v27 = vpop.f32.mrf.mxu0 }
 0x1c2   : > { %v3153_v3 = vadd.f32 %v5833_v28, %v8287_v59 }
 0x1c3   : > { %v8391_v40 = vpop.f32.mrf.mxu1  ;;  %v8395_v46 = vpop.f32.mrf.mxu0 }
 0x1c4   : > { %v8393_v12 = vadd.f32 %v5867_v19, %v3153_v3 }
 0x1c5   : > { %v5836_v20 = vpop.f32.mrf.mxu1  ;;  %v5871_v17 = vpop.f32.mrf.mxu0 }
 0x1c6   : > { %v3156_v54 = vadd.f32 %v5836_v20, %v8293_v38 }
 0x1c7   : > { %v8398_v52 = vpop.f32.mrf.mxu1  ;;  %v8402_v33 = vpop.f32.mrf.mxu0 }
 0x1c8   : > { %v8400_v6 = vadd.f32 %v5870_v27, %v3156_v54 }
 0x1c9   : > { %v5837_v42 = vpop.f32.mrf.mxu1  ;;  %v5874_v51 = vpop.f32.mrf.mxu0 }
 0x1ca   : > { %v3157_v59 = vadd.f32 %v5837_v42, %v8299_v14 }
 0x1cb   : > { %v8405_v34 = vpop.f32.mrf.mxu1  ;;  %v8409_v45 = vpop.f32.mrf.mxu0 }
 0x1cc   : > { %v8407_v39 = vadd.f32 %v5871_v17, %v3157_v59 }
 0x1cd   : > { %v5840_v48 = vpop.f32.mrf.mxu1  ;;  %v5875_v19 = vpop.f32.mrf.mxu0 }
 0x1ce   : > { %v3160_v38 = vadd.f32 %v5840_v48, %v8305_v9 }
 0x1cf   : > { %v8412_v28 = vpop.f32.mrf.mxu1  ;;  %v8416_v27 = vpop.f32.mrf.mxu0 }
 0x1d0   : > { %v8414_v3 = vadd.f32 %v5874_v51, %v3160_v38 }
 0x1d1   : > { %v5841_v20 = vpop.f32.mrf.mxu1  ;;  %v5878_v54 = vpop.f32.mrf.mxu0 }
 0x1d2   : > { %8812 = vst [vmem:[#allocation18_spill] sm:$0xff] %v8414_v3  ;;  %v3161_v14 = vadd.f32 %v5841_v20, %v8311_v18 }
 0x1d3   : > { %v8419_v42 = vpop.f32.mrf.mxu1  ;;  %v8423_v59 = vpop.f32.mrf.mxu0 }
 0x1d4   : > { %v8421_v17 = vadd.f32 %v5875_v19, %v3161_v14  ;;  %8814 = vst [vmem:[#allocation3_spill] sm:$0xff] %v8423_v59 }
 0x1d5   : > { %v5844_v62 = vpop.f32.mrf.mxu1  ;;  %v5879_v48 = vpop.f32.mrf.mxu0 }
 0x1d6   : > { %8813 = vst [vmem:[#allocation20_spill] sm:$0xff] %v8421_v17  ;;  %v3164_v9 = vadd.f32 %v5844_v62, %v8317_v58 }
 0x1d7   : > { %v8426_v23 = vpop.f32.mrf.mxu1  ;;  %v8430_v38 = vpop.f32.mrf.mxu0 }
 0x1d8   : > { %v8428_v51 = vadd.f32 %v5878_v54, %v3164_v9  ;;  %8816 = vst [vmem:[#allocation4_spill] sm:$0xff] %v8430_v38 }
 0x1d9   : > { %v5845_v22 = vpop.f32.mrf.mxu1  ;;  %v5882_v20 = vpop.f32.mrf.mxu0 }
 0x1da   : > { %8815 = vst [vmem:[#allocation12_spill] sm:$0xff] %v8428_v51  ;;  %v3165_v18 = vadd.f32 %v5845_v22, %v8323_v15 }
 0x1db   : > { %v8433_v3 = vpop.f32.mrf.mxu1  ;;  %v8437_v14 = vpop.f32.mrf.mxu0 }
 0x1dc   : > { %8817 = vst [vmem:[#allocation6_spill] sm:$0xff] %v8433_v3  ;;  %v8435_v19 = vadd.f32 %v5879_v48, %v3165_v18  ;;  %8819 = vst [vmem:[#allocation10_spill] sm:$0xff] %v8437_v14 }
 0x1dd   : > { %v5848_v17 = vpop.f32.mrf.mxu1  ;;  %v5883_v62 = vpop.f32.mrf.mxu0 }
 0x1de   : > { %8818 = vst [vmem:[#allocation8_spill] sm:$0xff] %v8435_v19  ;;  %v3168_v58 = vadd.f32 %v5848_v17, %v8329_v56  ;;  %v3139_v56 = vadd.f32 %v8349_v57, %v8254_v25  ;;  %v3143_v57 = vadd.f32 %v8363_v31, %v8266_v2 }
 0x1df   : > { %v8440_v59 = vpop.f32.mrf.mxu1  ;;  %v8444_v9 = vpop.f32.mrf.mxu0 }
 0x1e0   : > { %8820 = vst [vmem:[#allocation11_spill] sm:$0xff] %v8440_v59  ;;  %v8442_v54 = vadd.f32 %v5882_v20, %v3168_v58  ;;  %8822 = vst [vmem:[#allocation14_spill] sm:$0xff] %v8444_v9  ;;  %v3142_v20 = vadd.f32 %v8356_v29, %v8260_v50  ;;  %v3506_v2 = vadd.f32 %v8360_v47, %v3143_v57 }
 0x1e1   : > { %v5849_v51 = vpop.f32.mrf.mxu1  ;;  %v3147_v47 = vadd.f32 %v8377_v4, %v8278_v44 }
 0x1e2   : > { %8821 = vst [vmem:[#allocation2_spill] sm:$0xff] %v8442_v54  ;;  %v3169_v15 = vadd.f32 %v5849_v51, %v8335_v0  ;;  %v5922_v22 = vpop.f32.mrf.mxu0  ;;  %v3502_v54 = vadd.f32 %v8344_v13, %v3139_v56 }
 0x1e3   : > { %v8447_v38 = vpop.f32.mrf.mxu1  ;;  %v3510_v44 = vadd.f32 %v8374_v36, %v3147_v47  ;;  %v3151_v36 = vadd.f32 %v8391_v40, %v8290_v63 }
 0x1e4   : > { %8823 = vst [vmem:[#allocation17_spill] sm:$0xff] %v8447_v38  ;;  %v8449_v48 = vadd.f32 %v5883_v62, %v3169_v15  ;;  %v4578_v18 = vpop.f32.mrf.mxu0  ;;  %v3505_v38 = vadd.f32 %v8353_v53, %v3142_v20  ;;  %v3146_v53 = vadd.f32 %v8370_v35, %v8272_v61 }
 0x1e5   : > { %v5888_v19 = vpop.f32.mrf.mxu1  ;;  %v3514_v63 = vadd.f32 %v8388_v5, %v3151_v36  ;;  %v3155_v5 = vadd.f32 %v8405_v34, %v8302_v41 }
 0x1e6   : > { %8824 = vst [vmem:[#allocation19_spill] sm:$0xff] %v8449_v48  ;;  %v5923_v17 = vpop.f32.mrf.mxu0  ;;  %v4233_v62 = vadd.f32 %v5888_v19, %v8341_v32 }
 0x1e7   : > { %v4104_v14 = vpop.f32.mrf.mxu1  ;;  %v3518_v41 = vadd.f32 %v8402_v33, %v3155_v5  ;;  %v3159_v33 = vadd.f32 %v8419_v42, %v8314_v11 }
 0x1e8   : > { %v4581_v59 = vpop.f32.mrf.mxu0  ;;  %v4231_v0 = vadd.f32 %v4104_v14, %v8346_v26  ;;  %v8466_v14 = vadd.f32 %v5922_v22, %v4233_v62 }
 0x1e9   : > { %v5889_v58 = vpop.f32.mrf.mxu1  ;;  %v3522_v11 = vadd.f32 %v8416_v27, %v3159_v33 }
 0x1ea   : > { %v5926_v51 = vpop.f32.mrf.mxu0  ;;  %v8461_v3 = vadd.f32 %v4578_v18, %v4231_v0  ;;  %v4234_v50 = vadd.f32 %v5889_v58, %v8351_v7  ;;  %v3509_v0 = vadd.f32 %v8367_v49, %v3146_v53  ;;  %v3150_v49 = vadd.f32 %v8384_v24, %v8284_v30 }
 0x1eb   : > { %v4107_v9 = vpop.f32.mrf.mxu1 }
 0x1ec   : > { %v4232_v15 = vadd.f32 %v4107_v9, %v3502_v54  ;;  %v4594_v48 = vpop.f32.mrf.mxu0  ;;  %v8473_v31 = vadd.f32 %v5923_v17, %v4234_v50 }
 0x1ed   : > { %v5892_v25 = vpop.f32.mrf.mxu1 }
 0x1ee   : > { %v8464_v29 = vadd.f32 %v4581_v59, %v4232_v15  ;;  %v5927_v13 = vpop.f32.mrf.mxu0  ;;  %v4237_v22 = vadd.f32 %v5892_v25, %v8358_v1 }
 0x1ef   : > { %v4120_v26 = vpop.f32.mrf.mxu1 }
 0x1f0   : > { %v4737_v32 = vadd.f32 %v8464_v29, %v8461_v3  ;;  %v4235_v19 = vadd.f32 %v4120_v26, %v3505_v38  ;;  %v4597_v54 = vpop.f32.mrf.mxu0 }
 0x1f1   : > { %v5893_v9 = vpop.f32.mrf.mxu1 }
 0x1f2   : > { %v4738_v7 = vadd.f32 %v4737_v32, %v8466_v14  ;;  %v5930_v59 = vpop.f32.mrf.mxu0  ;;  %v8477_v56 = vadd.f32 %v4594_v48, %v4235_v19  ;;  %v4238_v17 = vadd.f32 %v5893_v9, %v8365_v16  ;;  %v8487_v48 = vadd.f32 %v5926_v51, %v4237_v22 }
 0x1f3   : > { %v4123_v18 = vpop.f32.mrf.mxu1 }
 0x1f4   : > { %v4739_v20 = vadd.f32 %v4738_v7, %v8473_v31  ;;  %v4236_v38 = vadd.f32 %v4123_v18, %v3506_v2  ;;  %v4610_v58 = vpop.f32.mrf.mxu0  ;;  %v8493_v4 = vadd.f32 %v5927_v13, %v4238_v17  ;;  %v3513_v7 = vadd.f32 %v8381_v21, %v3150_v49 }
 0x1f5   : > { %v5896_v61 = vpop.f32.mrf.mxu1  ;;  %v3154_v21 = vadd.f32 %v8398_v52, %v8296_v8 }
 0x1f6   : > { %v4740_v35 = vadd.f32 %v4739_v20, %v8477_v56  ;;  %v8485_v62 = vadd.f32 %v4597_v54, %v4236_v38  ;;  %v5931_v15 = vpop.f32.mrf.mxu0  ;;  %v4241_v54 = vadd.f32 %v5896_v61, %v8372_v10 }
 0x1f7   : > { %v4136_v1 = vpop.f32.mrf.mxu1 }
 0x1f8   : > { %v4741_v25 = vadd.f32 %v4740_v35, %v8485_v62  ;;  %v4239_v57 = vadd.f32 %v4136_v1, %v3509_v0  ;;  %v4613_v50 = vpop.f32.mrf.mxu0  ;;  %v8507_v20 = vadd.f32 %v5930_v59, %v4241_v54 }
 0x1f9   : > { %v5897_v26 = vpop.f32.mrf.mxu1 }
 0x1fa   : > { %v4742_v16 = vadd.f32 %v4741_v25, %v8487_v48  ;;  %v5934_v32 = vpop.f32.mrf.mxu0  ;;  %v8497_v51 = vadd.f32 %v4610_v58, %v4239_v57  ;;  %v4242_v13 = vadd.f32 %v5897_v26, %v8379_v60 }
 0x1fb   : > { %v4139_v19 = vpop.f32.mrf.mxu1 }
 0x1fc   : > { %v4743_v53 = vadd.f32 %v4742_v16, %v8493_v4  ;;  %v4240_v9 = vadd.f32 %v4139_v19, %v3510_v44  ;;  %v4626_v2 = vpop.f32.mrf.mxu0  ;;  %v8513_v40 = vadd.f32 %v5931_v15, %v4242_v13 }
 0x1fd   : > { %v5900_v30 = vpop.f32.mrf.mxu1 }
 0x1fe   : > { %v4744_v24 = vadd.f32 %v4743_v53, %v8497_v51  ;;  %v8505_v18 = vadd.f32 %v4613_v50, %v4240_v9  ;;  %v5935_v22 = vpop.f32.mrf.mxu0  ;;  %v4245_v17 = vadd.f32 %v5900_v30, %v8386_v37  ;;  %v3517_v50 = vadd.f32 %v8395_v46, %v3154_v21 }
 0x1ff   : > { %v4152_v10 = vpop.f32.mrf.mxu1  ;;  %v3158_v46 = vadd.f32 %v8412_v28, %v8308_v43 }
 0x200   : > { %v4745_v38 = vadd.f32 %v4744_v24, %v8505_v18  ;;  %v4243_v58 = vadd.f32 %v4152_v10, %v3513_v7  ;;  %v4629_v0 = vpop.f32.mrf.mxu0  ;;  %v8527_v44 = vadd.f32 %v5934_v32, %v4245_v17  ;;  %v8825_v17 = vld [vmem:[#allocation18_spill] sm:$0xff] }
 0x201   : > { %v5901_v61 = vpop.f32.mrf.mxu1  ;;  %v3521_v13 = vadd.f32 %v8409_v45, %v3158_v46  ;;  %v3162_v45 = vadd.f32 %v8426_v23, %v8320_v55  ;;  %v8827_v23 = vld [vmem:[#allocation16_spill] sm:$0xff] }
 0x202   : > { %v4746_v60 = vadd.f32 %v4745_v38, %v8507_v20  ;;  %v8517_v59 = vadd.f32 %v4626_v2, %v4243_v58  ;;  %v4246_v15 = vadd.f32 %v5901_v61, %v8393_v12 }
 0x203   : > { %v5938_v47 = vpop.f32.mrf.mxu0  ;;  %v4155_v35 = vpop.f32.mrf.mxu1 }
 0x204   : > { %v4747_v1 = vadd.f32 %v4746_v60, %v8513_v40  ;;  %v4244_v25 = vadd.f32 %v4155_v35, %v3514_v63  ;;  %v8533_v34 = vadd.f32 %v5935_v22, %v4246_v15 }
 0x205   : > { %v4642_v57 = vpop.f32.mrf.mxu0  ;;  %v5904_v8 = vpop.f32.mrf.mxu1 }
 0x206   : > { %v4748_v52 = vadd.f32 %v4747_v1, %v8517_v59  ;;  %v8525_v49 = vadd.f32 %v4629_v0, %v4244_v25  ;;  %v4249_v7 = vadd.f32 %v5904_v8, %v8400_v6  ;;  %v8826_v8 = vld [vmem:[#allocation3_spill] sm:$0xff] }
 0x207   : > { %v5939_v26 = vpop.f32.mrf.mxu0  ;;  %v4168_v37 = vpop.f32.mrf.mxu1  ;;  %v3525_v5 = vadd.f32 %v8826_v8, %v3162_v45  ;;  %v8834_v45 = vld [vmem:[#allocation10_spill] sm:$0xff] }
 0x208   : > { %v4749_v16 = vadd.f32 %v4748_v52, %v8525_v49  ;;  %v4247_v19 = vadd.f32 %v4168_v37, %v3517_v50  ;;  %v8547_v58 = vadd.f32 %v5938_v47, %v4249_v7  ;;  %v8828_v52 = vld [vmem:[#allocation6_spill] sm:$0xff]  ;;  %v8831_v7 = vld [vmem:[#allocation11_spill] sm:$0xff] }
 0x209   : > { %v4645_v54 = vpop.f32.mrf.mxu0  ;;  %v5905_v53 = vpop.f32.mrf.mxu1  ;;  %v3163_v27 = vadd.f32 %v8828_v52, %v8827_v23 }
 0x20a   : > { %v4750_v12 = vadd.f32 %v4749_v16, %v8527_v44  ;;  %v8537_v32 = vadd.f32 %v4642_v57, %v4247_v19  ;;  %v4250_v22 = vadd.f32 %v5905_v53, %v8407_v39 }
 0x20b   : > { %v5942_v9 = vpop.f32.mrf.mxu0  ;;  %v4171_v2 = vpop.f32.mrf.mxu1 }
 0x20c   : > { %v4751_v30 = vadd.f32 %v4750_v12, %v8533_v34  ;;  %v4248_v36 = vadd.f32 %v4171_v2, %v3518_v41  ;;  %v8553_v42 = vadd.f32 %v5939_v26, %v4250_v22  ;;  %v8829_v26 = vld [vmem:[#allocation20_spill] sm:$0xff]  ;;  %v8830_v2 = vld [vmem:[#allocation13_spill] sm:$0xff] }
 0x20d   : > { %v4658_v24 = vpop.f32.mrf.mxu0  ;;  %v5908_v43 = vpop.f32.mrf.mxu1 }
 0x20e   : > { %v4752_v28 = vadd.f32 %v4751_v30, %v8537_v32  ;;  %v8545_v10 = vadd.f32 %v4645_v54, %v4248_v36  ;;  %v4253_v1 = vadd.f32 %v5908_v43, %v8825_v17  ;;  %v3166_v30 = vadd.f32 %v8831_v7, %v8830_v2  ;;  %v8836_v17 = vld [vmem:[#allocation17_spill] sm:$0xff] }
 0x20f   : > { %v5943_v38 = vpop.f32.mrf.mxu0  ;;  %v4184_v6 = vpop.f32.mrf.mxu1 }
 0x210   : > { %v4753_v0 = vadd.f32 %v4752_v28, %v8545_v10  ;;  %v4251_v21 = vadd.f32 %v4184_v6, %v3521_v13  ;;  %v8567_v46 = vadd.f32 %v5942_v9, %v4253_v1  ;;  %v8833_v6 = vld [vmem:[#allocation12_spill] sm:$0xff] }
 0x211   : > { %v4661_v61 = vpop.f32.mrf.mxu0  ;;  %v5909_v63 = vpop.f32.mrf.mxu1 }
 0x212   : > { %v4754_v39 = vadd.f32 %v4753_v0, %v8547_v58  ;;  %v8557_v47 = vadd.f32 %v4658_v24, %v4251_v21  ;;  %v4254_v37 = vadd.f32 %v5909_v63, %v8829_v26  ;;  %v8832_v24 = vld [vmem:[#allocation4_spill] sm:$0xff]  ;;  %v3529_v63 = vadd.f32 %v8834_v45, %v3166_v30 }
 0x213   : > { %v5946_v60 = vpop.f32.mrf.mxu0  ;;  %v4187_v35 = vpop.f32.mrf.mxu1  ;;  %v3526_v13 = vadd.f32 %v8832_v24, %v3163_v27 }
 0x214   : > { %v4755_v25 = vadd.f32 %v4754_v39, %v8553_v42  ;;  %v4252_v57 = vadd.f32 %v4187_v35, %v3522_v11  ;;  %v8573_v43 = vadd.f32 %v5943_v38, %v4254_v37  ;;  %v8835_v35 = vld [vmem:[#allocation15_spill] sm:$0xff]  ;;  %v8837_v38 = vld [vmem:[#allocation8_spill] sm:$0xff] }
 0x215   : > { %v4674_v50 = vpop.f32.mrf.mxu0  ;;  %v5912_v55 = vpop.f32.mrf.mxu1  ;;  %v3167_v1 = vadd.f32 %v8836_v17, %v8835_v35 }
 0x216   : > { %v4756_v15 = vadd.f32 %v4755_v25, %v8557_v47  ;;  %v8565_v16 = vadd.f32 %v4661_v61, %v4252_v57  ;;  %v4257_v0 = vadd.f32 %v5912_v55, %v8833_v6 }
 0x217   : > { %v5947_v19 = vpop.f32.mrf.mxu0  ;;  %v4200_v54 = vpop.f32.mrf.mxu1 }
 0x218   : > { %v4757_v53 = vadd.f32 %v4756_v15, %v8565_v16  ;;  %v4255_v41 = vadd.f32 %v4200_v54, %v3525_v5  ;;  %v4731_v23 = vadd.f32 %v5946_v60, %v4257_v0  ;;  %v8838_v15 = vld [vmem:[#allocation14_spill] sm:$0xff] }
 0x219   : > { %v4677_v12 = vpop.f32.mrf.mxu0  ;;  %v5913_v36 = vpop.f32.mrf.mxu1  ;;  %v3530_v26 = vadd.f32 %v8838_v15, %v3167_v1 }
 0x21a   : > { %v4758_v33 = vadd.f32 %v4757_v53, %v8567_v46  ;;  %v4729_v9 = vadd.f32 %v4674_v50, %v4255_v41  ;;  %v4258_v57 = vadd.f32 %v5913_v36, %v8837_v38  ;;  %v8839_v41 = vld [vmem:[#allocation2_spill] sm:$0xff] }
 0x21b   : > { %v5950_v28 = vpop.f32.mrf.mxu0  ;;  %v4203_v22 = vpop.f32.mrf.mxu1 }
 0x21c   : > { %v4759_v21 = vadd.f32 %v4758_v33, %v8573_v43  ;;  %v4256_v61 = vadd.f32 %v4203_v22, %v3526_v13  ;;  %v4732_v37 = vadd.f32 %v5947_v19, %v4258_v57 }
 0x21d   : > { %v5916_v11 = vpop.f32.mrf.mxu1  ;;  %v4690_v39 = vpop.f32.mrf.mxu0 }
 0x21e   : > { %v4760_v25 = vadd.f32 %v4759_v21, %v4729_v9  ;;  %v4730_v8 = vadd.f32 %v4677_v12, %v4256_v61  ;;  %v4261_v2 = vadd.f32 %v5916_v11, %v8839_v41  ;;  %v8840_v12 = vld [vmem:[#allocation19_spill] sm:$0xff] }
 0x21f   : > { %v4216_v5 = vpop.f32.mrf.mxu1  ;;  %v5951_v50 = vpop.f32.mrf.mxu0 }
 0x220   : > { %v4761_v52 = vadd.f32 %v4760_v25, %v4730_v8  ;;  %v4259_v27 = vadd.f32 %v4216_v5, %v3529_v63  ;;  %v4735_v22 = vadd.f32 %v5950_v28, %v4261_v2 }
 0x221   : > { %v5917_v55 = vpop.f32.mrf.mxu1  ;;  %v4693_v13 = vpop.f32.mrf.mxu0 }
 0x222   : > { %v4762_v54 = vadd.f32 %v4761_v52, %v4731_v23  ;;  %v4733_v7 = vadd.f32 %v4690_v39, %v4259_v27  ;;  %v4262_v33 = vadd.f32 %v5917_v55, %v8840_v12 }
 0x223   : > { %v4219_v53 = vpop.f32.mrf.mxu1 }
 0x224   : > { %v4763_v30 = vadd.f32 %v4762_v54, %v4732_v37  ;;  %v4260_v24 = vadd.f32 %v4219_v53, %v3530_v26  ;;  %v4736_v0 = vadd.f32 %v5951_v50, %v4262_v33 }
 0x226   : > { %v4764_v36 = vadd.f32 %v4763_v30, %v4733_v7  ;;  %v4734_v60 = vadd.f32 %v4693_v13, %v4260_v24 }
 0x228   : > { %v4765_v6 = vadd.f32 %v4764_v36, %v4734_v60 }
 0x22a   : > { %v4766_v21 = vadd.f32 %v4765_v6, %v4735_v22 }
 0x22c   : > { %v4767_v61 = vadd.f32 %v4766_v21, %v4736_v0 }
 0x22e   : > { %v4768_v45 = vrot.slane %v4767_v61, 4 }
 0x230   : > { %v4769_v19 = vadd.f32 %v4768_v45, %v4767_v61 }
 0x232   : > { %v4770_v63 = vrot.slane %v4769_v19, 2 }
 0x234   : > { %v4771_v35 = vadd.f32 %v4770_v63, %v4769_v19 }
 0x236   : > { %v4772_v11 = vrot.slane %v4771_v35, 1 }
 0x238   : > { %v4773_v39 = vadd.f32 %v4772_v11, %v4771_v35 }
 0x23a   : > { %v4774_v17 = vmul.f32 0.00390625, %v4773_v39  ;;  %4876 = vst [vmem:[%s8589_s8] sm:$0x1] %v4773_v39 }
 0x23c   : > { %v4783_v28 = vsub.f32 %v8497_v51, %v4774_v17  ;;  %v4784_v1 = vsub.f32 %v8505_v18, %v4774_v17  ;;  %v4785_v25 = vsub.f32 %v8507_v20, %v4774_v17  ;;  %v4786_v38 = vsub.f32 %v8513_v40, %v4774_v17 }
 0x23d   : > { %v4787_v57 = vsub.f32 %v8517_v59, %v4774_v17  ;;  %v4788_v5 = vsub.f32 %v8525_v49, %v4774_v17  ;;  %v4789_v52 = vsub.f32 %v8527_v44, %v4774_v17  ;;  %v4790_v27 = vsub.f32 %v8533_v34, %v4774_v17 }
 0x23e   : > { %v4791_v55 = vsub.f32 %v8537_v32, %v4774_v17  ;;  %v4792_v50 = vsub.f32 %v8545_v10, %v4774_v17  ;;  %v4793_v51 = vsub.f32 %v8547_v58, %v4774_v17  ;;  %v4794_v18 = vsub.f32 %v8553_v42, %v4774_v17 }
 0x23f   : > { %v4795_v20 = vsub.f32 %v8557_v47, %v4774_v17  ;;  %v4796_v40 = vsub.f32 %v8565_v16, %v4774_v17  ;;  %v4797_v59 = vsub.f32 %v8567_v46, %v4774_v17  ;;  %v4798_v49 = vsub.f32 %v8573_v43, %v4774_v17 }
 0x240   : > { %v4799_v15 = vsub.f32 %v4729_v9, %v4774_v17  ;;  %v8608_v44 = vsub.f32 %v4730_v8, %v4774_v17  ;;  %v8610_v34 = vsub.f32 %v4731_v23, %v4774_v17  ;;  %v8612_v32 = vsub.f32 %v4732_v37, %v4774_v17 }
 0x241   : > { %v8614_v10 = vsub.f32 %v4733_v7, %v4774_v17  ;;  %v8616_v58 = vsub.f32 %v4734_v60, %v4774_v17  ;;  %v8618_v42 = vsub.f32 %v4735_v22, %v4774_v17  ;;  %v8620_v47 = vsub.f32 %v4736_v0, %v4774_v17 }
 0x242   : > { %v4775_v16 = vsub.f32 %v8461_v3, %v4774_v17  ;;  %v4776_v46 = vsub.f32 %v8464_v29, %v4774_v17  ;;  %v4777_v43 = vsub.f32 %v8466_v14, %v4774_v17  ;;  %v4778_v23 = vsub.f32 %v8473_v31, %v4774_v17 }
 0x243   : > { %v4779_v26 = vsub.f32 %v8477_v56, %v4774_v17  ;;  %v4780_v53 = vsub.f32 %v8485_v62, %v4774_v17  ;;  %v4781_v7 = vsub.f32 %v8487_v48, %v4774_v17  ;;  %v4782_v29 = vsub.f32 %v8493_v4, %v4774_v17 }
 0x244   : > { %v4807_v9 = vmul.f32 %v4775_v16, %v4775_v16  ;;  %v4808_v8 = vmul.f32 %v4776_v46, %v4776_v46  ;;  %v4809_v37 = vmul.f32 %v4777_v43, %v4777_v43  ;;  %v4810_v41 = vmul.f32 %v4778_v23, %v4778_v23 }
 0x245   : > { %v4811_v30 = vmul.f32 %v4779_v26, %v4779_v26  ;;  %v4812_v24 = vmul.f32 %v4780_v53, %v4780_v53  ;;  %v4813_v13 = vmul.f32 %v4781_v7, %v4781_v7  ;;  %v4814_v12 = vmul.f32 %v4782_v29, %v4782_v29 }
 0x246   : > { %v4839_v54 = vadd.f32 %v4808_v8, %v4807_v9  ;;  %v4815_v33 = vmul.f32 %v4783_v28, %v4783_v28  ;;  %v4816_v60 = vmul.f32 %v4784_v1, %v4784_v1  ;;  %v4817_v6 = vmul.f32 %v4785_v25, %v4785_v25 }
 0x247   : > { %v4818_v0 = vmul.f32 %v4786_v38, %v4786_v38  ;;  %v4819_v61 = vmul.f32 %v4787_v57, %v4787_v57  ;;  %v4820_v45 = vmul.f32 %v4788_v5, %v4788_v5  ;;  %v4821_v63 = vmul.f32 %v4789_v52, %v4789_v52 }
 0x248   : > { %v4840_v2 = vadd.f32 %v4839_v54, %v4809_v37  ;;  %v4822_v35 = vmul.f32 %v4790_v27, %v4790_v27  ;;  %v4823_v39 = vmul.f32 %v4791_v55, %v4791_v55  ;;  %v4824_v16 = vmul.f32 %v4792_v50, %v4792_v50 }
 0x249   : > { %v4825_v28 = vmul.f32 %v4793_v51, %v4793_v51  ;;  %v4826_v1 = vmul.f32 %v4794_v18, %v4794_v18  ;;  %v4827_v25 = vmul.f32 %v4795_v20, %v4795_v20  ;;  %v4828_v38 = vmul.f32 %v4796_v40, %v4796_v40 }
 0x24a   : > { %v4841_v3 = vadd.f32 %v4840_v2, %v4810_v41  ;;  %v4829_v57 = vmul.f32 %v4797_v59, %v4797_v59  ;;  %v4830_v5 = vmul.f32 %v4798_v49, %v4798_v49  ;;  %v4831_v52 = vmul.f32 %v4799_v15, %v4799_v15 }
 0x24b   : > { %v4832_v27 = vmul.f32 %v8608_v44, %v8608_v44  ;;  %v4833_v50 = vmul.f32 %v8610_v34, %v8610_v34  ;;  %v4834_v18 = vmul.f32 %v8612_v32, %v8612_v32  ;;  %v4835_v40 = vmul.f32 %v8614_v10, %v8614_v10 }
 0x24c   : > { %v4842_v14 = vadd.f32 %v4841_v3, %v4811_v30  ;;  %v4836_v49 = vmul.f32 %v8616_v58, %v8616_v58  ;;  %v4837_v44 = vmul.f32 %v8618_v42, %v8618_v42  ;;  %v4838_v34 = vmul.f32 %v8620_v47, %v8620_v47 }
 0x24e   : > { %v4843_v36 = vadd.f32 %v4842_v14, %v4812_v24 }
 0x250   : > { %v4844_v31 = vadd.f32 %v4843_v36, %v4813_v13 }
 0x252   : > { %v4845_v56 = vadd.f32 %v4844_v31, %v4814_v12 }
 0x254   : > { %v4846_v22 = vadd.f32 %v4845_v56, %v4815_v33 }
 0x256   : > { %v4847_v62 = vadd.f32 %v4846_v22, %v4816_v60 }
 0x258   : > { %v4848_v21 = vadd.f32 %v4847_v62, %v4817_v6 }
 0x25a   : > { %v4849_v48 = vadd.f32 %v4848_v21, %v4818_v0 }
 0x25c   : > { %v4850_v19 = vadd.f32 %v4849_v48, %v4819_v61 }
 0x25e   : > { %v4851_v4 = vadd.f32 %v4850_v19, %v4820_v45 }
 0x260   : > { %v4852_v11 = vadd.f32 %v4851_v4, %v4821_v63 }
 0x262   : > { %v4853_v17 = vadd.f32 %v4852_v11, %v4822_v35 }
 0x264   : > { %v4854_v46 = vadd.f32 %v4853_v17, %v4823_v39 }
 0x266   : > { %v4855_v43 = vadd.f32 %v4854_v46, %v4824_v16 }
 0x268   : > { %v4856_v9 = vadd.f32 %v4855_v43, %v4825_v28 }
 0x26a   : > { %v4857_v8 = vadd.f32 %v4856_v9, %v4826_v1 }
 0x26c   : > { %v4858_v23 = vadd.f32 %v4857_v8, %v4827_v25 }
 0x26e   : > { %v4859_v26 = vadd.f32 %v4858_v23, %v4828_v38 }
 0x270   : > { %v4860_v37 = vadd.f32 %v4859_v26, %v4829_v57 }
 0x272   : > { %v4861_v54 = vadd.f32 %v4860_v37, %v4830_v5 }
 0x274   : > { %v4862_v55 = vadd.f32 %v4861_v54, %v4831_v52 }
 0x276   : > { %v4863_v51 = vadd.f32 %v4862_v55, %v4832_v27 }
 0x278   : > { %v4864_v20 = vadd.f32 %v4863_v51, %v4833_v50 }
 0x27a   : > { %v4865_v59 = vadd.f32 %v4864_v20, %v4834_v18 }
 0x27c   : > { %v4866_v15 = vadd.f32 %v4865_v59, %v4835_v40 }
 0x27e   : > { %v4867_v53 = vadd.f32 %v4866_v15, %v4836_v49 }
 0x280   : > { %v4868_v41 = vadd.f32 %v4867_v53, %v4837_v44 }
 0x282   : > { %v4869_v2 = vadd.f32 %v4868_v41, %v4838_v34 }
 0x284   : > { %v4870_v32 = vrot.slane %v4869_v2, 4 }
 0x286   : > { %v4871_v7 = vadd.f32 %v4870_v32, %v4869_v2 }
 0x288   : > { %v4872_v30 = vrot.slane %v4871_v7, 2 }
 0x28a   : > { %v4873_v3 = vadd.f32 %v4872_v30, %v4871_v7 }
 0x28c   : > { %v4874_v29 = vrot.slane %v4873_v3, 1 }
 0x28e   : > { %v4875_v10 = vadd.f32 %v4874_v29, %v4873_v3 }
 0x290   : > { %4877 = vst [vmem:[%s8589_s8 + $0x1] sm:$0x1] %v4875_v10 }
 0x291 PF: > { %s12_s9 = sadd.s32 1, %s6031_s9  }
 0x292   : > { %p9_p4 = scmp.ge.s32.totalorder %s12_s9, 4  }
 0x294   :  { %11 = sbr.rel (!%p9_p4) target bundleno = 1 (0x1), region = 68 }

// kernel: conv_bn_relu.3
= control target key start
LH: loop header
LB: loop body
LE: loop exit
PB: predicated region body
PF: predicated region fallthrough
CT: control target
= control target key end

     0   :  { %s6122_s15 = smov 0   ;;  %s8776_s0 = inlined_call_operand.vmem [shape: bf16[2,18,18,16], index: 0, kind: input, shape index: {}]   ;;  %s8777_s1 = inlined_call_operand.vmem [shape: bf16[9,16,128], index: 1, kind: input, shape index: {}]   ;;  %s8778_s2 = inlined_call_operand.vmem [shape: f32[1,128], index: 2, kind: input, shape index: {}]   ;;  %s8779_s3 = inlined_call_operand.vmem [shape: f32[1,128], index: 3, kind: input, shape index: {}]   ;;  %s8780_s4 = inlined_call_operand.vmem [shape: f32[2,16,16,8], index: 4, kind: output, shape index: {}]  }
   0x1 LB: > { %s4991_s16 = sadd.s32 4294967295, %s6095_s15   ;;  %p4995_p0 = scmp.ge.s32.totalorder %s6095_s15, 1  ;;  %s6095_s15 = sphi %s6122_s15, %s14_s15  }
   0x2   : > { %p162_p1 = scmp.lt.s32.totalorder %s6095_s15, 3 }
   0x4   : > { %p163_p2 = pnand %p4995_p0, %p162_p1 }
   0x6   : > { %166 = sbr.rel (%p163_p2) target bundleno = 559 (0x22f), region = 36 }
   0xb   : > { %v6027_v0 = vld [vmem:[%s8777_s1 + $0x8] sm:$0xff]   ;;  %p188_p3 = scmp.lt.s32.totalorder %s4991_s16, 1  ;;  %v6136_v1 = vld [vmem:[%s8777_s1] sm:$0xff]   ;;  %v6143_v2 = vld [vmem:[%s8777_s1 + $0x10] sm:$0xff]   ;;  %vm249_vm0 = vsmask.f32 3328 }
   0xc   : > { %6016 = vmatprep.subr.bf16.mxu1 %v6027_v0  ;;  %5710 = vmatprep.subr.bf16.mxu0 %v6027_v0  ;;  %vm250_vm1 = vsmask.f32 7440  ;;  %vm693_vm2 = vcmask 130048   ;;  %vm1246_vm4 = vcmask 1042432   ;;  %vm1247_vm5 = vcmask 1046532  }
   0xd   : > { %s9024_s16 = smov (!%p188_p3, %s4991_s16), 1  ;;  %6017 = vmatpush3.bf16.msra.mxu1 %v6027_v0  ;;  %5711 = vmatpush3.bf16.msra.mxu0 %v6027_v0  ;;  %vm6189_vm3 = vmor %vm249_vm0, %vm250_vm1  ;;  %vm4903_vm7 = vcmask 64512  }
   0xe   : > { %s6018_s23 = smul.u32 216, %s9024_s16  ;;  %5744 = vmatprep.subr.bf16.mxu1 %v6136_v1  ;;  %5778 = vmatprep.subr.bf16.mxu0 %v6143_v2  ;;  %vm6465_vm6 = vmor %vm1246_vm4, %vm1247_vm5  ;;  %s5556_s19 = sshll.u32 %s9024_s16, 8 }
   0xf   : > { %s8572_s21 = scalar_lea.vmem %s8780_s4, %s5556_s19 }
  0x10   : > { %s6151_s26 = scalar_lea.vmem %s8776_s0, %s6018_s23 }
  0x11   : > { %v6154_v3 = vld [vmem:[%s6151_s26] sm:$0xf]  ;;  %v6157_v4 = vld [vmem:[%s6151_s26 + $0x4] sm:$0xf]  ;;  %v6160_v5 = vld [vmem:[%s6151_s26 + $0x8] sm:$0x1] }
  0x12   : > { %v253_v6 = vshrl.u32 %v6154_v3, 16  ;;  %v256_v7 = vshll.u32 %v6154_v3, 16  ;;  %v262_v8 = vshll.u32 %v6157_v4, 16  ;;  %v266_v9 = vshrl.u32 %v6157_v4, 16  ;;  %v6167_v10 = vld [vmem:[%s6151_s26 + $0x60] sm:$0xf] }
  0x13   : > { %v272_v11 = vshll.u32 %v6160_v5, 16  ;;  %v6171_v12 = vld [vmem:[%s6151_s26 + $0x64] sm:$0xf]  ;;  %v6174_v13 = vld [vmem:[%s6151_s26 + $0x68] sm:$0x1]  ;;  %v445_v19 = vshrl.u32 %v6167_v10, 16 }
  0x14   : > { %v255_v14 = vrot.slane %v253_v6, 4  ;;  %v258_v15 = vrot.slane %v256_v7, 5  ;;  %v264_v16 = vrot.slane %v262_v8, 5  ;;  %v268_v17 = vrot.slane %v266_v9, 4  ;;  %v6182_v26 = vld [vmem:[%s6151_s26 + $0xc] sm:$0xf] }
  0x15   : > { %v274_v18 = vrot.slane %v272_v11, 5  ;;  %v448_v20 = vshll.u32 %v6167_v10, 16  ;;  %v454_v21 = vshll.u32 %v6171_v12, 16  ;;  %v458_v24 = vshrl.u32 %v6171_v12, 16  ;;  %v6185_v27 = vld [vmem:[%s6151_s26 + $0x10] sm:$0xf] }
  0x16   : > { %v259_v22 = vor.u32 %v258_v15, %v255_v14  ;;  %v269_v23 = vor.u32 %v268_v17, %v264_v16  ;;  %v464_v25 = vshll.u32 %v6174_v13, 16  ;;  %v447_v30 = vrot.slane %v445_v19, 4  ;;  %v6195_v38 = vld [vmem:[%s6151_s26 + $0x14] sm:$0x1]  ;;  %v217_v50 = vld [vmem:[%s6151_s26 + $0x6c] sm:$0xf] }
  0x17   : > { %v450_v31 = vrot.slane %v448_v20, 5  ;;  %v456_v32 = vrot.slane %v454_v21, 5  ;;  %v460_v35 = vrot.slane %v458_v24, 4  ;;  %v277_v39 = vshrl.u32 %v6182_v26, 16  ;;  %v6208_v55 = vld [vmem:[%s6151_s26 + $0x70] sm:$0xf] }
  0x18   : > { %v260_v33 = vrot.slane %v259_v22, 4  ;;  %v270_v34 = vrot.slane %v269_v23, 4  ;;  %v466_v36 = vrot.slane %v464_v25, 5  ;;  %v280_v40 = vshll.u32 %v6182_v26, 16  ;;  %v6216_v60 = vld [vmem:[%s6151_s26 + $0x74] sm:$0x1] }
  0x19   : > { %v451_v37 = vor.u32 %v450_v31, %v447_v30  ;;  %v286_v41 = vshll.u32 %v6185_v27, 16  ;;  %v461_v44 = vor.u32 %v460_v35, %v456_v32  ;;  %v290_v45 = vshrl.u32 %v6185_v27, 16  ;;  %v6221_v6 = vld [vmem:[%s6151_s26 + $0x18] sm:$0xf]  ;;  %v6233_v22 = vld [vmem:[%s6151_s26 + $0x20] sm:$0x1] }
  0x1a   : > { %v265_v42 = vsel %vm6189_vm3, %v260_v33, %v264_v16  ;;  %v275_v43 = vsel %vm6189_vm3, %v270_v34, %v274_v18  ;;  %v279_v48 = vrot.slane %v277_v39, 4  ;;  %v282_v49 = vrot.slane %v280_v40, 5  ;;  %v6227_v18 = vld [vmem:[%s6151_s26 + $0x1c] sm:$0xf] }
  0x1b   : > { %v5001_v46 = vcombine.low %v265_v42, %v275_v43  ;;  %v452_v47 = vrot.slane %v451_v37, 4  ;;  %v462_v51 = vrot.slane %v461_v44, 4  ;;  %v288_v52 = vrot.slane %v286_v41, 5  ;;  %v6244_v37 = vld [vmem:[%s8777_s1 + $0x20] sm:$0xff]   ;;  %v6249_v43 = vld [vmem:[%s6151_s26 + $0x7c] sm:$0xf] }
  0x1c   : > { %v292_v53 = vrot.slane %v290_v45, 4  ;;  %v296_v54 = vshll.u32 %v6195_v38, 16  ;;  %v283_v57 = vor.u32 %v282_v49, %v279_v48  ;;  %v469_v0 = vshrl.u32 %v217_v50, 16  ;;  %8810 = vst [vmem:[#allocation2_spill] sm:$0xff] %v6249_v43 }
  0x1d   : > { %5712 = vmatprep.mubr.msk.bf16.mxu0 %vm693_vm2, %v5001_v46  ;;  %v457_v56 = vsel %vm6189_vm3, %v452_v47, %v456_v32  ;;  %v467_v61 = vsel %vm6189_vm3, %v462_v51, %v466_v36  ;;  %v472_v9 = vshll.u32 %v217_v50, 16  ;;  %v478_v11 = vshll.u32 %v6208_v55, 16  ;;  %v219_v32 = vld [vmem:[%s6151_s26 + $0x78] sm:$0xf] }
  0x1e   : > { %v293_v62 = vor.u32 %v292_v53, %v288_v52  ;;  %v298_v63 = vrot.slane %v296_v54, 5  ;;  %v5009_v7 = vcombine.low %v457_v56, %v467_v61  ;;  %v284_v8 = vrot.slane %v283_v57, 4  ;;  %v6260_v61 = vld [vmem:[%s6151_s26 + $0x24] sm:$0xf] }
  0x1f   : > { %v471_v15 = vrot.slane %v469_v0, 4  ;;  %v482_v16 = vshrl.u32 %v6208_v55, 16  ;;  %v488_v17 = vshll.u32 %v6216_v60, 16  ;;  %v474_v20 = vrot.slane %v472_v9, 5 }
  0x20   : > { %v294_v14 = vrot.slane %v293_v62, 4  ;;  %5728 = vmatprep.mubr.msk.bf16.mxu1 %vm693_vm2, %v5009_v7  ;;  %v289_v19 = vsel %vm6189_vm3, %v284_v8, %v288_v52  ;;  %v480_v21 = vrot.slane %v478_v11, 5  ;;  %v301_v23 = vshrl.u32 %v6221_v6, 16  ;;  %v6254_v52 = vld [vmem:[%s6151_s26 + $0x80] sm:$0x1] }
  0x21   : > { %v484_v25 = vrot.slane %v482_v16, 4  ;;  %v490_v30 = vrot.slane %v488_v17, 5  ;;  %v304_v31 = vshll.u32 %v6221_v6, 16  ;;  %v475_v34 = vor.u32 %v474_v20, %v471_v15  ;;  %8811 = vst [vmem:[#allocation3_spill] sm:$0xff] %v6254_v52  ;;  %v6267_v7 = vld [vmem:[%s6151_s26 + $0x28] sm:$0xf] }
  0x22   : > { %v299_v24 = vsel %vm6189_vm3, %v294_v14, %v298_v63  ;;  %v303_v35 = vrot.slane %v301_v23, 4  ;;  %v310_v36 = vshll.u32 %v6227_v18, 16  ;;  %v314_v41 = vshrl.u32 %v6227_v18, 16  ;;  %v6273_v15 = vld [vmem:[%s8777_s1 + $0x18] sm:$0xff]   ;;  %v6278_v20 = vld [vmem:[%s6151_s26 + $0x2c] sm:$0x1] }
  0x23   : > { %v5002_v33 = vcombine.low %v289_v19, %v299_v24  ;;  %v485_v39 = vor.u32 %v484_v25, %v480_v21  ;;  %v306_v40 = vrot.slane %v304_v31, 5  ;;  %v320_v42 = vshll.u32 %v6233_v22, 16  ;;  %v6285_v31 = vld [vmem:[%s6151_s26 + $0x84] sm:$0xf] }
  0x24   : > { %v476_v44 = vrot.slane %v475_v34, 4  ;;  %v312_v45 = vrot.slane %v310_v36, 5  ;;  %v493_v46 = vshrl.u32 %v219_v32, 16  ;;  %v496_v47 = vshll.u32 %v219_v32, 16  ;;  %v6292_v36 = vld [vmem:[%s6151_s26 + $0x88] sm:$0xf] }
  0x25   : > { %5713 = vmatmul.mubr.msk.bf16.vlgmr.msra.gmra.mxu0 %vm693_vm2, %v5002_v33  ;;  %v486_v48 = vrot.slane %v485_v39, 4  ;;  %v307_v49 = vor.u32 %v306_v40, %v303_v35  ;;  %v316_v50 = vrot.slane %v314_v41, 4  ;;  %v322_v51 = vrot.slane %v320_v42, 5 }
  0x26   : > { %5779 = vmatpush3.bf16.msra.mxu0 %v6143_v2  ;;  %v481_v53 = vsel %vm6189_vm3, %v476_v44, %v480_v21  ;;  %v495_v54 = vrot.slane %v493_v46, 4  ;;  %v498_v56 = vrot.slane %v496_v47, 5  ;;  %v502_v57 = vshll.u32 %v6249_v43, 16  ;;  %v6299_v46 = vld [vmem:[%s6151_s26 + $0x8c] sm:$0x1] }
  0x27   : > { %5846 = vmatprep.subr.bf16.mxu0 %v6244_v37  ;;  %v491_v2 = vsel %vm6189_vm3, %v486_v48, %v490_v30  ;;  %v308_v62 = vrot.slane %v307_v49, 4  ;;  %v317_v63 = vor.u32 %v316_v50, %v312_v45  ;;  %v506_v0 = vshrl.u32 %v6249_v43, 16 }
  0x28   : > { %v5010_v8 = vcombine.low %v481_v53, %v491_v2  ;;  %v499_v9 = vor.u32 %v498_v56, %v495_v54  ;;  %v504_v11 = vrot.slane %v502_v57, 5  ;;  %v512_v14 = vshll.u32 %v6254_v52, 16  ;;  %v6307_v53 = vld [vmem:[%s6151_s26 + $0x30] sm:$0xf] }
  0x29   : > { %v313_v16 = vsel %vm6189_vm3, %v308_v62, %v312_v45  ;;  %v318_v17 = vrot.slane %v317_v63, 4  ;;  %v508_v19 = vrot.slane %v506_v0, 4  ;;  %v325_v21 = vshrl.u32 %v6260_v61, 16  ;;  %v6312_v62 = vld [vmem:[%s6151_s26 + $0x34] sm:$0xf] }
  0x2a   : > { %5729 = vmatmul.mubr.msk.bf16.vlgmr.msra.gmra.mxu1 %vm693_vm2, %v5010_v8  ;;  %v500_v23 = vrot.slane %v499_v9, 4  ;;  %v514_v24 = vrot.slane %v512_v14, 5  ;;  %v328_v25 = vshll.u32 %v6260_v61, 16  ;;  %v334_v30 = vshll.u32 %v6267_v7, 16 }
  0x2b   : > { %5745 = vmatpush3.bf16.msra.mxu1 %v6136_v1  ;;  %v323_v32 = vsel %vm6189_vm3, %v318_v17, %v322_v51  ;;  %v509_v33 = vor.u32 %v508_v19, %v504_v11  ;;  %v327_v34 = vrot.slane %v325_v21, 4  ;;  %v338_v35 = vshrl.u32 %v6267_v7, 16 }
  0x2c   : > { %v5003_v39 = vcombine.low %v313_v16, %v323_v32  ;;  %v505_v40 = vsel %vm6189_vm3, %v500_v23, %v504_v11  ;;  %v330_v41 = vrot.slane %v328_v25, 5  ;;  %v336_v42 = vrot.slane %v334_v30, 5  ;;  %5812 = vmatprep.subr.bf16.mxu1 %v6273_v15  ;;  %v6320_v23 = vld [vmem:[%s6151_s26 + $0x38] sm:$0x1]  ;;  %v6325_v30 = vld [vmem:[%s6151_s26 + $0x90] sm:$0xf] }
  0x2d   : > { %v510_v1 = vrot.slane %v509_v33, 4  ;;  %v340_v44 = vrot.slane %v338_v35, 4  ;;  %v344_v45 = vshll.u32 %v6278_v20, 16  ;;  %v517_v47 = vshrl.u32 %v6285_v31, 16 }
  0x2e   : > { %5716 = vmatprep.mubr.msk.bf16.mxu0 %vm693_vm2, %v5003_v39  ;;  %v331_v48 = vor.u32 %v330_v41, %v327_v34  ;;  %v520_v49 = vshll.u32 %v6285_v31, 16  ;;  %v526_v50 = vshll.u32 %v6292_v36, 16  ;;  %v530_v51 = vshrl.u32 %v6292_v36, 16  ;;  %v6330_v39 = vld [vmem:[%s6151_s26 + $0x94] sm:$0xf] }
  0x2f   : > { %v515_v54 = vsel %vm6189_vm3, %v510_v1, %v514_v24  ;;  %v341_v56 = vor.u32 %v340_v44, %v336_v42  ;;  %v346_v57 = vrot.slane %v344_v45, 5  ;;  %v519_v2 = vrot.slane %v517_v47, 4 }
  0x30   : > { %v5011_v63 = vcombine.low %v505_v40, %v515_v54  ;;  %v332_v0 = vrot.slane %v331_v48, 4  ;;  %v522_v8 = vrot.slane %v520_v49, 5  ;;  %v528_v9 = vrot.slane %v526_v50, 5 }
  0x31   : > { %v342_v11 = vrot.slane %v341_v56, 4  ;;  %v532_v14 = vrot.slane %v530_v51, 4  ;;  %v536_v16 = vshll.u32 %v6299_v46, 16  ;;  %v349_v17 = vshrl.u32 %v6307_v53, 16  ;;  %v6339_v51 = vld [vmem:[%s6151_s26 + $0x98] sm:$0x1] }
  0x32   : > { %5732 = vmatprep.mubr.msk.bf16.mxu1 %vm693_vm2, %v5011_v63  ;;  %v337_v19 = vsel %vm6189_vm3, %v332_v0, %v336_v42  ;;  %v523_v21 = vor.u32 %v522_v8, %v519_v2  ;;  %v352_v24 = vshll.u32 %v6307_v53, 16  ;;  %v358_v25 = vshll.u32 %v6312_v62, 16  ;;  %8812 = vst [vmem:[#allocation4_spill] sm:$0xff] %v6339_v51 }
  0x33   : > { %v347_v32 = vsel %vm6189_vm3, %v342_v11, %v346_v57  ;;  %v533_v33 = vor.u32 %v532_v14, %v528_v9  ;;  %v538_v34 = vrot.slane %v536_v16, 5  ;;  %v351_v35 = vrot.slane %v349_v17, 4  ;;  %v6344_v57 = vld [vmem:[%s6151_s26 + $0x3c] sm:$0xf]  ;;  %v6349_v11 = vld [vmem:[%s6151_s26 + $0x40] sm:$0xf] }
  0x34   : > { %v5004_v40 = vcombine.low %v337_v19, %v347_v32  ;;  %v524_v41 = vrot.slane %v523_v21, 4  ;;  %v354_v42 = vrot.slane %v352_v24, 5  ;;  %v360_v1 = vrot.slane %v358_v25, 5 }
  0x35   : > { %v534_v44 = vrot.slane %v533_v33, 4  ;;  %v362_v45 = vshrl.u32 %v6312_v62, 16  ;;  %v368_v47 = vshll.u32 %v6320_v23, 16  ;;  %v541_v48 = vshrl.u32 %v6325_v30, 16 }
  0x36   : > { %5717 = vmatmul.mubr.msk.bf16.gmra.mxu0 %vm693_vm2, %v5004_v40  ;;  %v529_v49 = vsel %vm6189_vm3, %v524_v41, %v528_v9  ;;  %v355_v50 = vor.u32 %v354_v42, %v351_v35  ;;  %v544_v54 = vshll.u32 %v6325_v30, 16  ;;  %v550_v56 = vshll.u32 %v6330_v39, 16  ;;  %v6363_v41 = vld [vmem:[%s6151_s26 + $0x9c] sm:$0xf] }
  0x37   : > { %v539_v2 = vsel %vm6189_vm3, %v534_v44, %v538_v34  ;;  %v364_v63 = vrot.slane %v362_v45, 4  ;;  %v370_v0 = vrot.slane %v368_v47, 5  ;;  %v543_v8 = vrot.slane %v541_v48, 4  ;;  %v6358_v34 = vld [vmem:[%s6151_s26 + $0x44] sm:$0x1]  ;;  %8813 = vst [vmem:[#allocation5_spill] sm:$0xff] %v6363_v41 }
  0x38   : > { %v5012_v9 = vcombine.low %v529_v49, %v539_v2  ;;  %v356_v14 = vrot.slane %v355_v50, 4  ;;  %v546_v16 = vrot.slane %v544_v54, 5  ;;  %v552_v17 = vrot.slane %v550_v56, 5  ;;  %v6367_v54 = vld [vmem:[%s6151_s26 + $0xa0] sm:$0xf] }
  0x39   : > { %v365_v19 = vor.u32 %v364_v63, %v360_v1  ;;  %v554_v21 = vshrl.u32 %v6330_v39, 16  ;;  %v560_v24 = vshll.u32 %v6339_v51, 16  ;;  %v373_v25 = vshrl.u32 %v6344_v57, 16  ;;  %8814 = vst [vmem:[#allocation6_spill] sm:$0xff] %v6367_v54  ;;  %v1199_v51 = vld [vmem:[%s6151_s26 + $0xc] sm:$0xe] }
  0x3a   : > { %5733 = vmatmul.mubr.msk.bf16.gmra.mxu1 %vm693_vm2, %v5012_v9  ;;  %v361_v32 = vsel %vm6189_vm3, %v356_v14, %v360_v1  ;;  %v547_v33 = vor.u32 %v546_v16, %v543_v8  ;;  %v376_v35 = vshll.u32 %v6344_v57, 16  ;;  %v382_v40 = vshll.u32 %v6349_v11, 16  ;;  %v6373_v8 = vld [vmem:[%s6151_s26 + $0xa4] sm:$0x1]  ;;  %v6377_v14 = vld [vmem:[%s6151_s26 + $0x48] sm:$0xf] }
  0x3b   : > { %v366_v42 = vrot.slane %v365_v19, 4  ;;  %v556_v44 = vrot.slane %v554_v21, 4  ;;  %v562_v45 = vrot.slane %v560_v24, 5  ;;  %v375_v47 = vrot.slane %v373_v25, 4  ;;  %8815 = vst [vmem:[#allocation7_spill] sm:$0xff] %v6373_v8 }
  0x3c   : > { %v548_v48 = vrot.slane %v547_v33, 4  ;;  %v378_v49 = vrot.slane %v376_v35, 5  ;;  %v384_v50 = vrot.slane %v382_v40, 5  ;;  %v386_v1 = vshrl.u32 %v6349_v11, 16 }
  0x3d   : > { %v371_v56 = vsel %vm6189_vm3, %v366_v42, %v370_v0  ;;  %v557_v2 = vor.u32 %v556_v44, %v552_v17  ;;  %v392_v63 = vshll.u32 %v6358_v34, 16  ;;  %v565_v9 = vshrl.u32 %v6363_v41, 16 }
  0x3e   : > { %v5005_v16 = vcombine.low %v361_v32, %v371_v56  ;;  %v553_v19 = vsel %vm6189_vm3, %v548_v48, %v552_v17  ;;  %v379_v21 = vor.u32 %v378_v49, %v375_v47  ;;  %v388_v24 = vrot.slane %v386_v1, 4  ;;  %v6386_v56 = vld [vmem:[%s6151_s26 + $0x4c] sm:$0xf]  ;;  %v6392_v49 = vld [vmem:[%s6151_s26 + $0x50] sm:$0x1] }
  0x3f   : > { %v558_v25 = vrot.slane %v557_v2, 4  ;;  %v394_v33 = vrot.slane %v392_v63, 5  ;;  %v567_v0 = vrot.slane %v565_v9, 4  ;;  %v568_v35 = vshll.u32 %v6363_v41, 16 }
  0x40   : > { %5720 = vmatprep.mubr.msk.bf16.mxu0 %vm693_vm2, %v5005_v16  ;;  %v380_v40 = vrot.slane %v379_v21, 4  ;;  %v389_v42 = vor.u32 %v388_v24, %v384_v50  ;;  %v574_v44 = vshll.u32 %v6367_v54, 16  ;;  %v578_v32 = vshrl.u32 %v6367_v54, 16 }
  0x41   : > { %v563_v17 = vsel %vm6189_vm3, %v558_v25, %v562_v45  ;;  %v570_v47 = vrot.slane %v568_v35, 5  ;;  %v584_v48 = vshll.u32 %v6373_v8, 16  ;;  %v397_v1 = vshrl.u32 %v6377_v14, 16  ;;  %v6398_v45 = vld [vmem:[%s6151_s26 + $0xa8] sm:$0xf] }
  0x42   : > { %v5013_v2 = vcombine.low %v553_v19, %v563_v17  ;;  %v385_v63 = vsel %vm6189_vm3, %v380_v40, %v384_v50  ;;  %v390_v9 = vrot.slane %v389_v42, 4  ;;  %v576_v16 = vrot.slane %v574_v44, 5  ;;  %8816 = vst [vmem:[#allocation8_spill] sm:$0xff] %v6398_v45  ;;  %v6407_v40 = vld [vmem:[%s6151_s26 + $0xac] sm:$0xf] }
  0x43   : > { %v571_v21 = vor.u32 %v570_v47, %v567_v0  ;;  %v580_v24 = vrot.slane %v578_v32, 4  ;;  %v586_v59 = vrot.slane %v584_v48, 5  ;;  %v399_v29 = vrot.slane %v397_v1, 4  ;;  %8817 = vst [vmem:[#allocation9_spill] sm:$0xff] %v6407_v40  ;;  %v6411_v17 = vld [vmem:[%s6151_s26 + $0xb0] sm:$0x1] }
  0x44   : > { %5736 = vmatprep.mubr.msk.bf16.mxu1 %vm693_vm2, %v5013_v2  ;;  %v395_v25 = vsel %vm6189_vm3, %v390_v9, %v394_v33  ;;  %v400_v35 = vshll.u32 %v6377_v14, 16  ;;  %v406_v19 = vshll.u32 %v6386_v56, 16  ;;  %v410_v50 = vshrl.u32 %v6386_v56, 16  ;;  %8818 = vst [vmem:[#allocation10_spill] sm:$0xff] %v6411_v17 }
  0x45   : > { %v5006_v42 = vcombine.low %v385_v63, %v395_v25  ;;  %v572_v0 = vrot.slane %v571_v21, 4  ;;  %v581_v44 = vor.u32 %v580_v24, %v576_v16  ;;  %v416_v32 = vshll.u32 %v6392_v49, 16 }
  0x46   : > { %v402_v47 = vrot.slane %v400_v35, 5  ;;  %v408_v48 = vrot.slane %v406_v19, 5  ;;  %v412_v1 = vrot.slane %v410_v50, 4  ;;  %v589_v33 = vshrl.u32 %v6398_v45, 16  ;;  %v6420_v19 = vld [vmem:[%s6151_s26 + $0x54] sm:$0xf] }
  0x47   : > { %5721 = vmatmul.mubr.msk.bf16.gmra.mxu0 %vm693_vm2, %v5006_v42  ;;  %v577_v2 = vsel %vm6189_vm3, %v572_v0, %v576_v16  ;;  %v582_v9 = vrot.slane %v581_v44, 4  ;;  %v418_v63 = vrot.slane %v416_v32, 5  ;;  %v592_v21 = vshll.u32 %v6398_v45, 16  ;;  %v6427_v44 = vld [vmem:[%s6151_s26 + $0x58] sm:$0xf] }
  0x48   : > { %v403_v24 = vor.u32 %v402_v47, %v399_v29  ;;  %v413_v25 = vor.u32 %v412_v1, %v408_v48  ;;  %v591_v58 = vrot.slane %v589_v33, 4  ;;  %v598_v35 = vshll.u32 %v6407_v40, 16  ;;  %v6430_v33 = vld [vmem:[%s6151_s26 + $0x5c] sm:$0x1] }
  0x49   : > { %v587_v50 = vsel %vm6189_vm3, %v582_v9, %v586_v59  ;;  %v594_v42 = vrot.slane %v592_v21, 5  ;;  %v602_v16 = vshrl.u32 %v6407_v40, 16  ;;  %v608_v0 = vshll.u32 %v6411_v17, 16  ;;  %v1198_v17 = vld [vmem:[%s6151_s26] sm:$0xe] }
  0x4a   : > { %v5014_v29 = vcombine.low %v577_v2, %v587_v50  ;;  %v404_v32 = vrot.slane %v403_v24, 4  ;;  %v414_v47 = vrot.slane %v413_v25, 4  ;;  %v600_v1 = vrot.slane %v598_v35, 5  ;;  %v6441_v25 = vld [vmem:[%s6151_s26 + $0xb4] sm:$0xf] }
  0x4b   : > { %v595_v52 = vor.u32 %v594_v42, %v591_v58  ;;  %v604_v45 = vrot.slane %v602_v16, 4  ;;  %v610_v8 = vrot.slane %v608_v0, 5  ;;  %v421_v59 = vshrl.u32 %v6420_v19, 16  ;;  %8819 = vst [vmem:[#allocation11_spill] sm:$0xff] %v6441_v25  ;;  %v6444_v16 = vld [vmem:[%s6151_s26 + $0xb8] sm:$0xf] }
  0x4c   : > { %5737 = vmatmul.mubr.msk.bf16.gmra.mxu1 %vm693_vm2, %v5014_v29  ;;  %v409_v9 = vsel %vm6189_vm3, %v404_v32, %v408_v48  ;;  %v419_v2 = vsel %vm6189_vm3, %v414_v47, %v418_v63  ;;  %v424_v21 = vshll.u32 %v6420_v19, 16  ;;  %v430_v24 = vshll.u32 %v6427_v44, 16  ;;  %v6449_v63 = vld [vmem:[%s6151_s26 + $0xbc] sm:$0x1] }
  0x4d   : > { %v5007_v58 = vcombine.low %v409_v9, %v419_v2  ;;  %v596_v35 = vrot.slane %v595_v52, 4  ;;  %v605_v50 = vor.u32 %v604_v45, %v600_v1  ;;  %v423_v42 = vrot.slane %v421_v59, 4 }
  0x4e   : > { %v426_v0 = vrot.slane %v424_v21, 5  ;;  %v432_v29 = vrot.slane %v430_v24, 5  ;;  %v434_v48 = vshrl.u32 %v6427_v44, 16  ;;  %v440_v32 = vshll.u32 %v6430_v33, 16 }
  0x4f   : > { %5724 = vmatprep.mubr.msk.bf16.mxu0 %vm693_vm2, %v5007_v58  ;;  %v601_v47 = vsel %vm6189_vm3, %v596_v35, %v600_v1  ;;  %v606_v9 = vrot.slane %v605_v50, 4  ;;  %v613_v52 = vshrl.u32 %v6441_v25, 16  ;;  %v616_v45 = vshll.u32 %v6441_v25, 16 }
  0x50   : > { %v427_v59 = vor.u32 %v426_v0, %v423_v42  ;;  %v436_v2 = vrot.slane %v434_v48, 4  ;;  %v442_v21 = vrot.slane %v440_v32, 5  ;;  %v622_v24 = vshll.u32 %v6444_v16, 16 }
  0x51   : > { %v611_v40 = vsel %vm6189_vm3, %v606_v9, %v610_v8  ;;  %v615_v43 = vrot.slane %v613_v52, 4  ;;  %v618_v58 = vrot.slane %v616_v45, 5  ;;  %v626_v41 = vshrl.u32 %v6444_v16, 16 }
  0x52   : > { %v5015_v1 = vcombine.low %v601_v47, %v611_v40  ;;  %v428_v35 = vrot.slane %v427_v59, 4  ;;  %v437_v50 = vor.u32 %v436_v2, %v432_v29  ;;  %v624_v54 = vrot.slane %v622_v24, 5  ;;  %v1200_v59 = vld [vmem:[%s6151_s26 + $0x18] sm:$0xe] }
  0x53   : > { %v619_v25 = vor.u32 %v618_v58, %v615_v43  ;;  %v628_v42 = vrot.slane %v626_v41, 4  ;;  %v632_v0 = vshll.u32 %v6449_v63, 16  ;;  %v8820_v48 = vmov 0 }
  0x54   : > { %v8821_v48 = vsel %vm6465_vm6, 4294967295, %v8820_v48  ;;  %v5067_v8 = vrot.slane %v1198_v17, 9  ;;  %5740 = vmatprep.mubr.msk.bf16.mxu1 %vm693_vm2, %v5015_v1  ;;  %v433_v40 = vsel %vm6189_vm3, %v428_v35, %v432_v29  ;;  %v438_v32 = vrot.slane %v437_v50, 4 }
  0x55   : > { %8822 = vst [vmem:[#allocation12_spill] sm:$0xff] %v8821_v48  ;;  %v1251_v47 = vrot.slane %v6157_v4, 5  ;;  %v5035_v43 = vcombine.low %v6182_v26, %v6185_v27  ;;  %v620_v41 = vrot.slane %v619_v25, 4  ;;  %v629_v9 = vor.u32 %v628_v42, %v624_v54 }
  0x56   : > { %v634_v52 = vrot.slane %v632_v0, 5  ;;  %v5068_v45 = vrot.slane %v1199_v51, 9  ;;  %v443_v17 = vsel %vm6189_vm3, %v438_v32, %v442_v21  ;;  %v8823_v29 = vrot.slane %v6185_v27, 5  ;;  %v1201_v0 = vld [vmem:[%s6151_s26 + $0x24] sm:$0xe] }
  0x57   : > { %v1252_v2 = vsel %vm6465_vm6, %v5067_v8, %v1251_v47  ;;  %v1253_v24 = vrot.slane %v1251_v47, 4  ;;  %v5008_v1 = vcombine.low %v433_v40, %v443_v17  ;;  %v625_v35 = vsel %vm6189_vm3, %v620_v41, %v624_v54  ;;  %v1202_v17 = vld [vmem:[%s6151_s26 + $0x30] sm:$0xe] }
  0x58   : > { %v1260_v58 = vrot.slane %v8823_v29, 4  ;;  %v630_v25 = vrot.slane %v629_v9, 4  ;;  %v8824_v50 = vrot.slane %v6160_v5, 5  ;;  %v5036_v21 = vcombine.low %v6221_v6, %v6227_v18 }
  0x59   : > { %v5069_v42 = vrot.slane %v1200_v59, 9  ;;  %5725 = vmatmul.mubr.msk.bf16.gmra.mxu0 %vm693_vm2, %v5008_v1  ;;  %v5034_v40 = vcombine.low %v6154_v3, %v6157_v4  ;;  %v1265_v5 = vrot.slane %v6227_v18, 5  ;;  %v8825_v47 = vmov %v8823_v29  ;;  %v1203_v29 = vld [vmem:[%s6151_s26 + $0x3c] sm:$0xe] }
  0x5a   : > { %v1255_v51 = vsel %vm6465_vm6, %v1253_v24, %v8824_v50  ;;  %v635_v8 = vsel %vm6189_vm3, %v630_v25, %v634_v52  ;;  %v1259_v41 = vsel %vm6465_vm6, %v5068_v45, %v8825_v47  ;;  %v8826_v9 = vrot.slane %v6195_v38, 5  ;;  %v1205_v47 = vld [vmem:[%s6151_s26 + $0x54] sm:$0xe] }
  0x5b   : > { %v5085_v54 = vcombine.low %v1252_v2, %v1255_v51  ;;  %v5016_v32 = vcombine.low %v625_v35, %v635_v8  ;;  %v1268_v52 = vrot.slane %v6233_v22, 5  ;;  %v1266_v3 = vsel %vm6465_vm6, %v5069_v42, %v1265_v5  ;;  %v1204_v35 = vld [vmem:[%s6151_s26 + $0x48] sm:$0xe] }
  0x5c   : > { %v1262_v59 = vsel %vm6465_vm6, %v1260_v58, %v8826_v9  ;;  %v1267_v4 = vrot.slane %v1265_v5, 4  ;;  %v5070_v2 = vrot.slane %v1201_v0, 9  ;;  %v1272_v24 = vrot.slane %v6267_v7, 5 }
  0x5d   : > { %5780 = vmatprep.mubr.msk.bf16.mxu0 %vm693_vm2, %v5085_v54  ;;  %5741 = vmatmul.mubr.msk.bf16.gmra.mxu1 %vm693_vm2, %v5016_v32  ;;  %v1275_v38 = vrot.slane %v6278_v20, 5  ;;  %v1279_v45 = vrot.slane %v6312_v62, 5  ;;  %v5086_v22 = vcombine.low %v1259_v41, %v1262_v59  ;;  %v5071_v50 = vrot.slane %v1202_v17, 9 }
  0x5e   : > { %5746 = vmatprep.mubr.msk.bf16.mxu1 %vm693_vm2, %v5034_v40  ;;  %v1269_v58 = vsel %vm6465_vm6, %v1267_v4, %v1268_v52  ;;  %v1274_v1 = vrot.slane %v1272_v24, 4  ;;  %v1282_v51 = vrot.slane %v6320_v23, 5  ;;  %v1273_v42 = vsel %vm6465_vm6, %v5070_v2, %v1272_v24  ;;  %v6526_v40 = vld [vmem:[%s8777_s1 + $0x30] sm:$0xff]   ;;  %v6546_v4 = vld [vmem:[%s8777_s1 + $0x28] sm:$0xff]  }
  0x5f   : > { %v5087_v25 = vcombine.low %v1266_v3, %v1269_v58  ;;  %v1281_v20 = vrot.slane %v1279_v45, 4  ;;  %v5072_v0 = vrot.slane %v1203_v29, 9  ;;  %v1286_v8 = vrot.slane %v6349_v11, 5  ;;  %v1206_v3 = vld [vmem:[%s6151_s26 + $0x60] sm:$0xe] }
  0x60   : > { %v1276_v54 = vsel %vm6465_vm6, %v1274_v1, %v1275_v38  ;;  %v1289_v5 = vrot.slane %v6358_v34, 5  ;;  %v5073_v32 = vrot.slane %v1204_v35, 9  ;;  %v1293_v23 = vrot.slane %v6386_v56, 5 }
  0x61   : > { %5781 = vmatmul.mubr.msk.bf16.vlgmr.msra.gmra.mxu0 %vm693_vm2, %v5086_v22  ;;  %v1288_v41 = vrot.slane %v1286_v8, 4  ;;  %v1296_v9 = vrot.slane %v6392_v49, 5  ;;  %v1310_v59 = vrot.slane %v6174_v13, 5  ;;  %v5037_v52 = vcombine.low %v6260_v61, %v6267_v7  ;;  %v1207_v7 = vld [vmem:[%s6151_s26 + $0x6c] sm:$0xe] }
  0x62   : > { %5847 = vmatpush3.bf16.msra.mxu0 %v6244_v37  ;;  %5784 = vmatprep.mubr.msk.bf16.mxu0 %vm693_vm2, %v5087_v25  ;;  %v1280_v34 = vsel %vm6465_vm6, %v5071_v50, %v1279_v45  ;;  %v1295_v17 = vrot.slane %v1293_v23, 4  ;;  %v5088_v49 = vcombine.low %v1273_v42, %v1276_v54  ;;  %v1283_v13 = vsel %vm6465_vm6, %v1281_v20, %v1282_v51  ;;  %v1210_v42 = vld [vmem:[%s6151_s26 + $0x90] sm:$0xe]  ;;  %v6690_v54 = vld [vmem:[%s6151_s26 + $0x14] sm:$0x1] }
  0x63   : > { %v6552_v37 = vsel %vm6465_vm6, %v5072_v0, %v1286_v8  ;;  %v1300_v61 = vrot.slane %v6427_v44, 5  ;;  %5914 = vmatprep.subr.bf16.mxu0 %v6526_v40  ;;  %v6563_v2 = vsel %vm6465_vm6, %v5073_v32, %v1293_v23  ;;  %v5074_v24 = vrot.slane %v1205_v47, 9 }
  0x64   : > { %v1303_v38 = vrot.slane %v6430_v33, 5  ;;  %v1307_v45 = vrot.slane %v6171_v12, 5  ;;  %v1290_v26 = vsel %vm6465_vm6, %v1288_v41, %v1289_v5  ;;  %v6576_v27 = vsel %vm6465_vm6, %v1295_v17, %v1296_v9  ;;  %v1211_v41 = vld [vmem:[%s6151_s26 + $0x9c] sm:$0xe]  ;;  %v1212_v17 = vld [vmem:[%s6151_s26 + $0xa8] sm:$0xe] }
  0x65   : > { %5747 = vmatmul.mubr.msk.bf16.vlgmr.msra.gmra.mxu1 %vm693_vm2, %v5035_v43  ;;  %v1302_v43 = vrot.slane %v1300_v61, 4  ;;  %v5075_v29 = vrot.slane %v1206_v3, 9  ;;  %v5038_v33 = vcombine.low %v6307_v53, %v6312_v62  ;;  %v5039_v6 = vcombine.low %v6344_v57, %v6349_v11  ;;  %v1209_v53 = vld [vmem:[%s6151_s26 + $0x84] sm:$0xe] }
  0x66   : > { %5813 = vmatpush3.bf16.msra.mxu1 %v6273_v15  ;;  %5750 = vmatprep.mubr.msk.bf16.mxu1 %vm693_vm2, %v5036_v21  ;;  %v5089_v15 = vcombine.low %v1280_v34, %v1283_v13  ;;  %v5040_v18 = vcombine.low %v6377_v14, %v6386_v56  ;;  %v6585_v21 = vld [vmem:[%s6151_s26 + $0x78] sm:$0xe]  ;;  %v5041_v22 = vcombine.low %v6420_v19, %v6427_v44  ;;  %v1309_v1 = vrot.slane %v1307_v45, 4 }
  0x67   : > { %5880 = vmatprep.subr.bf16.mxu1 %v6546_v4  ;;  %v5042_v58 = vcombine.low %v6167_v10, %v6171_v12  ;;  %v5076_v35 = vrot.slane %v1207_v7, 9  ;;  %v5090_v62 = vcombine.low %v6552_v37, %v1290_v26  ;;  %v5091_v25 = vcombine.low %v6563_v2, %v6576_v27  ;;  %v8827_v37 = vld [vmem:[#allocation4_spill] sm:$0xff]  ;;  %v8828_v7 = vld [vmem:[#allocation6_spill] sm:$0xff]  ;;  %v8829_v2 = vld [vmem:[#allocation5_spill] sm:$0xff] }
  0x68   : > { %v6598_v50 = vsel %vm6465_vm6, %v5074_v24, %v1300_v61  ;;  %v6602_v51 = vsel %vm6465_vm6, %v1302_v43, %v1303_v38  ;;  %v6608_v20 = vsel %vm6465_vm6, %v5075_v29, %v1307_v45  ;;  %v1314_v0 = vrot.slane %v6208_v55, 5  ;;  %v8830_v45 = vld [vmem:[#allocation2_spill] sm:$0xff]  ;;  %v6084_v10 = vld [vmem:[%s6151_s26 + $0x6c] sm:$0xf]  ;;  %v6085_v12 = vld [vmem:[%s6151_s26 + $0x70] sm:$0xf] }
  0x69   : > { %5785 = vmatmul.mubr.msk.bf16.gmra.mxu0 %vm693_vm2, %v5088_v49  ;;  %v1317_v8 = vrot.slane %v6216_v60, 5  ;;  %v5077_v5 = vrot.slane %v6585_v21, 9  ;;  %v5078_v32 = vrot.slane %v1209_v53, 9  ;;  %v1328_v23 = vrot.slane %v6292_v36, 5  ;;  %v8833_v53 = vld [vmem:[#allocation8_spill] sm:$0xff] }
  0x6a   : > { %5788 = vmatprep.mubr.msk.bf16.mxu0 %vm693_vm2, %v5089_v15  ;;  %v1331_v47 = vrot.slane %v6299_v46, 5  ;;  %v5092_v9 = vcombine.low %v6598_v50, %v6602_v51  ;;  %v6623_v55 = vsel %vm6465_vm6, %v1309_v1, %v1310_v59  ;;  %v6627_v60 = vsel %vm6465_vm6, %v5076_v35, %v1314_v0  ;;  %v8831_v15 = vld [vmem:[#allocation7_spill] sm:$0xff]  ;;  %v8832_v35 = vld [vmem:[#allocation9_spill] sm:$0xff] }
  0x6b   : > { %v6635_v46 = vsel %vm6465_vm6, %v5078_v32, %v1328_v23  ;;  %v1330_v3 = vrot.slane %v1328_v23, 4  ;;  %v5079_v49 = vrot.slane %v1210_v42, 9  ;;  %v1335_v13 = vrot.slane %v6330_v39, 5  ;;  %v8836_v42 = vld [vmem:[#allocation3_spill] sm:$0xff] }
  0x6c   : > { %v1316_v59 = vrot.slane %v1314_v0, 4  ;;  %v1338_v61 = vrot.slane %v8827_v37, 5  ;;  %v5080_v38 = vrot.slane %v1211_v41, 9  ;;  %v1345_v1 = vrot.slane %v8831_v15, 5  ;;  %v6675_v15 = vld [vmem:[%s6151_s26 + $0x10] sm:$0xf] }
  0x6d   : > { %5751 = vmatmul.mubr.msk.bf16.gmra.mxu1 %vm693_vm2, %v5037_v52  ;;  %v1321_v52 = vrot.slane %v8830_v45, 5  ;;  %v6645_v26 = vsel %vm6465_vm6, %v1330_v3, %v1331_v47  ;;  %v6649_v27 = vsel %vm6465_vm6, %v5079_v49, %v1335_v13  ;;  %v1337_v43 = vrot.slane %v1335_v13, 4  ;;  %v8834_v47 = vld [vmem:[#allocation10_spill] sm:$0xff]  ;;  %v5185_v3 = vld [vmem:[%s6151_s26 + $0xc] sm:$0xf] }
  0x6e   : > { %5754 = vmatprep.mubr.msk.bf16.mxu1 %vm693_vm2, %v5038_v33  ;;  %v1342_v33 = vrot.slane %v8828_v7, 5  ;;  %v5081_v32 = vrot.slane %v1212_v17, 9  ;;  %v1349_v23 = vrot.slane %v8832_v35, 5  ;;  %v1352_v41 = vrot.slane %v8834_v47, 5 }
  0x6f   : > { %v6659_v0 = vsel %vm6465_vm6, %v1337_v43, %v1338_v61  ;;  %v8835_v61 = vld [vmem:[#allocation11_spill] sm:$0xff]  ;;  %v1213_v43 = vld [vmem:[%s6151_s26 + $0xb4] sm:$0xe]  ;;  %v1323_v47 = vrot.slane %v1321_v52, 4  ;;  %v1356_v17 = vrot.slane %v6444_v16, 5  ;;  %v2074_v49 = vshll.u32 %v5185_v3, 16 }
  0x70   : > { %v6669_v13 = vsel %vm6465_vm6, %v5080_v38, %v1342_v33  ;;  %v1344_v37 = vrot.slane %v1342_v33, 4  ;;  %v6681_v24 = vsel %vm6465_vm6, %v5081_v32, %v1349_v23  ;;  %v1351_v34 = vrot.slane %v1349_v23, 4  ;;  %v5188_v38 = vld [vmem:[%s6151_s26 + $0x18] sm:$0xf] }
  0x71   : > { %5789 = vmatmul.mubr.msk.bf16.gmra.mxu0 %vm693_vm2, %v5090_v62  ;;  %v1324_v62 = vrot.slane %v8836_v42, 5  ;;  %v5093_v42 = vcombine.low %v6608_v20, %v6623_v55  ;;  %v2080_v20 = vshll.u32 %v6675_v15, 16  ;;  %v5082_v55 = vrot.slane %v1213_v43, 9 }
  0x72   : > { %5792 = vmatprep.mubr.msk.bf16.mxu0 %vm693_vm2, %v5091_v25  ;;  %v6686_v33 = vsel %vm6465_vm6, %v1344_v37, %v1345_v1  ;;  %v2071_v25 = vshrl.u32 %v5185_v3, 16  ;;  %v6700_v1 = vsel %vm6465_vm6, %v1316_v59, %v1317_v8  ;;  %v6706_v23 = vsel %vm6465_vm6, %v1351_v34, %v1352_v41  ;;  %v5189_v3 = vld [vmem:[%s6151_s26 + $0x1c] sm:$0xf]  ;;  %v5190_v8 = vld [vmem:[%s6151_s26 + $0x20] sm:$0x1] }
  0x73   : > { %v1359_v59 = vrot.slane %v6449_v63, 5  ;;  %v2084_v34 = vshrl.u32 %v6675_v15, 16  ;;  %v2095_v41 = vshrl.u32 %v5188_v38, 16  ;;  %v5191_v37 = vld [vmem:[%s6151_s26 + $0x24] sm:$0xf]  ;;  %v1322_v14 = vsel %vm6465_vm6, %v5077_v5, %v1321_v52 }
  0x74   : > { %v2073_v11 = vrot.slane %v2071_v25, 4  ;;  %v1325_v56 = vsel %vm6465_vm6, %v1323_v47, %v1324_v62  ;;  %v6727_v25 = vld [vmem:[%s6151_s26 + $0x28] sm:$0xf]  ;;  %v6729_v57 = vrot.slane %v2080_v20, 5  ;;  %v2090_v63 = vshll.u32 %v6690_v54, 16 }
  0x75   : > { %5755 = vmatmul.mubr.msk.bf16.gmra.mxu1 %vm693_vm2, %v5039_v6  ;;  %v2076_v6 = vrot.slane %v2074_v49, 5  ;;  %v2098_v49 = vshll.u32 %v5188_v38, 16  ;;  %v2086_v43 = vrot.slane %v2084_v34, 4  ;;  %v2097_v32 = vrot.slane %v2095_v41, 4 }
  0x76   : > { %5758 = vmatprep.mubr.msk.bf16.mxu1 %vm693_vm2, %v5040_v18  ;;  %v1358_v18 = vrot.slane %v1356_v17, 4  ;;  %v2104_v52 = vshll.u32 %v5189_v3, 16  ;;  %v2108_v47 = vshrl.u32 %v5189_v3, 16  ;;  %v2114_v62 = vshll.u32 %v5190_v8, 16  ;;  %v6757_v3 = vld [vmem:[%s6151_s26 + $0x34] sm:$0xf] }
  0x77   : > { %v2077_v21 = vor.u32 %v2076_v6, %v2073_v11  ;;  %v2100_v5 = vrot.slane %v2098_v49, 5  ;;  %v2119_v38 = vshrl.u32 %v5191_v37, 16  ;;  %v2122_v20 = vshll.u32 %v5191_v37, 16  ;;  %8837 = vst [vmem:[#allocation4_spill] sm:$0xff] %v6757_v3  ;;  %v6768_v11 = vld [vmem:[%s6151_s26 + $0x2c] sm:$0x1] }
  0x78   : > { %v5094_v34 = vcombine.low %v6627_v60, %v6700_v1  ;;  %v5095_v41 = vcombine.low %v1322_v14, %v1325_v56  ;;  %v6741_v50 = vsel %vm6465_vm6, %v5082_v55, %v1356_v17  ;;  %v6745_v51 = vsel %vm6465_vm6, %v1358_v18, %v1359_v59  ;;  %v5197_v37 = vld [vmem:[%s6151_s26 + $0x3c] sm:$0xf]  ;;  %v6086_v14 = vld [vmem:[%s6151_s26 + $0x78] sm:$0xf] }
  0x79   : > { %5793 = vmatmul.mubr.msk.bf16.gmra.mxu0 %vm693_vm2, %v5092_v9  ;;  %v5194_v9 = vld [vmem:[%s6151_s26 + $0x30] sm:$0xf]  ;;  %v6753_v60 = vrot.slane %v2090_v63, 5  ;;  %v2101_v1 = vor.u32 %v2100_v5, %v2097_v32  ;;  %v2128_v17 = vshll.u32 %v6727_v25, 16  ;;  %v6763_v19 = vrot.slane %v2077_v21, 4 }
  0x7a   : > { %5796 = vmatprep.mubr.msk.bf16.mxu0 %vm693_vm2, %v5093_v42  ;;  %v2087_v42 = vor.u32 %v2086_v43, %v6729_v57  ;;  %v6765_v44 = vrot.slane %v2104_v52, 5  ;;  %v2132_v32 = vshrl.u32 %v6727_v25, 16  ;;  %v6771_v6 = vrot.slane %v2114_v62, 5  ;;  %v6781_v43 = vld [vmem:[%s6151_s26 + $0x38] sm:$0x1] }
  0x7b   : > { %v2121_v8 = vrot.slane %v2119_v38, 4  ;;  %v2124_v55 = vrot.slane %v2122_v20, 5  ;;  %v2143_v59 = vshrl.u32 %v5194_v9, 16  ;;  %v5044_v56 = vcombine.low %v6086_v14, %v8830_v45  ;;  %8838 = vst [vmem:[#allocation6_spill] sm:$0xff] %v6781_v43 }
  0x7c   : > { %v6778_v18 = vrot.slane %v2128_v17, 5  ;;  %v2134_v49 = vrot.slane %v2132_v32, 4  ;;  %v2088_v63 = vrot.slane %v2087_v42, 4  ;;  %v6783_v21 = vrot.slane %v2101_v1, 4  ;;  %v5200_v17 = vld [vmem:[%s6151_s26 + $0x48] sm:$0xf] }
  0x7d   : > { %5759 = vmatmul.mubr.msk.bf16.gmra.mxu1 %vm693_vm2, %v5041_v22  ;;  %v2110_v22 = vrot.slane %v2108_v47, 4  ;;  %v2145_v5 = vrot.slane %v2143_v59, 4  ;;  %v2146_v52 = vshll.u32 %v5194_v9, 16  ;;  %v6786_v47 = vld [vmem:[%s6151_s26 + $0x40] sm:$0xf]  ;;  %v2083_v45 = vsel %vm6189_vm3, %v6763_v19, %v6729_v57 }
  0x7e   : > { %5762 = vmatprep.mubr.msk.bf16.mxu1 %vm693_vm2, %v5042_v58  ;;  %v5043_v58 = vcombine.low %v6084_v10, %v6085_v12  ;;  %v2152_v38 = vshll.u32 %v6757_v3, 16  ;;  %v2156_v20 = vshrl.u32 %v6757_v3, 16  ;;  %v2125_v42 = vor.u32 %v2124_v55, %v2121_v8  ;;  %v6807_v12 = vld [vmem:[%s6151_s26 + $0x44] sm:$0x1]  ;;  %v6811_v55 = vld [vmem:[%s6151_s26 + $0x4c] sm:$0xf] }
  0x7f   : > { %v2111_v9 = vor.u32 %v2110_v22, %v6765_v44  ;;  %v2148_v1 = vrot.slane %v2146_v52, 5  ;;  %v2135_v32 = vor.u32 %v2134_v49, %v6778_v18  ;;  %v2167_v19 = vshrl.u32 %v5197_v37, 16 }
  0x80   : > { %v6802_v59 = vrot.slane %v2152_v38, 5  ;;  %v2158_v57 = vrot.slane %v2156_v20, 4  ;;  %v2170_v22 = vshll.u32 %v5197_v37, 16  ;;  %v2176_v8 = vshll.u32 %v6786_v47, 16  ;;  %v5203_v37 = vld [vmem:[%s6151_s26 + $0x54] sm:$0xf] }
  0x81   : > { %5797 = vmatmul.mubr.msk.bf16.gmra.mxu0 %vm693_vm2, %v5094_v34  ;;  %v2138_v34 = vshll.u32 %v6768_v11, 16  ;;  %v2149_v10 = vor.u32 %v2148_v1, %v2145_v5  ;;  %v2093_v14 = vsel %vm6189_vm3, %v2088_v63, %v6753_v60  ;;  %v2180_v5 = vshrl.u32 %v6786_v47, 16 }
  0x82   : > { %5800 = vmatprep.mubr.msk.bf16.mxu0 %vm693_vm2, %v5095_v41  ;;  %v2162_v41 = vshll.u32 %v6781_v43, 16  ;;  %v2159_v49 = vor.u32 %v2158_v57, %v6802_v59  ;;  %v2112_v52 = vrot.slane %v2111_v9, 4  ;;  %v2126_v38 = vrot.slane %v2125_v42, 4 }
  0x83   : > { %v2172_v20 = vrot.slane %v2170_v22, 5  ;;  %v6819_v1 = vrot.slane %v2176_v8, 5  ;;  %v2136_v62 = vrot.slane %v2135_v32, 4  ;;  %v2140_v29 = vrot.slane %v2138_v34, 5 }
  0x84   : > { %v2182_v43 = vrot.slane %v2180_v5, 4  ;;  %v2150_v3 = vrot.slane %v2149_v10, 4  ;;  %v2160_v48 = vrot.slane %v2159_v49, 4  ;;  %v2164_v60 = vrot.slane %v2162_v41, 5  ;;  %v6843_v41 = vld [vmem:[%s6151_s26 + $0x58] sm:$0xf] }
  0x85   : > { %5763 = vmatmul.mubr.msk.bf16.gmra.mxu1 %vm693_vm2, %v5043_v58  ;;  %v2169_v58 = vrot.slane %v2167_v19, 4  ;;  %v2194_v63 = vshll.u32 %v5200_v17, 16  ;;  %v8839_v57 = vcombine.low %v6635_v46, %v6645_v26  ;;  %v6826_v9 = vcombine.low %v2083_v45, %v2093_v14  ;;  %v6840_v45 = vld [vmem:[%s6151_s26 + $0x50] sm:$0x1]  ;;  %v6865_v49 = vld [vmem:[%s6151_s26 + $0x64] sm:$0xf] }
  0x86   : > { %5766 = vmatprep.mubr.msk.bf16.mxu1 %vm693_vm2, %v5044_v56  ;;  %v2191_v56 = vshrl.u32 %v5200_v17, 16  ;;  %v2186_v32 = vshll.u32 %v6807_v12, 16  ;;  %v2200_v34 = vshll.u32 %v6811_v55, 16  ;;  %v8840_v19 = vcombine.low %v6649_v27, %v6659_v0 }
  0x87   : > { %v2173_v42 = vor.u32 %v2172_v20, %v2169_v58  ;;  %v2107_v46 = vsel %vm6189_vm3, %v6783_v21, %v6765_v44  ;;  %v2183_v26 = vor.u32 %v2182_v43, %v6819_v1  ;;  %v2196_v10 = vrot.slane %v2194_v63, 5  ;;  %v5206_v21 = vld [vmem:[%s6151_s26 + $0x60] sm:$0xf] }
  0x88   : > { %v2193_v17 = vrot.slane %v2191_v56, 4  ;;  %v2117_v27 = vsel %vm6189_vm3, %v2112_v52, %v6771_v6  ;;  %v2131_v0 = vsel %vm6189_vm3, %v2126_v38, %v6778_v18  ;;  %v2204_v22 = vshrl.u32 %v6811_v55, 16 }
  0x89   : > { %5801 = vmatmul.mubr.msk.bf16.gmra.mxu0 %vm693_vm2, %v8839_v57  ;;  %v2215_v44 = vshrl.u32 %v5203_v37, 16  ;;  %v8841_v43 = vcombine.low %v6285_v31, %v6292_v36  ;;  %v2141_v8 = vsel %vm6189_vm3, %v2136_v62, %v2140_v29  ;;  %v2155_v6 = vsel %vm6189_vm3, %v2150_v3, %v6802_v59 }
  0x8a   : > { %5804 = vmatprep.mubr.msk.bf16.mxu0 %vm693_vm2, %v8840_v19  ;;  %v2165_v14 = vsel %vm6189_vm3, %v2160_v48, %v2164_v60  ;;  %v2218_v18 = vshll.u32 %v5203_v37, 16  ;;  %v8842_v58 = vcombine.low %v6325_v30, %v6330_v39  ;;  %v2174_v31 = vrot.slane %v2173_v42, 4  ;;  %v5209_v30 = vld [vmem:[%s6151_s26 + $0x6c] sm:$0xf] }
  0x8b   : > { %v2188_v36 = vrot.slane %v2186_v32, 5  ;;  %v6871_v5 = vrot.slane %v2200_v34, 5  ;;  %v2224_v29 = vshll.u32 %v6843_v41, 16  ;;  %v2184_v62 = vrot.slane %v2183_v26, 4  ;;  %v6892_v34 = vld [vmem:[%s6151_s26 + $0x5c] sm:$0x1] }
  0x8c   : > { %v2197_v3 = vor.u32 %v2196_v10, %v2193_v17  ;;  %v2206_v59 = vrot.slane %v2204_v22, 4  ;;  %v2210_v48 = vshll.u32 %v6840_v45, 16  ;;  %v2217_v52 = vrot.slane %v2215_v44, 4  ;;  %v6906_v10 = vld [vmem:[%s6151_s26 + $0x68] sm:$0x1] }
  0x8d   : > { %5767 = vmatmul.mubr.msk.bf16.gmra.mxu1 %vm693_vm2, %v8841_v43  ;;  %v2220_v38 = vrot.slane %v2218_v18, 5  ;;  %v2228_v20 = vshrl.u32 %v6843_v41, 16  ;;  %v2239_v37 = vshrl.u32 %v5206_v21, 16  ;;  %v6877_v39 = vcombine.low %v2107_v46, %v2117_v27  ;;  %v6910_v27 = vld [vmem:[%s6151_s26 + $0x70] sm:$0xf] }
  0x8e   : > { %5770 = vmatprep.mubr.msk.bf16.mxu1 %vm693_vm2, %v8842_v58  ;;  %v6879_v56 = vcombine.low %v2131_v0, %v2141_v8  ;;  %v2242_v60 = vshll.u32 %v5206_v21, 16  ;;  %v2248_v63 = vshll.u32 %v6865_v49, 16  ;;  %v8843_v57 = vcombine.low %v6669_v13, %v6686_v33 }
  0x8f   : > { %v6886_v42 = vcombine.low %v2155_v6, %v2165_v14  ;;  %v2179_v32 = vsel %vm6189_vm3, %v2174_v31, %v6819_v1  ;;  %v6894_v19 = vrot.slane %v2224_v29, 5  ;;  %v2230_v46 = vrot.slane %v2228_v20, 4  ;;  %v6922_v14 = vld [vmem:[%s6151_s26 + $0x74] sm:$0x1] }
  0x90   : > { %v8844_v26 = vcombine.low %v6681_v24, %v6706_v23  ;;  %v2189_v13 = vsel %vm6189_vm3, %v2184_v62, %v2188_v36  ;;  %v6902_v33 = vrot.slane %v2197_v3, 4  ;;  %v2207_v17 = vor.u32 %v2206_v59, %v6871_v5  ;;  %v5212_v36 = vld [vmem:[%s6151_s26 + $0x78] sm:$0xf] }
  0x91   : > { %5805 = vmatmul.mubr.msk.bf16.gmra.mxu0 %vm693_vm2, %v8843_v57  ;;  %v2252_v1 = vshrl.u32 %v6865_v49, 16  ;;  %v2221_v0 = vor.u32 %v2220_v38, %v2217_v52  ;;  %v2241_v22 = vrot.slane %v2239_v37, 4  ;;  %v2244_v24 = vrot.slane %v2242_v60, 5 }
  0x92   : > { %5808 = vmatprep.mubr.msk.bf16.mxu0 %vm693_vm2, %v8844_v26  ;;  %v2263_v23 = vshrl.u32 %v5209_v30, 16  ;;  %v8845_v44 = vcombine.low %v8829_v2, %v8828_v7  ;;  %v6916_v21 = vrot.slane %v2210_v48, 5  ;;  %v2234_v43 = vshll.u32 %v6892_v34, 16 }
  0x93   : > { %v6919_v8 = vrot.slane %v2248_v63, 5  ;;  %v2254_v6 = vrot.slane %v2252_v1, 4  ;;  %v8846_v18 = vcombine.low %v8833_v53, %v8832_v35  ;;  %v6928_v58 = vcombine.low %v2179_v32, %v2189_v13  ;;  %v6939_v53 = vld [vmem:[%s6151_s26 + $0x7c] sm:$0xf]  ;;  %v6048_v63 = vld [vmem:[%s6151_s26 + $0xc] sm:$0xff]  }
  0x94   : > { %v2231_v7 = vor.u32 %v2230_v46, %v6894_v19  ;;  %v2265_v2 = vrot.slane %v2263_v23, 4  ;;  %v2266_v31 = vshll.u32 %v5209_v30, 16  ;;  %v2203_v29 = vsel %vm6189_vm3, %v6902_v33, %v6871_v5  ;;  %v5215_v13 = vld [vmem:[%s6151_s26 + $0x84] sm:$0xf]  ;;  %v6964_v23 = vld [vmem:[%s6151_s26 + $0x88] sm:$0xf] }
  0x95   : > { %5771 = vmatmul.mubr.msk.bf16.gmra.mxu1 %vm693_vm2, %v8845_v44  ;;  %v2208_v62 = vrot.slane %v2207_v17, 4  ;;  %v2272_v3 = vshll.u32 %v6910_v27, 16  ;;  %v2276_v35 = vshrl.u32 %v6910_v27, 16  ;;  %v2222_v59 = vrot.slane %v2221_v0, 4 }
  0x96   : > { %5774 = vmatprep.mubr.msk.bf16.mxu1 %vm693_vm2, %v8846_v18  ;;  %v2245_v48 = vor.u32 %v2244_v24, %v2241_v22  ;;  %v2258_v52 = vshll.u32 %v6906_v10, 16  ;;  %v2268_v38 = vrot.slane %v2266_v31, 5  ;;  %v2236_v20 = vrot.slane %v2234_v43, 5 }
  0x97   : > { %v2255_v37 = vor.u32 %v2254_v6, %v6919_v8  ;;  %v6943_v30 = vrot.slane %v2272_v3, 5  ;;  %v2287_v60 = vshrl.u32 %v5212_v36, 16  ;;  %v8847_v5 = vcombine.low %v6741_v50, %v6745_v51 }
  0x98   : > { %v2232_v57 = vrot.slane %v2231_v7, 4  ;;  %v2269_v32 = vor.u32 %v2268_v38, %v2265_v2  ;;  %v2278_v46 = vrot.slane %v2276_v35, 4  ;;  %v2282_v26 = vshll.u32 %v6922_v14, 16  ;;  %v6985_v35 = vld [vmem:[%s6151_s26 + $0x94] sm:$0xf] }
  0x99   : > { %5809 = vmatmul.mubr.msk.bf16.gmra.mxu0 %vm693_vm2, %v8847_v5  ;;  %v2213_v33 = vsel %vm6189_vm3, %v2208_v62, %v6916_v21  ;;  %v2290_v17 = vshll.u32 %v5212_v36, 16  ;;  %v2296_v50 = vshll.u32 %v6939_v53, 16  ;;  %v2300_v51 = vshrl.u32 %v6939_v53, 16  ;;  %v6971_v21 = vld [vmem:[%s6151_s26 + $0x80] sm:$0x1] }
  0x9a   : > { %5848 = vmatprep.mubr.msk.bf16.mxu0 %vm693_vm2, %v6826_v9  ;;  %v2227_v1 = vsel %vm6189_vm3, %v2222_v59, %v6894_v19  ;;  %v2246_v0 = vrot.slane %v2245_v48, 4  ;;  %v2260_v22 = vrot.slane %v2258_v52, 5  ;;  %v2279_v24 = vor.u32 %v2278_v46, %v6943_v30 }
  0x9b   : > { %v8848_v9 = vcombine.low %v8835_v61, %v6444_v16  ;;  %v2256_v44 = vrot.slane %v2255_v37, 4  ;;  %v2289_v43 = vrot.slane %v2287_v60, 4  ;;  %v2292_v6 = vrot.slane %v2290_v17, 5  ;;  %v5218_v61 = vld [vmem:[%s6151_s26 + $0x90] sm:$0xf]  ;;  %v6050_v37 = vld [vmem:[%s6151_s26 + $0x18] sm:$0xff]  }
  0x9c   : > { %v2311_v18 = vshrl.u32 %v5215_v13, 16  ;;  %v2237_v19 = vsel %vm6189_vm3, %v2232_v57, %v2236_v20  ;;  %v6976_v7 = vrot.slane %v2269_v32, 4  ;;  %v6978_v2 = vrot.slane %v2282_v26, 5  ;;  %v6992_v20 = vld [vmem:[%s8777_s1 + $0x40] sm:$0xff]  }
  0x9d   : > { %5775 = vmatmul.mubr.msk.bf16.gmra.mxu1 %vm693_vm2, %v8848_v9  ;;  %v2314_v16 = vshll.u32 %v5215_v13, 16  ;;  %v6981_v31 = vrot.slane %v2296_v50, 5  ;;  %v2302_v36 = vrot.slane %v2300_v51, 4  ;;  %v2320_v3 = vshll.u32 %v6964_v23, 16  ;;  %8849 = vst [vmem:[#allocation5_spill] sm:$0xff] %v6992_v20  ;;  %v6052_v32 = vld [vmem:[%s6151_s26 + $0x24] sm:$0xff]  }
  0x9e   : > { %5814 = vmatprep.mubr.msk.bf16.mxu1 %vm693_vm2, %v6048_v63  ;;  %v2313_v62 = vrot.slane %v2311_v18, 4  ;;  %v2280_v59 = vrot.slane %v2279_v24, 4  ;;  %v2306_v48 = vshll.u32 %v6971_v21, 16  ;;  %v2324_v38 = vshrl.u32 %v6964_v23, 16  ;;  %v7010_v13 = vld [vmem:[%s6151_s26 + $0x8c] sm:$0x1] }
  0x9f   : > { %v2316_v52 = vrot.slane %v2314_v16, 5  ;;  %v2251_v60 = vsel %vm6189_vm3, %v2246_v0, %v6919_v8  ;;  %v2261_v5 = vsel %vm6189_vm3, %v2256_v44, %v2260_v22  ;;  %v2293_v63 = vor.u32 %v2292_v6, %v2289_v43  ;;  %v7035_v24 = vld [vmem:[%s6151_s26 + $0xa0] sm:$0xf]  ;;  %v7047_v6 = vld [vmem:[%s6151_s26 + $0x98] sm:$0x1] }
  0xa0   : > { %v7000_v57 = vrot.slane %v2320_v3, 5  ;;  %v7005_v46 = vcombine.low %v2203_v29, %v2213_v33  ;;  %v7007_v26 = vcombine.low %v2227_v1, %v2237_v19  ;;  %v2326_v17 = vrot.slane %v2324_v38, 4  ;;  %v5221_v29 = vld [vmem:[%s6151_s26 + $0x9c] sm:$0xf]  ;;  %8851 = vst [vmem:[#allocation7_spill] sm:$0xff] %v7035_v24 }
  0xa1   : > { %5849 = vmatmul.mubr.msk.bf16.vlgmr.msra.gmra.mxu0 %vm693_vm2, %v6877_v39  ;;  %v2335_v8 = vshrl.u32 %v5218_v61, 16  ;;  %v2303_v50 = vor.u32 %v2302_v36, %v6981_v31  ;;  %v2317_v51 = vor.u32 %v2316_v52, %v2313_v62  ;;  %v2338_v0 = vshll.u32 %v5218_v61, 16  ;;  %v7021_v33 = vld [vmem:[%s8777_s1 + $0x38] sm:$0xff]   ;;  %v7060_v38 = vld [vmem:[%s6151_s26 + $0xac] sm:$0xf] }
  0xa2   : > { %5915 = vmatpush3.bf16.msra.mxu0 %v6526_v40  ;;  %5852 = vmatprep.mubr.msk.bf16.mxu0 %vm693_vm2, %v6879_v56  ;;  %v2344_v39 = vshll.u32 %v6985_v35, 16  ;;  %8850 = vst [vmem:[#allocation2_spill] sm:$0xff] %v7021_v33  ;;  %v7023_v1 = vcombine.low %v2251_v60, %v2261_v5  ;;  %v2275_v40 = vsel %vm6189_vm3, %v6976_v7, %v6943_v30  ;;  %v7032_v22 = vrot.slane %v2306_v48, 5 }
  0xa3   : > { %v2285_v56 = vsel %vm6189_vm3, %v2280_v59, %v6978_v2  ;;  %5982 = vmatprep.subr.bf16.mxu0 %v6992_v20  ;;  %v7039_v9 = vrot.slane %v2293_v63, 4  ;;  %v2327_v44 = vor.u32 %v2326_v17, %v7000_v57  ;;  %v2330_v43 = vshll.u32 %v7010_v13, 16  ;;  %8852 = vst [vmem:[#allocation9_spill] sm:$0xff] %v7060_v38  ;;  %v6054_v17 = vld [vmem:[%s6151_s26 + $0x3c] sm:$0xff]   ;;  %v7126_v20 = vld [vmem:[%s6151_s26 + $0xc4] sm:$0xf] }
  0xa4   : > { %v2348_v30 = vshrl.u32 %v6985_v35, 16  ;;  %v2337_v18 = vrot.slane %v2335_v8, 4  ;;  %v2340_v19 = vrot.slane %v2338_v0, 5  ;;  %v2359_v7 = vshrl.u32 %v5221_v29, 16 }
  0xa5   : > { %5815 = vmatmul.mubr.msk.bf16.vlgmr.msra.gmra.mxu1 %vm693_vm2, %v6050_v37  ;;  %v2362_v2 = vshll.u32 %v5221_v29, 16  ;;  %v7049_v16 = vrot.slane %v2303_v50, 4  ;;  %v7051_v61 = vrot.slane %v2317_v51, 4  ;;  %v7053_v36 = vrot.slane %v2344_v39, 5  ;;  %v6053_v37 = vld [vmem:[%s6151_s26 + $0x30] sm:$0xff]  }
  0xa6   : > { %5881 = vmatpush3.bf16.msra.mxu1 %v6546_v4  ;;  %5818 = vmatprep.mubr.msk.bf16.mxu1 %vm693_vm2, %v6052_v32  ;;  %v2368_v62 = vshll.u32 %v7035_v24, 16  ;;  %v5224_v4 = vld [vmem:[%s6151_s26 + $0xa8] sm:$0xf]  ;;  %v2350_v3 = vrot.slane %v2348_v30, 4  ;;  %v2361_v59 = vrot.slane %v2359_v7, 4  ;;  %v2372_v52 = vshrl.u32 %v7035_v24, 16 }
  0xa7   : > { %5948 = vmatprep.subr.bf16.mxu1 %v7021_v33  ;;  %v2364_v48 = vrot.slane %v2362_v2, 5  ;;  %v7063_v60 = vcombine.low %v2275_v40, %v2285_v56  ;;  %v7065_v5 = vrot.slane %v2327_v44, 4  ;;  %v7067_v63 = vrot.slane %v2330_v43, 5  ;;  %v7074_v50 = vld [vmem:[%s6151_s26 + $0xa4] sm:$0x1] }
  0xa8   : > { %v2354_v32 = vshll.u32 %v7047_v6, 16  ;;  %v2341_v8 = vor.u32 %v2340_v19, %v2337_v18  ;;  %8853 = vst [vmem:[#allocation8_spill] sm:$0xff] %v7074_v50  ;;  %v7076_v51 = vrot.slane %v2368_v62, 5  ;;  %v2374_v0 = vrot.slane %v2372_v52, 4  ;;  %v7095_v30 = vld [vmem:[%s6151_s26 + $0xb0] sm:$0x1] }
  0xa9   : > { %5853 = vmatmul.mubr.msk.bf16.gmra.mxu0 %vm693_vm2, %v6886_v42  ;;  %v2383_v39 = vshrl.u32 %v5224_v4, 16  ;;  %v2309_v42 = vsel %vm6189_vm3, %v7049_v16, %v7032_v22  ;;  %v2386_v40 = vshll.u32 %v5224_v4, 16  ;;  %v2392_v56 = vshll.u32 %v7060_v38, 16  ;;  %8854 = vst [vmem:[#allocation10_spill] sm:$0xff] %v7095_v30  ;;  %v5227_v19 = vld [vmem:[%s6151_s26 + $0xb4] sm:$0xf] }
  0xaa   : > { %5856 = vmatprep.mubr.msk.bf16.mxu0 %vm693_vm2, %v6928_v58  ;;  %v2351_v58 = vor.u32 %v2350_v3, %v7053_v36  ;;  %v2365_v43 = vor.u32 %v2364_v48, %v2361_v59  ;;  %v2378_v22 = vshll.u32 %v7074_v50, 16  ;;  %v2396_v16 = vshrl.u32 %v7060_v38, 16  ;;  %v7104_v62 = vld [vmem:[%s6151_s26 + $0xb8] sm:$0xf]  ;;  %v7135_v24 = vld [vmem:[%s6151_s26 + $0xc8] sm:$0x1] }
  0xab   : > { %v2385_v18 = vrot.slane %v2383_v39, 4  ;;  %v2388_v7 = vrot.slane %v2386_v40, 5  ;;  %v7100_v2 = vrot.slane %v2392_v56, 5  ;;  %8855 = vst [vmem:[#allocation11_spill] sm:$0xff] %v7104_v62  ;;  %v2333_v4 = vsel %vm6189_vm3, %v7065_v5, %v7067_v63  ;;  %v7118_v39 = vld [vmem:[%s6151_s26 + $0xbc] sm:$0x1] }
  0xac   : > { %v7111_v3 = vrot.slane %v2341_v8, 4  ;;  %v7113_v59 = vrot.slane %v2354_v32, 5  ;;  %v2375_v48 = vor.u32 %v2374_v0, %v7076_v51  ;;  %v2398_v52 = vrot.slane %v2396_v16, 4  ;;  %v5230_v63 = vld [vmem:[%s6151_s26 + $0xc0] sm:$0xf]  ;;  %v6055_v32 = vld [vmem:[%s6151_s26 + $0x48] sm:$0xff]  }
  0xad   : > { %5819 = vmatmul.mubr.msk.bf16.gmra.mxu1 %vm693_vm2, %v6053_v37  ;;  %v2402_v37 = vshll.u32 %v7095_v30, 16  ;;  %v2407_v40 = vshrl.u32 %v5227_v19, 16  ;;  %v2352_v56 = vrot.slane %v2351_v58, 4  ;;  %v2389_v44 = vor.u32 %v2388_v7, %v2385_v18 }
  0xae   : > { %5822 = vmatprep.mubr.msk.bf16.mxu1 %vm693_vm2, %v6054_v17  ;;  %v2410_v17 = vshll.u32 %v5227_v19, 16  ;;  %v2416_v29 = vshll.u32 %v7104_v62, 16  ;;  %v2420_v5 = vshrl.u32 %v7104_v62, 16  ;;  %v2366_v8 = vrot.slane %v2365_v43, 4  ;;  %v6056_v19 = vld [vmem:[%s6151_s26 + $0x54] sm:$0xff]  }
  0xaf   : > { %v2380_v33 = vrot.slane %v2378_v22, 5  ;;  %v2399_v0 = vor.u32 %v2398_v52, %v7100_v2  ;;  %v2409_v16 = vrot.slane %v2407_v40, 4  ;;  %v2426_v30 = vshll.u32 %v7118_v39, 16 }
  0xb0   : > { %v2412_v58 = vrot.slane %v2410_v17, 5  ;;  %v2418_v18 = vrot.slane %v2416_v29, 5  ;;  %v2422_v7 = vrot.slane %v2420_v5, 4  ;;  %v2376_v43 = vrot.slane %v2375_v48, 4 }
  0xb1   : > { %5857 = vmatmul.mubr.msk.bf16.gmra.mxu0 %vm693_vm2, %v7005_v46  ;;  %v2404_v22 = vrot.slane %v2402_v37, 5  ;;  %v2431_v62 = vshrl.u32 %v5230_v63, 16  ;;  %v2434_v52 = vshll.u32 %v5230_v63, 16  ;;  %v2390_v40 = vrot.slane %v2389_v44, 4 }
  0xb2   : > { %5860 = vmatprep.mubr.msk.bf16.mxu0 %vm693_vm2, %v7007_v26  ;;  %v2413_v38 = vor.u32 %v2412_v58, %v2409_v16  ;;  %v2423_v50 = vor.u32 %v2422_v7, %v2418_v18  ;;  %v2440_v46 = vshll.u32 %v7126_v20, 16  ;;  %v2400_v29 = vrot.slane %v2399_v0, 4 }
  0xb3   : > { %v2433_v17 = vrot.slane %v2431_v62, 4  ;;  %v2436_v5 = vrot.slane %v2434_v52, 5  ;;  %v2444_v26 = vshrl.u32 %v7126_v20, 16  ;;  %v2428_v44 = vrot.slane %v2426_v30, 5 }
  0xb4   : > { %v2414_v48 = vrot.slane %v2413_v38, 4  ;;  %v2424_v37 = vrot.slane %v2423_v50, 4  ;;  %v7141_v63 = vrot.slane %v2440_v46, 5  ;;  %v2450_v58 = vshll.u32 %v7135_v24, 16 }
  0xb5   : > { %5823 = vmatmul.mubr.msk.bf16.gmra.mxu1 %vm693_vm2, %v6055_v32  ;;  %v8856_v32 = vsel %vm6189_vm3, %v7039_v9, %v6981_v31  ;;  %v2437_v62 = vor.u32 %v2436_v5, %v2433_v17  ;;  %v2446_v16 = vrot.slane %v2444_v26, 4  ;;  %v8857_v38 = vsel %vm6189_vm3, %v7051_v61, %v7000_v57 }
  0xb6   : > { %5826 = vmatprep.mubr.msk.bf16.mxu1 %vm693_vm2, %v6056_v19  ;;  %v5244_v0 = vcombine.low %v8856_v32, %v2309_v42  ;;  %v5245_v50 = vcombine.low %v8857_v38, %v2333_v4  ;;  %v2347_v30 = vsel %vm6189_vm3, %v7111_v3, %v7053_v36  ;;  %v2357_v31 = vsel %vm6189_vm3, %v2352_v56, %v7113_v59  ;;  %v5270_v42 = vld [vmem:[%s6151_s26 + $0x24] sm:$0xe]  ;;  %v7175_v3 = vld [vmem:[%s6151_s26 + $0xc] sm:$0xe] }
  0xb7   : > { %v2371_v9 = vsel %vm6189_vm3, %v2366_v8, %v7076_v51  ;;  %v6057_v19 = vld [vmem:[%s6151_s26 + $0x60] sm:$0xff]   ;;  %v2381_v57 = vsel %vm6189_vm3, %v2376_v43, %v2380_v33  ;;  %v2395_v61 = vsel %vm6189_vm3, %v2390_v40, %v7100_v2  ;;  %v2405_v36 = vsel %vm6189_vm3, %v2400_v29, %v2404_v22  ;;  %v6058_v51 = vld [vmem:[%s6151_s26 + $0x6c] sm:$0xff]   ;;  %v5272_v29 = vld [vmem:[%s6151_s26 + $0x3c] sm:$0xe] }
  0xb8   : > { %v2447_v4 = vor.u32 %v2446_v16, %v7141_v63  ;;  %v2419_v59 = vsel %vm6189_vm3, %v2414_v48, %v2418_v18  ;;  %v2429_v33 = vsel %vm6189_vm3, %v2424_v37, %v2428_v44  ;;  %v7184_v56 = vrot.slane %v2437_v62, 4  ;;  %v5271_v8 = vld [vmem:[%s6151_s26 + $0x30] sm:$0xe]  ;;  %v5273_v48 = vld [vmem:[%s6151_s26 + $0x48] sm:$0xe]  ;;  %v8860_v38 = vld [vmem:[#allocation6_spill] sm:$0xff] }
  0xb9   : > { %5861 = vmatmul.mubr.msk.bf16.gmra.mxu0 %vm693_vm2, %v7023_v1  ;;  %v2818_v2 = vrot.slane %v6675_v15, 5  ;;  %v7190_v7 = vcombine.low %v2347_v30, %v2357_v31  ;;  %v7194_v43 = vrot.slane %v2450_v58, 5  ;;  %v5286_v22 = vrot.slane %v5270_v42, 9  ;;  %v8859_v16 = vld [vmem:[#allocation4_spill] sm:$0xff]  ;;  %v6065_v15 = vld [vmem:[%s6151_s26 + $0xc0] sm:$0xff]  }
  0xba   : > { %5864 = vmatprep.mubr.msk.bf16.mxu0 %vm693_vm2, %v7063_v60  ;;  %v7192_v1 = vrot.slane %v2447_v4, 4  ;;  %v7196_v18 = vcombine.low %v2371_v9, %v2381_v57  ;;  %v7198_v52 = vcombine.low %v2395_v61, %v2405_v36  ;;  %v5284_v40 = vrot.slane %v7175_v3, 9  ;;  %v5274_v9 = vld [vmem:[%s6151_s26 + $0x54] sm:$0xe]  ;;  %v6059_v36 = vld [vmem:[%s6151_s26 + $0x78] sm:$0xff]  }
  0xbb   : > { %v2832_v46 = vrot.slane %v6727_v25, 5  ;;  %v7204_v60 = vcombine.low %v2419_v59, %v2429_v33  ;;  %v2821_v17 = vrot.slane %v6690_v54, 5  ;;  %v2835_v5 = vrot.slane %v6768_v11, 5 }
  0xbc   : > { %v5287_v26 = vrot.slane %v5271_v8, 9  ;;  %v2443_v25 = vsel %vm6189_vm3, %v7184_v56, %v7141_v63  ;;  %v7216_v37 = vrot.slane %v2818_v2, 4  ;;  %v2453_v62 = vsel %vm6189_vm3, %v7192_v1, %v7194_v43  ;;  %v5275_v8 = vld [vmem:[%s6151_s26 + $0x60] sm:$0xe]  ;;  %v6066_v56 = vld [vmem:[%s6151_s26 + $0x18] sm:$0xff]  }
  0xbd   : > { %5827 = vmatmul.mubr.msk.bf16.gmra.mxu1 %vm693_vm2, %v6057_v19  ;;  %v7220_v32 = vsel %vm6465_vm6, %v5286_v22, %v2832_v46  ;;  %v2834_v11 = vrot.slane %v2832_v46, 4  ;;  %v2839_v58 = vrot.slane %v8859_v16, 5  ;;  %v2842_v30 = vrot.slane %v8860_v38, 5  ;;  %v5269_v43 = vld [vmem:[%s6151_s26 + $0x18] sm:$0xe] }
  0xbe   : > { %5830 = vmatprep.mubr.msk.bf16.mxu1 %vm693_vm2, %v6058_v51  ;;  %v5288_v31 = vrot.slane %v5272_v29, 9  ;;  %v2846_v19 = vrot.slane %v6786_v47, 5  ;;  %v2849_v57 = vrot.slane %v6807_v12, 5  ;;  %v5289_v61 = vrot.slane %v5273_v48, 9  ;;  %v6060_v47 = vld [vmem:[%s6151_s26 + $0x84] sm:$0xff]  }
  0xbf   : > { %v7231_v42 = vsel %vm6465_vm6, %v2834_v11, %v2835_v5  ;;  %v7240_v51 = vsel %vm6465_vm6, %v5287_v26, %v2839_v58  ;;  %v2841_v59 = vrot.slane %v2839_v58, 4  ;;  %v2853_v33 = vrot.slane %v6811_v55, 5  ;;  %v5276_v48 = vld [vmem:[%s6151_s26 + $0x6c] sm:$0xe]  ;;  %v5277_v58 = vld [vmem:[%s6151_s26 + $0x78] sm:$0xe] }
  0xc0   : > { %v5304_v4 = vcombine.low %v7220_v32, %v7231_v42  ;;  %v7248_v12 = vsel %vm6465_vm6, %v5288_v31, %v2846_v19  ;;  %v2848_v22 = vrot.slane %v2846_v19, 4  ;;  %v2856_v46 = vrot.slane %v6840_v45, 5 }
  0xc1   : > { %5865 = vmatmul.mubr.msk.bf16.gmra.mxu0 %vm693_vm2, %v5244_v0  ;;  %v5290_v29 = vrot.slane %v5274_v9, 9  ;;  %v7254_v5 = vsel %vm6465_vm6, %v2841_v59, %v2842_v30  ;;  %v7258_v55 = vsel %vm6465_vm6, %v5289_v61, %v2853_v33  ;;  %v2855_v0 = vrot.slane %v2853_v33, 4  ;;  %v5278_v61 = vld [vmem:[%s6151_s26 + $0x84] sm:$0xe] }
  0xc2   : > { %5868 = vmatprep.mubr.msk.bf16.mxu0 %vm693_vm2, %v5245_v50  ;;  %v2860_v26 = vrot.slane %v6843_v41, 5  ;;  %v5305_v11 = vcombine.low %v7240_v51, %v7254_v5  ;;  %v7266_v45 = vsel %vm6465_vm6, %v2848_v22, %v2849_v57  ;;  %v2863_v50 = vrot.slane %v6892_v34, 5  ;;  %v7518_v34 = vld [vmem:[%s6151_s26 + $0x38] sm:$0x1] }
  0xc3   : > { %v5291_v16 = vrot.slane %v5275_v8, 9  ;;  %v5306_v38 = vcombine.low %v7248_v12, %v7266_v45  ;;  %v7275_v41 = vsel %vm6465_vm6, %v2855_v0, %v2856_v46  ;;  %v2867_v9 = vrot.slane %v6865_v49, 5  ;;  %v5279_v46 = vld [vmem:[%s6151_s26 + $0x90] sm:$0xe] }
  0xc4   : > { %v7279_v30 = vsel %vm6465_vm6, %v5290_v29, %v2860_v26  ;;  %v2862_v31 = vrot.slane %v2860_v26, 4  ;;  %v2870_v19 = vrot.slane %v6906_v10, 5  ;;  %v5292_v57 = vrot.slane %v5276_v48, 9  ;;  %v6061_v29 = vld [vmem:[%s6151_s26 + $0x90] sm:$0xff]   ;;  %v6062_v48 = vld [vmem:[%s6151_s26 + $0x9c] sm:$0xff]  }
  0xc5   : > { %5831 = vmatmul.mubr.msk.bf16.gmra.mxu1 %vm693_vm2, %v6059_v36  ;;  %v2874_v59 = vrot.slane %v6910_v27, 5  ;;  %v2877_v33 = vrot.slane %v6922_v14, 5  ;;  %v5293_v8 = vrot.slane %v5277_v58, 9  ;;  %v7297_v49 = vsel %vm6465_vm6, %v5291_v16, %v2867_v9 }
  0xc6   : > { %5834 = vmatprep.mubr.msk.bf16.mxu1 %vm693_vm2, %v6060_v47  ;;  %v7289_v36 = vsel %vm6465_vm6, %v2862_v31, %v2863_v50  ;;  %v2869_v10 = vrot.slane %v2867_v9, 4  ;;  %v2881_v22 = vrot.slane %v6939_v53, 5  ;;  %v2884_v14 = vrot.slane %v6971_v21, 5  ;;  %v5280_v31 = vld [vmem:[%s6151_s26 + $0x9c] sm:$0xe] }
  0xc7   : > { %v7304_v0 = vsel %vm6465_vm6, %v5292_v57, %v2874_v59  ;;  %v2876_v27 = vrot.slane %v2874_v59, 4  ;;  %v5294_v26 = vrot.slane %v5278_v61, 9  ;;  %v2888_v58 = vrot.slane %v6964_v23, 5  ;;  %v5281_v57 = vld [vmem:[%s6151_s26 + $0xa8] sm:$0xe] }
  0xc8   : > { %v7312_v50 = vsel %vm6465_vm6, %v2869_v10, %v2870_v19  ;;  %v7316_v53 = vsel %vm6465_vm6, %v5293_v8, %v2881_v22  ;;  %v2883_v16 = vrot.slane %v2881_v22, 4  ;;  %v2891_v9 = vrot.slane %v7010_v13, 5  ;;  %v5282_v22 = vld [vmem:[%s6151_s26 + $0xb4] sm:$0xe]  ;;  %v5283_v13 = vld [vmem:[%s6151_s26 + $0xc0] sm:$0xe] }
  0xc9   : > { %5869 = vmatmul.mubr.msk.bf16.gmra.mxu0 %vm693_vm2, %v7190_v7  ;;  %v7326_v7 = vsel %vm6465_vm6, %v2876_v27, %v2877_v33  ;;  %v5295_v19 = vrot.slane %v5279_v46, 9  ;;  %v2890_v59 = vrot.slane %v2888_v58, 4  ;;  %v2895_v33 = vrot.slane %v6985_v35, 5  ;;  %v8861_v27 = vld [vmem:[#allocation7_spill] sm:$0xff] }
  0xca   : > { %5872 = vmatprep.mubr.msk.bf16.mxu0 %vm693_vm2, %v7196_v18  ;;  %v7334_v23 = vsel %vm6465_vm6, %v2883_v16, %v2884_v14  ;;  %v7338_v18 = vsel %vm6465_vm6, %v5294_v26, %v2888_v58  ;;  %v2898_v8 = vrot.slane %v7047_v6, 5  ;;  %v5296_v10 = vrot.slane %v5280_v31, 9  ;;  %v8862_v26 = vld [vmem:[#allocation8_spill] sm:$0xff]  ;;  %v8863_v31 = vld [vmem:[#allocation9_spill] sm:$0xff]  ;;  %v6063_v61 = vld [vmem:[%s6151_s26 + $0xa8] sm:$0xff]  }
  0xcb   : > { %v7349_v46 = vsel %vm6465_vm6, %v2890_v59, %v2891_v9  ;;  %v2902_v14 = vrot.slane %v8861_v27, 5  ;;  %v5297_v16 = vrot.slane %v5281_v57, 9  ;;  %v7357_v6 = vsel %vm6465_vm6, %v5295_v19, %v2895_v33  ;;  %v8864_v27 = vld [vmem:[#allocation10_spill] sm:$0xff] }
  0xcc   : > { %v2897_v58 = vrot.slane %v2895_v33, 4  ;;  %v5298_v57 = vrot.slane %v5282_v22, 9  ;;  %v2819_v1 = vsel %vm6465_vm6, %v5284_v40, %v2818_v2  ;;  %v2822_v63 = vsel %vm6465_vm6, %v7216_v37, %v2821_v17  ;;  %v6088_v17 = vld [vmem:[%s6151_s26 + $0x20] sm:$0x1] }
  0xcd   : > { %5835 = vmatmul.mubr.msk.bf16.gmra.mxu1 %vm693_vm2, %v6061_v29  ;;  %v2905_v29 = vrot.slane %v8862_v26, 5  ;;  %v7363_v9 = vsel %vm6465_vm6, %v5296_v10, %v2902_v14  ;;  %v2904_v59 = vrot.slane %v2902_v14, 4  ;;  %v2912_v26 = vrot.slane %v8864_v27, 5  ;;  %v6064_v10 = vld [vmem:[%s6151_s26 + $0xb4] sm:$0xff]  }
  0xce   : > { %5838 = vmatprep.mubr.msk.bf16.mxu1 %vm693_vm2, %v6062_v48  ;;  %v2909_v48 = vrot.slane %v8863_v31, 5  ;;  %v7369_v35 = vsel %vm6465_vm6, %v2897_v58, %v2898_v8  ;;  %v8865_v31 = vld [vmem:[#allocation11_spill] sm:$0xff]  ;;  %v2919_v8 = vrot.slane %v7118_v39, 5  ;;  %v5299_v58 = vrot.slane %v5283_v13, 9 }
  0xcf   : > { %v2916_v21 = vrot.slane %v8865_v31, 5  ;;  %v7383_v14 = vsel %vm6465_vm6, %v2904_v59, %v2905_v29  ;;  %v2923_v13 = vrot.slane %v7126_v20, 5  ;;  %v6087_v59 = vld [vmem:[%s6151_s26 + $0x1c] sm:$0xf]  ;;  %v5250_v20 = vcombine.low %v2443_v25, %v2453_v62  ;;  %v6070_v31 = vld [vmem:[%s6151_s26 + $0x30] sm:$0xff]  }
  0xd0   : > { %v7373_v19 = vsel %vm6465_vm6, %v5297_v16, %v2909_v48  ;;  %v2911_v33 = vrot.slane %v2909_v48, 4  ;;  %v2825_v27 = vrot.slane %v6087_v59, 5  ;;  %v5302_v54 = vcombine.low %v2819_v1, %v2822_v63 }
  0xd1   : > { %5873 = vmatmul.mubr.msk.bf16.gmra.mxu0 %vm693_vm2, %v7198_v52  ;;  %v7396_v48 = vsel %vm6465_vm6, %v5298_v57, %v2916_v21  ;;  %v2918_v29 = vrot.slane %v2916_v21, 4  ;;  %v7423_v21 = vsel %vm6465_vm6, %v5299_v58, %v2923_v13  ;;  %v5285_v2 = vrot.slane %v5269_v43, 9 }
  0xd2   : > { %5876 = vmatprep.mubr.msk.bf16.mxu0 %vm693_vm2, %v7204_v60  ;;  %v7392_v52 = vsel %vm6465_vm6, %v2911_v33, %v2912_v26  ;;  %v2926_v60 = vrot.slane %v7135_v24, 5  ;;  %v2827_v40 = vrot.slane %v2825_v27, 4  ;;  %v2828_v37 = vrot.slane %v6088_v17, 5  ;;  %v6068_v33 = vld [vmem:[%s6151_s26 + $0x24] sm:$0xff]  }
  0xd3   : > { %v7406_v26 = vsel %vm6465_vm6, %v2918_v29, %v2919_v8  ;;  %v2826_v62 = vsel %vm6465_vm6, %v5285_v2, %v2825_v27  ;;  %v7458_v8 = vld [vmem:[%s6151_s26 + $0x1c] sm:$0xf]  ;;  %v5405_v29 = vld [vmem:[%s6151_s26 + $0x24] sm:$0xf]  ;;  %v6072_v2 = vld [vmem:[%s6151_s26 + $0x48] sm:$0xff]  }
  0xd4   : > { %v2829_v57 = vsel %vm6465_vm6, %v2827_v40, %v2828_v37  ;;  %v3662_v1 = vshrl.u32 %v5405_v29, 16  ;;  %v3665_v63 = vshll.u32 %v5405_v29, 16  ;;  %v5404_v40 = vld [vmem:[%s6151_s26 + $0x20] sm:$0x1] }
  0xd5   : > { %5839 = vmatmul.mubr.msk.bf16.gmra.mxu1 %vm693_vm2, %v6063_v61  ;;  %v2925_v61 = vrot.slane %v2923_v13, 4  ;;  %v5303_v58 = vcombine.low %v2826_v62, %v2829_v57  ;;  %v7463_v13 = vld [vmem:[%s6151_s26 + $0x28] sm:$0xf]  ;;  %v3657_v42 = vshll.u32 %v5404_v40, 16 }
  0xd6   : > { %5842 = vmatprep.mubr.msk.bf16.mxu1 %vm693_vm2, %v6064_v10  ;;  %v5402_v10 = vld [vmem:[%s6151_s26 + $0x18] sm:$0xf]  ;;  %v3675_v43 = vshrl.u32 %v7463_v13, 16 }
  0xd7   : > { %v7440_v25 = vsel %vm6465_vm6, %v2925_v61, %v2926_v60  ;;  %v8866_v60 = vld [vmem:[#allocation5_spill] sm:$0xff]  ;;  %v3638_v59 = vshrl.u32 %v5402_v10, 16  ;;  %v3641_v27 = vshll.u32 %v5402_v10, 16  ;;  %v3651_v61 = vshrl.u32 %v7458_v8, 16  ;;  %v5408_v10 = vld [vmem:[%s6151_s26 + $0x30] sm:$0xf] }
  0xd8   : > { %v3677_v29 = vrot.slane %v3675_v43, 4  ;;  %v4392_v43 = vrot.slane %v7463_v13, 5  ;;  %v3659_v51 = vrot.slane %v3657_v42, 5 }
  0xd9   : > { %5877 = vmatmul.mubr.msk.bf16.gmra.mxu0 %vm693_vm2, %v5250_v20  ;;  %v3647_v20 = vshll.u32 %v7458_v8, 16  ;;  %v3640_v17 = vrot.slane %v3638_v59, 4  ;;  %v3643_v37 = vrot.slane %v3641_v27, 5  ;;  %v3653_v57 = vrot.slane %v3651_v61, 4  ;;  %v7491_v59 = vld [vmem:[%s6151_s26 + $0x34] sm:$0xf] }
  0xda   : > { %5916 = vmatprep.mubr.msk.bf16.mxu0 %vm693_vm2, %v6066_v56  ;;  %v3671_v56 = vshll.u32 %v7463_v13, 16  ;;  %v5485_v61 = vld [vmem:[%s6151_s26 + $0x18] sm:$0xe]  ;;  %v4394_v22 = vrot.slane %v4392_v43, 4 }
  0xdb   : > { %v7480_v62 = vrot.slane %v3647_v20, 5  ;;  %v3644_v27 = vor.u32 %v3643_v37, %v3640_v17  ;;  %v3695_v17 = vshll.u32 %v7491_v59, 16  ;;  %v3699_v37 = vshrl.u32 %v7491_v59, 16  ;;  %v6073_v13 = vld [vmem:[%s6151_s26 + $0x54] sm:$0xff]  }
  0xdc   : > { %v5501_v5 = vrot.slane %v5485_v61, 9 }
  0xdd   : > { %5843 = vmatmul.mubr.msk.bf16.gmra.mxu1 %vm693_vm2, %v6065_v15  ;;  %v8867_v15 = vld [vmem:[#allocation2_spill] sm:$0xff]  ;;  %v3654_v20 = vor.u32 %v3653_v57, %v7480_v62  ;;  %v7520_v42 = vrot.slane %v3695_v17, 5 }
  0xde   : > { %5882 = vmatprep.mubr.msk.bf16.mxu1 %vm693_vm2, %v5302_v54  ;;  %v6071_v54 = vld [vmem:[%s6151_s26 + $0x3c] sm:$0xff]  }
  0xdf   : > { %v7554_v17 = vld [vmem:[%s6151_s26 + $0x40] sm:$0xf] }
  0xe1   : > { %5917 = vmatmul.mubr.msk.bf16.vlgmr.msra.gmra.mxu0 %vm693_vm2, %v6068_v33  ;;  %v3664_v33 = vrot.slane %v3662_v1, 4  ;;  %v3686_v1 = vshrl.u32 %v5408_v10, 16 }
  0xe2   : > { %5983 = vmatpush3.bf16.msra.mxu0 %v8866_v60  ;;  %5920 = vmatprep.mubr.msk.bf16.mxu0 %vm693_vm2, %v6070_v31  ;;  %v3667_v31 = vrot.slane %v3665_v63, 5  ;;  %v5407_v60 = vld [vmem:[%s6151_s26 + $0x2c] sm:$0x1]  ;;  %v3689_v63 = vshll.u32 %v5408_v10, 16  ;;  %v3645_v10 = vrot.slane %v3644_v27, 4 }
  0xe3   : > { %v3688_v3 = vrot.slane %v3686_v1, 4  ;;  %v4395_v12 = vrot.slane %v5407_v60, 5 }
  0xe4   : > { %v3691_v24 = vrot.slane %v3689_v63, 5  ;;  %v3650_v61 = vsel %vm6189_vm3, %v3645_v10, %v7480_v62 }
  0xe5   : > { %5883 = vmatmul.mubr.msk.bf16.vlgmr.msra.gmra.mxu1 %vm693_vm2, %v5303_v58  ;;  %v7483_v58 = vrot.slane %v3671_v56, 5  ;;  %v7486_v32 = vpop.f32.mrf.mxu0  ;;  %v3668_v56 = vor.u32 %v3667_v31, %v3664_v33  ;;  %v4388_v33 = vrot.slane %v5404_v40, 5  ;;  %v6074_v31 = vld [vmem:[%s6151_s26 + $0x60] sm:$0xff]   ;;  %v3701_v40 = vrot.slane %v3699_v37, 4 }
  0xe6   : > { %5949 = vmatpush3.bf16.msra.mxu1 %v8867_v15  ;;  %5886 = vmatprep.mubr.msk.bf16.mxu1 %vm693_vm2, %v5304_v4  ;;  %v4385_v4 = vrot.slane %v7458_v8, 5  ;;  %v7549_v62 = vsel %vm6465_vm6, %v4394_v22, %v4395_v12  ;;  %v3723_v12 = vshrl.u32 %v7554_v17, 16 }
  0xe7   : > { %v3678_v15 = vor.u32 %v3677_v29, %v7483_v58  ;;  %v7512_v57 = vpop.f32.mrf.mxu0  ;;  %v3655_v29 = vrot.slane %v3654_v20, 4  ;;  %v3669_v39 = vrot.slane %v3668_v56, 4  ;;  %v3692_v56 = vor.u32 %v3691_v24, %v3688_v3 }
  0xe8   : > { %v7527_v20 = vsel %vm6465_vm6, %v5501_v5, %v4385_v4  ;;  %v8870_v24 = vcombine.low %v7258_v55, %v7275_v41  ;;  %v3702_v22 = vor.u32 %v3701_v40, %v7520_v42  ;;  %v6075_v55 = vld [vmem:[%s6151_s26 + $0x6c] sm:$0xff]   ;;  %v6076_v41 = vld [vmem:[%s6151_s26 + $0x78] sm:$0xff]  }
  0xe9   : > { %5921 = vmatmul.mubr.msk.bf16.gmra.mxu0 %vm693_vm2, %v6071_v54  ;;  %v3681_v54 = vshll.u32 %v5407_v60, 16  ;;  %v7523_v27 = vpop.f32.mrf.mxu0  ;;  %v5487_v60 = vld [vmem:[%s6151_s26 + $0x30] sm:$0xe]  ;;  %v3660_v1 = vsel %vm6189_vm3, %v3655_v29, %v3659_v51  ;;  %v5414_v51 = vld [vmem:[%s6151_s26 + $0x48] sm:$0xf]  ;;  %v7579_v5 = vrot.slane %v3692_v56, 4 }
  0xea   : > { %5924 = vmatprep.mubr.msk.bf16.mxu0 %vm693_vm2, %v6072_v2  ;;  %v7501_v8 = vpop.f32.mrf.mxu1  ;;  %v5486_v2 = vld [vmem:[%s6151_s26 + $0x24] sm:$0xe]  ;;  %v5503_v3 = vrot.slane %v5487_v60, 9  ;;  %v7590_v29 = vld [vmem:[%s6151_s26 + $0x44] sm:$0x1]  ;;  %v3703_v40 = vrot.slane %v3702_v22, 4 }
  0xeb   : > { %8868 = vst [vmem:[#allocation3_spill] sm:$0xff] %v7501_v8  ;;  %v5502_v16 = vrot.slane %v5486_v2, 9  ;;  %v3683_v47 = vrot.slane %v3681_v54, 5  ;;  %v3705_v54 = vshll.u32 %v7518_v34, 16  ;;  %v5411_v2 = vld [vmem:[%s6151_s26 + $0x3c] sm:$0xf]  ;;  %v7572_v37 = vpop.f32.mrf.mxu0 }
  0xec   : > { %v7515_v45 = vpop.f32.mrf.mxu1  ;;  %v5417_v56 = vld [vmem:[%s6151_s26 + $0x54] sm:$0xf]  ;;  %v7607_v22 = vld [vmem:[%s6151_s26 + $0x58] sm:$0xf] }
  0xed   : > { %5887 = vmatmul.mubr.msk.bf16.gmra.mxu1 %vm693_vm2, %v5305_v11  ;;  %v4387_v11 = vrot.slane %v4385_v4, 4  ;;  %8869 = vst [vmem:[#allocation12_spill] sm:$0xff] %v7515_v45  ;;  %v3674_v4 = vsel %vm6189_vm3, %v3669_v39, %v7483_v58  ;;  %v4399_v58 = vrot.slane %v7491_v59, 5  ;;  %v3710_v59 = vshrl.u32 %v5411_v2, 16 }
  0xee   : > { %5890 = vmatprep.mubr.msk.bf16.mxu1 %vm693_vm2, %v5306_v38  ;;  %v3679_v38 = vrot.slane %v3678_v15, 4  ;;  %v7545_v15 = vsel %vm6465_vm6, %v5502_v16, %v4392_v43  ;;  %v7560_v39 = vpop.f32.mrf.mxu1  ;;  %v8872_v43 = vcombine.low %v7279_v30, %v7289_v36  ;;  %v3719_v30 = vshll.u32 %v7554_v17, 16  ;;  %v7583_v36 = vld [vmem:[%s6151_s26 + $0x4c] sm:$0xf] }
  0xef   : > { %v7538_v63 = vsel %vm6465_vm6, %v4387_v11, %v4388_v33  ;;  %8871 = vst [vmem:[#allocation4_spill] sm:$0xff] %v7560_v39  ;;  %v3713_v11 = vshll.u32 %v5411_v2, 16  ;;  %v3707_v10 = vrot.slane %v3705_v54, 5  ;;  %v7597_v60 = vsel %vm6465_vm6, %v5503_v3, %v4399_v58  ;;  %v6077_v39 = vld [vmem:[%s6151_s26 + $0x84] sm:$0xff]  }
  0xf0   : > { %v3684_v16 = vsel %vm6189_vm3, %v3679_v38, %v3683_v47  ;;  %v7593_v38 = vpop.f32.mrf.mxu1  ;;  %v3734_v54 = vshrl.u32 %v5414_v51, 16  ;;  %v3737_v2 = vshll.u32 %v5414_v51, 16  ;;  %v3712_v3 = vrot.slane %v3710_v59, 4  ;;  %v5488_v51 = vld [vmem:[%s6151_s26 + $0x3c] sm:$0xe] }
  0xf1   : > { %5925 = vmatmul.mubr.msk.bf16.gmra.mxu0 %vm693_vm2, %v6073_v13  ;;  %v7574_v13 = vcombine.low %v3650_v61, %v3660_v1  ;;  %v7585_v33 = vcombine.low %v3674_v4, %v3684_v16  ;;  %8873 = vst [vmem:[#allocation6_spill] sm:$0xff] %v7593_v38  ;;  %v4401_v61 = vrot.slane %v4399_v58, 4  ;;  %v4402_v1 = vrot.slane %v7518_v34, 5 }
  0xf2   : > { %5928 = vmatprep.mubr.msk.bf16.mxu0 %vm693_vm2, %v6074_v31  ;;  %v3747_v16 = vshrl.u32 %v7583_v36, 16  ;;  %v3698_v34 = vsel %vm6189_vm3, %v7579_v5, %v7520_v42  ;;  %v3715_v58 = vrot.slane %v3713_v11, 5  ;;  %v4406_v31 = vrot.slane %v7554_v17, 5 }
  0xf3   : > { %v3758_v47 = vshrl.u32 %v5417_v56, 16  ;;  %v3761_v38 = vshll.u32 %v5417_v56, 16  ;;  %v7627_v42 = vsel %vm6465_vm6, %v4401_v61, %v4402_v1  ;;  %v3729_v5 = vshll.u32 %v7590_v29, 16  ;;  %v6078_v56 = vld [vmem:[%s6151_s26 + $0x90] sm:$0xff]  }
  0xf4   : > { %v3767_v59 = vshll.u32 %v7607_v22, 16  ;;  %v3771_v17 = vshrl.u32 %v7607_v22, 16  ;;  %v8877_v11 = vcombine.low %v7304_v0, %v7326_v7  ;;  %v3749_v1 = vrot.slane %v3747_v16, 4 }
  0xf5   : > { %5891 = vmatmul.mubr.msk.bf16.gmra.mxu1 %vm693_vm2, %v8870_v24  ;;  %v3743_v24 = vshll.u32 %v7583_v36, 16  ;;  %v5504_v8 = vrot.slane %v5488_v51, 9  ;;  %v4409_v0 = vrot.slane %v7590_v29, 5  ;;  %v7665_v51 = vld [vmem:[%s6151_s26 + $0x5c] sm:$0x1] }
  0xf6   : > { %5894 = vmatprep.mubr.msk.bf16.mxu1 %vm693_vm2, %v8872_v43  ;;  %v7602_v4 = vpop.f32.mrf.mxu0  ;;  %v7614_v43 = vrot.slane %v3719_v30, 5  ;;  %v3736_v30 = vrot.slane %v3734_v54, 4  ;;  %v5420_v54 = vld [vmem:[%s6151_s26 + $0x60] sm:$0xf] }
  0xf7   : > { %8874 = vst [vmem:[#allocation7_spill] sm:$0xff] %v7602_v4  ;;  %v7641_v61 = vrot.slane %v3743_v24, 5  ;;  %v3763_v4 = vrot.slane %v3761_v38, 5  ;;  %v3785_v24 = vshll.u32 %v5420_v54, 16 }
  0xf9   : > { %5929 = vmatmul.mubr.msk.bf16.gmra.mxu0 %vm693_vm2, %v6075_v55  ;;  %v3725_v55 = vrot.slane %v3723_v12, 4  ;;  %v3739_v12 = vrot.slane %v3737_v2, 5  ;;  %v3750_v38 = vor.u32 %v3749_v1, %v7641_v61  ;;  %v7681_v1 = vld [vmem:[%s6151_s26 + $0x64] sm:$0xf] }
  0xfa   : > { %5932 = vmatprep.mubr.msk.bf16.mxu0 %vm693_vm2, %v6076_v41  ;;  %v8875_v41 = vcombine.low %v7297_v49, %v7312_v50  ;;  %v7623_v45 = vpop.f32.mrf.mxu1  ;;  %v7636_v49 = vpop.f32.mrf.mxu0  ;;  %v7639_v50 = vld [vmem:[%s6151_s26 + $0x50] sm:$0x1] }
  0xfb   : > { %8876 = vst [vmem:[#allocation8_spill] sm:$0xff] %v7623_v45  ;;  %8878 = vst [vmem:[#allocation9_spill] sm:$0xff] %v7636_v49  ;;  %v3716_v45 = vor.u32 %v3715_v58, %v3712_v3  ;;  %v3726_v7 = vor.u32 %v3725_v55, %v7614_v43  ;;  %v3760_v49 = vrot.slane %v3758_v47, 4  ;;  %v3753_v16 = vshll.u32 %v7639_v50, 16  ;;  %v5489_v58 = vld [vmem:[%s6151_s26 + $0x48] sm:$0xe] }
  0xfc   : > { %v7649_v2 = vpop.f32.mrf.mxu1  ;;  %v7657_v29 = vpop.f32.mrf.mxu0  ;;  %v3740_v47 = vor.u32 %v3739_v12, %v3736_v30  ;;  %v4413_v55 = vrot.slane %v7583_v36, 5  ;;  %v7674_v30 = vsel %vm6465_vm6, %v5504_v8, %v4406_v31 }
  0xfd   : > { %5895 = vmatmul.mubr.msk.bf16.gmra.mxu1 %vm693_vm2, %v8875_v41  ;;  %v3708_v41 = vsel %vm6189_vm3, %v3703_v40, %v3707_v10  ;;  %8879 = vst [vmem:[#allocation10_spill] sm:$0xff] %v7649_v2  ;;  %v7654_v10 = vrot.slane %v3767_v59, 5  ;;  %v3773_v40 = vrot.slane %v3771_v17, 4  ;;  %v7668_v59 = vrot.slane %v3716_v45, 4 }
  0xfe   : > { %5898 = vmatprep.mubr.msk.bf16.mxu1 %vm693_vm2, %v8877_v11  ;;  %v4408_v11 = vrot.slane %v4406_v31, 4  ;;  %v7659_v3 = vcombine.low %v3698_v34, %v3708_v41  ;;  %v7670_v17 = vrot.slane %v3729_v5, 5  ;;  %v3727_v34 = vrot.slane %v3726_v7, 4  ;;  %v7687_v5 = vpop.f32.mrf.mxu1  ;;  %v6080_v7 = vld [vmem:[%s6151_s26 + $0xa8] sm:$0xff]  }
  0xff   : > { %v3764_v12 = vor.u32 %v3763_v4, %v3760_v49  ;;  %v8880_v45 = vcombine.low %v7316_v53, %v7334_v23  ;;  %8881 = vst [vmem:[#allocation11_spill] sm:$0xff] %v7687_v5  ;;  %v5505_v41 = vrot.slane %v5489_v58, 9  ;;  %v3774_v8 = vor.u32 %v3773_v40, %v7654_v10  ;;  %v6079_v4 = vld [vmem:[%s6151_s26 + $0x9c] sm:$0xff]   ;;  %v7696_v49 = vpop.f32.mrf.mxu0 }
 0x100   : > { %v7678_v36 = vsel %vm6465_vm6, %v4408_v11, %v4409_v0  ;;  %v3777_v31 = vshll.u32 %v7665_v51, 16  ;;  %v8882_v0 = vcombine.low %v7338_v18, %v7349_v46  ;;  %8883 = vst [vmem:[#allocation5_spill] sm:$0xff] %v7696_v49  ;;  %v3741_v53 = vrot.slane %v3740_v47, 4 }
 0x101   : > { %5933 = vmatmul.mubr.msk.bf16.gmra.mxu0 %vm693_vm2, %v6077_v39  ;;  %v3782_v39 = vshrl.u32 %v5420_v54, 16  ;;  %v3751_v23 = vrot.slane %v3750_v38, 4  ;;  %v4415_v11 = vrot.slane %v4413_v55, 4  ;;  %v4416_v54 = vrot.slane %v7639_v50, 5  ;;  %v7711_v38 = vpop.f32.mrf.mxu1 }
 0x102   : > { %5936 = vmatprep.mubr.msk.bf16.mxu0 %vm693_vm2, %v6078_v56  ;;  %v3755_v56 = vrot.slane %v3753_v16, 5  ;;  %v5490_v16 = vld [vmem:[%s6151_s26 + $0x54] sm:$0xe]  ;;  %v3787_v40 = vrot.slane %v3785_v24, 5  ;;  %v3795_v5 = vshrl.u32 %v7681_v1, 16  ;;  %v3722_v18 = vsel %vm6189_vm3, %v7668_v59, %v7614_v43  ;;  %8884 = vst [vmem:[#allocation2_spill] sm:$0xff] %v7711_v38 }
 0x103   : > { %v3784_v58 = vrot.slane %v3782_v39, 4  ;;  %v3732_v46 = vsel %vm6189_vm3, %v3727_v34, %v7670_v17  ;;  %v3765_v47 = vrot.slane %v3764_v12, 4  ;;  %v4420_v50 = vrot.slane %v7607_v22, 5  ;;  %v5423_v59 = vld [vmem:[%s6151_s26 + $0x6c] sm:$0xf] }
 0x104   : > { %v7717_v39 = vsel %vm6465_vm6, %v5505_v41, %v4413_v55  ;;  %v3779_v43 = vrot.slane %v3777_v31, 5  ;;  %v3746_v22 = vsel %vm6189_vm3, %v3741_v53, %v7641_v61  ;;  %v3756_v34 = vsel %vm6189_vm3, %v3751_v23, %v3755_v56  ;;  %v7733_v41 = vld [vmem:[%s6151_s26 + $0x68] sm:$0x1]  ;;  %v7741_v53 = vld [vmem:[%s6151_s26 + $0x70] sm:$0xf] }
 0x105   : > { %5899 = vmatmul.mubr.msk.bf16.gmra.mxu1 %vm693_vm2, %v8880_v45  ;;  %v3791_v45 = vshll.u32 %v7681_v1, 16  ;;  %v7730_v12 = vsel %vm6465_vm6, %v4415_v11, %v4416_v54  ;;  %v5506_v55 = vrot.slane %v5490_v16, 9  ;;  %v4423_v31 = vrot.slane %v7665_v51, 5 }
 0x106   : > { %5902 = vmatprep.mubr.msk.bf16.mxu1 %vm693_vm2, %v8882_v0  ;;  %v3775_v0 = vrot.slane %v3774_v8, 4  ;;  %v5491_v8 = vld [vmem:[%s6151_s26 + $0x60] sm:$0xe]  ;;  %v3797_v61 = vrot.slane %v3795_v5, 4  ;;  %v3770_v56 = vsel %vm6189_vm3, %v3765_v47, %v7654_v10  ;;  %v4422_v23 = vrot.slane %v4420_v50, 4 }
 0x107   : > { %v7721_v17 = vpop.f32.mrf.mxu0  ;;  %v7738_v24 = vrot.slane %v3791_v45, 5  ;;  %v3806_v11 = vshrl.u32 %v5423_v59, 16  ;;  %v3809_v54 = vshll.u32 %v5423_v59, 16  ;;  %v3801_v16 = vshll.u32 %v7733_v41, 16  ;;  %v6082_v59 = vld [vmem:[%s6151_s26 + $0xc0] sm:$0xff]  }
 0x108   : > { %8885 = vst [vmem:[#allocation13_spill] sm:$0xff] %v7721_v17  ;;  %v3780_v5 = vsel %vm6189_vm3, %v3775_v0, %v3779_v43  ;;  %v4427_v10 = vrot.slane %v7681_v1, 5  ;;  %v7763_v45 = vcombine.low %v3722_v18, %v3732_v46  ;;  %v7765_v47 = vcombine.low %v3746_v22, %v3756_v34  ;;  %v5426_v46 = vld [vmem:[%s6151_s26 + $0x78] sm:$0xf]  ;;  %v7790_v1 = vld [vmem:[%s6151_s26 + $0x7c] sm:$0xf] }
 0x109   : > { %5937 = vmatmul.mubr.msk.bf16.gmra.mxu0 %vm693_vm2, %v6079_v4  ;;  %v3788_v4 = vor.u32 %v3787_v40, %v3784_v58  ;;  %v5507_v58 = vrot.slane %v5491_v8, 9  ;;  %v8888_v40 = vcombine.low %v7363_v9, %v7383_v14  ;;  %v3815_v0 = vshll.u32 %v7741_v53, 16  ;;  %v7787_v8 = vld [vmem:[%s6151_s26 + $0x74] sm:$0x1] }
 0x10a   : > { %5940 = vmatprep.mubr.msk.bf16.mxu0 %vm693_vm2, %v6080_v7  ;;  %v8886_v7 = vcombine.low %v7357_v6, %v7369_v35  ;;  %v6081_v35 = vld [vmem:[%s6151_s26 + $0xb4] sm:$0xff]   ;;  %v7761_v6 = vpop.f32.mrf.mxu0  ;;  %v3819_v43 = vshrl.u32 %v7741_v53, 16  ;;  %v7774_v9 = vsel %vm6465_vm6, %v5506_v55, %v4420_v50  ;;  %v3798_v18 = vor.u32 %v3797_v61, %v7738_v24 }
 0x10b   : > { %8889 = vst [vmem:[#allocation15_spill] sm:$0xff] %v7761_v6  ;;  %v7776_v14 = vrot.slane %v3788_v4, 4  ;;  %v7780_v22 = vcombine.low %v3770_v56, %v3780_v5  ;;  %v7784_v34 = vsel %vm6465_vm6, %v4422_v23, %v4423_v31  ;;  %v7794_v55 = vrot.slane %v3801_v16, 5  ;;  %v5429_v56 = vld [vmem:[%s6151_s26 + $0x84] sm:$0xf] }
 0x10c   : > { %v7750_v51 = vpop.f32.mrf.mxu1  ;;  %v7798_v4 = vsel %vm6465_vm6, %v5507_v58, %v4427_v10  ;;  %v4429_v61 = vrot.slane %v4427_v10, 4  ;;  %v4430_v31 = vrot.slane %v7733_v41, 5  ;;  %v7803_v23 = vpop.f32.mrf.mxu0  ;;  %v3830_v5 = vshrl.u32 %v5426_v46, 16  ;;  %v5492_v58 = vld [vmem:[%s6151_s26 + $0x6c] sm:$0xe] }
 0x10d   : > { %5903 = vmatmul.mubr.msk.bf16.gmra.mxu1 %vm693_vm2, %v8886_v7  ;;  %8887 = vst [vmem:[#allocation14_spill] sm:$0xff] %v7750_v51  ;;  %8890 = vst [vmem:[#allocation16_spill] sm:$0xff] %v7780_v22  ;;  %v3808_v7 = vrot.slane %v3806_v11, 4  ;;  %v7805_v11 = vrot.slane %v3815_v0, 5  ;;  %v7808_v51 = vld [vmem:[%s6151_s26 + $0x88] sm:$0xf] }
 0x10e   : > { %5906 = vmatprep.mubr.msk.bf16.mxu1 %vm693_vm2, %v8888_v40  ;;  %v3811_v40 = vrot.slane %v3809_v54, 5  ;;  %v7792_v50 = vpop.f32.mrf.mxu1  ;;  %8892 = vst [vmem:[#allocation18_spill] sm:$0xff] %v7803_v23  ;;  %v3821_v54 = vrot.slane %v3819_v43, 4  ;;  %v7815_v41 = vrot.slane %v3798_v18, 4  ;;  %v3839_v10 = vshll.u32 %v7790_v1, 16 }
 0x10f   : > { %8891 = vst [vmem:[#allocation17_spill] sm:$0xff] %v7792_v50  ;;  %v3833_v50 = vshll.u32 %v5426_v46, 16  ;;  %v4434_v43 = vrot.slane %v7741_v53, 5  ;;  %v3854_v46 = vshrl.u32 %v5429_v56, 16  ;;  %v3857_v38 = vshll.u32 %v5429_v56, 16 }
 0x110   : > { %v3812_v0 = vor.u32 %v3811_v40, %v3808_v7  ;;  %v7825_v16 = vpop.f32.mrf.mxu1  ;;  %v7829_v18 = vsel %vm6465_vm6, %v4429_v61, %v4430_v31  ;;  %v3825_v2 = vshll.u32 %v7787_v8, 16  ;;  %v3863_v7 = vshll.u32 %v7808_v51, 16  ;;  %v7834_v40 = vpop.f32.mrf.mxu0  ;;  %v5428_v61 = vld [vmem:[%s6151_s26 + $0x80] sm:$0x1]  ;;  %v5493_v22 = vld [vmem:[%s6151_s26 + $0x78] sm:$0xe] }
 0x111   : > { %5941 = vmatmul.mubr.msk.bf16.gmra.mxu0 %vm693_vm2, %v6081_v35  ;;  %v3843_v35 = vshrl.u32 %v7790_v1, 16  ;;  %8894 = vst [vmem:[#allocation19_spill] sm:$0xff] %v7825_v16  ;;  %v3867_v53 = vshrl.u32 %v7808_v51, 16  ;;  %8895 = vst [vmem:[#allocation20_spill] sm:$0xff] %v7834_v40  ;;  %v3822_v56 = vor.u32 %v3821_v54, %v7805_v11  ;;  %v3832_v31 = vrot.slane %v3830_v5, 4 }
 0x112   : > { %5944 = vmatprep.mubr.msk.bf16.mxu0 %vm693_vm2, %v6082_v59  ;;  %v8893_v59 = vcombine.low %v7373_v19, %v7392_v52  ;;  %v8896_v19 = vcombine.low %v7396_v48, %v7406_v26  ;;  %v6083_v52 = vld [vmem:[%s6151_s26 + $0xcc] sm:$0xff]   ;;  %v3835_v16 = vrot.slane %v3833_v50, 5  ;;  %v4437_v23 = vrot.slane %v7787_v8, 5  ;;  %v7850_v54 = vpop.f32.mrf.mxu1 }
 0x113   : > { %v7844_v6 = vrot.slane %v3839_v10, 5  ;;  %v3845_v17 = vrot.slane %v3843_v35, 4  ;;  %v4441_v40 = vrot.slane %v7790_v1, 5  ;;  %v7848_v49 = vrot.slane %v3812_v0, 4  ;;  %8897 = vst [vmem:[#allocation21_spill] sm:$0xff] %v7850_v54 }
 0x114   : > { %v4436_v48 = vrot.slane %v4434_v43, 4  ;;  %v3856_v26 = vrot.slane %v3854_v46, 4  ;;  %v3804_v50 = vsel %vm6189_vm3, %v7815_v41, %v7794_v55  ;;  %v7856_v8 = vrot.slane %v3825_v2, 5  ;;  %v7859_v5 = vld [vmem:[%s6151_s26 + $0x8c] sm:$0x1] }
 0x115   : > { %5907 = vmatmul.mubr.msk.bf16.gmra.mxu1 %vm693_vm2, %v8893_v59  ;;  %v5508_v59 = vrot.slane %v5492_v58, 9  ;;  %v7861_v58 = vrot.slane %v3863_v7, 5  ;;  %v3869_v1 = vrot.slane %v3867_v53, 4  ;;  %v3836_v35 = vor.u32 %v3835_v16, %v3832_v31  ;;  %v5432_v54 = vld [vmem:[%s6151_s26 + $0x90] sm:$0xf] }
 0x116   : > { %5910 = vmatprep.mubr.msk.bf16.mxu1 %vm693_vm2, %v8896_v19  ;;  %v3859_v19 = vrot.slane %v3857_v38, 5  ;;  %v3823_v38 = vrot.slane %v3822_v56, 4  ;;  %v3849_v0 = vshll.u32 %v5428_v61, 16  ;;  %v5509_v46 = vrot.slane %v5493_v22, 9 }
 0x117   : > { %v8898_v2 = vcombine.low %v7527_v20, %v7538_v63  ;;  %v7873_v55 = vsel %vm6465_vm6, %v5508_v59, %v4434_v43  ;;  %v3846_v41 = vor.u32 %v3845_v17, %v7844_v6  ;;  %v4443_v7 = vrot.slane %v4441_v40, 4  ;;  %v7888_v43 = vld [vmem:[%s6151_s26 + $0x94] sm:$0xf] }
 0x118   : > { %v4444_v53 = vrot.slane %v5428_v61, 5  ;;  %v3818_v22 = vsel %vm6189_vm3, %v7848_v49, %v7805_v11  ;;  %v7884_v20 = vsel %vm6465_vm6, %v4436_v48, %v4437_v23  ;;  %v3860_v63 = vor.u32 %v3859_v19, %v3856_v26  ;;  %v5494_v61 = vld [vmem:[%s6151_s26 + $0x84] sm:$0xe] }
 0x119   : > { %v7863_v10 = vpop.f32.mrf.mxu0  ;;  %5945 = vmatmul.mubr.msk.bf16.gmra.mxu0 %vm693_vm2, %v6083_v52  ;;  %v3873_v16 = vshll.u32 %v7859_v5, 16  ;;  %v8899_v17 = vcombine.low %v7423_v21, %v7440_v25  ;;  %v3870_v59 = vor.u32 %v3869_v1, %v7861_v58  ;;  %v4448_v49 = vrot.slane %v7808_v51, 5 }
 0x11a   : > { %5984 = vmatprep.mubr.msk.bf16.mxu0 %vm693_vm2, %v8898_v2  ;;  %v3878_v11 = vshrl.u32 %v5432_v54, 16  ;;  %v3881_v23 = vshll.u32 %v5432_v54, 16  ;;  %v3828_v48 = vsel %vm6189_vm3, %v3823_v38, %v7856_v8  ;;  %v3837_v26 = vrot.slane %v3836_v35, 4  ;;  %v8934_v28 = vld [vmem:[#allocation21_spill] sm:$0xff] }
 0x11b   : > { %v7876_v52 = vpop.f32.mrf.mxu0  ;;  %v3851_v21 = vrot.slane %v3849_v0, 5  ;;  %v7908_v25 = vsel %vm6465_vm6, %v5509_v46, %v4441_v40  ;;  %v3847_v51 = vrot.slane %v3846_v41, 4  ;;  %v7914_v54 = vsel %vm6465_vm6, %v4443_v7, %v4444_v53 }
 0x11c   : > { %v3887_v1 = vshll.u32 %v7888_v43, 16  ;;  %v3861_v8 = vrot.slane %v3860_v63, 4  ;;  %v3875_v38 = vrot.slane %v3873_v16, 5  ;;  %v5510_v35 = vrot.slane %v5494_v61, 9 }
 0x11d   : > { %v7890_v56 = vpop.f32.mrf.mxu1  ;;  %5911 = vmatmul.mubr.msk.bf16.gmra.mxu1 %vm693_vm2, %v8899_v17  ;;  %v7899_v31 = vpop.f32.mrf.mxu0  ;;  %v4451_v40 = vrot.slane %v7859_v5, 5  ;;  %v3871_v46 = vrot.slane %v3870_v59, 4  ;;  %v4450_v41 = vrot.slane %v4448_v49, 4  ;;  %v3880_v17 = vrot.slane %v3878_v11, 4 }
 0x11e   : > { %5950 = vmatprep.mubr.msk.bf16.mxu1 %vm693_vm2, %v7574_v13  ;;  %v3891_v13 = vshrl.u32 %v7888_v43, 16  ;;  %v3883_v7 = vrot.slane %v3881_v23, 5  ;;  %v5524_v63 = vcombine.low %v7774_v9, %v7784_v34  ;;  %v8902_v5 = vsel %vm6189_vm3, %v7776_v14, %v7738_v24 }
 0x11f   : > { %v7910_v19 = vpop.f32.mrf.mxu1  ;;  %v7918_v2 = vpop.f32.mrf.mxu0  ;;  %v7934_v16 = vcombine.low %v8902_v5, %v3804_v50  ;;  %v8903_v11 = vcombine.low %v7597_v60, %v7627_v42  ;;  %v3842_v24 = vsel %vm6189_vm3, %v3837_v26, %v7844_v6  ;;  %v3852_v14 = vsel %vm6189_vm3, %v3847_v51, %v3851_v21  ;;  %v7969_v26 = vld [vmem:[%s6151_s26 + $0xa0] sm:$0xf]  ;;  %v5438_v60 = vld [vmem:[%s6151_s26 + $0xa8] sm:$0xf] }
 0x120   : > { %8900 = vst [vmem:[#allocation22_spill] sm:$0xff] %v7910_v19  ;;  %v8901_v19 = vcombine.low %v7545_v15, %v7549_v62  ;;  %v7941_v15 = vld [vmem:[%s6151_s26 + $0x98] sm:$0x1]  ;;  %v7954_v50 = vrot.slane %v3887_v1, 5  ;;  %v3893_v23 = vrot.slane %v3891_v13, 4  ;;  %v7957_v61 = vcombine.low %v3818_v22, %v3828_v48 }
 0x121   : > { %v7921_v0 = vpop.f32.mrf.mxu1  ;;  %v5782_v53 = vpop.f32.mrf.mxu0  ;;  %v3866_v42 = vsel %vm6189_vm3, %v3861_v8, %v7861_v58  ;;  %v7966_v6 = vsel %vm6465_vm6, %v5510_v35, %v4448_v49  ;;  %v3876_v22 = vsel %vm6189_vm3, %v3871_v46, %v3875_v38  ;;  %v7977_v48 = vsel %vm6465_vm6, %v4450_v41, %v4451_v40  ;;  %v5495_v8 = vld [vmem:[%s6151_s26 + $0x90] sm:$0xe] }
 0x122   : > { %5985 = vmatmul.mubr.msk.bf16.vlgmr.msra.gmra.mxu0 %vm693_vm2, %v8901_v19  ;;  %v5435_v19 = vld [vmem:[%s6151_s26 + $0x9c] sm:$0xf]  ;;  %v3884_v51 = vor.u32 %v3883_v7, %v3880_v17  ;;  %v3897_v58 = vshll.u32 %v7941_v15, 16  ;;  %v7983_v13 = vcombine.low %v3842_v24, %v3852_v14  ;;  %v3894_v46 = vor.u32 %v3893_v23, %v7954_v50 }
 0x123   : > { %v7943_v62 = vpop.f32.mrf.mxu1  ;;  %5988 = vmatprep.mubr.msk.bf16.mxu0 %vm693_vm2, %v8903_v11  ;;  %v1500_v5 = vpop.f32.mrf.mxu0  ;;  %v3905_v35 = vshll.u32 %v5435_v19, 16  ;;  %v4455_v40 = vrot.slane %v7888_v43, 5  ;;  %v3911_v41 = vshll.u32 %v7969_v26, 16  ;;  %v3915_v17 = vshrl.u32 %v7969_v26, 16 }
 0x124   : > { %v7993_v11 = vcombine.low %v3866_v42, %v3876_v22  ;;  %v3899_v23 = vrot.slane %v3897_v58, 5  ;;  %v5511_v43 = vrot.slane %v5495_v8, 9  ;;  %v8904_v42 = vcombine.low %v7674_v30, %v7678_v36 }
 0x125   : > { %v5748_v21 = vpop.f32.mrf.mxu1  ;;  %5951 = vmatmul.mubr.msk.bf16.vlgmr.msra.gmra.mxu1 %vm693_vm2, %v7585_v33  ;;  %v5783_v49 = vpop.f32.mrf.mxu0  ;;  %v3902_v33 = vshrl.u32 %v5435_v19, 16  ;;  %v7997_v19 = vrot.slane %v3884_v51, 4  ;;  %v8009_v51 = vld [vmem:[%s6151_s26 + $0xac] sm:$0xf]  ;;  %v4457_v8 = vrot.slane %v4455_v40, 4 }
 0x126   : > { %v1080_v1 = vadd.f32 %v5748_v21, %v7486_v32  ;;  %5954 = vmatprep.mubr.msk.bf16.mxu1 %vm693_vm2, %v7659_v3  ;;  %v4458_v21 = vrot.slane %v7941_v15, 5  ;;  %v8905_v15 = vcombine.low %v7717_v39, %v7730_v12  ;;  %v8031_v12 = vsel %vm6465_vm6, %v5511_v43, %v4455_v40 }
 0x127   : > { %v1071_v38 = vpop.f32.mrf.mxu1  ;;  %v1503_v3 = vpop.f32.mrf.mxu0  ;;  %v3904_v22 = vrot.slane %v3902_v33, 4  ;;  %v8021_v33 = vld [vmem:[%s6151_s26 + $0xa4] sm:$0x1]  ;;  %v3890_v39 = vsel %vm6189_vm3, %v7997_v19, %v7954_v50  ;;  %v4462_v50 = vrot.slane %v7969_v26, 5 }
 0x128   : > { %v7990_v32 = vadd.f32 %v5782_v53, %v1080_v1  ;;  %v1072_v7 = vadd.f32 %v1071_v38, %v7512_v57  ;;  %v3907_v1 = vrot.slane %v3905_v35, 5  ;;  %v8015_v38 = vrot.slane %v3911_v41, 5 }
 0x129   : > { %v5749_v14 = vpop.f32.mrf.mxu1  ;;  %v5786_v53 = vpop.f32.mrf.mxu0  ;;  %v3926_v35 = vshrl.u32 %v5438_v60, 16  ;;  %v8046_v43 = vsel %vm6465_vm6, %v4457_v8, %v4458_v21 }
 0x12a   : > { %v8001_v59 = vadd.f32 %v1500_v5, %v1072_v7  ;;  %v1083_v57 = vadd.f32 %v5749_v14, %v7523_v27  ;;  %5989 = vmatmul.mubr.msk.bf16.gmra.mxu0 %vm693_vm2, %v8904_v42  ;;  %v3895_v5 = vrot.slane %v3894_v46, 4  ;;  %v3917_v27 = vrot.slane %v3915_v17, 4 }
 0x12b   : > { %v1074_v58 = vpop.f32.mrf.mxu1  ;;  %5992 = vmatprep.mubr.msk.bf16.mxu0 %vm693_vm2, %v8905_v15  ;;  %v1516_v36 = vpop.f32.mrf.mxu0  ;;  %v3929_v14 = vshll.u32 %v5438_v60, 16  ;;  %v8906_v60 = vld [vmem:[#allocation7_spill] sm:$0xff]  ;;  %v3928_v26 = vrot.slane %v3926_v35, 4 }
 0x12c   : > { %v8017_v7 = vadd.f32 %v5783_v49, %v1083_v57  ;;  %v1075_v30 = vadd.f32 %v1074_v58, %v7572_v37  ;;  %v3935_v37 = vshll.u32 %v8009_v51, 16  ;;  %v3939_v49 = vshrl.u32 %v8009_v51, 16  ;;  %v5496_v57 = vld [vmem:[%s6151_s26 + $0x9c] sm:$0xe] }
 0x12d   : > { %v5752_v42 = vpop.f32.mrf.mxu1  ;;  %5955 = vmatmul.mubr.msk.bf16.gmra.mxu1 %vm693_vm2, %v7763_v45  ;;  %v5787_v17 = vpop.f32.mrf.mxu0  ;;  %v3908_v45 = vor.u32 %v3907_v1, %v3904_v22  ;;  %v3900_v40 = vsel %vm6189_vm3, %v3895_v5, %v3899_v23  ;;  %v3921_v58 = vshll.u32 %v8021_v33, 16  ;;  %v3931_v1 = vrot.slane %v3929_v14, 5 }
 0x12e   : > { %v8035_v46 = vadd.f32 %v1503_v3, %v1075_v30  ;;  %v1096_v41 = vadd.f32 %v5752_v42, %v8906_v60  ;;  %5958 = vmatprep.mubr.msk.bf16.mxu1 %vm693_vm2, %v7765_v47  ;;  %v3918_v3 = vor.u32 %v3917_v27, %v8015_v38  ;;  %v8907_v30 = vld [vmem:[#allocation9_spill] sm:$0xff]  ;;  %v5512_v60 = vrot.slane %v5496_v57, 9 }
 0x12f   : > { %v1087_v19 = vpop.f32.mrf.mxu1  ;;  %v1519_v22 = vpop.f32.mrf.mxu0  ;;  %v4465_v23 = vrot.slane %v8021_v33, 5  ;;  %v8054_v5 = vrot.slane %v3935_v37, 5  ;;  %v3941_v21 = vrot.slane %v3939_v49, 4  ;;  %v8063_v35 = vrot.slane %v3908_v45, 4  ;;  %v5497_v33 = vld [vmem:[%s6151_s26 + $0xa8] sm:$0xe] }
 0x130   : > { %v8050_v15 = vadd.f32 %v5786_v53, %v1096_v41  ;;  %v1088_v47 = vadd.f32 %v1087_v19, %v8907_v30  ;;  %v4464_v14 = vrot.slane %v4462_v50, 4  ;;  %v8066_v41 = vld [vmem:[%s6151_s26 + $0xb0] sm:$0x1]  ;;  %v8077_v34 = vrot.slane %v3918_v3, 4  ;;  %v8909_v45 = vld [vmem:[#allocation5_spill] sm:$0xff] }
 0x131   : > { %v5753_v42 = vpop.f32.mrf.mxu1  ;;  %v5790_v53 = vpop.f32.mrf.mxu0  ;;  %v3932_v30 = vor.u32 %v3931_v1, %v3928_v26  ;;  %v3942_v3 = vor.u32 %v3941_v21, %v8054_v5  ;;  %v8911_v26 = vld [vmem:[#allocation13_spill] sm:$0xff] }
 0x132   : > { %v8056_v8 = vadd.f32 %v1516_v36, %v1088_v47  ;;  %v1099_v27 = vadd.f32 %v5753_v42, %v7657_v29  ;;  %5993 = vmatmul.mubr.msk.bf16.gmra.mxu0 %vm693_vm2, %v5524_v63  ;;  %v8908_v36 = vcombine.low %v7798_v4, %v7829_v18  ;;  %v8073_v29 = vcombine.low %v3890_v39, %v3900_v40  ;;  %v5441_v4 = vld [vmem:[%s6151_s26 + $0xb4] sm:$0xf] }
 0x133   : > { %v1090_v37 = vpop.f32.mrf.mxu1  ;;  %v8079_v63 = vrot.slane %v3921_v58, 5  ;;  %v1532_v19 = vpop.f32.mrf.mxu0  ;;  %v4469_v47 = vrot.slane %v8009_v51, 5  ;;  %v8910_v39 = vld [vmem:[#allocation16_spill] sm:$0xff]  ;;  %v8090_v40 = vsel %vm6465_vm6, %v5512_v60, %v4462_v50  ;;  %v5513_v58 = vrot.slane %v5497_v33, 9  ;;  %v8113_v33 = vld [vmem:[%s6151_s26 + $0xb8] sm:$0xf] }
 0x134   : > { %5996 = vmatprep.mubr.msk.bf16.mxu0 %vm693_vm2, %v8908_v36  ;;  %v8081_v49 = vadd.f32 %v5787_v17, %v1099_v27  ;;  %v1091_v57 = vadd.f32 %v1090_v37, %v8909_v45  ;;  %v3945_v17 = vshll.u32 %v8066_v41, 16  ;;  %v3914_v50 = vsel %vm6189_vm3, %v8063_v35, %v8015_v38  ;;  %v8912_v38 = vld [vmem:[#allocation15_spill] sm:$0xff] }
 0x135   : > { %v5756_v18 = vpop.f32.mrf.mxu1  ;;  %5959 = vmatmul.mubr.msk.bf16.gmra.mxu1 %vm693_vm2, %v8910_v39  ;;  %v5791_v51 = vpop.f32.mrf.mxu0  ;;  %v8105_v60 = vsel %vm6465_vm6, %v4464_v14, %v4465_v23  ;;  %v4472_v27 = vrot.slane %v8066_v41, 5  ;;  %v3953_v37 = vshll.u32 %v5441_v4, 16  ;;  %v3933_v23 = vrot.slane %v3932_v30, 4 }
 0x136   : > { %v8094_v42 = vadd.f32 %v1519_v22, %v1091_v57  ;;  %v1112_v1 = vadd.f32 %v5756_v18, %v8911_v26  ;;  %5962 = vmatprep.mubr.msk.bf16.mxu1 %vm693_vm2, %v7934_v16  ;;  %v3924_v22 = vsel %vm6189_vm3, %v8077_v34, %v8079_v63  ;;  %v3950_v16 = vshrl.u32 %v5441_v4, 16  ;;  %v5444_v57 = vld [vmem:[%s6151_s26 + $0xc0] sm:$0xf] }
 0x137   : > { %v1103_v21 = vpop.f32.mrf.mxu1  ;;  %v1535_v45 = vpop.f32.mrf.mxu0  ;;  %v4471_v14 = vrot.slane %v4469_v47, 4  ;;  %v3943_v63 = vrot.slane %v3942_v3, 4  ;;  %v3947_v41 = vrot.slane %v3945_v17, 5  ;;  %v8123_v39 = vsel %vm6465_vm6, %v5513_v58, %v4469_v47  ;;  %v8138_v17 = vld [vmem:[%s6151_s26 + $0xc4] sm:$0xf] }
 0x138   : > { %v8115_v36 = vadd.f32 %v5790_v53, %v1112_v1  ;;  %v1104_v35 = vadd.f32 %v1103_v21, %v8912_v38  ;;  %v8913_v53 = vld [vmem:[#allocation18_spill] sm:$0xff]  ;;  %v8914_v30 = vcombine.low %v7873_v55, %v7884_v20  ;;  %v8133_v21 = vld [vmem:[%s6151_s26 + $0xbc] sm:$0x1]  ;;  %v3959_v38 = vshll.u32 %v8113_v33, 16 }
 0x139   : > { %v5757_v18 = vpop.f32.mrf.mxu1  ;;  %v5794_v1 = vpop.f32.mrf.mxu0  ;;  %v3963_v3 = vshrl.u32 %v8113_v33, 16  ;;  %v3952_v58 = vrot.slane %v3950_v16, 4  ;;  %v3974_v55 = vshrl.u32 %v5444_v57, 16  ;;  %v3977_v20 = vshll.u32 %v5444_v57, 16  ;;  %v5498_v16 = vld [vmem:[%s6151_s26 + $0xb4] sm:$0xe] }
 0x13a   : > { %v8125_v4 = vadd.f32 %v1532_v19, %v1104_v35  ;;  %v1115_v26 = vadd.f32 %v5757_v18, %v8913_v53  ;;  %5997 = vmatmul.mubr.msk.bf16.gmra.mxu0 %vm693_vm2, %v8914_v30  ;;  %v8915_v19 = vcombine.low %v7908_v25, %v7914_v54  ;;  %v3955_v35 = vrot.slane %v3953_v37, 5  ;;  %v8916_v53 = vld [vmem:[#allocation20_spill] sm:$0xff] }
 0x13b   : > { %v1106_v47 = vpop.f32.mrf.mxu1  ;;  %v1548_v34 = vpop.f32.mrf.mxu0  ;;  %v3938_v9 = vsel %vm6189_vm3, %v3933_v23, %v8054_v5  ;;  %v8152_v24 = vsel %vm6465_vm6, %v4471_v14, %v4472_v27  ;;  %v3948_v54 = vsel %vm6189_vm3, %v3943_v63, %v3947_v41  ;;  %v3983_v37 = vshll.u32 %v8138_v17, 16 }
 0x13c   : > { %6000 = vmatprep.mubr.msk.bf16.mxu0 %vm693_vm2, %v8915_v19  ;;  %v8144_v18 = vadd.f32 %v5791_v51, %v1115_v26  ;;  %v1107_v30 = vadd.f32 %v1106_v47, %v8916_v53  ;;  %v3969_v51 = vshll.u32 %v8133_v21, 16  ;;  %v3987_v57 = vshrl.u32 %v8138_v17, 16 }
 0x13d   : > { %v5760_v25 = vpop.f32.mrf.mxu1  ;;  %5963 = vmatmul.mubr.msk.bf16.gmra.mxu1 %vm693_vm2, %v7957_v61  ;;  %v5795_v27 = vpop.f32.mrf.mxu0  ;;  %v8167_v23 = vrot.slane %v3959_v38, 5  ;;  %v3965_v61 = vrot.slane %v3963_v3, 4  ;;  %v3956_v63 = vor.u32 %v3955_v35, %v3952_v58  ;;  %v4476_v41 = vrot.slane %v8113_v33, 5 }
 0x13e   : > { %v8162_v26 = vadd.f32 %v1535_v45, %v1107_v30  ;;  %v1128_v5 = vadd.f32 %v5760_v25, %v7863_v10  ;;  %5966 = vmatprep.mubr.msk.bf16.mxu1 %vm693_vm2, %v7983_v13  ;;  %v3976_v47 = vrot.slane %v3974_v55, 4  ;;  %v3979_v19 = vrot.slane %v3977_v20, 5 }
 0x13f   : > { %v1119_v14 = vpop.f32.mrf.mxu1  ;;  %v1551_v10 = vpop.f32.mrf.mxu0  ;;  %v8173_v30 = vcombine.low %v3914_v50, %v3924_v22  ;;  %v5514_v25 = vrot.slane %v5498_v16, 9  ;;  %v8175_v38 = vcombine.low %v3938_v9, %v3948_v54  ;;  %v5531_v3 = vcombine.low %v8123_v39, %v8152_v24  ;;  %v5446_v24 = vld [vmem:[%s6151_s26 + $0xc8] sm:$0x1]  ;;  %v5447_v39 = vld [vmem:[%s6151_s26 + $0xcc] sm:$0xf] }
 0x140   : > { %v8170_v53 = vadd.f32 %v5794_v1, %v1128_v5  ;;  %v1120_v45 = vadd.f32 %v1119_v14, %v7876_v52  ;;  %v8179_v58 = vrot.slane %v3983_v37, 5  ;;  %v3989_v33 = vrot.slane %v3987_v57, 4  ;;  %v8201_v54 = vld [vmem:[%s6151_s26 + $0xd0] sm:$0xf] }
 0x141   : > { %v5761_v13 = vpop.f32.mrf.mxu1  ;;  %v5798_v52 = vpop.f32.mrf.mxu0  ;;  %v8918_v50 = vcombine.low %v7966_v6, %v7977_v48  ;;  %v8188_v9 = vrot.slane %v3969_v51, 5  ;;  %v4479_v22 = vrot.slane %v8133_v21, 5  ;;  %v3966_v20 = vor.u32 %v3965_v61, %v8167_v23 }
 0x142   : > { %v8181_v1 = vadd.f32 %v1548_v34, %v1120_v45  ;;  %v1131_v35 = vadd.f32 %v5761_v13, %v7899_v31  ;;  %v8919_v34 = vcombine.low %v8031_v12, %v8046_v43  ;;  %v8197_v31 = vrot.slane %v3956_v63, 4  ;;  %v5499_v12 = vld [vmem:[%s6151_s26 + $0xc0] sm:$0xe] }
 0x143   : > { %6001 = vmatmul.mubr.msk.bf16.gmra.mxu0 %vm693_vm2, %v8918_v50  ;;  %v1122_v55 = vpop.f32.mrf.mxu1  ;;  %v4478_v6 = vrot.slane %v4476_v41, 4  ;;  %v3980_v48 = vor.u32 %v3979_v19, %v3976_v47  ;;  %v1564_v16 = vpop.f32.mrf.mxu0  ;;  %v8208_v37 = vsel %vm6465_vm6, %v5514_v25, %v4476_v41  ;;  %v4483_v43 = vrot.slane %v8138_v17, 5 }
 0x144   : > { %8917 = vst [vmem:[#allocation7_spill] sm:$0xff] %v8181_v1  ;;  %6004 = vmatprep.mubr.msk.bf16.mxu0 %vm693_vm2, %v8919_v34  ;;  %v8203_v51 = vadd.f32 %v5795_v27, %v1131_v35  ;;  %v1123_v21 = vadd.f32 %v1122_v55, %v7918_v2  ;;  %v3990_v5 = vor.u32 %v3989_v33, %v8179_v58  ;;  %v3993_v61 = vshll.u32 %v5446_v24, 16  ;;  %v8922_v2 = vld [vmem:[#allocation3_spill] sm:$0xff] }
 0x145   : > { %v5764_v57 = vpop.f32.mrf.mxu1  ;;  %5967 = vmatmul.mubr.msk.bf16.gmra.mxu1 %vm693_vm2, %v7993_v11  ;;  %v3998_v14 = vshrl.u32 %v5447_v39, 16  ;;  %v4001_v27 = vshll.u32 %v5447_v39, 16  ;;  %v5799_v19 = vpop.f32.mrf.mxu0  ;;  %v4007_v41 = vshll.u32 %v8201_v54, 16  ;;  %v4011_v17 = vshrl.u32 %v8201_v54, 16 }
 0x146   : > { %8920 = vst [vmem:[#allocation9_spill] sm:$0xff] %v8203_v51  ;;  %v8215_v63 = vadd.f32 %v1551_v10, %v1123_v21  ;;  %v1144_v47 = vadd.f32 %v5764_v57, %v8922_v2  ;;  %5970 = vmatprep.mubr.msk.bf16.mxu1 %vm693_vm2, %v8073_v29  ;;  %v3967_v25 = vrot.slane %v3966_v20, 4  ;;  %v4480_v11 = vsel %vm6465_vm6, %v4478_v6, %v4479_v22  ;;  %v8923_v10 = vld [vmem:[#allocation12_spill] sm:$0xff] }
 0x147   : > { %v1135_v45 = vpop.f32.mrf.mxu1  ;;  %v3981_v13 = vrot.slane %v3980_v48, 4  ;;  %v5515_v33 = vrot.slane %v5499_v12, 9  ;;  %v1567_v39 = vpop.f32.mrf.mxu0  ;;  %v4485_v55 = vrot.slane %v4483_v43, 4  ;;  %v4486_v34 = vrot.slane %v5446_v24, 5  ;;  %v8924_v20 = vld [vmem:[#allocation4_spill] sm:$0xff] }
 0x148   : > { %8921 = vst [vmem:[#allocation5_spill] sm:$0xff] %v8215_v63  ;;  %v8224_v35 = vadd.f32 %v5798_v52, %v1144_v47  ;;  %v1136_v50 = vadd.f32 %v1135_v45, %v8923_v10  ;;  %v3991_v21 = vrot.slane %v3990_v5, 4  ;;  %v3995_v57 = vrot.slane %v3993_v61, 5  ;;  %v5449_v5 = vld [vmem:[%s6151_s26 + $0xd4] sm:$0x1]  ;;  %v8926_v61 = vld [vmem:[#allocation6_spill] sm:$0xff] }
 0x149   : > { %v5765_v29 = vpop.f32.mrf.mxu1  ;;  %v4000_v2 = vrot.slane %v3998_v14, 4  ;;  %v4003_v63 = vrot.slane %v4001_v27, 5  ;;  %v5802_v22 = vpop.f32.mrf.mxu0  ;;  %v8925_v52 = vcombine.low %v8090_v40, %v8105_v60  ;;  %v8234_v6 = vrot.slane %v4007_v41, 5  ;;  %v5500_v41 = vld [vmem:[%s6151_s26 + $0xcc] sm:$0xe] }
 0x14a   : > { %v8227_v51 = vadd.f32 %v1564_v16, %v1136_v50  ;;  %v1147_v1 = vadd.f32 %v5765_v29, %v8924_v20  ;;  %v4013_v24 = vrot.slane %v4011_v17, 4  ;;  %v3962_v16 = vsel %vm6189_vm3, %v8197_v31, %v8167_v23  ;;  %v8928_v50 = vld [vmem:[#allocation10_spill] sm:$0xff] }
 0x14b   : > { %6005 = vmatmul.mubr.msk.bf16.gmra.mxu0 %vm693_vm2, %v8925_v52  ;;  %v1138_v48 = vpop.f32.mrf.mxu1  ;;  %v3972_v12 = vsel %vm6189_vm3, %v3967_v25, %v8188_v9  ;;  %v4490_v40 = vrot.slane %v8201_v54, 5  ;;  %v1580_v27 = vpop.f32.mrf.mxu0  ;;  %v4487_v47 = vsel %vm6465_vm6, %v4485_v55, %v4486_v34  ;;  %v5532_v9 = vcombine.low %v8208_v37, %v4480_v11 }
 0x14c   : > { %6008 = vmatprep.mubr.msk.bf16.mxu0 %vm693_vm2, %v5531_v3  ;;  %v8246_v60 = vadd.f32 %v5799_v19, %v1147_v1  ;;  %v1139_v14 = vadd.f32 %v1138_v48, %v8926_v61  ;;  %v4484_v3 = vsel %vm6465_vm6, %v5515_v33, %v4483_v43  ;;  %v3986_v1 = vsel %vm6189_vm3, %v3981_v13, %v8179_v58  ;;  %v8927_v43 = vld [vmem:[#allocation8_spill] sm:$0xff] }
 0x14d   : > { %v5768_v23 = vpop.f32.mrf.mxu1  ;;  %5971 = vmatmul.mubr.msk.bf16.gmra.mxu1 %vm693_vm2, %v8173_v30  ;;  %v3996_v31 = vsel %vm6189_vm3, %v3991_v21, %v3995_v57  ;;  %v4004_v54 = vor.u32 %v4003_v63, %v4000_v2  ;;  %v5803_v45 = vpop.f32.mrf.mxu0  ;;  %v4014_v30 = vor.u32 %v4013_v24, %v8234_v6  ;;  %v4017_v25 = vshll.u32 %v5449_v5, 16 }
 0x14e   : > { %v8262_v19 = vadd.f32 %v1567_v39, %v1139_v14  ;;  %v1160_v17 = vadd.f32 %v5768_v23, %v8927_v43  ;;  %5974 = vmatprep.mubr.msk.bf16.mxu1 %vm693_vm2, %v8175_v38  ;;  %v5533_v11 = vcombine.low %v4484_v3, %v4487_v47  ;;  %v5516_v33 = vrot.slane %v5500_v41, 9  ;;  %v8929_v38 = vld [vmem:[#allocation11_spill] sm:$0xff]  ;;  %v8931_v41 = vld [vmem:[#allocation14_spill] sm:$0xff] }
 0x14f   : > { %v1151_v37 = vpop.f32.mrf.mxu1  ;;  %v4492_v10 = vrot.slane %v4490_v40, 4  ;;  %v4493_v58 = vrot.slane %v5449_v5, 5  ;;  %v1583_v39 = vpop.f32.mrf.mxu0  ;;  %v5465_v34 = vcombine.low %v3962_v16, %v3972_v12  ;;  %v5466_v29 = vcombine.low %v3986_v1, %v3996_v31  ;;  %v8930_v5 = vld [vmem:[#allocation2_spill] sm:$0xff] }
 0x150   : > { %v8268_v13 = vadd.f32 %v5802_v22, %v1160_v17  ;;  %v1152_v63 = vadd.f32 %v1151_v37, %v8928_v50  ;;  %v4005_v21 = vrot.slane %v4004_v54, 4  ;;  %v4015_v52 = vrot.slane %v4014_v30, 4  ;;  %v8932_v54 = vld [vmem:[#allocation17_spill] sm:$0xff] }
 0x151   : > { %v5769_v55 = vpop.f32.mrf.mxu1  ;;  %v5806_v20 = vpop.f32.mrf.mxu0  ;;  %v4019_v24 = vrot.slane %v4017_v25, 5  ;;  %v4491_v22 = vsel %vm6465_vm6, %v5516_v33, %v4490_v40  ;;  %v4494_v16 = vsel %vm6465_vm6, %v4492_v10, %v4493_v58  ;;  %v8933_v25 = vld [vmem:[#allocation19_spill] sm:$0xff] }
 0x152   : > { %v8271_v57 = vadd.f32 %v1580_v27, %v1152_v63  ;;  %v1163_v2 = vadd.f32 %v5769_v55, %v8929_v38  ;;  %v4010_v3 = vsel %vm6189_vm3, %v4005_v21, %v8234_v6  ;;  %v8935_v38 = vld [vmem:[#allocation22_spill] sm:$0xff] }
 0x153   : > { %6009 = vmatmul.mubr.msk.bf16.gmra.mxu0 %vm693_vm2, %v5532_v9  ;;  %v1154_v48 = vpop.f32.mrf.mxu1  ;;  %v1596_v14 = vpop.f32.mrf.mxu0  ;;  %v4020_v44 = vsel %vm6189_vm3, %v4015_v52, %v4019_v24  ;;  %v5534_v9 = vcombine.low %v4491_v22, %v4494_v16 }
 0x154   : > { %6012 = vmatprep.mubr.msk.bf16.mxu0 %vm693_vm2, %v5533_v11  ;;  %v8280_v12 = vadd.f32 %v5803_v45, %v1163_v2  ;;  %v1155_v61 = vadd.f32 %v1154_v48, %v8930_v5  ;;  %v5467_v30 = vcombine.low %v4010_v3, %v4020_v44 }
 0x155   : > { %v5772_v27 = vpop.f32.mrf.mxu1  ;;  %5975 = vmatmul.mubr.msk.bf16.gmra.mxu1 %vm693_vm2, %v5465_v34  ;;  %v5807_v40 = vpop.f32.mrf.mxu0 }
 0x156   : > { %v8287_v47 = vadd.f32 %v1583_v39, %v1155_v61  ;;  %v1176_v23 = vadd.f32 %v5772_v27, %v8931_v41  ;;  %5978 = vmatprep.mubr.msk.bf16.mxu1 %vm693_vm2, %v5466_v29 }
 0x157   : > { %v1167_v1 = vpop.f32.mrf.mxu1  ;;  %v1599_v17 = vpop.f32.mrf.mxu0 }
 0x158   : > { %v8293_v31 = vadd.f32 %v5806_v20, %v1176_v23  ;;  %v1168_v43 = vadd.f32 %v1167_v1, %v8932_v54 }
 0x159   : > { %v5773_v45 = vpop.f32.mrf.mxu1  ;;  %v5810_v11 = vpop.f32.mrf.mxu0 }
 0x15a   : > { %v8296_v6 = vadd.f32 %v1596_v14, %v1168_v43  ;;  %v1179_v37 = vadd.f32 %v5773_v45, %v8933_v25 }
 0x15b   : > { %6013 = vmatmul.mubr.msk.bf16.gmra.mxu0 %vm693_vm2, %v5534_v9  ;;  %v1170_v33 = vpop.f32.mrf.mxu1  ;;  %v1612_v50 = vpop.f32.mrf.mxu0 }
 0x15c   : > { %v8300_v10 = vadd.f32 %v5807_v40, %v1179_v37  ;;  %v1171_v58 = vadd.f32 %v1170_v33, %v8934_v28 }
 0x15d   : > { %v5776_v63 = vpop.f32.mrf.mxu1  ;;  %5979 = vmatmul.mubr.msk.bf16.gmra.mxu1 %vm693_vm2, %v5467_v30  ;;  %v5811_v34 = vpop.f32.mrf.mxu0 }
 0x15e   : > { %v8304_v39 = vadd.f32 %v1599_v17, %v1171_v58  ;;  %v1192_v55 = vadd.f32 %v5776_v63, %v7890_v56 }
 0x15f   : > { %v1183_v29 = vpop.f32.mrf.mxu1  ;;  %v1615_v20 = vpop.f32.mrf.mxu0 }
 0x160   : > { %v8307_v21 = vadd.f32 %v5810_v11, %v1192_v55  ;;  %v1184_v2 = vadd.f32 %v1183_v29, %v8935_v38 }
 0x161   : > { %v5777_v52 = vpop.f32.mrf.mxu1  ;;  %v5850_v22 = vpop.f32.mrf.mxu0 }
 0x162   : > { %v8310_v24 = vadd.f32 %v1612_v50, %v1184_v2  ;;  %v1195_v48 = vadd.f32 %v5777_v52, %v7921_v0 }
 0x163   : > { %v1186_v16 = vpop.f32.mrf.mxu1  ;;  %v2593_v14 = vpop.f32.mrf.mxu0 }
 0x164   : > { %v8313_v5 = vadd.f32 %v5811_v34, %v1195_v48  ;;  %v1187_v61 = vadd.f32 %v1186_v16, %v7943_v62 }
 0x165   : > { %v5816_v56 = vpop.f32.mrf.mxu1  ;;  %v5851_v41 = vpop.f32.mrf.mxu0 }
 0x166   : > { %v8316_v27 = vadd.f32 %v1615_v20, %v1187_v61  ;;  %v1992_v3 = vadd.f32 %v5816_v56, %v7990_v32 }
 0x167   : > { %v1863_v23 = vpop.f32.mrf.mxu1  ;;  %v2596_v9 = vpop.f32.mrf.mxu0 }
 0x168   : > { %v8319_v40 = vadd.f32 %v5850_v22, %v1992_v3  ;;  %v1990_v44 = vadd.f32 %v1863_v23, %v8001_v59 }
 0x169   : > { %v5817_v0 = vpop.f32.mrf.mxu1  ;;  %v5854_v43 = vpop.f32.mrf.mxu0 }
 0x16a   : > { %v8322_v1 = vadd.f32 %v2593_v14, %v1990_v44  ;;  %v1993_v54 = vadd.f32 %v5817_v0, %v8017_v7 }
 0x16b   : > { %v1866_v62 = vpop.f32.mrf.mxu1  ;;  %v2609_v30 = vpop.f32.mrf.mxu0 }
 0x16c   : > { %v8325_v17 = vadd.f32 %v5851_v41, %v1993_v54  ;;  %v1991_v45 = vadd.f32 %v1866_v62, %v8035_v46 }
 0x16d   : > { %v5820_v32 = vpop.f32.mrf.mxu1  ;;  %v5855_v11 = vpop.f32.mrf.mxu0 }
 0x16e   : > { %v8328_v25 = vadd.f32 %v2596_v9, %v1991_v45  ;;  %v1996_v37 = vadd.f32 %v5820_v32, %v8050_v15  ;;  %v8937_v32 = vld [vmem:[#allocation9_spill] sm:$0xff] }
 0x16f   : > { %v1879_v59 = vpop.f32.mrf.mxu1  ;;  %v2612_v58 = vpop.f32.mrf.mxu0 }
 0x170   : > { %v8331_v33 = vadd.f32 %v5854_v43, %v1996_v37  ;;  %v1994_v28 = vadd.f32 %v1879_v59, %v8056_v8  ;;  %v8936_v43 = vld [vmem:[#allocation7_spill] sm:$0xff] }
 0x171   : > { %v5821_v7 = vpop.f32.mrf.mxu1  ;;  %v5858_v55 = vpop.f32.mrf.mxu0 }
 0x172   : > { %v8334_v50 = vadd.f32 %v2609_v30, %v1994_v28  ;;  %v1997_v63 = vadd.f32 %v5821_v7, %v8081_v49  ;;  %v8938_v28 = vld [vmem:[#allocation5_spill] sm:$0xff] }
 0x173   : > { %v1882_v46 = vpop.f32.mrf.mxu1  ;;  %v2625_v38 = vpop.f32.mrf.mxu0 }
 0x174   : > { %v8337_v34 = vadd.f32 %v5855_v11, %v1997_v63  ;;  %v1995_v29 = vadd.f32 %v1882_v46, %v8094_v42 }
 0x175   : > { %v5824_v15 = vpop.f32.mrf.mxu1  ;;  %v5859_v52 = vpop.f32.mrf.mxu0 }
 0x176   : > { %v8340_v2 = vadd.f32 %v2612_v58, %v1995_v29  ;;  %v2000_v20 = vadd.f32 %v5824_v15, %v8115_v36 }
 0x177   : > { %v1895_v8 = vpop.f32.mrf.mxu1  ;;  %v2628_v16 = vpop.f32.mrf.mxu0 }
 0x178   : > { %v8343_v48 = vadd.f32 %v5858_v55, %v2000_v20  ;;  %v1998_v22 = vadd.f32 %v1895_v8, %v8125_v4 }
 0x179   : > { %v5825_v49 = vpop.f32.mrf.mxu1  ;;  %v5862_v56 = vpop.f32.mrf.mxu0 }
 0x17a   : > { %v8346_v61 = vadd.f32 %v2625_v38, %v1998_v22  ;;  %v2001_v14 = vadd.f32 %v5825_v49, %v8144_v18 }
 0x17b   : > { %v1898_v42 = vpop.f32.mrf.mxu1  ;;  %v2641_v23 = vpop.f32.mrf.mxu0 }
 0x17c   : > { %v8349_v3 = vadd.f32 %v5859_v52, %v2001_v14  ;;  %v1999_v41 = vadd.f32 %v1898_v42, %v8162_v26 }
 0x17d   : > { %v5828_v36 = vpop.f32.mrf.mxu1  ;;  %v5863_v0 = vpop.f32.mrf.mxu0 }
 0x17e   : > { %v8352_v44 = vadd.f32 %v2628_v16, %v1999_v41  ;;  %v2004_v9 = vadd.f32 %v5828_v36, %v8170_v53 }
 0x17f   : > { %v1911_v4 = vpop.f32.mrf.mxu1  ;;  %v2644_v45 = vpop.f32.mrf.mxu0 }
 0x180   : > { %v8355_v54 = vadd.f32 %v5862_v56, %v2004_v9  ;;  %v2002_v62 = vadd.f32 %v1911_v4, %v8936_v43 }
 0x181   : > { %v5829_v18 = vpop.f32.mrf.mxu1  ;;  %v5866_v11 = vpop.f32.mrf.mxu0 }
 0x182   : > { %v8358_v30 = vadd.f32 %v2641_v23, %v2002_v62  ;;  %v2005_v37 = vadd.f32 %v5829_v18, %v8937_v32 }
 0x183   : > { %v1914_v26 = vpop.f32.mrf.mxu1  ;;  %v2657_v7 = vpop.f32.mrf.mxu0 }
 0x184   : > { %v8361_v59 = vadd.f32 %v5863_v0, %v2005_v37  ;;  %v2003_v58 = vadd.f32 %v1914_v26, %v8938_v28 }
 0x185   : > { %v5832_v53 = vpop.f32.mrf.mxu1  ;;  %v5867_v46 = vpop.f32.mrf.mxu0 }
 0x186   : > { %v8364_v63 = vadd.f32 %v2644_v45, %v2003_v58  ;;  %v2008_v55 = vadd.f32 %v5832_v53, %v8224_v35 }
 0x187   : > { %v1927_v29 = vpop.f32.mrf.mxu1  ;;  %v2660_v20 = vpop.f32.mrf.mxu0 }
 0x188   : > { %v8367_v38 = vadd.f32 %v5866_v11, %v2008_v55  ;;  %v2006_v15 = vadd.f32 %v1927_v29, %v8227_v51 }
 0x189   : > { %v5833_v52 = vpop.f32.mrf.mxu1  ;;  %v5870_v16 = vpop.f32.mrf.mxu0 }
 0x18a   : > { %v8370_v8 = vadd.f32 %v2657_v7, %v2006_v15  ;;  %v2009_v22 = vadd.f32 %v5833_v52, %v8246_v60 }
 0x18b   : > { %v1930_v49 = vpop.f32.mrf.mxu1  ;;  %v2673_v42 = vpop.f32.mrf.mxu0 }
 0x18c   : > { %v8373_v14 = vadd.f32 %v5867_v46, %v2009_v22  ;;  %v2007_v56 = vadd.f32 %v1930_v49, %v8262_v19 }
 0x18d   : > { %v5836_v35 = vpop.f32.mrf.mxu1  ;;  %v5871_v36 = vpop.f32.mrf.mxu0 }
 0x18e   : > { %8939 = vst [vmem:[#allocation16_spill] sm:$0xff] %v8373_v14  ;;  %v8376_v41 = vadd.f32 %v2660_v20, %v2007_v56  ;;  %v2012_v23 = vadd.f32 %v5836_v35, %v8268_v13 }
 0x18f   : > { %v1943_v51 = vpop.f32.mrf.mxu1  ;;  %v2676_v4 = vpop.f32.mrf.mxu0 }
 0x190   : > { %8940 = vst [vmem:[#allocation13_spill] sm:$0xff] %v8376_v41  ;;  %v8379_v9 = vadd.f32 %v5870_v16, %v2012_v23  ;;  %v2010_v0 = vadd.f32 %v1943_v51, %v8271_v57 }
 0x191   : > { %v5837_v60 = vpop.f32.mrf.mxu1  ;;  %v5874_v45 = vpop.f32.mrf.mxu0 }
 0x192   : > { %8941 = vst [vmem:[#allocation15_spill] sm:$0xff] %v8379_v9  ;;  %v8382_v43 = vadd.f32 %v2673_v42, %v2010_v0  ;;  %v2013_v62 = vadd.f32 %v5837_v60, %v8280_v12 }
 0x193   : > { %v1946_v19 = vpop.f32.mrf.mxu1  ;;  %v2689_v37 = vpop.f32.mrf.mxu0 }
 0x194   : > { %8942 = vst [vmem:[#allocation18_spill] sm:$0xff] %v8382_v43  ;;  %v8385_v18 = vadd.f32 %v5871_v36, %v2013_v62  ;;  %v2011_v32 = vadd.f32 %v1946_v19, %v8287_v47 }
 0x195   : > { %v5840_v13 = vpop.f32.mrf.mxu1  ;;  %v5875_v28 = vpop.f32.mrf.mxu0 }
 0x196   : > { %8943 = vst [vmem:[#allocation20_spill] sm:$0xff] %v8385_v18  ;;  %v8388_v11 = vadd.f32 %v2676_v4, %v2011_v32  ;;  %v2016_v26 = vadd.f32 %v5840_v13, %v8293_v31 }
 0x197   : > { %v1959_v57 = vpop.f32.mrf.mxu1  ;;  %v2692_v53 = vpop.f32.mrf.mxu0 }
 0x198   : > { %8944 = vst [vmem:[#allocation3_spill] sm:$0xff] %v8388_v11  ;;  %v8391_v58 = vadd.f32 %v5874_v45, %v2016_v26  ;;  %v2014_v7 = vadd.f32 %v1959_v57, %v8296_v6 }
 0x199   : > { %v5841_v12 = vpop.f32.mrf.mxu1  ;;  %v5878_v29 = vpop.f32.mrf.mxu0 }
 0x19a   : > { %8945 = vst [vmem:[#allocation12_spill] sm:$0xff] %v8391_v58  ;;  %v8394_v55 = vadd.f32 %v2689_v37, %v2014_v7  ;;  %v2017_v46 = vadd.f32 %v5841_v12, %v8300_v10 }
 0x19b   : > { %v1962_v47 = vpop.f32.mrf.mxu1  ;;  %v2705_v52 = vpop.f32.mrf.mxu0 }
 0x19c   : > { %8946 = vst [vmem:[#allocation4_spill] sm:$0xff] %v8394_v55  ;;  %v8397_v15 = vadd.f32 %v5875_v28, %v2017_v46  ;;  %v2015_v20 = vadd.f32 %v1962_v47, %v8304_v39 }
 0x19d   : > { %v5844_v31 = vpop.f32.mrf.mxu1  ;;  %v5879_v49 = vpop.f32.mrf.mxu0 }
 0x19e   : > { %8947 = vst [vmem:[#allocation6_spill] sm:$0xff] %v8397_v15  ;;  %v8400_v22 = vadd.f32 %v2692_v53, %v2015_v20  ;;  %v2020_v16 = vadd.f32 %v5844_v31, %v8307_v21 }
 0x19f   : > { %v1975_v6 = vpop.f32.mrf.mxu1  ;;  %v2708_v35 = vpop.f32.mrf.mxu0 }
 0x1a0   : > { %8948 = vst [vmem:[#allocation8_spill] sm:$0xff] %v8400_v22  ;;  %v8403_v56 = vadd.f32 %v5878_v29, %v2020_v16  ;;  %v2018_v42 = vadd.f32 %v1975_v6, %v8310_v24 }
 0x1a1   : > { %v5845_v10 = vpop.f32.mrf.mxu1  ;;  %v8409_v51 = vpop.f32.mrf.mxu0 }
 0x1a2   : > { %8949 = vst [vmem:[#allocation10_spill] sm:$0xff] %v8403_v56  ;;  %v8406_v23 = vadd.f32 %v2705_v52, %v2018_v42  ;;  %v2021_v36 = vadd.f32 %v5845_v10, %v8313_v5 }
 0x1a3   : > { %v1978_v39 = vpop.f32.mrf.mxu1  ;;  %v8414_v21 = vpop.f32.mrf.mxu0 }
 0x1a4   : > { %8950 = vst [vmem:[#allocation11_spill] sm:$0xff] %v8406_v23  ;;  %v8411_v0 = vadd.f32 %v5879_v49, %v2021_v36  ;;  %v2019_v4 = vadd.f32 %v1978_v39, %v8316_v27 }
 0x1a5   : > { %v5884_v60 = vpop.f32.mrf.mxu1  ;;  %v8418_v45 = vpop.f32.mrf.mxu0 }
 0x1a6   : > { %8951 = vst [vmem:[#allocation2_spill] sm:$0xff] %v8411_v0  ;;  %v8416_v62 = vadd.f32 %v2708_v35, %v2019_v4 }
 0x1a7   : > { %v3067_v24 = vpop.f32.mrf.mxu1  ;;  %v8420_v19 = vpop.f32.mrf.mxu0 }
 0x1a8   : > { %8952 = vst [vmem:[#allocation14_spill] sm:$0xff] %v8416_v62 }
 0x1a9   : > { %v5885_v32 = vpop.f32.mrf.mxu1  ;;  %v8422_v37 = vpop.f32.mrf.mxu0 }
 0x1ab   : > { %v8424_v5 = vpop.f32.mrf.mxu1  ;;  %v8426_v13 = vpop.f32.mrf.mxu0 }
 0x1ad   : > { %v8428_v26 = vpop.f32.mrf.mxu1  ;;  %v8430_v27 = vpop.f32.mrf.mxu0 }
 0x1af   : > { %v8432_v28 = vpop.f32.mrf.mxu1  ;;  %v8434_v57 = vpop.f32.mrf.mxu0 }
 0x1b1   : > { %v8436_v7 = vpop.f32.mrf.mxu1  ;;  %v8438_v53 = vpop.f32.mrf.mxu0 }
 0x1b3   : > { %v8440_v12 = vpop.f32.mrf.mxu1  ;;  %v8442_v46 = vpop.f32.mrf.mxu0 }
 0x1b5   : > { %v8444_v29 = vpop.f32.mrf.mxu1  ;;  %v8446_v47 = vpop.f32.mrf.mxu0 }
 0x1b7   : > { %v8448_v20 = vpop.f32.mrf.mxu1  ;;  %v8450_v52 = vpop.f32.mrf.mxu0 }
 0x1b9   : > { %v8452_v31 = vpop.f32.mrf.mxu1  ;;  %v8454_v16 = vpop.f32.mrf.mxu0 }
 0x1bb   : > { %v8456_v49 = vpop.f32.mrf.mxu1  ;;  %v8458_v6 = vpop.f32.mrf.mxu0 }
 0x1bd   : > { %v8460_v42 = vpop.f32.mrf.mxu1  ;;  %v8462_v35 = vpop.f32.mrf.mxu0 }
 0x1bf   : > { %v8464_v10 = vpop.f32.mrf.mxu1  ;;  %v8466_v36 = vpop.f32.mrf.mxu0 }
 0x1c1   : > { %v8468_v39 = vpop.f32.mrf.mxu1  ;;  %v8470_v4 = vpop.f32.mrf.mxu0 }
 0x1c2   : > { %8953 = vst [vmem:[#allocation17_spill] sm:$0xff] %v8470_v4 }
 0x1c3   : > { %v8472_v62 = vpop.f32.mrf.mxu1  ;;  %v8474_v0 = vpop.f32.mrf.mxu0 }
 0x1c4   : > { %8954 = vst [vmem:[#allocation19_spill] sm:$0xff] %v8474_v0 }
 0x1c5   : > { %v8476_v23 = vpop.f32.mrf.mxu1  ;;  %v8478_v56 = vpop.f32.mrf.mxu0 }
 0x1c6   : > { %8955 = vst [vmem:[#allocation21_spill] sm:$0xff] %v8478_v56 }
 0x1c7   : > { %v8480_v22 = vpop.f32.mrf.mxu1  ;;  %v8482_v15 = vpop.f32.mrf.mxu0 }
 0x1c8   : > { %8956 = vst [vmem:[#allocation22_spill] sm:$0xff] %v8482_v15 }
 0x1c9   : > { %v8484_v55 = vpop.f32.mrf.mxu1  ;;  %v8486_v58 = vpop.f32.mrf.mxu0 }
 0x1ca   : > { %8957 = vst [vmem:[#allocation7_spill] sm:$0xff] %v8484_v55  ;;  %8958 = vst [vmem:[#allocation9_spill] sm:$0xff] %v8486_v58 }
 0x1cb   : > { %v8488_v11 = vpop.f32.mrf.mxu1  ;;  %v8490_v18 = vpop.f32.mrf.mxu0 }
 0x1cc   : > { %8959 = vst [vmem:[#allocation5_spill] sm:$0xff] %v8488_v11  ;;  %8960 = vst [vmem:[#allocation23_spill] sm:$0xff] %v8490_v18 }
 0x1cd   : > { %v8492_v43 = vpop.f32.mrf.mxu1  ;;  %v8494_v9 = vpop.f32.mrf.mxu0 }
 0x1ce   : > { %8961 = vst [vmem:[#allocation24_spill] sm:$0xff] %v8492_v43  ;;  %8962 = vst [vmem:[#allocation25_spill] sm:$0xff] %v8494_v9 }
 0x1cf   : > { %v8496_v41 = vpop.f32.mrf.mxu1  ;;  %v8498_v0 = vpop.f32.mrf.mxu0 }
 0x1d0   : > { %8963 = vst [vmem:[#allocation26_spill] sm:$0xff] %v8496_v41  ;;  %8964 = vst [vmem:[#allocation27_spill] sm:$0xff] %v8498_v0 }
 0x1d1   : > { %v8500_v56 = vpop.f32.mrf.mxu1  ;;  %v8502_v14 = vpop.f32.mrf.mxu0 }
 0x1d2   : > { %8965 = vst [vmem:[#allocation28_spill] sm:$0xff] %v8500_v56  ;;  %8966 = vst [vmem:[#allocation29_spill] sm:$0xff] %v8502_v14 }
 0x1d3   : > { %v8504_v15 = vpop.f32.mrf.mxu1  ;;  %v8506_v55 = vpop.f32.mrf.mxu0 }
 0x1d4   : > { %8967 = vst [vmem:[#allocation30_spill] sm:$0xff] %v8504_v15  ;;  %8968 = vst [vmem:[#allocation31_spill] sm:$0xff] %v8506_v55 }
 0x1d5   : > { %v8508_v58 = vpop.f32.mrf.mxu1  ;;  %v8510_v11 = vpop.f32.mrf.mxu0 }
 0x1d6   : > { %8969 = vst [vmem:[#allocation32_spill] sm:$0xff] %v8508_v58  ;;  %8970 = vst [vmem:[#allocation33_spill] sm:$0xff] %v8510_v11  ;;  %v3196_v11 = vadd.f32 %v5884_v60, %v8319_v40  ;;  %v3195_v40 = vadd.f32 %v8424_v5, %v8328_v25  ;;  %v8556_v25 = vld [vmem:[%s8779_s3] ss:$0 sm:$0xff] }
 0x1d7   : > { %v8512_v18 = vpop.f32.mrf.mxu1  ;;  %v8514_v43 = vpop.f32.mrf.mxu0 }
 0x1d8   : > { %8971 = vst [vmem:[#allocation34_spill] sm:$0xff] %v8512_v18  ;;  %8972 = vst [vmem:[#allocation35_spill] sm:$0xff] %v8514_v43  ;;  %v3194_v43 = vadd.f32 %v3067_v24, %v8322_v1  ;;  %v8546_v1 = vld [vmem:[%s8778_s2] ss:$0 sm:$0xff] }
 0x1d9   : > { %v8516_v9 = vpop.f32.mrf.mxu1  ;;  %v8518_v41 = vpop.f32.mrf.mxu0 }
 0x1da   : > { %8973 = vst [vmem:[#allocation36_spill] sm:$0xff] %v8516_v9  ;;  %8974 = vst [vmem:[#allocation37_spill] sm:$0xff] %v8518_v41 }
 0x1db   : > { %v8520_v0 = vpop.f32.mrf.mxu1  ;;  %v8522_v56 = vpop.f32.mrf.mxu0 }
 0x1dc   : > { %8975 = vst [vmem:[#allocation38_spill] sm:$0xff] %v8520_v0  ;;  %8976 = vst [vmem:[#allocation39_spill] sm:$0xff] %v8522_v56  ;;  %v3559_v0 = vadd.f32 %v8409_v51, %v3196_v11  ;;  %v3197_v56 = vadd.f32 %v5885_v32, %v8325_v17 }
 0x1dd   : > { %v8524_v14 = vpop.f32.mrf.mxu1  ;;  %v8526_v15 = vpop.f32.mrf.mxu0 }
 0x1de   : > { %8977 = vst [vmem:[#allocation40_spill] sm:$0xff] %v8524_v14  ;;  %8978 = vst [vmem:[#allocation41_spill] sm:$0xff] %v8526_v15  ;;  %v3557_v15 = vadd.f32 %v8414_v21, %v3194_v43  ;;  %v3560_v11 = vadd.f32 %v8418_v45, %v3197_v56  ;;  %v3198_v43 = vadd.f32 %v8432_v28, %v8334_v50 }
 0x1df   : > { %v8528_v55 = vpop.f32.mrf.mxu1  ;;  %v8531_v58 = vpop.f32.mrf.mxu0  ;;  %v3558_v21 = vadd.f32 %v8420_v19, %v3195_v40 }
 0x1e0   : > { %8979 = vst [vmem:[#allocation42_spill] sm:$0xff] %v8531_v58  ;;  %v3561_v19 = vadd.f32 %v8426_v13, %v3198_v43 }
 0x1e1   : > { %v8533_v18 = vpop.f32.mrf.mxu1 }
 0x1e2   : > { %v5986_v9 = vpop.f32.mrf.mxu0 }
 0x1e3   : > { %v8536_v41 = vpop.f32.mrf.mxu1 }
 0x1e4   : > { %8980 = vst [vmem:[#allocation43_spill] sm:$0xff] %v8536_v41  ;;  %v4634_v14 = vpop.f32.mrf.mxu0  ;;  %v3200_v41 = vadd.f32 %v8428_v26, %v8331_v33  ;;  %v3201_v33 = vadd.f32 %v8436_v7, %v8337_v34 }
 0x1e5   : > { %v5952_v4 = vpop.f32.mrf.mxu1 }
 0x1e6   : > { %v4289_v60 = vadd.f32 %v5952_v4, %v3559_v0  ;;  %v5987_v58 = vpop.f32.mrf.mxu0  ;;  %v3564_v13 = vadd.f32 %v8430_v27, %v3201_v33 }
 0x1e7   : > { %v4160_v24 = vpop.f32.mrf.mxu1 }
 0x1e8   : > { %v4763_v51 = vadd.f32 %v5986_v9, %v4289_v60  ;;  %v4287_v17 = vadd.f32 %v4160_v24, %v3557_v15  ;;  %v4637_v32 = vpop.f32.mrf.mxu0  ;;  %v3563_v24 = vadd.f32 %v8422_v37, %v3200_v41 }
 0x1e9   : > { %v5953_v0 = vpop.f32.mrf.mxu1 }
 0x1ea   : > { %v4802_v56 = vmul.f32 %v8546_v1, %v4763_v51  ;;  %v4761_v9 = vadd.f32 %v4634_v14, %v4287_v17  ;;  %v4290_v15 = vadd.f32 %v5953_v0, %v3560_v11  ;;  %v5990_v45 = vpop.f32.mrf.mxu0  ;;  %v3199_v14 = vadd.f32 %v8440_v12, %v8340_v2 }
 0x1eb   : > { %v4163_v5 = vpop.f32.mrf.mxu1  ;;  %v3204_v2 = vadd.f32 %v8444_v29, %v8343_v48 }
 0x1ec   : > { %v4841_v50 = vadd.f32 %v8556_v25, %v4802_v56  ;;  %v4800_v26 = vmul.f32 %v8546_v1, %v4761_v9  ;;  %v4764_v28 = vadd.f32 %v5987_v58, %v4290_v15  ;;  %v4288_v4 = vadd.f32 %v4163_v5, %v3558_v21  ;;  %v4650_v60 = vpop.f32.mrf.mxu0 }
 0x1ed   : > { %v5956_v34 = vpop.f32.mrf.mxu1  ;;  %v3567_v5 = vadd.f32 %v8438_v53, %v3204_v2  ;;  %v3203_v53 = vadd.f32 %v8456_v49, %v8352_v44  ;;  %v3208_v44 = vadd.f32 %v8460_v42, %v8355_v54 }
 0x1ee   : > { %v4873_v7 = vmax.f32 %v4841_v50, 0.0  ;;  %v4839_v58 = vadd.f32 %v8556_v25, %v4800_v26  ;;  %v4803_v40 = vmul.f32 %v8546_v1, %v4764_v28  ;;  %v4762_v41 = vadd.f32 %v4637_v32, %v4288_v4  ;;  %v5991_v37 = vpop.f32.mrf.mxu0 }
 0x1ef   : > { %v4293_v12 = vadd.f32 %v5956_v34, %v3563_v24  ;;  %v4176_v11 = vpop.f32.mrf.mxu1  ;;  %v3562_v32 = vadd.f32 %v8434_v57, %v3199_v14  ;;  %v3202_v50 = vadd.f32 %v8448_v20, %v8346_v61  ;;  %v3205_v26 = vadd.f32 %v8452_v31, %v8349_v3 }
 0x1f0   : > { %4906 = vst.msk [vmem:[%s8572_s21 + $0x10] sm:$0xff] %vm4903_vm7, %v4873_v7  ;;  %v4871_v51 = vmax.f32 %v4839_v58, 0.0  ;;  %v4842_v17 = vadd.f32 %v8556_v25, %v4803_v40  ;;  %v4801_v43 = vmul.f32 %v8546_v1, %v4762_v41  ;;  %v4291_v0 = vadd.f32 %v4176_v11, %v3561_v19  ;;  %v4653_v21 = vpop.f32.mrf.mxu0 }
 0x1f1   : > { %v4767_v56 = vadd.f32 %v5990_v45, %v4293_v12  ;;  %v5957_v9 = vpop.f32.mrf.mxu1  ;;  %v3565_v58 = vadd.f32 %v8442_v46, %v3202_v50  ;;  %v3568_v40 = vadd.f32 %v8446_v47, %v3205_v26  ;;  %v3206_v46 = vadd.f32 %v8464_v10, %v8358_v30 }
 0x1f2   : > { %4904 = vst.msk [vmem:[%s8572_s21] sm:$0xff] %vm4903_vm7, %v4871_v51  ;;  %v4874_v27 = vmax.f32 %v4842_v17, 0.0  ;;  %v4840_v48 = vadd.f32 %v8556_v25, %v4801_v43  ;;  %v4765_v29 = vadd.f32 %v4650_v60, %v4291_v0  ;;  %v4294_v15 = vadd.f32 %v5957_v9, %v3564_v13  ;;  %v5994_v33 = vpop.f32.mrf.mxu0 }
 0x1f3   : > { %v4806_v57 = vmul.f32 %v8546_v1, %v4767_v56  ;;  %v4179_v45 = vpop.f32.mrf.mxu1  ;;  %v3566_v51 = vadd.f32 %v8450_v52, %v3203_v53 }
 0x1f4   : > { %4907 = vst.msk [vmem:[%s8572_s21 + $0x18] sm:$0xff] %vm4903_vm7, %v4874_v27  ;;  %v4872_v28 = vmax.f32 %v4840_v48, 0.0  ;;  %v4804_v4 = vmul.f32 %v8546_v1, %v4765_v29  ;;  %v4768_v60 = vadd.f32 %v5991_v37, %v4294_v15  ;;  %v4292_v24 = vadd.f32 %v4179_v45, %v3562_v32  ;;  %v4666_v19 = vpop.f32.mrf.mxu0 }
 0x1f5   : > { %v4845_v14 = vadd.f32 %v8556_v25, %v4806_v57  ;;  %v5960_v61 = vpop.f32.mrf.mxu1  ;;  %v3571_v32 = vadd.f32 %v8454_v16, %v3208_v44  ;;  %v3569_v29 = vadd.f32 %v8458_v6, %v3206_v46  ;;  %v3209_v15 = vadd.f32 %v8468_v39, %v8361_v59  ;;  %v8983_v44 = vld [vmem:[#allocation7_spill] sm:$0xff] }
 0x1f6   : > { %4905 = vst.msk [vmem:[%s8572_s21 + $0x8] sm:$0xff] %vm4903_vm7, %v4872_v28  ;;  %v4843_v3 = vadd.f32 %v8556_v25, %v4804_v4  ;;  %v4807_v20 = vmul.f32 %v8546_v1, %v4768_v60  ;;  %v4766_v31 = vadd.f32 %v4653_v21, %v4292_v24  ;;  %v4297_v34 = vadd.f32 %v5960_v61, %v3567_v5  ;;  %v5995_v7 = vpop.f32.mrf.mxu0 }
 0x1f7   : > { %v4877_v49 = vmax.f32 %v4845_v14, 0.0  ;;  %v4192_v41 = vpop.f32.mrf.mxu1  ;;  %v3212_v6 = vadd.f32 %v8476_v23, %v8367_v38  ;;  %v3210_v38 = vadd.f32 %v8480_v22, %v8370_v8 }
 0x1f8   : > { %v4875_v37 = vmax.f32 %v4843_v3, 0.0  ;;  %v4846_v13 = vadd.f32 %v8556_v25, %v4807_v20  ;;  %v4805_v2 = vmul.f32 %v8546_v1, %v4766_v31  ;;  %v4771_v12 = vadd.f32 %v5994_v33, %v4297_v34  ;;  %v4669_v11 = vpop.f32.mrf.mxu0 }
 0x1f9   : > { %4910 = vst.msk [vmem:[%s8572_s21 + $0x30] sm:$0xff] %vm4903_vm7, %v4877_v49  ;;  %v4295_v47 = vadd.f32 %v4192_v41, %v3565_v58  ;;  %v5961_v17 = vpop.f32.mrf.mxu1  ;;  %v3207_v33 = vadd.f32 %v8472_v62, %v8364_v63 }
 0x1fa   : > { %4908 = vst.msk [vmem:[%s8572_s21 + $0x20] sm:$0xff] %vm4903_vm7, %v4875_v37  ;;  %v4878_v54 = vmax.f32 %v4846_v13, 0.0  ;;  %v4844_v42 = vadd.f32 %v8556_v25, %v4805_v2  ;;  %v4810_v43 = vmul.f32 %v8546_v1, %v4771_v12  ;;  %v4298_v0 = vadd.f32 %v5961_v17, %v3568_v40  ;;  %v5998_v21 = vpop.f32.mrf.mxu0  ;;  %v8982_v40 = vld [vmem:[#allocation16_spill] sm:$0xff]  ;;  %v8984_v2 = vld [vmem:[#allocation19_spill] sm:$0xff] }
 0x1fb   : > { %v4769_v52 = vadd.f32 %v4666_v19, %v4295_v47  ;;  %v4195_v56 = vpop.f32.mrf.mxu1  ;;  %v3572_v19 = vadd.f32 %v8462_v35, %v3209_v15  ;;  %v3570_v53 = vadd.f32 %v8466_v36, %v3207_v33  ;;  %v3213_v35 = vadd.f32 %v8983_v44, %v8982_v40  ;;  %v8997_v40 = vld [vmem:[#allocation3_spill] sm:$0xff]  ;;  %v8998_v44 = vld [vmem:[#allocation30_spill] sm:$0xff] }
 0x1fc   : > { %4911 = vst.msk [vmem:[%s8572_s21 + $0x38] sm:$0xff] %vm4903_vm7, %v4878_v54  ;;  %v4876_v30 = vmax.f32 %v4844_v42, 0.0  ;;  %v4849_v10 = vadd.f32 %v8556_v25, %v4810_v43  ;;  %v4772_v9 = vadd.f32 %v5995_v7, %v4298_v0  ;;  %v4296_v27 = vadd.f32 %v4195_v56, %v3566_v51  ;;  %v4682_v48 = vpop.f32.mrf.mxu0  ;;  %v8981_v7 = vld [vmem:[#allocation17_spill] sm:$0xff]  ;;  %v8988_v56 = vld [vmem:[#allocation15_spill] sm:$0xff] }
 0x1fd   : > { %v4808_v16 = vmul.f32 %v8546_v1, %v4769_v52  ;;  %v5964_v5 = vpop.f32.mrf.mxu1  ;;  %v3575_v58 = vadd.f32 %v8981_v7, %v3212_v6  ;;  %v3573_v12 = vadd.f32 %v8984_v2, %v3210_v38  ;;  %v8985_v43 = vld [vmem:[#allocation21_spill] sm:$0xff]  ;;  %v8996_v7 = vld [vmem:[#allocation23_spill] sm:$0xff] }
 0x1fe   : > { %4909 = vst.msk [vmem:[%s8572_s21 + $0x28] sm:$0xff] %vm4903_vm7, %v4876_v30  ;;  %v4881_v50 = vmax.f32 %v4849_v10, 0.0  ;;  %v4811_v26 = vmul.f32 %v8546_v1, %v4772_v9  ;;  %v4770_v57 = vadd.f32 %v4669_v11, %v4296_v27  ;;  %v4301_v45 = vadd.f32 %v5964_v5, %v3571_v32  ;;  %v5999_v28 = vpop.f32.mrf.mxu0  ;;  %v8987_v32 = vld [vmem:[#allocation5_spill] sm:$0xff]  ;;  %v8989_v30 = vld [vmem:[#allocation24_spill] sm:$0xff]  ;;  %v8990_v5 = vld [vmem:[#allocation18_spill] sm:$0xff] }
 0x1ff   : > { %v4847_v4 = vadd.f32 %v8556_v25, %v4808_v16  ;;  %v4208_v59 = vpop.f32.mrf.mxu1  ;;  %v3576_v0 = vadd.f32 %v8985_v43, %v3213_v35  ;;  %v3216_v10 = vadd.f32 %v8989_v30, %v8988_v56  ;;  %v3215_v35 = vadd.f32 %v8998_v44, %v8997_v40  ;;  %v8999_v2 = vld [vmem:[#allocation25_spill] sm:$0xff]  ;;  %v9000_v43 = vld [vmem:[#allocation27_spill] sm:$0xff]  ;;  %v9003_v56 = vld [vmem:[#allocation4_spill] sm:$0xff] }
 0x200   : > { %4914 = vst.msk [vmem:[%s8572_s21 + $0x50] sm:$0xff] %vm4903_vm7, %v4881_v50  ;;  %v4850_v63 = vadd.f32 %v8556_v25, %v4811_v26  ;;  %v4809_v62 = vmul.f32 %v8546_v1, %v4770_v57  ;;  %v4775_v39 = vadd.f32 %v5998_v21, %v4301_v45  ;;  %v4299_v60 = vadd.f32 %v4208_v59, %v3569_v29  ;;  %v4685_v24 = vpop.f32.mrf.mxu0  ;;  %v8986_v21 = vld [vmem:[#allocation13_spill] sm:$0xff]  ;;  %v8991_v50 = vld [vmem:[#allocation26_spill] sm:$0xff]  ;;  %v9013_v44 = vld [vmem:[#allocation40_spill] sm:$0xff] }
 0x201   : > { %v4879_v23 = vmax.f32 %v4847_v4, 0.0  ;;  %v5965_v14 = vpop.f32.mrf.mxu1  ;;  %v3211_v52 = vadd.f32 %v8987_v32, %v8986_v21  ;;  %v3214_v26 = vadd.f32 %v8991_v50, %v8990_v5  ;;  %v9001_v21 = vld [vmem:[#allocation12_spill] sm:$0xff]  ;;  %v9004_v30 = vld [vmem:[#allocation34_spill] sm:$0xff] }
 0x202   : > { %v4882_v61 = vmax.f32 %v4850_v63, 0.0  ;;  %v4848_v3 = vadd.f32 %v8556_v25, %v4809_v62  ;;  %v4814_v20 = vmul.f32 %v8546_v1, %v4775_v39  ;;  %v4773_v31 = vadd.f32 %v4682_v48, %v4299_v60  ;;  %v8992_v62 = vld [vmem:[#allocation22_spill] sm:$0xff]  ;;  %v8993_v60 = vld [vmem:[#allocation9_spill] sm:$0xff]  ;;  %v9002_v32 = vld [vmem:[#allocation32_spill] sm:$0xff] }
 0x203   : > { %v6002_v34 = vpop.f32.mrf.mxu0  ;;  %4912 = vst.msk [vmem:[%s8572_s21 + $0x40] sm:$0xff] %vm4903_vm7, %v4879_v23  ;;  %v4302_v36 = vadd.f32 %v5965_v14, %v3572_v19  ;;  %v4211_v49 = vpop.f32.mrf.mxu1  ;;  %v3574_v39 = vadd.f32 %v8992_v62, %v3211_v52  ;;  %v8994_v19 = vld [vmem:[#allocation20_spill] sm:$0xff]  ;;  %v3220_v52 = vadd.f32 %v9002_v32, %v9001_v21  ;;  %v9005_v5 = vld [vmem:[#allocation6_spill] sm:$0xff]  ;;  %v9007_v62 = vld [vmem:[#allocation29_spill] sm:$0xff] }
 0x204   : > { %4915 = vst.msk [vmem:[%s8572_s21 + $0x58] sm:$0xff] %vm4903_vm7, %v4882_v61  ;;  %v4880_v8 = vmax.f32 %v4848_v3, 0.0  ;;  %v4853_v22 = vadd.f32 %v8556_v25, %v4814_v20  ;;  %v4812_v41 = vmul.f32 %v8546_v1, %v4773_v31  ;;  %v4300_v37 = vadd.f32 %v4211_v49, %v3570_v53  ;;  %v8995_v53 = vld [vmem:[#allocation28_spill] sm:$0xff]  ;;  %v9012_v40 = vld [vmem:[#allocation10_spill] sm:$0xff]  ;;  %v9016_v21 = vld [vmem:[#allocation11_spill] sm:$0xff] }
 0x205   : > { %v4698_v13 = vpop.f32.mrf.mxu0  ;;  %v4776_v11 = vadd.f32 %v5999_v28, %v4302_v36  ;;  %v5968_v51 = vpop.f32.mrf.mxu1  ;;  %v3217_v38 = vadd.f32 %v8995_v53, %v8994_v19  ;;  %v9006_v50 = vld [vmem:[#allocation36_spill] sm:$0xff]  ;;  %v9010_v53 = vld [vmem:[#allocation38_spill] sm:$0xff]  ;;  %v3222_v32 = vadd.f32 %v8528_v55, %v9016_v21 }
 0x206   : > { %4913 = vst.msk [vmem:[%s8572_s21 + $0x48] sm:$0xff] %vm4903_vm7, %v4880_v8  ;;  %v4885_v46 = vmax.f32 %v4853_v22, 0.0  ;;  %v4851_v47 = vadd.f32 %v8556_v25, %v4812_v41  ;;  %v4774_v17 = vadd.f32 %v4685_v24, %v4300_v37  ;;  %v4305_v54 = vadd.f32 %v5968_v51, %v3575_v58  ;;  %v9009_v19 = vld [vmem:[#allocation8_spill] sm:$0xff] }
 0x207   : > { %v6003_v42 = vpop.f32.mrf.mxu0  ;;  %v4815_v9 = vmul.f32 %v8546_v1, %v4776_v11  ;;  %v4224_v27 = vpop.f32.mrf.mxu1  ;;  %v3579_v24 = vadd.f32 %v8993_v60, %v3216_v10  ;;  %v3577_v58 = vadd.f32 %v8996_v7, %v3214_v26  ;;  %v3218_v10 = vadd.f32 %v9004_v30, %v9003_v56  ;;  %v9008_v60 = vld [vmem:[#allocation31_spill] sm:$0xff]  ;;  %v9011_v7 = vld [vmem:[#allocation33_spill] sm:$0xff] }
 0x208   : > { %4918 = vst.msk [vmem:[%s8572_s21 + $0x70] sm:$0xff] %vm4903_vm7, %v4885_v46  ;;  %v4883_v48 = vmax.f32 %v4851_v47, 0.0  ;;  %v4813_v29 = vmul.f32 %v8546_v1, %v4774_v17  ;;  %v4779_v15 = vadd.f32 %v6002_v34, %v4305_v54  ;;  %v4303_v33 = vadd.f32 %v4224_v27, %v3573_v12 }
 0x209   : > { %v4701_v16 = vpop.f32.mrf.mxu0  ;;  %v4854_v57 = vadd.f32 %v8556_v25, %v4815_v9  ;;  %v5969_v45 = vpop.f32.mrf.mxu1  ;;  %v3580_v12 = vadd.f32 %v8999_v2, %v3217_v38  ;;  %v3221_v26 = vadd.f32 %v9006_v50, %v9005_v5  ;;  %v3219_v38 = vadd.f32 %v9010_v53, %v9009_v19  ;;  %v9014_v2 = vld [vmem:[#allocation35_spill] sm:$0xff]  ;;  %v9022_v53 = vld [vmem:[#allocation42_spill] sm:$0xff] }
 0x20a   : > { %4916 = vst.msk [vmem:[%s8572_s21 + $0x60] sm:$0xff] %vm4903_vm7, %v4883_v48  ;;  %v4852_v28 = vadd.f32 %v8556_v25, %v4813_v29  ;;  %v4818_v6 = vmul.f32 %v8546_v1, %v4779_v15  ;;  %v4777_v4 = vadd.f32 %v4698_v13, %v4303_v33  ;;  %v4306_v59 = vadd.f32 %v5969_v45, %v3576_v0 }
 0x20b   : > { %v6006_v63 = vpop.f32.mrf.mxu0  ;;  %v4886_v23 = vmax.f32 %v4854_v57, 0.0  ;;  %v4227_v14 = vpop.f32.mrf.mxu1  ;;  %v3578_v0 = vadd.f32 %v9000_v43, %v3215_v35  ;;  %v3224_v35 = vadd.f32 %v9013_v44, %v9012_v40  ;;  %v9015_v43 = vld [vmem:[#allocation37_spill] sm:$0xff] }
 0x20c   : > { %v4884_v61 = vmax.f32 %v4852_v28, 0.0  ;;  %v4857_v3 = vadd.f32 %v8556_v25, %v4818_v6  ;;  %v4816_v20 = vmul.f32 %v8546_v1, %v4777_v4  ;;  %v4780_v31 = vadd.f32 %v6003_v42, %v4306_v59 }
 0x20d   : > { %v4714_v34 = vpop.f32.mrf.mxu0  ;;  %4919 = vst.msk [vmem:[%s8572_s21 + $0x78] sm:$0xff] %vm4903_vm7, %v4886_v23  ;;  %v4304_v36 = vadd.f32 %v4227_v14, %v3574_v39  ;;  %v5972_v49 = vpop.f32.mrf.mxu1  ;;  %v3583_v39 = vadd.f32 %v9007_v62, %v3220_v52  ;;  %v9017_v52 = vld [vmem:[#allocation2_spill] sm:$0xff] }
 0x20e   : > { %4917 = vst.msk [vmem:[%s8572_s21 + $0x68] sm:$0xff] %vm4903_vm7, %v4884_v61  ;;  %v4889_v8 = vmax.f32 %v4857_v3, 0.0  ;;  %v4855_v22 = vadd.f32 %v8556_v25, %v4816_v20  ;;  %v4819_v41 = vmul.f32 %v8546_v1, %v4780_v31  ;;  %v4309_v37 = vadd.f32 %v5972_v49, %v3579_v24 }
 0x20f   : > { %v6007_v13 = vpop.f32.mrf.mxu0  ;;  %v4778_v11 = vadd.f32 %v4701_v16, %v4304_v36  ;;  %v4240_v51 = vpop.f32.mrf.mxu1  ;;  %v3581_v24 = vadd.f32 %v9008_v60, %v3218_v10  ;;  %v3225_v56 = vadd.f32 %v8533_v18, %v9017_v52 }
 0x210   : > { %4922 = vst.msk [vmem:[%s8572_s21 + $0x90] sm:$0xff] %vm4903_vm7, %v4889_v8  ;;  %v4887_v46 = vmax.f32 %v4855_v22, 0.0  ;;  %v4858_v47 = vadd.f32 %v8556_v25, %v4819_v41  ;;  %v4783_v17 = vadd.f32 %v6006_v63, %v4309_v37  ;;  %v4307_v54 = vadd.f32 %v4240_v51, %v3577_v58 }
 0x211   : > { %v4717_v42 = vpop.f32.mrf.mxu0  ;;  %v4817_v9 = vmul.f32 %v8546_v1, %v4778_v11  ;;  %v5973_v27 = vpop.f32.mrf.mxu1  ;;  %v3584_v58 = vadd.f32 %v9011_v7, %v3221_v26 }
 0x212   : > { %4920 = vst.msk [vmem:[%s8572_s21 + $0x80] sm:$0xff] %vm4903_vm7, %v4887_v46  ;;  %v4890_v48 = vmax.f32 %v4858_v47, 0.0  ;;  %v4822_v29 = vmul.f32 %v8546_v1, %v4783_v17  ;;  %v4781_v15 = vadd.f32 %v4714_v34, %v4307_v54  ;;  %v4310_v33 = vadd.f32 %v5973_v27, %v3580_v12 }
 0x213   : > { %v6010_v16 = vpop.f32.mrf.mxu0  ;;  %v4856_v57 = vadd.f32 %v8556_v25, %v4817_v9  ;;  %v4243_v45 = vpop.f32.mrf.mxu1  ;;  %v3582_v12 = vadd.f32 %v9014_v2, %v3219_v38 }
 0x214   : > { %4923 = vst.msk [vmem:[%s8572_s21 + $0x98] sm:$0xff] %vm4903_vm7, %v4890_v48  ;;  %v4861_v28 = vadd.f32 %v8556_v25, %v4822_v29  ;;  %v4820_v6 = vmul.f32 %v8546_v1, %v4781_v15  ;;  %v4784_v4 = vadd.f32 %v6007_v13, %v4310_v33  ;;  %v4308_v59 = vadd.f32 %v4243_v45, %v3578_v0  ;;  %v9018_v15 = vld [vmem:[#allocation14_spill] sm:$0xff]  ;;  %v9019_v33 = vld [vmem:[#allocation43_spill] sm:$0xff] }
 0x215   : > { %v4730_v63 = vpop.f32.mrf.mxu0  ;;  %v4888_v23 = vmax.f32 %v4856_v57, 0.0  ;;  %v5976_v14 = vpop.f32.mrf.mxu1  ;;  %v3587_v0 = vadd.f32 %v9015_v43, %v3224_v35 }
 0x216   : > { %v4893_v61 = vmax.f32 %v4861_v28, 0.0  ;;  %v4859_v3 = vadd.f32 %v8556_v25, %v4820_v6  ;;  %v4823_v20 = vmul.f32 %v8546_v1, %v4784_v4  ;;  %v4782_v31 = vadd.f32 %v4717_v42, %v4308_v59  ;;  %v9020_v28 = vld [vmem:[#allocation39_spill] sm:$0xff]  ;;  %v9021_v4 = vld [vmem:[#allocation41_spill] sm:$0xff] }
 0x217   : > { %v6011_v34 = vpop.f32.mrf.mxu0  ;;  %4921 = vst.msk [vmem:[%s8572_s21 + $0x88] sm:$0xff] %vm4903_vm7, %v4888_v23  ;;  %v4313_v36 = vadd.f32 %v5976_v14, %v3583_v39  ;;  %v4256_v49 = vpop.f32.mrf.mxu1  ;;  %v3585_v6 = vadd.f32 %v9020_v28, %v3222_v32  ;;  %v3588_v59 = vadd.f32 %v9021_v4, %v3225_v56 }
 0x218   : > { %4926 = vst.msk [vmem:[%s8572_s21 + $0xb0] sm:$0xff] %vm4903_vm7, %v4893_v61  ;;  %v4891_v8 = vmax.f32 %v4859_v3, 0.0  ;;  %v4862_v22 = vadd.f32 %v8556_v25, %v4823_v20  ;;  %v4821_v41 = vmul.f32 %v8546_v1, %v4782_v31  ;;  %v4311_v37 = vadd.f32 %v4256_v49, %v3581_v24 }
 0x219   : > { %v4733_v13 = vpop.f32.mrf.mxu0  ;;  %v4787_v11 = vadd.f32 %v6010_v16, %v4313_v36  ;;  %v5977_v51 = vpop.f32.mrf.mxu1  ;;  %v3223_v16 = vadd.f32 %v9019_v33, %v9018_v15 }
 0x21a   : > { %4924 = vst.msk [vmem:[%s8572_s21 + $0xa0] sm:$0xff] %vm4903_vm7, %v4891_v8  ;;  %v4894_v46 = vmax.f32 %v4862_v22, 0.0  ;;  %v4860_v47 = vadd.f32 %v8556_v25, %v4821_v41  ;;  %v4785_v17 = vadd.f32 %v4730_v63, %v4311_v37  ;;  %v4314_v54 = vadd.f32 %v5977_v51, %v3584_v58 }
 0x21b   : > { %v6014_v42 = vpop.f32.mrf.mxu0  ;;  %v4826_v30 = vmul.f32 %v8546_v1, %v4787_v11  ;;  %v4259_v10 = vpop.f32.mrf.mxu1  ;;  %v3586_v38 = vadd.f32 %v9022_v53, %v3223_v16 }
 0x21c   : > { %4927 = vst.msk [vmem:[%s8572_s21 + $0xb8] sm:$0xff] %vm4903_vm7, %v4894_v46  ;;  %v4892_v9 = vmax.f32 %v4860_v47, 0.0  ;;  %v4824_v27 = vmul.f32 %v8546_v1, %v4785_v17  ;;  %v4788_v48 = vadd.f32 %v6011_v34, %v4314_v54  ;;  %v4312_v29 = vadd.f32 %v4259_v10, %v3582_v12 }
 0x21d   : > { %v4865_v5 = vadd.f32 %v8556_v25, %v4826_v30  ;;  %v5980_v50 = vpop.f32.mrf.mxu1  ;;  %v4746_v55 = vpop.f32.mrf.mxu0 }
 0x21e   : > { %4925 = vst.msk [vmem:[%s8572_s21 + $0xa8] sm:$0xff] %vm4903_vm7, %v4892_v9  ;;  %v4863_v18 = vadd.f32 %v8556_v25, %v4824_v27  ;;  %v4827_v26 = vmul.f32 %v8546_v1, %v4788_v48  ;;  %v4786_v57 = vadd.f32 %v4733_v13, %v4312_v29  ;;  %v4317_v45 = vadd.f32 %v5980_v50, %v3587_v0 }
 0x21f   : > { %v4897_v63 = vmax.f32 %v4865_v5, 0.0  ;;  %v4272_v62 = vpop.f32.mrf.mxu1  ;;  %v6015_v61 = vpop.f32.mrf.mxu0 }
 0x220   : > { %v4895_v39 = vmax.f32 %v4863_v18, 0.0  ;;  %v4866_v60 = vadd.f32 %v8556_v25, %v4827_v26  ;;  %v4825_v24 = vmul.f32 %v8546_v1, %v4786_v57  ;;  %v4791_v19 = vadd.f32 %v6014_v42, %v4317_v45 }
 0x221   : > { %4930 = vst.msk [vmem:[%s8572_s21 + $0xd0] sm:$0xff] %vm4903_vm7, %v4897_v63  ;;  %v4315_v23 = vadd.f32 %v4272_v62, %v3585_v6  ;;  %v5981_v14 = vpop.f32.mrf.mxu1  ;;  %v4749_v8 = vpop.f32.mrf.mxu0 }
 0x222   : > { %4928 = vst.msk [vmem:[%s8572_s21 + $0xc0] sm:$0xff] %vm4903_vm7, %v4895_v39  ;;  %v4898_v3 = vmax.f32 %v4866_v60, 0.0  ;;  %v4864_v20 = vadd.f32 %v8556_v25, %v4825_v24  ;;  %v4830_v31 = vmul.f32 %v8546_v1, %v4791_v19  ;;  %v4318_v34 = vadd.f32 %v5981_v14, %v3588_v59 }
 0x223   : > { %v4789_v7 = vadd.f32 %v4746_v55, %v4315_v23  ;;  %v4275_v58 = vpop.f32.mrf.mxu1 }
 0x224   : > { %4931 = vst.msk [vmem:[%s8572_s21 + $0xd8] sm:$0xff] %vm4903_vm7, %v4898_v3  ;;  %v4896_v40 = vmax.f32 %v4864_v20, 0.0  ;;  %v4869_v44 = vadd.f32 %v8556_v25, %v4830_v31  ;;  %v4792_v35 = vadd.f32 %v6015_v61, %v4318_v34  ;;  %v4316_v36 = vadd.f32 %v4275_v58, %v3586_v38 }
 0x225   : > { %v4828_v49 = vmul.f32 %v8546_v1, %v4789_v7 }
 0x226   : > { %4929 = vst.msk [vmem:[%s8572_s21 + $0xc8] sm:$0xff] %vm4903_vm7, %v4896_v40  ;;  %v4901_v22 = vmax.f32 %v4869_v44, 0.0  ;;  %v4831_v41 = vmul.f32 %v8546_v1, %v4792_v35  ;;  %v4790_v37 = vadd.f32 %v4749_v8, %v4316_v36 }
 0x227   : > { %v4867_v13 = vadd.f32 %v8556_v25, %v4828_v49 }
 0x228   : > { %4934 = vst.msk [vmem:[%s8572_s21 + $0xf0] sm:$0xff] %vm4903_vm7, %v4901_v22  ;;  %v4870_v2 = vadd.f32 %v8556_v25, %v4831_v41  ;;  %v4829_v12 = vmul.f32 %v8546_v1, %v4790_v37 }
 0x229   : > { %v4899_v11 = vmax.f32 %v4867_v13, 0.0 }
 0x22a   : > { %v4902_v51 = vmax.f32 %v4870_v2, 0.0  ;;  %v4868_v46 = vadd.f32 %v8556_v25, %v4829_v12 }
 0x22b   : > { %4932 = vst.msk [vmem:[%s8572_s21 + $0xe0] sm:$0xff] %vm4903_vm7, %v4899_v11 }
 0x22c   : > { %4935 = vst.msk [vmem:[%s8572_s21 + $0xf8] sm:$0xff] %vm4903_vm7, %v4902_v51  ;;  %v4900_v47 = vmax.f32 %v4868_v46, 0.0 }
 0x22e   : > { %4933 = vst.msk [vmem:[%s8572_s21 + $0xe8] sm:$0xff] %vm4903_vm7, %v4900_v47 }
 0x22f PF: > { %s14_s15 = sadd.s32 1, %s6095_s15  }
 0x230   : > { %p11_p4 = scmp.ge.s32.totalorder %s14_s15, 4  }
 0x232   :  { %13 = sbr.rel (!%p11_p4) target bundleno = 1 (0x1), region = 76 }

</bundles_post_ra>
